<compile_context>
chip_gen: v6e
topology: v6e:2x2x1
jax: 0.10.0
libtpu: 0.0.40
codegen_flags: <defaults>
</compile_context>

<pallas_src>
import functools

import jax
import jax.numpy as jnp
from jax import lax
from jax.experimental import pallas as pl
from jax.experimental.pallas import tpu as pltpu

NEG_SLOPE = 0.01


def _ffu_kernel(x_ref, w1, b1, w2, b2, w3, b3, w4, b4, w5, b5,
                o_ref, pad_ref, *, neg_slope):
    """FeatureForwardUnit forward for one batch block (packed layout).

    x_ref  : (TB, H, G, L)        packed activations, L = PACK*C = 128 lanes
    w*     : (9, L, L)            per-tap packed im2col weights (BN folded)
    b*     : (1, L)               packed biases
    o_ref  : (TB*H*G, L)          lane-dense output slab
    pad_ref: (TB, H+2, GP, L)     zero-halo scratch, GP = roundup(G+2, 8)
    """
    TB, H, G, L = x_ref.shape
    GP = pad_ref.shape[2]
    M = TB * H * G

    def leaky(v):
        return jnp.where(v > 0, v, neg_slope * v)

    # Zero only the halo frame (top/bottom rows, left/right group columns);
    # the interior is fully rewritten by every layer.  Done every grid step so
    # it stays correct with "parallel" semantics / per-core scratch.
    zrow = jnp.zeros((TB, 1, GP, L), jnp.float32)
    pad_ref[:, 0:1, :, :] = zrow
    pad_ref[:, H + 1:H + 2, :, :] = zrow
    zcol = jnp.zeros((TB, H, 1, L), jnp.float32)
    pad_ref[:, 1:H + 1, 0:1, :] = zcol
    pad_ref[:, 1:H + 1, G + 1:G + 2, :] = zcol

    pad_ref[:, 1:H + 1, 1:G + 1, :] = x_ref[...]

    def conv3x3(w_ref, b_ref, act):
        # 9 accumulated dots over the shifted views -- no im2col buffer.
        acc = None
        for idx in range(9):
            ky, s = divmod(idx, 3)
            v = pad_ref[:, ky:ky + H, s:s + G, :].reshape(M, L)
            d = jnp.dot(v.astype(w_ref.dtype), w_ref[idx],
                        preferred_element_type=jnp.float32)
            acc = d if acc is None else acc + d
        y = acc + b_ref[...]                                    # (M, L)
        return leaky(y) if act else y

    # conv1..conv4: conv + folded BN + LeakyReLU, each feeding the scratch.
    for w_ref, b_ref in ((w1, b1), (w2, b2), (w3, b3), (w4, b4)):
        y = conv3x3(w_ref, b_ref, True)
        pad_ref[:, 1:H + 1, 1:G + 1, :] = y.reshape(TB, H, G, L)

    out6 = conv3x3(w5, b5, False)                 # conv6 (no BN / no act)
    res = out6 + x_ref[...].reshape(M, L)         # residual
    o_ref[...] = leaky(res).astype(o_ref.dtype)   # lane-dense store


def _pack_weight(w_hwio, pack):
    """(3,3,C,C) HWIO conv weight -> (9, pack*C, pack*C) per-tap im2col weight
    stack for the layout packing `pack` consecutive W positions into lanes.
    Tap index = 3*ky + s, where s is the group-axis shift of the view."""
    C = w_hwio.shape[-1]
    w_big = jnp.zeros((3, 3, pack, C, pack, C), w_hwio.dtype)
    for s in range(3):              # horizontal (group) shift of the view
        for p in range(pack):       # input position inside its group
            for q in range(pack):   # output position inside its group
                kx = pack * (s - 1) + p - q + 1
                if 0 <= kx < 3:
                    w_big = w_big.at[:, s, p, :, q, :].set(w_hwio[:, kx])
    return w_big.reshape(9, pack * C, pack * C)


def feature_forward_unit(x, params, neg_slope=NEG_SLOPE, batch_block=8,
                         matmul_dtype=jnp.float32):
    """x is NCHW (PyTorch). 5-D inputs are flattened like the torch module."""
    flag = False
    if x.ndim == 5:
        N5, H5, W5 = x.shape[0], x.shape[2], x.shape[3]
        x = x.reshape(N5, -1, H5, W5)
        flag = True

    N, Cin, H, W = x.shape
    ws, bs = params                    # HWIO (3,3,C,C) weights, (1,C) biases
    C = ws[0].shape[-1]

    # Pack spatial W-positions into the lane axis so L = pack*C fills a vreg
    # (C = 32 -> pack = 4 -> L = 128 lanes).
    pack = 1
    for cand in (4, 2, 1):
        if W % cand == 0 and cand * C <= 128:
            pack = cand
            break
    L, G = pack * C, W // pack
    GP = ((G + 2 + 7) // 8) * 8        # scratch group axis, 8-sublane aligned

    # >= 2 grid steps whenever N >= 2 so the "parallel" batch axis shards
    # across v7x's two TensorCores and the pipeline has work to overlap.
    TB = max(1, min(batch_block, pl.cdiv(N, 2)))
    n_blocks = pl.cdiv(N, TB)
    Npad = n_blocks * TB
    M = TB * H * G
    # TODO(synk): for large H*W (e.g. 320x320) add an H grid axis with a 1-row
    # halo and re-derive per-generation tile/VMEM budgets (v7x has 64 MiB);
    # whole-plane blocks are fine at the small sizes exercised here.

    # NCHW -> packed (N, H, G, L); zero-pad channels to C and batch to Npad.
    x_nhwc = jnp.transpose(x, (0, 2, 3, 1)).astype(jnp.float32)
    x_nhwc = jnp.pad(x_nhwc, ((0, Npad - N), (0, 0), (0, 0), (0, C - Cin)))
    x_pack = x_nhwc.reshape(Npad, H, G, L)

    # TODO(synk): matmul_dtype=jnp.bfloat16 gives ~2-3x MXU rate and halves
    # weight/patch bytes, but exceeds the 1e-4 reference tolerance; kept f32.
    w_pack = [_pack_weight(w, pack).astype(matmul_dtype) for w in ws]
    b_pack = [jnp.tile(b, (1, pack)).astype(jnp.float32) for b in bs]

    kernel = functools.partial(_ffu_kernel, neg_slope=neg_slope)
    x_spec = pl.BlockSpec((TB, H, G, L), lambda n: (n, 0, 0, 0))
    # TODO(synk): weights/biases have constant index maps; single-buffer them
    # (pipeline_mode=pl.Buffered(1)) for VMEM headroom once tiles grow.
    w_spec = pl.BlockSpec((9, L, L), lambda n: (0, 0, 0))
    v_spec = pl.BlockSpec((1, L), lambda n: (0, 0))
    o_spec = pl.BlockSpec((M, L), lambda n: (n, 0))

    in_specs, args = [x_spec], [x_pack]
    for wp, bp in zip(w_pack, b_pack):
        in_specs += [w_spec, v_spec]
        args += [wp, bp]

    out = pl.pallas_call(
        kernel,
        out_shape=jax.ShapeDtypeStruct((Npad * H * G, L), jnp.float32),
        grid_spec=pltpu.PrefetchScalarGridSpec(
            num_scalar_prefetch=0,
            grid=(n_blocks,),
            in_specs=in_specs,
            out_specs=o_spec,
            scratch_shapes=[pltpu.VMEM((TB, H + 2, GP, L), jnp.float32)]),
        compiler_params=pltpu.CompilerParams(
            dimension_semantics=("parallel",),      # v7x: shard batch on 2 TCs
            vmem_limit_bytes=32 * 1024 * 1024),     # headroom over v5e default
    )(*args)

    # Lane-dense slab -> NCHW; drop channel padding and batch padding.
    # (Consumers that accept NHWC could skip this XLA transpose entirely.)
    out = jnp.transpose(out.reshape(Npad, H, W, C), (0, 3, 1, 2))[:N, :Cin]
    if flag:
        out = out.reshape(N, -1, H, W, 2)
    return out


def init_params(key, indim=2, middim=32, eps=1e-5):
    """Deterministic synthetic parameters with eval-mode BatchNorm folded into
    the conv weights/biases.
    # TODO(synk): training-mode BatchNorm (batch statistics) would require a
    # cross-batch reduction pass and is not implemented here.
    Returns HWIO weights (3,3,C,C) and biases (1,C), zero-padded to C=middim.
    """
    C = middim
    dims = [(indim, middim), (middim, middim), (middim, middim),
            (middim, middim), (middim, indim)]
    ws, bs = [], []
    for i, (cin, cout) in enumerate(dims):
        key, k1, k2, k3, k4, k5, k6 = jax.random.split(key, 7)
        w = jax.random.normal(k1, (cout, cin, 3, 3), jnp.float32) * 0.1
        b = jax.random.normal(k2, (cout,), jnp.float32) * 0.1
        w_t = jnp.transpose(w, (2, 3, 1, 0))              # OIHW -> HWIO
        if i < 4:  # layers with BatchNorm
            gamma = 1.0 + 0.1 * jax.random.normal(k3, (cout,), jnp.float32)
            beta = 0.1 * jax.random.normal(k4, (cout,), jnp.float32)
            mean = 0.1 * jax.random.normal(k5, (cout,), jnp.float32)
            var = jnp.abs(jax.random.normal(k6, (cout,), jnp.float32)) + 0.5
            a = gamma / jnp.sqrt(var + eps)
            w_t = w_t * a                                  # scale along cout
            b = a * (b - mean) + beta
        w_full = jnp.zeros((3, 3, C, C), jnp.float32).at[:, :, :cin, :cout].set(w_t)
        b_full = jnp.zeros((1, C), jnp.float32).at[0, :cout].set(b)
        ws.append(w_full)
        bs.append(b_full)
    return ws, bs


def _reference(x, params, neg_slope=NEG_SLOPE):
    """Pure-JAX reference (lax.conv) using the same folded parameters."""
    ws, bs = params
    C = ws[0].shape[-1]
    N, Cin, H, W = x.shape
    h = jnp.pad(jnp.transpose(x, (0, 2, 3, 1)).astype(jnp.float32),
                ((0, 0), (0, 0), (0, 0), (0, C - Cin)))
    x0 = h
    for i, (w, b) in enumerate(zip(ws, bs)):
        h = lax.conv_general_dilated(
            h, w, (1, 1), "SAME",
            dimension_numbers=("NHWC", "HWIO", "NHWC")) + b[0]
        if i < 4:
            h = jnp.where(h > 0, h, neg_slope * h)
    h = h + x0
    h = jnp.where(h > 0, h, neg_slope * h)
    return jnp.transpose(h[..., :Cin], (0, 3, 1, 2))


if __name__ == "__main__":
    key = jax.random.PRNGKey(0)
    kx, kp = jax.random.split(key)

    N, Cin, H, W = 2, 2, 16, 16                            # indim=2, middim=32
    x = jax.random.normal(kx, (N, Cin, H, W), jnp.float32)
    params = init_params(kp, indim=Cin, middim=32)

    out = feature_forward_unit(x, params)
    out = jax.block_until_ready(out)

    ref = _reference(x, params)
    assert out.shape == (N, Cin, H, W), out.shape
    assert jnp.allclose(out, ref, atol=1e-4, rtol=1e-4), \
        float(jnp.max(jnp.abs(out - ref)))
    print("KERNEL_OK")
</pallas_src>

<mosaic_0001>
module attributes {stable_mosaic.version = 11 : i64} {
  func.func @_ffu_kernel(%arg0: i32, %arg1: memref<1x16x4x128xf32, #tpu.memory_space<vmem>>, %arg2: memref<9x128x128xf32, #tpu.memory_space<vmem>>, %arg3: memref<1x128xf32, #tpu.memory_space<vmem>>, %arg4: memref<9x128x128xf32, #tpu.memory_space<vmem>>, %arg5: memref<1x128xf32, #tpu.memory_space<vmem>>, %arg6: memref<9x128x128xf32, #tpu.memory_space<vmem>>, %arg7: memref<1x128xf32, #tpu.memory_space<vmem>>, %arg8: memref<9x128x128xf32, #tpu.memory_space<vmem>>, %arg9: memref<1x128xf32, #tpu.memory_space<vmem>>, %arg10: memref<9x128x128xf32, #tpu.memory_space<vmem>>, %arg11: memref<1x128xf32, #tpu.memory_space<vmem>>, %arg12: memref<64x128xf32, #tpu.memory_space<vmem>>, %arg13: memref<1x18x8x128xf32, #tpu.memory_space<vmem>>) attributes {dimension_semantics = [#tpu.dimension_semantics<parallel>], iteration_bounds = array<i64: 2>, scalar_prefetch = 0 : i64, scratch_operands = 1 : i64, tpu.core_type = #tpu.core_type<tc>, window_params = [{transform_indices = @transform_0, window_bounds = array<i64: 1, 16, 4, 128>}, {pipeline_mode = #tpu.pipeline_mode<synchronous>, transform_indices = @transform_1, window_bounds = array<i64: 9, 128, 128>}, {pipeline_mode = #tpu.pipeline_mode<synchronous>, transform_indices = @transform_2, window_bounds = array<i64: 1, 128>}, {pipeline_mode = #tpu.pipeline_mode<synchronous>, transform_indices = @transform_3, window_bounds = array<i64: 9, 128, 128>}, {pipeline_mode = #tpu.pipeline_mode<synchronous>, transform_indices = @transform_4, window_bounds = array<i64: 1, 128>}, {pipeline_mode = #tpu.pipeline_mode<synchronous>, transform_indices = @transform_5, window_bounds = array<i64: 9, 128, 128>}, {pipeline_mode = #tpu.pipeline_mode<synchronous>, transform_indices = @transform_6, window_bounds = array<i64: 1, 128>}, {pipeline_mode = #tpu.pipeline_mode<synchronous>, transform_indices = @transform_7, window_bounds = array<i64: 9, 128, 128>}, {pipeline_mode = #tpu.pipeline_mode<synchronous>, transform_indices = @transform_8, window_bounds = array<i64: 1, 128>}, {pipeline_mode = #tpu.pipeline_mode<synchronous>, transform_indices = @transform_9, window_bounds = array<i64: 9, 128, 128>}, {pipeline_mode = #tpu.pipeline_mode<synchronous>, transform_indices = @transform_10, window_bounds = array<i64: 1, 128>}, {transform_indices = @transform_11, window_bounds = array<i64: 64, 128>}]} {
    %cst = arith.constant 0.000000e+00 : f32
    %0 = vector.broadcast %cst : f32 to vector<1x1x8x128xf32>
    %c0 = arith.constant 0 : index
    %c0_0 = arith.constant 0 : index
    %c0_1 = arith.constant 0 : index
    %c0_2 = arith.constant 0 : index
    %1 = vector.load %arg13[%c0, %c0_0, %c0_1, %c0_2] : memref<1x18x8x128xf32, #tpu.memory_space<vmem>>, vector<1x1x8x128xf32>
    tpu.vector_store %arg13[%c0, %c0_0, %c0_1, %c0_2], %0 {strides = array<i32>} : memref<1x18x8x128xf32, #tpu.memory_space<vmem>>, vector<1x1x8x128xf32>,
    %c0_3 = arith.constant 0 : index
    %c17 = arith.constant 17 : index
    %c0_4 = arith.constant 0 : index
    %c0_5 = arith.constant 0 : index
    %2 = vector.load %arg13[%c0_3, %c17, %c0_4, %c0_5] : memref<1x18x8x128xf32, #tpu.memory_space<vmem>>, vector<1x1x8x128xf32>
    tpu.vector_store %arg13[%c0_3, %c17, %c0_4, %c0_5], %0 {strides = array<i32>} : memref<1x18x8x128xf32, #tpu.memory_space<vmem>>, vector<1x1x8x128xf32>,
    %cst_6 = arith.constant 0.000000e+00 : f32
    %3 = vector.broadcast %cst_6 : f32 to vector<1x16x1x128xf32>
    %c0_7 = arith.constant 0 : index
    %c1 = arith.constant 1 : index
    %c0_8 = arith.constant 0 : index
    %c0_9 = arith.constant 0 : index
    %4 = vector.load %arg13[%c0_7, %c1, %c0_8, %c0_9] : memref<1x18x8x128xf32, #tpu.memory_space<vmem>>, vector<1x16x1x128xf32>
    tpu.vector_store %arg13[%c0_7, %c1, %c0_8, %c0_9], %3 {strides = array<i32>} : memref<1x18x8x128xf32, #tpu.memory_space<vmem>>, vector<1x16x1x128xf32>,
    %c0_10 = arith.constant 0 : index
    %c1_11 = arith.constant 1 : index
    %c5 = arith.constant 5 : index
    %c0_12 = arith.constant 0 : index
    %5 = vector.load %arg13[%c0_10, %c1_11, %c5, %c0_12] : memref<1x18x8x128xf32, #tpu.memory_space<vmem>>, vector<1x16x1x128xf32>
    tpu.vector_store %arg13[%c0_10, %c1_11, %c5, %c0_12], %3 {strides = array<i32>} : memref<1x18x8x128xf32, #tpu.memory_space<vmem>>, vector<1x16x1x128xf32>,
    %c0_13 = arith.constant 0 : index
    %c0_14 = arith.constant 0 : index
    %c0_15 = arith.constant 0 : index
    %c0_16 = arith.constant 0 : index
    %6 = vector.load %arg1[%c0_13, %c0_14, %c0_15, %c0_16] : memref<1x16x4x128xf32, #tpu.memory_space<vmem>>, vector<1x16x4x128xf32>
    %c0_17 = arith.constant 0 : index
    %c1_18 = arith.constant 1 : index
    %c1_19 = arith.constant 1 : index
    %c0_20 = arith.constant 0 : index
    %7 = vector.load %arg13[%c0_17, %c1_18, %c1_19, %c0_20] : memref<1x18x8x128xf32, #tpu.memory_space<vmem>>, vector<1x16x4x128xf32>
    tpu.vector_store %arg13[%c0_17, %c1_18, %c1_19, %c0_20], %6 {strides = array<i32>} : memref<1x18x8x128xf32, #tpu.memory_space<vmem>>, vector<1x16x4x128xf32>,
    %c0_21 = arith.constant 0 : index
    %c0_22 = arith.constant 0 : index
    %c0_23 = arith.constant 0 : index
    %c0_24 = arith.constant 0 : index
    %8 = vector.load %arg13[%c0_21, %c0_22, %c0_23, %c0_24] : memref<1x18x8x128xf32, #tpu.memory_space<vmem>>, vector<1x16x4x128xf32>
    %9 = vector.shape_cast %8 : vector<1x16x4x128xf32> to vector<64x128xf32>
    %c0_25 = arith.constant 0 : index
    %c0_26 = arith.constant 0 : index
    %c0_27 = arith.constant 0 : index
    %10 = vector.load %arg2[%c0_25, %c0_26, %c0_27] : memref<9x128x128xf32, #tpu.memory_space<vmem>>, vector<1x128x128xf32>
    %11 = vector.shape_cast %10 : vector<1x128x128xf32> to vector<128x128xf32>
    %cst_28 = arith.constant dense<0.000000e+00> : vector<64x128xf32>
    %12 = tpu.matmul %9, %11, %cst_28 {dimension_numbers = #tpu.dot_dimension_numbers<[1], [0], [0], [1], [0, 0, 1, 1], [], []>} : vector<64x128xf32>, vector<128x128xf32>, vector<64x128xf32> -> vector<64x128xf32>
    %c0_29 = arith.constant 0 : index
    %c0_30 = arith.constant 0 : index
    %c1_31 = arith.constant 1 : index
    %c0_32 = arith.constant 0 : index
    %13 = vector.load %arg13[%c0_29, %c0_30, %c1_31, %c0_32] : memref<1x18x8x128xf32, #tpu.memory_space<vmem>>, vector<1x16x4x128xf32>
    %14 = vector.shape_cast %13 : vector<1x16x4x128xf32> to vector<64x128xf32>
    %c1_33 = arith.constant 1 : index
    %c0_34 = arith.constant 0 : index
    %c0_35 = arith.constant 0 : index
    %15 = vector.load %arg2[%c1_33, %c0_34, %c0_35] : memref<9x128x128xf32, #tpu.memory_space<vmem>>, vector<1x128x128xf32>
    %16 = vector.shape_cast %15 : vector<1x128x128xf32> to vector<128x128xf32>
    %cst_36 = arith.constant dense<0.000000e+00> : vector<64x128xf32>
    %17 = tpu.matmul %14, %16, %cst_36 {dimension_numbers = #tpu.dot_dimension_numbers<[1], [0], [0], [1], [0, 0, 1, 1], [], []>} : vector<64x128xf32>, vector<128x128xf32>, vector<64x128xf32> -> vector<64x128xf32>
    %18 = arith.addf %12, %17 : vector<64x128xf32>
    %c0_37 = arith.constant 0 : index
    %c0_38 = arith.constant 0 : index
    %c2 = arith.constant 2 : index
    %c0_39 = arith.constant 0 : index
    %19 = vector.load %arg13[%c0_37, %c0_38, %c2, %c0_39] : memref<1x18x8x128xf32, #tpu.memory_space<vmem>>, vector<1x16x4x128xf32>
    %20 = vector.shape_cast %19 : vector<1x16x4x128xf32> to vector<64x128xf32>
    %c2_40 = arith.constant 2 : index
    %c0_41 = arith.constant 0 : index
    %c0_42 = arith.constant 0 : index
    %21 = vector.load %arg2[%c2_40, %c0_41, %c0_42] : memref<9x128x128xf32, #tpu.memory_space<vmem>>, vector<1x128x128xf32>
    %22 = vector.shape_cast %21 : vector<1x128x128xf32> to vector<128x128xf32>
    %cst_43 = arith.constant dense<0.000000e+00> : vector<64x128xf32>
    %23 = tpu.matmul %20, %22, %cst_43 {dimension_numbers = #tpu.dot_dimension_numbers<[1], [0], [0], [1], [0, 0, 1, 1], [], []>} : vector<64x128xf32>, vector<128x128xf32>, vector<64x128xf32> -> vector<64x128xf32>
    %24 = arith.addf %18, %23 : vector<64x128xf32>
    %c0_44 = arith.constant 0 : index
    %c1_45 = arith.constant 1 : index
    %c0_46 = arith.constant 0 : index
    %c0_47 = arith.constant 0 : index
    %25 = vector.load %arg13[%c0_44, %c1_45, %c0_46, %c0_47] : memref<1x18x8x128xf32, #tpu.memory_space<vmem>>, vector<1x16x4x128xf32>
    %26 = vector.shape_cast %25 : vector<1x16x4x128xf32> to vector<64x128xf32>
    %c3 = arith.constant 3 : index
    %c0_48 = arith.constant 0 : index
    %c0_49 = arith.constant 0 : index
    %27 = vector.load %arg2[%c3, %c0_48, %c0_49] : memref<9x128x128xf32, #tpu.memory_space<vmem>>, vector<1x128x128xf32>
    %28 = vector.shape_cast %27 : vector<1x128x128xf32> to vector<128x128xf32>
    %cst_50 = arith.constant dense<0.000000e+00> : vector<64x128xf32>
    %29 = tpu.matmul %26, %28, %cst_50 {dimension_numbers = #tpu.dot_dimension_numbers<[1], [0], [0], [1], [0, 0, 1, 1], [], []>} : vector<64x128xf32>, vector<128x128xf32>, vector<64x128xf32> -> vector<64x128xf32>
    %30 = arith.addf %24, %29 : vector<64x128xf32>
    %c0_51 = arith.constant 0 : index
    %c1_52 = arith.constant 1 : index
    %c1_53 = arith.constant 1 : index
    %c0_54 = arith.constant 0 : index
    %31 = vector.load %arg13[%c0_51, %c1_52, %c1_53, %c0_54] : memref<1x18x8x128xf32, #tpu.memory_space<vmem>>, vector<1x16x4x128xf32>
    %32 = vector.shape_cast %31 : vector<1x16x4x128xf32> to vector<64x128xf32>
    %c4 = arith.constant 4 : index
    %c0_55 = arith.constant 0 : index
    %c0_56 = arith.constant 0 : index
    %33 = vector.load %arg2[%c4, %c0_55, %c0_56] : memref<9x128x128xf32, #tpu.memory_space<vmem>>, vector<1x128x128xf32>
    %34 = vector.shape_cast %33 : vector<1x128x128xf32> to vector<128x128xf32>
    %cst_57 = arith.constant dense<0.000000e+00> : vector<64x128xf32>
    %35 = tpu.matmul %32, %34, %cst_57 {dimension_numbers = #tpu.dot_dimension_numbers<[1], [0], [0], [1], [0, 0, 1, 1], [], []>} : vector<64x128xf32>, vector<128x128xf32>, vector<64x128xf32> -> vector<64x128xf32>
    %36 = arith.addf %30, %35 : vector<64x128xf32>
    %c0_58 = arith.constant 0 : index
    %c1_59 = arith.constant 1 : index
    %c2_60 = arith.constant 2 : index
    %c0_61 = arith.constant 0 : index
    %37 = vector.load %arg13[%c0_58, %c1_59, %c2_60, %c0_61] : memref<1x18x8x128xf32, #tpu.memory_space<vmem>>, vector<1x16x4x128xf32>
    %38 = vector.shape_cast %37 : vector<1x16x4x128xf32> to vector<64x128xf32>
    %c5_62 = arith.constant 5 : index
    %c0_63 = arith.constant 0 : index
    %c0_64 = arith.constant 0 : index
    %39 = vector.load %arg2[%c5_62, %c0_63, %c0_64] : memref<9x128x128xf32, #tpu.memory_space<vmem>>, vector<1x128x128xf32>
    %40 = vector.shape_cast %39 : vector<1x128x128xf32> to vector<128x128xf32>
    %cst_65 = arith.constant dense<0.000000e+00> : vector<64x128xf32>
    %41 = tpu.matmul %38, %40, %cst_65 {dimension_numbers = #tpu.dot_dimension_numbers<[1], [0], [0], [1], [0, 0, 1, 1], [], []>} : vector<64x128xf32>, vector<128x128xf32>, vector<64x128xf32> -> vector<64x128xf32>
    %42 = arith.addf %36, %41 : vector<64x128xf32>
    %c0_66 = arith.constant 0 : index
    %c2_67 = arith.constant 2 : index
    %c0_68 = arith.constant 0 : index
    %c0_69 = arith.constant 0 : index
    %43 = vector.load %arg13[%c0_66, %c2_67, %c0_68, %c0_69] : memref<1x18x8x128xf32, #tpu.memory_space<vmem>>, vector<1x16x4x128xf32>
    %44 = vector.shape_cast %43 : vector<1x16x4x128xf32> to vector<64x128xf32>
    %c6 = arith.constant 6 : index
    %c0_70 = arith.constant 0 : index
    %c0_71 = arith.constant 0 : index
    %45 = vector.load %arg2[%c6, %c0_70, %c0_71] : memref<9x128x128xf32, #tpu.memory_space<vmem>>, vector<1x128x128xf32>
    %46 = vector.shape_cast %45 : vector<1x128x128xf32> to vector<128x128xf32>
    %cst_72 = arith.constant dense<0.000000e+00> : vector<64x128xf32>
    %47 = tpu.matmul %44, %46, %cst_72 {dimension_numbers = #tpu.dot_dimension_numbers<[1], [0], [0], [1], [0, 0, 1, 1], [], []>} : vector<64x128xf32>, vector<128x128xf32>, vector<64x128xf32> -> vector<64x128xf32>
    %48 = arith.addf %42, %47 : vector<64x128xf32>
    %c0_73 = arith.constant 0 : index
    %c2_74 = arith.constant 2 : index
    %c1_75 = arith.constant 1 : index
    %c0_76 = arith.constant 0 : index
    %49 = vector.load %arg13[%c0_73, %c2_74, %c1_75, %c0_76] : memref<1x18x8x128xf32, #tpu.memory_space<vmem>>, vector<1x16x4x128xf32>
    %50 = vector.shape_cast %49 : vector<1x16x4x128xf32> to vector<64x128xf32>
    %c7 = arith.constant 7 : index
    %c0_77 = arith.constant 0 : index
    %c0_78 = arith.constant 0 : index
    %51 = vector.load %arg2[%c7, %c0_77, %c0_78] : memref<9x128x128xf32, #tpu.memory_space<vmem>>, vector<1x128x128xf32>
    %52 = vector.shape_cast %51 : vector<1x128x128xf32> to vector<128x128xf32>
    %cst_79 = arith.constant dense<0.000000e+00> : vector<64x128xf32>
    %53 = tpu.matmul %50, %52, %cst_79 {dimension_numbers = #tpu.dot_dimension_numbers<[1], [0], [0], [1], [0, 0, 1, 1], [], []>} : vector<64x128xf32>, vector<128x128xf32>, vector<64x128xf32> -> vector<64x128xf32>
    %54 = arith.addf %48, %53 : vector<64x128xf32>
    %c0_80 = arith.constant 0 : index
    %c2_81 = arith.constant 2 : index
    %c2_82 = arith.constant 2 : index
    %c0_83 = arith.constant 0 : index
    %55 = vector.load %arg13[%c0_80, %c2_81, %c2_82, %c0_83] : memref<1x18x8x128xf32, #tpu.memory_space<vmem>>, vector<1x16x4x128xf32>
    %56 = vector.shape_cast %55 : vector<1x16x4x128xf32> to vector<64x128xf32>
    %c8 = arith.constant 8 : index
    %c0_84 = arith.constant 0 : index
    %c0_85 = arith.constant 0 : index
    %57 = vector.load %arg2[%c8, %c0_84, %c0_85] : memref<9x128x128xf32, #tpu.memory_space<vmem>>, vector<1x128x128xf32>
    %58 = vector.shape_cast %57 : vector<1x128x128xf32> to vector<128x128xf32>
    %cst_86 = arith.constant dense<0.000000e+00> : vector<64x128xf32>
    %59 = tpu.matmul %56, %58, %cst_86 {dimension_numbers = #tpu.dot_dimension_numbers<[1], [0], [0], [1], [0, 0, 1, 1], [], []>} : vector<64x128xf32>, vector<128x128xf32>, vector<64x128xf32> -> vector<64x128xf32>
    %60 = arith.addf %54, %59 : vector<64x128xf32>
    %c0_87 = arith.constant 0 : index
    %c0_88 = arith.constant 0 : index
    %61 = vector.load %arg3[%c0_87, %c0_88] : memref<1x128xf32, #tpu.memory_space<vmem>>, vector<1x128xf32>
    %62 = vector.broadcast %61 : vector<1x128xf32> to vector<64x128xf32>
    %63 = arith.addf %60, %62 : vector<64x128xf32>
    %cst_89 = arith.constant 0.000000e+00 : f32
    %64 = vector.broadcast %cst_89 : f32 to vector<64x128xf32>
    %65 = arith.cmpf ogt, %63, %64 : vector<64x128xf32>
    %cst_90 = arith.constant 0.00999999977 : f32
    %66 = vector.broadcast %cst_90 : f32 to vector<64x128xf32>
    %67 = arith.mulf %66, %63 : vector<64x128xf32>
    %68 = arith.select %65, %63, %67 : vector<64x128xi1>, vector<64x128xf32>
    %69 = vector.shape_cast %68 : vector<64x128xf32> to vector<1x16x4x128xf32>
    %c0_91 = arith.constant 0 : index
    %c1_92 = arith.constant 1 : index
    %c1_93 = arith.constant 1 : index
    %c0_94 = arith.constant 0 : index
    %70 = vector.load %arg13[%c0_91, %c1_92, %c1_93, %c0_94] : memref<1x18x8x128xf32, #tpu.memory_space<vmem>>, vector<1x16x4x128xf32>
    tpu.vector_store %arg13[%c0_91, %c1_92, %c1_93, %c0_94], %69 {strides = array<i32>} : memref<1x18x8x128xf32, #tpu.memory_space<vmem>>, vector<1x16x4x128xf32>,
    %c0_95 = arith.constant 0 : index
    %c0_96 = arith.constant 0 : index
    %c0_97 = arith.constant 0 : index
    %c0_98 = arith.constant 0 : index
    %71 = vector.load %arg13[%c0_95, %c0_96, %c0_97, %c0_98] : memref<1x18x8x128xf32, #tpu.memory_space<vmem>>, vector<1x16x4x128xf32>
    %72 = vector.shape_cast %71 : vector<1x16x4x128xf32> to vector<64x128xf32>
    %c0_99 = arith.constant 0 : index
    %c0_100 = arith.constant 0 : index
    %c0_101 = arith.constant 0 : index
    %73 = vector.load %arg4[%c0_99, %c0_100, %c0_101] : memref<9x128x128xf32, #tpu.memory_space<vmem>>, vector<1x128x128xf32>
    %74 = vector.shape_cast %73 : vector<1x128x128xf32> to vector<128x128xf32>
    %cst_102 = arith.constant dense<0.000000e+00> : vector<64x128xf32>
    %75 = tpu.matmul %72, %74, %cst_102 {dimension_numbers = #tpu.dot_dimension_numbers<[1], [0], [0], [1], [0, 0, 1, 1], [], []>} : vector<64x128xf32>, vector<128x128xf32>, vector<64x128xf32> -> vector<64x128xf32>
    %c0_103 = arith.constant 0 : index
    %c0_104 = arith.constant 0 : index
    %c1_105 = arith.constant 1 : index
    %c0_106 = arith.constant 0 : index
    %76 = vector.load %arg13[%c0_103, %c0_104, %c1_105, %c0_106] : memref<1x18x8x128xf32, #tpu.memory_space<vmem>>, vector<1x16x4x128xf32>
    %77 = vector.shape_cast %76 : vector<1x16x4x128xf32> to vector<64x128xf32>
    %c1_107 = arith.constant 1 : index
    %c0_108 = arith.constant 0 : index
    %c0_109 = arith.constant 0 : index
    %78 = vector.load %arg4[%c1_107, %c0_108, %c0_109] : memref<9x128x128xf32, #tpu.memory_space<vmem>>, vector<1x128x128xf32>
    %79 = vector.shape_cast %78 : vector<1x128x128xf32> to vector<128x128xf32>
    %cst_110 = arith.constant dense<0.000000e+00> : vector<64x128xf32>
    %80 = tpu.matmul %77, %79, %cst_110 {dimension_numbers = #tpu.dot_dimension_numbers<[1], [0], [0], [1], [0, 0, 1, 1], [], []>} : vector<64x128xf32>, vector<128x128xf32>, vector<64x128xf32> -> vector<64x128xf32>
    %81 = arith.addf %75, %80 : vector<64x128xf32>
    %c0_111 = arith.constant 0 : index
    %c0_112 = arith.constant 0 : index
    %c2_113 = arith.constant 2 : index
    %c0_114 = arith.constant 0 : index
    %82 = vector.load %arg13[%c0_111, %c0_112, %c2_113, %c0_114] : memref<1x18x8x128xf32, #tpu.memory_space<vmem>>, vector<1x16x4x128xf32>
    %83 = vector.shape_cast %82 : vector<1x16x4x128xf32> to vector<64x128xf32>
    %c2_115 = arith.constant 2 : index
    %c0_116 = arith.constant 0 : index
    %c0_117 = arith.constant 0 : index
    %84 = vector.load %arg4[%c2_115, %c0_116, %c0_117] : memref<9x128x128xf32, #tpu.memory_space<vmem>>, vector<1x128x128xf32>
    %85 = vector.shape_cast %84 : vector<1x128x128xf32> to vector<128x128xf32>
    %cst_118 = arith.constant dense<0.000000e+00> : vector<64x128xf32>
    %86 = tpu.matmul %83, %85, %cst_118 {dimension_numbers = #tpu.dot_dimension_numbers<[1], [0], [0], [1], [0, 0, 1, 1], [], []>} : vector<64x128xf32>, vector<128x128xf32>, vector<64x128xf32> -> vector<64x128xf32>
    %87 = arith.addf %81, %86 : vector<64x128xf32>
    %c0_119 = arith.constant 0 : index
    %c1_120 = arith.constant 1 : index
    %c0_121 = arith.constant 0 : index
    %c0_122 = arith.constant 0 : index
    %88 = vector.load %arg13[%c0_119, %c1_120, %c0_121, %c0_122] : memref<1x18x8x128xf32, #tpu.memory_space<vmem>>, vector<1x16x4x128xf32>
    %89 = vector.shape_cast %88 : vector<1x16x4x128xf32> to vector<64x128xf32>
    %c3_123 = arith.constant 3 : index
    %c0_124 = arith.constant 0 : index
    %c0_125 = arith.constant 0 : index
    %90 = vector.load %arg4[%c3_123, %c0_124, %c0_125] : memref<9x128x128xf32, #tpu.memory_space<vmem>>, vector<1x128x128xf32>
    %91 = vector.shape_cast %90 : vector<1x128x128xf32> to vector<128x128xf32>
    %cst_126 = arith.constant dense<0.000000e+00> : vector<64x128xf32>
    %92 = tpu.matmul %89, %91, %cst_126 {dimension_numbers = #tpu.dot_dimension_numbers<[1], [0], [0], [1], [0, 0, 1, 1], [], []>} : vector<64x128xf32>, vector<128x128xf32>, vector<64x128xf32> -> vector<64x128xf32>
    %93 = arith.addf %87, %92 : vector<64x128xf32>
    %c0_127 = arith.constant 0 : index
    %c1_128 = arith.constant 1 : index
    %c1_129 = arith.constant 1 : index
    %c0_130 = arith.constant 0 : index
    %94 = vector.load %arg13[%c0_127, %c1_128, %c1_129, %c0_130] : memref<1x18x8x128xf32, #tpu.memory_space<vmem>>, vector<1x16x4x128xf32>
    %95 = vector.shape_cast %94 : vector<1x16x4x128xf32> to vector<64x128xf32>
    %c4_131 = arith.constant 4 : index
    %c0_132 = arith.constant 0 : index
    %c0_133 = arith.constant 0 : index
    %96 = vector.load %arg4[%c4_131, %c0_132, %c0_133] : memref<9x128x128xf32, #tpu.memory_space<vmem>>, vector<1x128x128xf32>
    %97 = vector.shape_cast %96 : vector<1x128x128xf32> to vector<128x128xf32>
    %cst_134 = arith.constant dense<0.000000e+00> : vector<64x128xf32>
    %98 = tpu.matmul %95, %97, %cst_134 {dimension_numbers = #tpu.dot_dimension_numbers<[1], [0], [0], [1], [0, 0, 1, 1], [], []>} : vector<64x128xf32>, vector<128x128xf32>, vector<64x128xf32> -> vector<64x128xf32>
    %99 = arith.addf %93, %98 : vector<64x128xf32>
    %c0_135 = arith.constant 0 : index
    %c1_136 = arith.constant 1 : index
    %c2_137 = arith.constant 2 : index
    %c0_138 = arith.constant 0 : index
    %100 = vector.load %arg13[%c0_135, %c1_136, %c2_137, %c0_138] : memref<1x18x8x128xf32, #tpu.memory_space<vmem>>, vector<1x16x4x128xf32>
    %101 = vector.shape_cast %100 : vector<1x16x4x128xf32> to vector<64x128xf32>
    %c5_139 = arith.constant 5 : index
    %c0_140 = arith.constant 0 : index
    %c0_141 = arith.constant 0 : index
    %102 = vector.load %arg4[%c5_139, %c0_140, %c0_141] : memref<9x128x128xf32, #tpu.memory_space<vmem>>, vector<1x128x128xf32>
    %103 = vector.shape_cast %102 : vector<1x128x128xf32> to vector<128x128xf32>
    %cst_142 = arith.constant dense<0.000000e+00> : vector<64x128xf32>
    %104 = tpu.matmul %101, %103, %cst_142 {dimension_numbers = #tpu.dot_dimension_numbers<[1], [0], [0], [1], [0, 0, 1, 1], [], []>} : vector<64x128xf32>, vector<128x128xf32>, vector<64x128xf32> -> vector<64x128xf32>
    %105 = arith.addf %99, %104 : vector<64x128xf32>
    %c0_143 = arith.constant 0 : index
    %c2_144 = arith.constant 2 : index
    %c0_145 = arith.constant 0 : index
    %c0_146 = arith.constant 0 : index
    %106 = vector.load %arg13[%c0_143, %c2_144, %c0_145, %c0_146] : memref<1x18x8x128xf32, #tpu.memory_space<vmem>>, vector<1x16x4x128xf32>
    %107 = vector.shape_cast %106 : vector<1x16x4x128xf32> to vector<64x128xf32>
    %c6_147 = arith.constant 6 : index
    %c0_148 = arith.constant 0 : index
    %c0_149 = arith.constant 0 : index
    %108 = vector.load %arg4[%c6_147, %c0_148, %c0_149] : memref<9x128x128xf32, #tpu.memory_space<vmem>>, vector<1x128x128xf32>
    %109 = vector.shape_cast %108 : vector<1x128x128xf32> to vector<128x128xf32>
    %cst_150 = arith.constant dense<0.000000e+00> : vector<64x128xf32>
    %110 = tpu.matmul %107, %109, %cst_150 {dimension_numbers = #tpu.dot_dimension_numbers<[1], [0], [0], [1], [0, 0, 1, 1], [], []>} : vector<64x128xf32>, vector<128x128xf32>, vector<64x128xf32> -> vector<64x128xf32>
    %111 = arith.addf %105, %110 : vector<64x128xf32>
    %c0_151 = arith.constant 0 : index
    %c2_152 = arith.constant 2 : index
    %c1_153 = arith.constant 1 : index
    %c0_154 = arith.constant 0 : index
    %112 = vector.load %arg13[%c0_151, %c2_152, %c1_153, %c0_154] : memref<1x18x8x128xf32, #tpu.memory_space<vmem>>, vector<1x16x4x128xf32>
    %113 = vector.shape_cast %112 : vector<1x16x4x128xf32> to vector<64x128xf32>
    %c7_155 = arith.constant 7 : index
    %c0_156 = arith.constant 0 : index
    %c0_157 = arith.constant 0 : index
    %114 = vector.load %arg4[%c7_155, %c0_156, %c0_157] : memref<9x128x128xf32, #tpu.memory_space<vmem>>, vector<1x128x128xf32>
    %115 = vector.shape_cast %114 : vector<1x128x128xf32> to vector<128x128xf32>
    %cst_158 = arith.constant dense<0.000000e+00> : vector<64x128xf32>
    %116 = tpu.matmul %113, %115, %cst_158 {dimension_numbers = #tpu.dot_dimension_numbers<[1], [0], [0], [1], [0, 0, 1, 1], [], []>} : vector<64x128xf32>, vector<128x128xf32>, vector<64x128xf32> -> vector<64x128xf32>
    %117 = arith.addf %111, %116 : vector<64x128xf32>
    %c0_159 = arith.constant 0 : index
    %c2_160 = arith.constant 2 : index
    %c2_161 = arith.constant 2 : index
    %c0_162 = arith.constant 0 : index
    %118 = vector.load %arg13[%c0_159, %c2_160, %c2_161, %c0_162] : memref<1x18x8x128xf32, #tpu.memory_space<vmem>>, vector<1x16x4x128xf32>
    %119 = vector.shape_cast %118 : vector<1x16x4x128xf32> to vector<64x128xf32>
    %c8_163 = arith.constant 8 : index
    %c0_164 = arith.constant 0 : index
    %c0_165 = arith.constant 0 : index
    %120 = vector.load %arg4[%c8_163, %c0_164, %c0_165] : memref<9x128x128xf32, #tpu.memory_space<vmem>>, vector<1x128x128xf32>
    %121 = vector.shape_cast %120 : vector<1x128x128xf32> to vector<128x128xf32>
    %cst_166 = arith.constant dense<0.000000e+00> : vector<64x128xf32>
    %122 = tpu.matmul %119, %121, %cst_166 {dimension_numbers = #tpu.dot_dimension_numbers<[1], [0], [0], [1], [0, 0, 1, 1], [], []>} : vector<64x128xf32>, vector<128x128xf32>, vector<64x128xf32> -> vector<64x128xf32>
    %123 = arith.addf %117, %122 : vector<64x128xf32>
    %c0_167 = arith.constant 0 : index
    %c0_168 = arith.constant 0 : index
    %124 = vector.load %arg5[%c0_167, %c0_168] : memref<1x128xf32, #tpu.memory_space<vmem>>, vector<1x128xf32>
    %125 = vector.broadcast %124 : vector<1x128xf32> to vector<64x128xf32>
    %126 = arith.addf %123, %125 : vector<64x128xf32>
    %cst_169 = arith.constant 0.000000e+00 : f32
    %127 = vector.broadcast %cst_169 : f32 to vector<64x128xf32>
    %128 = arith.cmpf ogt, %126, %127 : vector<64x128xf32>
    %cst_170 = arith.constant 0.00999999977 : f32
    %129 = vector.broadcast %cst_170 : f32 to vector<64x128xf32>
    %130 = arith.mulf %129, %126 : vector<64x128xf32>
    %131 = arith.select %128, %126, %130 : vector<64x128xi1>, vector<64x128xf32>
    %132 = vector.shape_cast %131 : vector<64x128xf32> to vector<1x16x4x128xf32>
    %c0_171 = arith.constant 0 : index
    %c1_172 = arith.constant 1 : index
    %c1_173 = arith.constant 1 : index
    %c0_174 = arith.constant 0 : index
    %133 = vector.load %arg13[%c0_171, %c1_172, %c1_173, %c0_174] : memref<1x18x8x128xf32, #tpu.memory_space<vmem>>, vector<1x16x4x128xf32>
    tpu.vector_store %arg13[%c0_171, %c1_172, %c1_173, %c0_174], %132 {strides = array<i32>} : memref<1x18x8x128xf32, #tpu.memory_space<vmem>>, vector<1x16x4x128xf32>,
    %c0_175 = arith.constant 0 : index
    %c0_176 = arith.constant 0 : index
    %c0_177 = arith.constant 0 : index
    %c0_178 = arith.constant 0 : index
    %134 = vector.load %arg13[%c0_175, %c0_176, %c0_177, %c0_178] : memref<1x18x8x128xf32, #tpu.memory_space<vmem>>, vector<1x16x4x128xf32>
    %135 = vector.shape_cast %134 : vector<1x16x4x128xf32> to vector<64x128xf32>
    %c0_179 = arith.constant 0 : index
    %c0_180 = arith.constant 0 : index
    %c0_181 = arith.constant 0 : index
    %136 = vector.load %arg6[%c0_179, %c0_180, %c0_181] : memref<9x128x128xf32, #tpu.memory_space<vmem>>, vector<1x128x128xf32>
    %137 = vector.shape_cast %136 : vector<1x128x128xf32> to vector<128x128xf32>
    %cst_182 = arith.constant dense<0.000000e+00> : vector<64x128xf32>
    %138 = tpu.matmul %135, %137, %cst_182 {dimension_numbers = #tpu.dot_dimension_numbers<[1], [0], [0], [1], [0, 0, 1, 1], [], []>} : vector<64x128xf32>, vector<128x128xf32>, vector<64x128xf32> -> vector<64x128xf32>
    %c0_183 = arith.constant 0 : index
    %c0_184 = arith.constant 0 : index
    %c1_185 = arith.constant 1 : index
    %c0_186 = arith.constant 0 : index
    %139 = vector.load %arg13[%c0_183, %c0_184, %c1_185, %c0_186] : memref<1x18x8x128xf32, #tpu.memory_space<vmem>>, vector<1x16x4x128xf32>
    %140 = vector.shape_cast %139 : vector<1x16x4x128xf32> to vector<64x128xf32>
    %c1_187 = arith.constant 1 : index
    %c0_188 = arith.constant 0 : index
    %c0_189 = arith.constant 0 : index
    %141 = vector.load %arg6[%c1_187, %c0_188, %c0_189] : memref<9x128x128xf32, #tpu.memory_space<vmem>>, vector<1x128x128xf32>
    %142 = vector.shape_cast %141 : vector<1x128x128xf32> to vector<128x128xf32>
    %cst_190 = arith.constant dense<0.000000e+00> : vector<64x128xf32>
    %143 = tpu.matmul %140, %142, %cst_190 {dimension_numbers = #tpu.dot_dimension_numbers<[1], [0], [0], [1], [0, 0, 1, 1], [], []>} : vector<64x128xf32>, vector<128x128xf32>, vector<64x128xf32> -> vector<64x128xf32>
    %144 = arith.addf %138, %143 : vector<64x128xf32>
    %c0_191 = arith.constant 0 : index
    %c0_192 = arith.constant 0 : index
    %c2_193 = arith.constant 2 : index
    %c0_194 = arith.constant 0 : index
    %145 = vector.load %arg13[%c0_191, %c0_192, %c2_193, %c0_194] : memref<1x18x8x128xf32, #tpu.memory_space<vmem>>, vector<1x16x4x128xf32>
    %146 = vector.shape_cast %145 : vector<1x16x4x128xf32> to vector<64x128xf32>
    %c2_195 = arith.constant 2 : index
    %c0_196 = arith.constant 0 : index
    %c0_197 = arith.constant 0 : index
    %147 = vector.load %arg6[%c2_195, %c0_196, %c0_197] : memref<9x128x128xf32, #tpu.memory_space<vmem>>, vector<1x128x128xf32>
    %148 = vector.shape_cast %147 : vector<1x128x128xf32> to vector<128x128xf32>
    %cst_198 = arith.constant dense<0.000000e+00> : vector<64x128xf32>
    %149 = tpu.matmul %146, %148, %cst_198 {dimension_numbers = #tpu.dot_dimension_numbers<[1], [0], [0], [1], [0, 0, 1, 1], [], []>} : vector<64x128xf32>, vector<128x128xf32>, vector<64x128xf32> -> vector<64x128xf32>
    %150 = arith.addf %144, %149 : vector<64x128xf32>
    %c0_199 = arith.constant 0 : index
    %c1_200 = arith.constant 1 : index
    %c0_201 = arith.constant 0 : index
    %c0_202 = arith.constant 0 : index
    %151 = vector.load %arg13[%c0_199, %c1_200, %c0_201, %c0_202] : memref<1x18x8x128xf32, #tpu.memory_space<vmem>>, vector<1x16x4x128xf32>
    %152 = vector.shape_cast %151 : vector<1x16x4x128xf32> to vector<64x128xf32>
    %c3_203 = arith.constant 3 : index
    %c0_204 = arith.constant 0 : index
    %c0_205 = arith.constant 0 : index
    %153 = vector.load %arg6[%c3_203, %c0_204, %c0_205] : memref<9x128x128xf32, #tpu.memory_space<vmem>>, vector<1x128x128xf32>
    %154 = vector.shape_cast %153 : vector<1x128x128xf32> to vector<128x128xf32>
    %cst_206 = arith.constant dense<0.000000e+00> : vector<64x128xf32>
    %155 = tpu.matmul %152, %154, %cst_206 {dimension_numbers = #tpu.dot_dimension_numbers<[1], [0], [0], [1], [0, 0, 1, 1], [], []>} : vector<64x128xf32>, vector<128x128xf32>, vector<64x128xf32> -> vector<64x128xf32>
    %156 = arith.addf %150, %155 : vector<64x128xf32>
    %c0_207 = arith.constant 0 : index
    %c1_208 = arith.constant 1 : index
    %c1_209 = arith.constant 1 : index
    %c0_210 = arith.constant 0 : index
    %157 = vector.load %arg13[%c0_207, %c1_208, %c1_209, %c0_210] : memref<1x18x8x128xf32, #tpu.memory_space<vmem>>, vector<1x16x4x128xf32>
    %158 = vector.shape_cast %157 : vector<1x16x4x128xf32> to vector<64x128xf32>
    %c4_211 = arith.constant 4 : index
    %c0_212 = arith.constant 0 : index
    %c0_213 = arith.constant 0 : index
    %159 = vector.load %arg6[%c4_211, %c0_212, %c0_213] : memref<9x128x128xf32, #tpu.memory_space<vmem>>, vector<1x128x128xf32>
    %160 = vector.shape_cast %159 : vector<1x128x128xf32> to vector<128x128xf32>
    %cst_214 = arith.constant dense<0.000000e+00> : vector<64x128xf32>
    %161 = tpu.matmul %158, %160, %cst_214 {dimension_numbers = #tpu.dot_dimension_numbers<[1], [0], [0], [1], [0, 0, 1, 1], [], []>} : vector<64x128xf32>, vector<128x128xf32>, vector<64x128xf32> -> vector<64x128xf32>
    %162 = arith.addf %156, %161 : vector<64x128xf32>
    %c0_215 = arith.constant 0 : index
    %c1_216 = arith.constant 1 : index
    %c2_217 = arith.constant 2 : index
    %c0_218 = arith.constant 0 : index
    %163 = vector.load %arg13[%c0_215, %c1_216, %c2_217, %c0_218] : memref<1x18x8x128xf32, #tpu.memory_space<vmem>>, vector<1x16x4x128xf32>
    %164 = vector.shape_cast %163 : vector<1x16x4x128xf32> to vector<64x128xf32>
    %c5_219 = arith.constant 5 : index
    %c0_220 = arith.constant 0 : index
    %c0_221 = arith.constant 0 : index
    %165 = vector.load %arg6[%c5_219, %c0_220, %c0_221] : memref<9x128x128xf32, #tpu.memory_space<vmem>>, vector<1x128x128xf32>
    %166 = vector.shape_cast %165 : vector<1x128x128xf32> to vector<128x128xf32>
    %cst_222 = arith.constant dense<0.000000e+00> : vector<64x128xf32>
    %167 = tpu.matmul %164, %166, %cst_222 {dimension_numbers = #tpu.dot_dimension_numbers<[1], [0], [0], [1], [0, 0, 1, 1], [], []>} : vector<64x128xf32>, vector<128x128xf32>, vector<64x128xf32> -> vector<64x128xf32>
    %168 = arith.addf %162, %167 : vector<64x128xf32>
    %c0_223 = arith.constant 0 : index
    %c2_224 = arith.constant 2 : index
    %c0_225 = arith.constant 0 : index
    %c0_226 = arith.constant 0 : index
    %169 = vector.load %arg13[%c0_223, %c2_224, %c0_225, %c0_226] : memref<1x18x8x128xf32, #tpu.memory_space<vmem>>, vector<1x16x4x128xf32>
    %170 = vector.shape_cast %169 : vector<1x16x4x128xf32> to vector<64x128xf32>
    %c6_227 = arith.constant 6 : index
    %c0_228 = arith.constant 0 : index
    %c0_229 = arith.constant 0 : index
    %171 = vector.load %arg6[%c6_227, %c0_228, %c0_229] : memref<9x128x128xf32, #tpu.memory_space<vmem>>, vector<1x128x128xf32>
    %172 = vector.shape_cast %171 : vector<1x128x128xf32> to vector<128x128xf32>
    %cst_230 = arith.constant dense<0.000000e+00> : vector<64x128xf32>
    %173 = tpu.matmul %170, %172, %cst_230 {dimension_numbers = #tpu.dot_dimension_numbers<[1], [0], [0], [1], [0, 0, 1, 1], [], []>} : vector<64x128xf32>, vector<128x128xf32>, vector<64x128xf32> -> vector<64x128xf32>
    %174 = arith.addf %168, %173 : vector<64x128xf32>
    %c0_231 = arith.constant 0 : index
    %c2_232 = arith.constant 2 : index
    %c1_233 = arith.constant 1 : index
    %c0_234 = arith.constant 0 : index
    %175 = vector.load %arg13[%c0_231, %c2_232, %c1_233, %c0_234] : memref<1x18x8x128xf32, #tpu.memory_space<vmem>>, vector<1x16x4x128xf32>
    %176 = vector.shape_cast %175 : vector<1x16x4x128xf32> to vector<64x128xf32>
    %c7_235 = arith.constant 7 : index
    %c0_236 = arith.constant 0 : index
    %c0_237 = arith.constant 0 : index
    %177 = vector.load %arg6[%c7_235, %c0_236, %c0_237] : memref<9x128x128xf32, #tpu.memory_space<vmem>>, vector<1x128x128xf32>
    %178 = vector.shape_cast %177 : vector<1x128x128xf32> to vector<128x128xf32>
    %cst_238 = arith.constant dense<0.000000e+00> : vector<64x128xf32>
    %179 = tpu.matmul %176, %178, %cst_238 {dimension_numbers = #tpu.dot_dimension_numbers<[1], [0], [0], [1], [0, 0, 1, 1], [], []>} : vector<64x128xf32>, vector<128x128xf32>, vector<64x128xf32> -> vector<64x128xf32>
    %180 = arith.addf %174, %179 : vector<64x128xf32>
    %c0_239 = arith.constant 0 : index
    %c2_240 = arith.constant 2 : index
    %c2_241 = arith.constant 2 : index
    %c0_242 = arith.constant 0 : index
    %181 = vector.load %arg13[%c0_239, %c2_240, %c2_241, %c0_242] : memref<1x18x8x128xf32, #tpu.memory_space<vmem>>, vector<1x16x4x128xf32>
    %182 = vector.shape_cast %181 : vector<1x16x4x128xf32> to vector<64x128xf32>
    %c8_243 = arith.constant 8 : index
    %c0_244 = arith.constant 0 : index
    %c0_245 = arith.constant 0 : index
    %183 = vector.load %arg6[%c8_243, %c0_244, %c0_245] : memref<9x128x128xf32, #tpu.memory_space<vmem>>, vector<1x128x128xf32>
    %184 = vector.shape_cast %183 : vector<1x128x128xf32> to vector<128x128xf32>
    %cst_246 = arith.constant dense<0.000000e+00> : vector<64x128xf32>
    %185 = tpu.matmul %182, %184, %cst_246 {dimension_numbers = #tpu.dot_dimension_numbers<[1], [0], [0], [1], [0, 0, 1, 1], [], []>} : vector<64x128xf32>, vector<128x128xf32>, vector<64x128xf32> -> vector<64x128xf32>
    %186 = arith.addf %180, %185 : vector<64x128xf32>
    %c0_247 = arith.constant 0 : index
    %c0_248 = arith.constant 0 : index
    %187 = vector.load %arg7[%c0_247, %c0_248] : memref<1x128xf32, #tpu.memory_space<vmem>>, vector<1x128xf32>
    %188 = vector.broadcast %187 : vector<1x128xf32> to vector<64x128xf32>
    %189 = arith.addf %186, %188 : vector<64x128xf32>
    %cst_249 = arith.constant 0.000000e+00 : f32
    %190 = vector.broadcast %cst_249 : f32 to vector<64x128xf32>
    %191 = arith.cmpf ogt, %189, %190 : vector<64x128xf32>
    %cst_250 = arith.constant 0.00999999977 : f32
    %192 = vector.broadcast %cst_250 : f32 to vector<64x128xf32>
    %193 = arith.mulf %192, %189 : vector<64x128xf32>
    %194 = arith.select %191, %189, %193 : vector<64x128xi1>, vector<64x128xf32>
    %195 = vector.shape_cast %194 : vector<64x128xf32> to vector<1x16x4x128xf32>
    %c0_251 = arith.constant 0 : index
    %c1_252 = arith.constant 1 : index
    %c1_253 = arith.constant 1 : index
    %c0_254 = arith.constant 0 : index
    %196 = vector.load %arg13[%c0_251, %c1_252, %c1_253, %c0_254] : memref<1x18x8x128xf32, #tpu.memory_space<vmem>>, vector<1x16x4x128xf32>
    tpu.vector_store %arg13[%c0_251, %c1_252, %c1_253, %c0_254], %195 {strides = array<i32>} : memref<1x18x8x128xf32, #tpu.memory_space<vmem>>, vector<1x16x4x128xf32>,
    %c0_255 = arith.constant 0 : index
    %c0_256 = arith.constant 0 : index
    %c0_257 = arith.constant 0 : index
    %c0_258 = arith.constant 0 : index
    %197 = vector.load %arg13[%c0_255, %c0_256, %c0_257, %c0_258] : memref<1x18x8x128xf32, #tpu.memory_space<vmem>>, vector<1x16x4x128xf32>
    %198 = vector.shape_cast %197 : vector<1x16x4x128xf32> to vector<64x128xf32>
    %c0_259 = arith.constant 0 : index
    %c0_260 = arith.constant 0 : index
    %c0_261 = arith.constant 0 : index
    %199 = vector.load %arg8[%c0_259, %c0_260, %c0_261] : memref<9x128x128xf32, #tpu.memory_space<vmem>>, vector<1x128x128xf32>
    %200 = vector.shape_cast %199 : vector<1x128x128xf32> to vector<128x128xf32>
    %cst_262 = arith.constant dense<0.000000e+00> : vector<64x128xf32>
    %201 = tpu.matmul %198, %200, %cst_262 {dimension_numbers = #tpu.dot_dimension_numbers<[1], [0], [0], [1], [0, 0, 1, 1], [], []>} : vector<64x128xf32>, vector<128x128xf32>, vector<64x128xf32> -> vector<64x128xf32>
    %c0_263 = arith.constant 0 : index
    %c0_264 = arith.constant 0 : index
    %c1_265 = arith.constant 1 : index
    %c0_266 = arith.constant 0 : index
    %202 = vector.load %arg13[%c0_263, %c0_264, %c1_265, %c0_266] : memref<1x18x8x128xf32, #tpu.memory_space<vmem>>, vector<1x16x4x128xf32>
    %203 = vector.shape_cast %202 : vector<1x16x4x128xf32> to vector<64x128xf32>
    %c1_267 = arith.constant 1 : index
    %c0_268 = arith.constant 0 : index
    %c0_269 = arith.constant 0 : index
    %204 = vector.load %arg8[%c1_267, %c0_268, %c0_269] : memref<9x128x128xf32, #tpu.memory_space<vmem>>, vector<1x128x128xf32>
    %205 = vector.shape_cast %204 : vector<1x128x128xf32> to vector<128x128xf32>
    %cst_270 = arith.constant dense<0.000000e+00> : vector<64x128xf32>
    %206 = tpu.matmul %203, %205, %cst_270 {dimension_numbers = #tpu.dot_dimension_numbers<[1], [0], [0], [1], [0, 0, 1, 1], [], []>} : vector<64x128xf32>, vector<128x128xf32>, vector<64x128xf32> -> vector<64x128xf32>
    %207 = arith.addf %201, %206 : vector<64x128xf32>
    %c0_271 = arith.constant 0 : index
    %c0_272 = arith.constant 0 : index
    %c2_273 = arith.constant 2 : index
    %c0_274 = arith.constant 0 : index
    %208 = vector.load %arg13[%c0_271, %c0_272, %c2_273, %c0_274] : memref<1x18x8x128xf32, #tpu.memory_space<vmem>>, vector<1x16x4x128xf32>
    %209 = vector.shape_cast %208 : vector<1x16x4x128xf32> to vector<64x128xf32>
    %c2_275 = arith.constant 2 : index
    %c0_276 = arith.constant 0 : index
    %c0_277 = arith.constant 0 : index
    %210 = vector.load %arg8[%c2_275, %c0_276, %c0_277] : memref<9x128x128xf32, #tpu.memory_space<vmem>>, vector<1x128x128xf32>
    %211 = vector.shape_cast %210 : vector<1x128x128xf32> to vector<128x128xf32>
    %cst_278 = arith.constant dense<0.000000e+00> : vector<64x128xf32>
    %212 = tpu.matmul %209, %211, %cst_278 {dimension_numbers = #tpu.dot_dimension_numbers<[1], [0], [0], [1], [0, 0, 1, 1], [], []>} : vector<64x128xf32>, vector<128x128xf32>, vector<64x128xf32> -> vector<64x128xf32>
    %213 = arith.addf %207, %212 : vector<64x128xf32>
    %c0_279 = arith.constant 0 : index
    %c1_280 = arith.constant 1 : index
    %c0_281 = arith.constant 0 : index
    %c0_282 = arith.constant 0 : index
    %214 = vector.load %arg13[%c0_279, %c1_280, %c0_281, %c0_282] : memref<1x18x8x128xf32, #tpu.memory_space<vmem>>, vector<1x16x4x128xf32>
    %215 = vector.shape_cast %214 : vector<1x16x4x128xf32> to vector<64x128xf32>
    %c3_283 = arith.constant 3 : index
    %c0_284 = arith.constant 0 : index
    %c0_285 = arith.constant 0 : index
    %216 = vector.load %arg8[%c3_283, %c0_284, %c0_285] : memref<9x128x128xf32, #tpu.memory_space<vmem>>, vector<1x128x128xf32>
    %217 = vector.shape_cast %216 : vector<1x128x128xf32> to vector<128x128xf32>
    %cst_286 = arith.constant dense<0.000000e+00> : vector<64x128xf32>
    %218 = tpu.matmul %215, %217, %cst_286 {dimension_numbers = #tpu.dot_dimension_numbers<[1], [0], [0], [1], [0, 0, 1, 1], [], []>} : vector<64x128xf32>, vector<128x128xf32>, vector<64x128xf32> -> vector<64x128xf32>
    %219 = arith.addf %213, %218 : vector<64x128xf32>
    %c0_287 = arith.constant 0 : index
    %c1_288 = arith.constant 1 : index
    %c1_289 = arith.constant 1 : index
    %c0_290 = arith.constant 0 : index
    %220 = vector.load %arg13[%c0_287, %c1_288, %c1_289, %c0_290] : memref<1x18x8x128xf32, #tpu.memory_space<vmem>>, vector<1x16x4x128xf32>
    %221 = vector.shape_cast %220 : vector<1x16x4x128xf32> to vector<64x128xf32>
    %c4_291 = arith.constant 4 : index
    %c0_292 = arith.constant 0 : index
    %c0_293 = arith.constant 0 : index
    %222 = vector.load %arg8[%c4_291, %c0_292, %c0_293] : memref<9x128x128xf32, #tpu.memory_space<vmem>>, vector<1x128x128xf32>
    %223 = vector.shape_cast %222 : vector<1x128x128xf32> to vector<128x128xf32>
    %cst_294 = arith.constant dense<0.000000e+00> : vector<64x128xf32>
    %224 = tpu.matmul %221, %223, %cst_294 {dimension_numbers = #tpu.dot_dimension_numbers<[1], [0], [0], [1], [0, 0, 1, 1], [], []>} : vector<64x128xf32>, vector<128x128xf32>, vector<64x128xf32> -> vector<64x128xf32>
    %225 = arith.addf %219, %224 : vector<64x128xf32>
    %c0_295 = arith.constant 0 : index
    %c1_296 = arith.constant 1 : index
    %c2_297 = arith.constant 2 : index
    %c0_298 = arith.constant 0 : index
    %226 = vector.load %arg13[%c0_295, %c1_296, %c2_297, %c0_298] : memref<1x18x8x128xf32, #tpu.memory_space<vmem>>, vector<1x16x4x128xf32>
    %227 = vector.shape_cast %226 : vector<1x16x4x128xf32> to vector<64x128xf32>
    %c5_299 = arith.constant 5 : index
    %c0_300 = arith.constant 0 : index
    %c0_301 = arith.constant 0 : index
    %228 = vector.load %arg8[%c5_299, %c0_300, %c0_301] : memref<9x128x128xf32, #tpu.memory_space<vmem>>, vector<1x128x128xf32>
    %229 = vector.shape_cast %228 : vector<1x128x128xf32> to vector<128x128xf32>
    %cst_302 = arith.constant dense<0.000000e+00> : vector<64x128xf32>
    %230 = tpu.matmul %227, %229, %cst_302 {dimension_numbers = #tpu.dot_dimension_numbers<[1], [0], [0], [1], [0, 0, 1, 1], [], []>} : vector<64x128xf32>, vector<128x128xf32>, vector<64x128xf32> -> vector<64x128xf32>
    %231 = arith.addf %225, %230 : vector<64x128xf32>
    %c0_303 = arith.constant 0 : index
    %c2_304 = arith.constant 2 : index
    %c0_305 = arith.constant 0 : index
    %c0_306 = arith.constant 0 : index
    %232 = vector.load %arg13[%c0_303, %c2_304, %c0_305, %c0_306] : memref<1x18x8x128xf32, #tpu.memory_space<vmem>>, vector<1x16x4x128xf32>
    %233 = vector.shape_cast %232 : vector<1x16x4x128xf32> to vector<64x128xf32>
    %c6_307 = arith.constant 6 : index
    %c0_308 = arith.constant 0 : index
    %c0_309 = arith.constant 0 : index
    %234 = vector.load %arg8[%c6_307, %c0_308, %c0_309] : memref<9x128x128xf32, #tpu.memory_space<vmem>>, vector<1x128x128xf32>
    %235 = vector.shape_cast %234 : vector<1x128x128xf32> to vector<128x128xf32>
    %cst_310 = arith.constant dense<0.000000e+00> : vector<64x128xf32>
    %236 = tpu.matmul %233, %235, %cst_310 {dimension_numbers = #tpu.dot_dimension_numbers<[1], [0], [0], [1], [0, 0, 1, 1], [], []>} : vector<64x128xf32>, vector<128x128xf32>, vector<64x128xf32> -> vector<64x128xf32>
    %237 = arith.addf %231, %236 : vector<64x128xf32>
    %c0_311 = arith.constant 0 : index
    %c2_312 = arith.constant 2 : index
    %c1_313 = arith.constant 1 : index
    %c0_314 = arith.constant 0 : index
    %238 = vector.load %arg13[%c0_311, %c2_312, %c1_313, %c0_314] : memref<1x18x8x128xf32, #tpu.memory_space<vmem>>, vector<1x16x4x128xf32>
    %239 = vector.shape_cast %238 : vector<1x16x4x128xf32> to vector<64x128xf32>
    %c7_315 = arith.constant 7 : index
    %c0_316 = arith.constant 0 : index
    %c0_317 = arith.constant 0 : index
    %240 = vector.load %arg8[%c7_315, %c0_316, %c0_317] : memref<9x128x128xf32, #tpu.memory_space<vmem>>, vector<1x128x128xf32>
    %241 = vector.shape_cast %240 : vector<1x128x128xf32> to vector<128x128xf32>
    %cst_318 = arith.constant dense<0.000000e+00> : vector<64x128xf32>
    %242 = tpu.matmul %239, %241, %cst_318 {dimension_numbers = #tpu.dot_dimension_numbers<[1], [0], [0], [1], [0, 0, 1, 1], [], []>} : vector<64x128xf32>, vector<128x128xf32>, vector<64x128xf32> -> vector<64x128xf32>
    %243 = arith.addf %237, %242 : vector<64x128xf32>
    %c0_319 = arith.constant 0 : index
    %c2_320 = arith.constant 2 : index
    %c2_321 = arith.constant 2 : index
    %c0_322 = arith.constant 0 : index
    %244 = vector.load %arg13[%c0_319, %c2_320, %c2_321, %c0_322] : memref<1x18x8x128xf32, #tpu.memory_space<vmem>>, vector<1x16x4x128xf32>
    %245 = vector.shape_cast %244 : vector<1x16x4x128xf32> to vector<64x128xf32>
    %c8_323 = arith.constant 8 : index
    %c0_324 = arith.constant 0 : index
    %c0_325 = arith.constant 0 : index
    %246 = vector.load %arg8[%c8_323, %c0_324, %c0_325] : memref<9x128x128xf32, #tpu.memory_space<vmem>>, vector<1x128x128xf32>
    %247 = vector.shape_cast %246 : vector<1x128x128xf32> to vector<128x128xf32>
    %cst_326 = arith.constant dense<0.000000e+00> : vector<64x128xf32>
    %248 = tpu.matmul %245, %247, %cst_326 {dimension_numbers = #tpu.dot_dimension_numbers<[1], [0], [0], [1], [0, 0, 1, 1], [], []>} : vector<64x128xf32>, vector<128x128xf32>, vector<64x128xf32> -> vector<64x128xf32>
    %249 = arith.addf %243, %248 : vector<64x128xf32>
    %c0_327 = arith.constant 0 : index
    %c0_328 = arith.constant 0 : index
    %250 = vector.load %arg9[%c0_327, %c0_328] : memref<1x128xf32, #tpu.memory_space<vmem>>, vector<1x128xf32>
    %251 = vector.broadcast %250 : vector<1x128xf32> to vector<64x128xf32>
    %252 = arith.addf %249, %251 : vector<64x128xf32>
    %cst_329 = arith.constant 0.000000e+00 : f32
    %253 = vector.broadcast %cst_329 : f32 to vector<64x128xf32>
    %254 = arith.cmpf ogt, %252, %253 : vector<64x128xf32>
    %cst_330 = arith.constant 0.00999999977 : f32
    %255 = vector.broadcast %cst_330 : f32 to vector<64x128xf32>
    %256 = arith.mulf %255, %252 : vector<64x128xf32>
    %257 = arith.select %254, %252, %256 : vector<64x128xi1>, vector<64x128xf32>
    %258 = vector.shape_cast %257 : vector<64x128xf32> to vector<1x16x4x128xf32>
    %c0_331 = arith.constant 0 : index
    %c1_332 = arith.constant 1 : index
    %c1_333 = arith.constant 1 : index
    %c0_334 = arith.constant 0 : index
    %259 = vector.load %arg13[%c0_331, %c1_332, %c1_333, %c0_334] : memref<1x18x8x128xf32, #tpu.memory_space<vmem>>, vector<1x16x4x128xf32>
    tpu.vector_store %arg13[%c0_331, %c1_332, %c1_333, %c0_334], %258 {strides = array<i32>} : memref<1x18x8x128xf32, #tpu.memory_space<vmem>>, vector<1x16x4x128xf32>,
    %c0_335 = arith.constant 0 : index
    %c0_336 = arith.constant 0 : index
    %c0_337 = arith.constant 0 : index
    %c0_338 = arith.constant 0 : index
    %260 = vector.load %arg13[%c0_335, %c0_336, %c0_337, %c0_338] : memref<1x18x8x128xf32, #tpu.memory_space<vmem>>, vector<1x16x4x128xf32>
    %261 = vector.shape_cast %260 : vector<1x16x4x128xf32> to vector<64x128xf32>
    %c0_339 = arith.constant 0 : index
    %c0_340 = arith.constant 0 : index
    %c0_341 = arith.constant 0 : index
    %262 = vector.load %arg10[%c0_339, %c0_340, %c0_341] : memref<9x128x128xf32, #tpu.memory_space<vmem>>, vector<1x128x128xf32>
    %263 = vector.shape_cast %262 : vector<1x128x128xf32> to vector<128x128xf32>
    %cst_342 = arith.constant dense<0.000000e+00> : vector<64x128xf32>
    %264 = tpu.matmul %261, %263, %cst_342 {dimension_numbers = #tpu.dot_dimension_numbers<[1], [0], [0], [1], [0, 0, 1, 1], [], []>} : vector<64x128xf32>, vector<128x128xf32>, vector<64x128xf32> -> vector<64x128xf32>
    %c0_343 = arith.constant 0 : index
    %c0_344 = arith.constant 0 : index
    %c1_345 = arith.constant 1 : index
    %c0_346 = arith.constant 0 : index
    %265 = vector.load %arg13[%c0_343, %c0_344, %c1_345, %c0_346] : memref<1x18x8x128xf32, #tpu.memory_space<vmem>>, vector<1x16x4x128xf32>
    %266 = vector.shape_cast %265 : vector<1x16x4x128xf32> to vector<64x128xf32>
    %c1_347 = arith.constant 1 : index
    %c0_348 = arith.constant 0 : index
    %c0_349 = arith.constant 0 : index
    %267 = vector.load %arg10[%c1_347, %c0_348, %c0_349] : memref<9x128x128xf32, #tpu.memory_space<vmem>>, vector<1x128x128xf32>
    %268 = vector.shape_cast %267 : vector<1x128x128xf32> to vector<128x128xf32>
    %cst_350 = arith.constant dense<0.000000e+00> : vector<64x128xf32>
    %269 = tpu.matmul %266, %268, %cst_350 {dimension_numbers = #tpu.dot_dimension_numbers<[1], [0], [0], [1], [0, 0, 1, 1], [], []>} : vector<64x128xf32>, vector<128x128xf32>, vector<64x128xf32> -> vector<64x128xf32>
    %270 = arith.addf %264, %269 : vector<64x128xf32>
    %c0_351 = arith.constant 0 : index
    %c0_352 = arith.constant 0 : index
    %c2_353 = arith.constant 2 : index
    %c0_354 = arith.constant 0 : index
    %271 = vector.load %arg13[%c0_351, %c0_352, %c2_353, %c0_354] : memref<1x18x8x128xf32, #tpu.memory_space<vmem>>, vector<1x16x4x128xf32>
    %272 = vector.shape_cast %271 : vector<1x16x4x128xf32> to vector<64x128xf32>
    %c2_355 = arith.constant 2 : index
    %c0_356 = arith.constant 0 : index
    %c0_357 = arith.constant 0 : index
    %273 = vector.load %arg10[%c2_355, %c0_356, %c0_357] : memref<9x128x128xf32, #tpu.memory_space<vmem>>, vector<1x128x128xf32>
    %274 = vector.shape_cast %273 : vector<1x128x128xf32> to vector<128x128xf32>
    %cst_358 = arith.constant dense<0.000000e+00> : vector<64x128xf32>
    %275 = tpu.matmul %272, %274, %cst_358 {dimension_numbers = #tpu.dot_dimension_numbers<[1], [0], [0], [1], [0, 0, 1, 1], [], []>} : vector<64x128xf32>, vector<128x128xf32>, vector<64x128xf32> -> vector<64x128xf32>
    %276 = arith.addf %270, %275 : vector<64x128xf32>
    %c0_359 = arith.constant 0 : index
    %c1_360 = arith.constant 1 : index
    %c0_361 = arith.constant 0 : index
    %c0_362 = arith.constant 0 : index
    %277 = vector.load %arg13[%c0_359, %c1_360, %c0_361, %c0_362] : memref<1x18x8x128xf32, #tpu.memory_space<vmem>>, vector<1x16x4x128xf32>
    %278 = vector.shape_cast %277 : vector<1x16x4x128xf32> to vector<64x128xf32>
    %c3_363 = arith.constant 3 : index
    %c0_364 = arith.constant 0 : index
    %c0_365 = arith.constant 0 : index
    %279 = vector.load %arg10[%c3_363, %c0_364, %c0_365] : memref<9x128x128xf32, #tpu.memory_space<vmem>>, vector<1x128x128xf32>
    %280 = vector.shape_cast %279 : vector<1x128x128xf32> to vector<128x128xf32>
    %cst_366 = arith.constant dense<0.000000e+00> : vector<64x128xf32>
    %281 = tpu.matmul %278, %280, %cst_366 {dimension_numbers = #tpu.dot_dimension_numbers<[1], [0], [0], [1], [0, 0, 1, 1], [], []>} : vector<64x128xf32>, vector<128x128xf32>, vector<64x128xf32> -> vector<64x128xf32>
    %282 = arith.addf %276, %281 : vector<64x128xf32>
    %c0_367 = arith.constant 0 : index
    %c1_368 = arith.constant 1 : index
    %c1_369 = arith.constant 1 : index
    %c0_370 = arith.constant 0 : index
    %283 = vector.load %arg13[%c0_367, %c1_368, %c1_369, %c0_370] : memref<1x18x8x128xf32, #tpu.memory_space<vmem>>, vector<1x16x4x128xf32>
    %284 = vector.shape_cast %283 : vector<1x16x4x128xf32> to vector<64x128xf32>
    %c4_371 = arith.constant 4 : index
    %c0_372 = arith.constant 0 : index
    %c0_373 = arith.constant 0 : index
    %285 = vector.load %arg10[%c4_371, %c0_372, %c0_373] : memref<9x128x128xf32, #tpu.memory_space<vmem>>, vector<1x128x128xf32>
    %286 = vector.shape_cast %285 : vector<1x128x128xf32> to vector<128x128xf32>
    %cst_374 = arith.constant dense<0.000000e+00> : vector<64x128xf32>
    %287 = tpu.matmul %284, %286, %cst_374 {dimension_numbers = #tpu.dot_dimension_numbers<[1], [0], [0], [1], [0, 0, 1, 1], [], []>} : vector<64x128xf32>, vector<128x128xf32>, vector<64x128xf32> -> vector<64x128xf32>
    %288 = arith.addf %282, %287 : vector<64x128xf32>
    %c0_375 = arith.constant 0 : index
    %c1_376 = arith.constant 1 : index
    %c2_377 = arith.constant 2 : index
    %c0_378 = arith.constant 0 : index
    %289 = vector.load %arg13[%c0_375, %c1_376, %c2_377, %c0_378] : memref<1x18x8x128xf32, #tpu.memory_space<vmem>>, vector<1x16x4x128xf32>
    %290 = vector.shape_cast %289 : vector<1x16x4x128xf32> to vector<64x128xf32>
    %c5_379 = arith.constant 5 : index
    %c0_380 = arith.constant 0 : index
    %c0_381 = arith.constant 0 : index
    %291 = vector.load %arg10[%c5_379, %c0_380, %c0_381] : memref<9x128x128xf32, #tpu.memory_space<vmem>>, vector<1x128x128xf32>
    %292 = vector.shape_cast %291 : vector<1x128x128xf32> to vector<128x128xf32>
    %cst_382 = arith.constant dense<0.000000e+00> : vector<64x128xf32>
    %293 = tpu.matmul %290, %292, %cst_382 {dimension_numbers = #tpu.dot_dimension_numbers<[1], [0], [0], [1], [0, 0, 1, 1], [], []>} : vector<64x128xf32>, vector<128x128xf32>, vector<64x128xf32> -> vector<64x128xf32>
    %294 = arith.addf %288, %293 : vector<64x128xf32>
    %c0_383 = arith.constant 0 : index
    %c2_384 = arith.constant 2 : index
    %c0_385 = arith.constant 0 : index
    %c0_386 = arith.constant 0 : index
    %295 = vector.load %arg13[%c0_383, %c2_384, %c0_385, %c0_386] : memref<1x18x8x128xf32, #tpu.memory_space<vmem>>, vector<1x16x4x128xf32>
    %296 = vector.shape_cast %295 : vector<1x16x4x128xf32> to vector<64x128xf32>
    %c6_387 = arith.constant 6 : index
    %c0_388 = arith.constant 0 : index
    %c0_389 = arith.constant 0 : index
    %297 = vector.load %arg10[%c6_387, %c0_388, %c0_389] : memref<9x128x128xf32, #tpu.memory_space<vmem>>, vector<1x128x128xf32>
    %298 = vector.shape_cast %297 : vector<1x128x128xf32> to vector<128x128xf32>
    %cst_390 = arith.constant dense<0.000000e+00> : vector<64x128xf32>
    %299 = tpu.matmul %296, %298, %cst_390 {dimension_numbers = #tpu.dot_dimension_numbers<[1], [0], [0], [1], [0, 0, 1, 1], [], []>} : vector<64x128xf32>, vector<128x128xf32>, vector<64x128xf32> -> vector<64x128xf32>
    %300 = arith.addf %294, %299 : vector<64x128xf32>
    %c0_391 = arith.constant 0 : index
    %c2_392 = arith.constant 2 : index
    %c1_393 = arith.constant 1 : index
    %c0_394 = arith.constant 0 : index
    %301 = vector.load %arg13[%c0_391, %c2_392, %c1_393, %c0_394] : memref<1x18x8x128xf32, #tpu.memory_space<vmem>>, vector<1x16x4x128xf32>
    %302 = vector.shape_cast %301 : vector<1x16x4x128xf32> to vector<64x128xf32>
    %c7_395 = arith.constant 7 : index
    %c0_396 = arith.constant 0 : index
    %c0_397 = arith.constant 0 : index
    %303 = vector.load %arg10[%c7_395, %c0_396, %c0_397] : memref<9x128x128xf32, #tpu.memory_space<vmem>>, vector<1x128x128xf32>
    %304 = vector.shape_cast %303 : vector<1x128x128xf32> to vector<128x128xf32>
    %cst_398 = arith.constant dense<0.000000e+00> : vector<64x128xf32>
    %305 = tpu.matmul %302, %304, %cst_398 {dimension_numbers = #tpu.dot_dimension_numbers<[1], [0], [0], [1], [0, 0, 1, 1], [], []>} : vector<64x128xf32>, vector<128x128xf32>, vector<64x128xf32> -> vector<64x128xf32>
    %306 = arith.addf %300, %305 : vector<64x128xf32>
    %c0_399 = arith.constant 0 : index
    %c2_400 = arith.constant 2 : index
    %c2_401 = arith.constant 2 : index
    %c0_402 = arith.constant 0 : index
    %307 = vector.load %arg13[%c0_399, %c2_400, %c2_401, %c0_402] : memref<1x18x8x128xf32, #tpu.memory_space<vmem>>, vector<1x16x4x128xf32>
    %308 = vector.shape_cast %307 : vector<1x16x4x128xf32> to vector<64x128xf32>
    %c8_403 = arith.constant 8 : index
    %c0_404 = arith.constant 0 : index
    %c0_405 = arith.constant 0 : index
    %309 = vector.load %arg10[%c8_403, %c0_404, %c0_405] : memref<9x128x128xf32, #tpu.memory_space<vmem>>, vector<1x128x128xf32>
    %310 = vector.shape_cast %309 : vector<1x128x128xf32> to vector<128x128xf32>
    %cst_406 = arith.constant dense<0.000000e+00> : vector<64x128xf32>
    %311 = tpu.matmul %308, %310, %cst_406 {dimension_numbers = #tpu.dot_dimension_numbers<[1], [0], [0], [1], [0, 0, 1, 1], [], []>} : vector<64x128xf32>, vector<128x128xf32>, vector<64x128xf32> -> vector<64x128xf32>
    %312 = arith.addf %306, %311 : vector<64x128xf32>
    %c0_407 = arith.constant 0 : index
    %c0_408 = arith.constant 0 : index
    %313 = vector.load %arg11[%c0_407, %c0_408] : memref<1x128xf32, #tpu.memory_space<vmem>>, vector<1x128xf32>
    %314 = vector.broadcast %313 : vector<1x128xf32> to vector<64x128xf32>
    %315 = arith.addf %312, %314 : vector<64x128xf32>
    %c0_409 = arith.constant 0 : index
    %c0_410 = arith.constant 0 : index
    %c0_411 = arith.constant 0 : index
    %c0_412 = arith.constant 0 : index
    %316 = vector.load %arg1[%c0_409, %c0_410, %c0_411, %c0_412] : memref<1x16x4x128xf32, #tpu.memory_space<vmem>>, vector<1x16x4x128xf32>
    %317 = vector.shape_cast %316 : vector<1x16x4x128xf32> to vector<64x128xf32>
    %318 = arith.addf %315, %317 : vector<64x128xf32>
    %cst_413 = arith.constant 0.000000e+00 : f32
    %319 = vector.broadcast %cst_413 : f32 to vector<64x128xf32>
    %320 = arith.cmpf ogt, %318, %319 : vector<64x128xf32>
    %cst_414 = arith.constant 0.00999999977 : f32
    %321 = vector.broadcast %cst_414 : f32 to vector<64x128xf32>
    %322 = arith.mulf %321, %318 : vector<64x128xf32>
    %323 = arith.select %320, %318, %322 : vector<64x128xi1>, vector<64x128xf32>
    %c0_415 = arith.constant 0 : index
    %c0_416 = arith.constant 0 : index
    %324 = vector.load %arg12[%c0_415, %c0_416] : memref<64x128xf32, #tpu.memory_space<vmem>>, vector<64x128xf32>
    tpu.vector_store %arg12[%c0_415, %c0_416], %323 {strides = array<i32>} : memref<64x128xf32, #tpu.memory_space<vmem>>, vector<64x128xf32>,
    return
  }
  func.func @transform_0(%arg0: i32) -> (i32, i32, i32, i32) {
    %c0_i32 = arith.constant 0 : i32
    %c0_i32_0 = arith.constant 0 : i32
    %c0_i32_1 = arith.constant 0 : i32
    %c0_i32_2 = arith.constant 0 : i32
    return %arg0, %c0_i32, %c0_i32_0, %c0_i32_1 : i32, i32, i32, i32
  }
  func.func @transform_1(%arg0: i32) -> (i32, i32, i32) {
    %c0_i32 = arith.constant 0 : i32
    %c0_i32_0 = arith.constant 0 : i32
    %c0_i32_1 = arith.constant 0 : i32
    %c0_i32_2 = arith.constant 0 : i32
    return %c0_i32, %c0_i32_0, %c0_i32_1 : i32, i32, i32
  }
  func.func @transform_2(%arg0: i32) -> (i32, i32) {
    %c0_i32 = arith.constant 0 : i32
    %c0_i32_0 = arith.constant 0 : i32
    %c0_i32_1 = arith.constant 0 : i32
    return %c0_i32, %c0_i32_0 : i32, i32
  }
  func.func @transform_3(%arg0: i32) -> (i32, i32, i32) {
    %c0_i32 = arith.constant 0 : i32
    %c0_i32_0 = arith.constant 0 : i32
    %c0_i32_1 = arith.constant 0 : i32
    %c0_i32_2 = arith.constant 0 : i32
    return %c0_i32, %c0_i32_0, %c0_i32_1 : i32, i32, i32
  }
  func.func @transform_4(%arg0: i32) -> (i32, i32) {
    %c0_i32 = arith.constant 0 : i32
    %c0_i32_0 = arith.constant 0 : i32
    %c0_i32_1 = arith.constant 0 : i32
    return %c0_i32, %c0_i32_0 : i32, i32
  }
  func.func @transform_5(%arg0: i32) -> (i32, i32, i32) {
    %c0_i32 = arith.constant 0 : i32
    %c0_i32_0 = arith.constant 0 : i32
    %c0_i32_1 = arith.constant 0 : i32
    %c0_i32_2 = arith.constant 0 : i32
    return %c0_i32, %c0_i32_0, %c0_i32_1 : i32, i32, i32
  }
  func.func @transform_6(%arg0: i32) -> (i32, i32) {
    %c0_i32 = arith.constant 0 : i32
    %c0_i32_0 = arith.constant 0 : i32
    %c0_i32_1 = arith.constant 0 : i32
    return %c0_i32, %c0_i32_0 : i32, i32
  }
  func.func @transform_7(%arg0: i32) -> (i32, i32, i32) {
    %c0_i32 = arith.constant 0 : i32
    %c0_i32_0 = arith.constant 0 : i32
    %c0_i32_1 = arith.constant 0 : i32
    %c0_i32_2 = arith.constant 0 : i32
    return %c0_i32, %c0_i32_0, %c0_i32_1 : i32, i32, i32
  }
  func.func @transform_8(%arg0: i32) -> (i32, i32) {
    %c0_i32 = arith.constant 0 : i32
    %c0_i32_0 = arith.constant 0 : i32
    %c0_i32_1 = arith.constant 0 : i32
    return %c0_i32, %c0_i32_0 : i32, i32
  }
  func.func @transform_9(%arg0: i32) -> (i32, i32, i32) {
    %c0_i32 = arith.constant 0 : i32
    %c0_i32_0 = arith.constant 0 : i32
    %c0_i32_1 = arith.constant 0 : i32
    %c0_i32_2 = arith.constant 0 : i32
    return %c0_i32, %c0_i32_0, %c0_i32_1 : i32, i32, i32
  }
  func.func @transform_10(%arg0: i32) -> (i32, i32) {
    %c0_i32 = arith.constant 0 : i32
    %c0_i32_0 = arith.constant 0 : i32
    %c0_i32_1 = arith.constant 0 : i32
    return %c0_i32, %c0_i32_0 : i32, i32
  }
  func.func @transform_11(%arg0: i32) -> (i32, i32) {
    %c0_i32 = arith.constant 0 : i32
    %c0_i32_0 = arith.constant 0 : i32
    return %arg0, %c0_i32 : i32, i32
  }
}

</mosaic_0001>

<bundles_post_ra>
// kernel: tpu_custom_call.1
= control target key start
LH: loop header
LB: loop body
LE: loop exit
PB: predicated region body
PF: predicated region fallthrough
CT: control target
= control target key end

     0   :  { %s13505_s0 = inlined_call_operand.hbm [shape: f32[2,16,4,128], index: 0, kind: input, shape index: {}]   ;;  %s13506_s1 = inlined_call_operand.hbm [shape: f32[9,128,128], index: 1, kind: input, shape index: {}]   ;;  %s13507_s2 = inlined_call_operand.vmem [shape: f32[1,128], index: 2, kind: input, shape index: {}]   ;;  %s13508_s3 = inlined_call_operand.hbm [shape: f32[9,128,128], index: 3, kind: input, shape index: {}]   ;;  %s13509_s4 = inlined_call_operand.vmem [shape: f32[1,128], index: 4, kind: input, shape index: {}]   ;;  %s13510_s5 = inlined_call_operand.hbm [shape: f32[9,128,128], index: 5, kind: input, shape index: {}]   ;;  %s13511_s6 = inlined_call_operand.vmem [shape: f32[1,128], index: 6, kind: input, shape index: {}]   ;;  %s13512_s7 = inlined_call_operand.hbm [shape: f32[9,128,128], index: 7, kind: input, shape index: {}]   ;;  %s13513_s8 = inlined_call_operand.vmem [shape: f32[1,128], index: 8, kind: input, shape index: {}]   ;;  %s13514_s9 = inlined_call_operand.hbm [shape: f32[9,128,128], index: 9, kind: input, shape index: {}]   ;;  %s13515_s10 = inlined_call_operand.vmem [shape: f32[1,128], index: 10, kind: input, shape index: {}]   ;;  %s13516_s11 = inlined_call_operand.hbm [shape: f32[128,128], index: 11, kind: output, shape index: {}]  }
   0x1   :  { %13529 = sst [smem:[#allocation27_spill]] %s13506_s1 }
   0x2   :  { %13530 = sst [smem:[#allocation28_spill]] %s13508_s3 }
   0x3   :  { %13531 = sst [smem:[#allocation29_spill]] %s13510_s5 }
   0x4   :  { %13532 = sst [smem:[#allocation30_spill]] %s13512_s7 }
   0x5   :  { %13533 = sst [smem:[#allocation31_spill]] %s13514_s9 }
   0x6   :  { %16 = vsyncpa [#allocation4], 0 }
   0x7   :  { %18 = vsyncpa [#allocation4 + $0x1], 0 }
   0x8   :  { %19 = vsyncpa [#allocation7], 0 }
   0x9   :  { %20 = vsyncpa [#allocation10], 0 }
   0xa   :  { %21 = vsyncpa [#allocation13], 0 }
   0xb   :  { %22 = vsyncpa [#allocation5], 0 }
   0xc   :  { %24 = vsyncpa [#allocation5 + $0x1], 0  ;;  %s12932_s17 = smov 0   ;;  %s12934_s18 = smov 0  }
   0xd   :  { %s12936_s19 = smov 0   ;;  %s12938_s20 = smov 0  }
   0xe LB: > { %s12858_s21 = smov [#allocation6]   ;;  %s12953_s23 = sadd.s32 4294967295, %s12856_s20   ;;  %s12856_s20 = sphi %s12938_s20, %s13610_s20   ;;  %s12852_s19 = sphi %s12936_s19, %s13609_s19   ;;  %s12848_s18 = sphi %s12934_s18, %s13608_s18   ;;  %s12844_s17 = sphi %s12932_s17, %s13607_s17  }
   0xf   : > { %s309_s22 = sshll.u32 %s12858_s21, 4  ;;  %p9028_p0 = scmp.ge.s32.totalorder %s12856_s20, 1  ;;  %s310_s22 = int_to_ptr.vmem [resolvable:$true] %s309_s22 }
  0x10   : > { %p13517_p1 = scmp.eq.s32.totalorder %s12953_s23, 0  ;;  %p297_p2 = scmp.lt.s32.totalorder %s12856_s20, 3 }
  0x11   : > { %s12859_s25 = smov [#allocation9]   ;;  %s12860_s28 = smov [#allocation8]  }
  0x12   : > { %p12958_p3 = pnand %p9028_p0, %p297_p2  ;;  %s341_s26 = sshll.u32 %s12859_s25, 4  ;;  %s12971_s26 = int_to_ptr.vmem [resolvable:$true] %s341_s26 }
  0x13   : > { %s325_s29 = sshll.u32 %s12860_s28, 4  ;;  %s12633_s12 = scalar_lea.vmem %s310_s22, 18432  ;;  %s12973_s29 = int_to_ptr.vmem [resolvable:$true] %s325_s29 }
  0x14   : > { %s13534_s24 = scalar_select %p12958_p3, 1, 0 }
  0x15   : > { %p12174_p5 = pneg %p12958_p3  ;;  %p12634_p8 = scmp.ne.s32.totalorder %s310_s22, %s12633_s12 }
  0x16   : > { %p12641_p11 = scmp.lt.s32.totalorder %s310_s22, %s310_s22  ;;  %p12642_p12 = scmp.lt.s32.totalorder %s12633_s12, %s12633_s12 }
  0x17   : > { %p12967_p6 = pnand %p12174_p5, %p13517_p1 }
  0x18   : > { %p12643_p13 = por %p12642_p12, %p12641_p11 }
  0x19   : > { %p12977_p7 = pneg %p12967_p6 }
  0x1b   : > { %p12636_p9 = pnand %p12634_p8, %p12977_p7 }
  0x1d   : > { %p12637_p10 = pneg %p12636_p9 }
  0x1f   : > { %p12644_p0 = pnand %p12643_p13, %p12637_p10 }
  0x21   : > { %12647 = shalt.err (!%p12644_p0)
}
  0x22   : > { %s12861_s13 = smov 128   ;;  %s12862_s14 = smov 8  }
  0x23   : > { %s13537_s1 = sld [smem:[#allocation27_spill]]  ;;  %s12659_s21 = scalar_lea.vmem %s12971_s26, 18432 }
  0x24   : > { %p12660_p2 = scmp.ne.s32.totalorder %s12971_s26, %s12659_s21  ;;  %p12667_p9 = scmp.lt.s32.totalorder %s12971_s26, %s12971_s26 }
  0x25   : > { %p12668_p10 = scmp.lt.s32.totalorder %s12659_s21, %s12659_s21 }
  0x26   : > { %p12662_p5 = pnand %p12660_p2, %p12977_p7 }
  0x27   : > { %p12669_p11 = por %p12668_p10, %p12667_p9 }
  0x28   : > { %p12663_p8 = pneg %p12662_p5 }
  0x29   : > { %12177 = dma.hbm_to_vmem [thread:$0]  (!%p12967_p6), %s13537_s1, 18432, %s310_s22, [#allocation7], %s12861_s13, %s12861_s13, %s12862_s14  }
  0x2a   : > { %p12670_p12 = pnand %p12669_p11, %p12663_p8 }
  0x2c   : > { %12673 = shalt.err (!%p12670_p12)
}
  0x2d   : > { %s13538_s5 = sld [smem:[#allocation29_spill]]  ;;  %s12685_s22 = scalar_lea.vmem %s12973_s29, 18432 }
  0x2e   : > { %p12686_p13 = scmp.ne.s32.totalorder %s12973_s29, %s12685_s22  ;;  %p12693_p5 = scmp.lt.s32.totalorder %s12973_s29, %s12973_s29 }
  0x2f   : > { %p12694_p8 = scmp.lt.s32.totalorder %s12685_s22, %s12685_s22 }
  0x30   : > { %p12688_p0 = pnand %p12686_p13, %p12977_p7 }
  0x31   : > { %p12695_p9 = por %p12694_p8, %p12693_p5 }
  0x32   : > { %p12689_p2 = pneg %p12688_p0 }
  0x33   : > { %12183 = dma.hbm_to_vmem [thread:$0]  (!%p12967_p6), %s13538_s5, 18432, %s12971_s26, [#allocation10], %s12861_s13, %s12861_s13, %s12862_s14  }
  0x34   : > { %p12696_p10 = pnand %p12695_p9, %p12689_p2 }
  0x36   : > { %12699 = shalt.err (!%p12696_p10)
}
  0x37   : > { %s13539_s3 = sld [smem:[#allocation28_spill]]  ;;  %s12863_s26 = smov [#allocation11]  }
  0x38   : > { %s357_s16 = sshll.u32 %s12863_s26, 4  ;;  %s12864_s21 = smov [#allocation12]   ;;  %s358_s16 = int_to_ptr.vmem [resolvable:$true] %s357_s16 }
  0x39   : > { %s373_s25 = sshll.u32 %s12864_s21, 4  ;;  %s12711_s28 = scalar_lea.vmem %s358_s16, 18432  ;;  %s374_s25 = int_to_ptr.vmem [resolvable:$true] %s373_s25 }
  0x3a   : > { %p12712_p11 = scmp.ne.s32.totalorder %s358_s16, %s12711_s28  ;;  %p12719_p0 = scmp.lt.s32.totalorder %s358_s16, %s358_s16 }
  0x3b   : > { %p12720_p2 = scmp.lt.s32.totalorder %s12711_s28, %s12711_s28 }
  0x3c   : > { %p12714_p12 = pnand %p12712_p11, %p12977_p7 }
  0x3d   : > { %12180 = dma.hbm_to_vmem [thread:$0]  (!%p12967_p6), %s13539_s3, 18432, %s12973_s29, [#allocation7], %s12861_s13, %s12861_s13, %s12862_s14  }
  0x3e   : > { %p12715_p13 = pneg %p12714_p12  ;;  %p12721_p5 = por %p12720_p2, %p12719_p0 }
  0x40   : > { %p12722_p8 = pnand %p12721_p5, %p12715_p13 }
  0x42   : > { %12725 = shalt.err (!%p12722_p8)
}
  0x43   : > { %s13540_s7 = sld [smem:[#allocation30_spill]]  ;;  %s12737_s12 = scalar_lea.vmem %s374_s25, 18432 }
  0x44   : > { %p12738_p9 = scmp.ne.s32.totalorder %s374_s25, %s12737_s12  ;;  %p12745_p12 = scmp.lt.s32.totalorder %s374_s25, %s374_s25 }
  0x45   : > { %p12746_p0 = scmp.lt.s32.totalorder %s12737_s12, %s12737_s12 }
  0x46   : > { %p12740_p10 = pnand %p12738_p9, %p12977_p7 }
  0x47   : > { %p12747_p13 = por %p12746_p0, %p12745_p12 }
  0x48   : > { %p12741_p11 = pneg %p12740_p10 }
  0x49   : > { %12186 = dma.hbm_to_vmem [thread:$0]  (!%p12967_p6), %s13540_s7, 18432, %s358_s16, [#allocation10], %s12861_s13, %s12861_s13, %s12862_s14  }
  0x4a   : > { %p12748_p2 = pnand %p12747_p13, %p12741_p11 }
  0x4c   : > { %12751 = shalt.err (!%p12748_p2)
}
  0x4d   : > { %s13541_s9 = sld [smem:[#allocation31_spill]]  ;;  %s9027_s27 = sadd.s32 4294967294, %s12856_s20  }
  0x4e   : > { %s13043_s30 = sadd.s32 1, %s12856_s20   ;;  %s37_s16 = sadd.s32 1, %s12852_s19 }
  0x4f   : > { %s34_s21 = ssub.s32 %s12856_s20, %s13043_s30  ;;  %p44_p7 = scmp.ne.s32.totalorder %s12852_s19, %s12848_s18 }
  0x50   : > { %p35_p5 = scmp.eq.s32.totalorder %s34_s21, 0  ;;  %p45_p8 = scmp.eq.s32.totalorder %s12856_s20, 0 }
  0x51   : > { %p50_p9 = scmp.ne.s32.totalorder %s12848_s18, %s12844_s17  ;;  %p284_p10 = scmp.eq.s32.totalorder %s12953_s23, 1 }
  0x52   : > { %s13055_s28 = scalar_select %p35_p5, %s12852_s19, %s37_s16  }
  0x53   : > { %12189 = dma.hbm_to_vmem [thread:$0]  (!%p12967_p6), %s13541_s9, 18432, %s374_s25, [#allocation13], %s12861_s13, %s12861_s13, %s12862_s14  }
  0x54   : > { %p46_p11 = por %p45_p8, %p44_p7  ;;  %p13059_p12 = por %p13517_p1, %p50_p9 }
  0x55   : > { %p13063_p6 = por %p284_p10, %p44_p7  ;;  %p290_p0 = scmp.eq.s32.totalorder %s9027_s27, 1 }
  0x56   : > { %s13542_s29 = scalar_select %p13059_p12, 1, 0 }
  0x57   : > { %s13543_s13 = scalar_select %p13063_p6, 1, 0 }
  0x58   : > { %p12203_p13 = scmp.lt.s32.totalorder %s12856_s20, 2  ;;  %s390_s14 = sand.u32 1, %s12852_s19  }
  0x59   : > { %p13069_p2 = por %p290_p0, %p50_p9  ;;  %s9035_s22 = sshll.u32 %s390_s14, 6 }
  0x5a   : > { %s9056_s12 = sshll.u32 %s12856_s20, 10  ;;  %s394_s21 = scalar_lea.vmem [#allocation3], %s9035_s22 }
  0x5b   : > { %s13544_s25 = scalar_select %p13069_p2, 1, 0 }
  0x5c   : > { %s13077_s16 = scalar_lea.hbm %s13505_s0, %s9056_s12  ;;  %s401_s1 = sshll.u32 %s394_s21, 4  ;;  %s13083_s1 = int_to_ptr.vmem [resolvable:$true] %s401_s1 }
  0x5d   : > { %p13079_p7 = pnand %p12203_p13, %p46_p11  ;;  %s13085_s3 = scalar_lea.sflag [#allocation4], %s390_s14 }
  0x5e   : > { %s12752_s5 = scalar_lea.hbm %s13077_s16, 1024  ;;  %s12757_s22 = scalar_lea.hbm %s13505_s0, 2048 }
  0x5f   : > { %p12753_p5 = scmp.ne.s32.totalorder %s13077_s16, %s12752_s5  ;;  %p12754_p8 = pneg %p13079_p7 }
  0x60   : > { %p12758_p11 = scmp.lt.s32.totalorder %s13077_s16, %s13505_s0  ;;  %p12759_p0 = scmp.lt.s32.totalorder %s12757_s22, %s12752_s5 }
  0x61   : > { %p12755_p9 = pnand %p12754_p8, %p12753_p5 }
  0x62   : > { %p12760_p13 = por %p12759_p0, %p12758_p11 }
  0x63   : > { %p12756_p10 = pneg %p12755_p9 }
  0x65   : > { %p12761_p4 = pnand %p12760_p13, %p12756_p10 }
  0x67   : > { %12764 = shalt.err (!%p12761_p4)
}
  0x68   : > { %s12765_s14 = scalar_lea.vmem %s13083_s1, 1024  ;;  %s12865_s7 = smov [#allocation3]  }
  0x69   : > { %p12766_p1 = scmp.ne.s32.totalorder %s13083_s1, %s12765_s14  ;;  %s12770_s9 = sshll.u32 %s12865_s7, 4  ;;  %s12771_s9 = int_to_ptr.vmem [resolvable:$false] %s12770_s9 }
  0x6a   : > { %s12772_s12 = scalar_lea.vmem %s12771_s9, 2048  ;;  %p12773_p9 = scmp.lt.s32.totalorder %s13083_s1, %s12771_s9 }
  0x6b   : > { %p12768_p2 = pnand %p12766_p1, %p12754_p8  ;;  %p12774_p6 = scmp.lt.s32.totalorder %s12772_s12, %s12765_s14 }
  0x6d   : > { %p12769_p5 = pneg %p12768_p2  ;;  %p12775_p12 = por %p12774_p6, %p12773_p9 }
  0x6f   : > { %p12776_p3 = pnand %p12775_p12, %p12769_p5 }
  0x71   : > { %12779 = shalt.err (!%p12776_p3)
}
  0x72   : > { %s12866_s5 = smov 64   ;;  %s12867_s15 = smov 4  }
  0x73   : > { %12193 = dma.hbm_to_vmem [thread:$0]  (!%p13079_p7), %s13077_s16, 1024, %s13083_s1, %s13085_s3, %s12866_s5, %s12866_s5, %s12867_s15  }
  0x74   : > { %p13546_p1 = scmp.ne.s32.totalorder %s13534_s24, 0 }
  0x76   : > { %413 = sbr.rel (%p13546_p1) target bundleno = 2021 (0x7e5), region = 64 }
  0x7b   : > { %s13109_s7 = sand.u32 1, %s12848_s18   ;;  %p13547_p3 = scmp.ne.s32.totalorder %s13542_s29, 0 }
  0x7c   : > { %s9039_s9 = sshll.u32 %s13109_s7, 6  ;;  %s416_s22 = scalar_lea.sflag [#allocation4], %s13109_s7 }
  0x7d   : > { %s13115_s26 = scalar_lea.vmem [#allocation3], %s9039_s9 }
  0x7e   : > { %12823 = dma.done.wait (%p13547_p3), %s416_s22, 1024  }
  0x7f   : > { %12825 = vsyncadd (%p13547_p3), %s416_s22, 4294966272  ;;  %p13548_p4 = scmp.eq.s32.totalorder %s12953_s23, 0 }
  0x81   : > { %12827 = dma.done.wait (%p13548_p4), [#allocation7], 36864   ;;  %p13549_p12 = pmov %p13548_p4 }
  0x82   : > { %p13550_p6 = pmov %p13548_p4 }
  0x83   : > { %12829 = vsyncadd (%p13549_p12), [#allocation7], 4294930432 }
  0x84   : > { %12831 = dma.done.wait (%p13550_p6), [#allocation10], 36864   ;;  %p13551_p2 = pmov %p13548_p4 }
  0x86   : > { %12833 = vsyncadd (%p13551_p2), [#allocation10], 4294930432  ;;  %p13552_p7 = pmov %p13551_p2 }
  0x87   : > { %p13553_p8 = pmov %p13551_p2 }
  0x88   : > { %12835 = dma.done.wait (%p13552_p7), [#allocation13], 18432  }
  0x89   : > { %12837 = vsyncadd (%p13553_p8), [#allocation13], 4294948864  ;;  %v12868_v0 = vmov 0.0   ;;  %v611_v1 = vld [vmem:[#allocation6 + $0xf8] sm:$0xff]  ;;  %v610_v3 = vld [vmem:[#allocation6 + $0xf0] sm:$0xff]  ;;  %s13441_s15 = scalar_lea.vmem [#allocation14], %s9039_s9 }
  0x8a   : > { %479 = vst [vmem:[#allocation2] sm:$0xff] %v12868_v0  ;;  %481 = vst [vmem:[#allocation2 + $0x88] sm:$0xff] %v12868_v0  ;;  %v578_v2 = vld [vmem:[#allocation6 + $0x78] sm:$0xff]  ;;  %10138 = vmatprep.subr.mxu0 %v611_v1  ;;  %v577_v4 = vld [vmem:[#allocation6 + $0x70] sm:$0xff]  ;;  %s9057_s9 = sshll.u32 %s12953_s23, 10  ;;  %s8906_s22 = sshll.u32 %s13441_s15, 4  ;;  %s13460_s22 = int_to_ptr.vmem [resolvable:$true] %s8906_s22 }
  0x8b   : > { %483 = vst [vmem:[#allocation2 + $0x8] sm:$0x1] %v12868_v0  ;;  %484 = vst [vmem:[#allocation2 + $0x10] sm:$0x1] %v12868_v0  ;;  %10182 = vmatprep.subr.mxu1 %v578_v2  ;;  %10139 = vmatpush3.msra.mxu0 %v611_v1  ;;  %v609_v5 = vld [vmem:[#allocation6 + $0xe8] sm:$0xff]  ;;  %v608_v7 = vld [vmem:[#allocation6 + $0xe0] sm:$0xff]  ;;  %s13458_s3 = scalar_lea.hbm %s13516_s11, %s9057_s9 }
  0x8c   : > { %485 = vst [vmem:[#allocation2 + $0x18] sm:$0x1] %v12868_v0  ;;  %486 = vst [vmem:[#allocation2 + $0x20] sm:$0x1] %v12868_v0  ;;  %10183 = vmatpush3.msra.mxu1 %v578_v2  ;;  %v576_v6 = vld [vmem:[#allocation6 + $0x68] sm:$0xff]  ;;  %10140 = vmatprep.subr.mxu0 %v610_v3  ;;  %v575_v8 = vld [vmem:[#allocation6 + $0x60] sm:$0xff] }
  0x8d   : > { %487 = vst [vmem:[#allocation2 + $0x28] sm:$0x1] %v12868_v0  ;;  %488 = vst [vmem:[#allocation2 + $0x30] sm:$0x1] %v12868_v0  ;;  %10184 = vmatprep.subr.mxu1 %v577_v4  ;;  %10141 = vmatpush3.msra.mxu0 %v610_v3  ;;  %v607_v9 = vld [vmem:[#allocation6 + $0xd8] sm:$0xff]  ;;  %v606_v11 = vld [vmem:[#allocation6 + $0xd0] sm:$0xff] }
  0x8e   : > { %489 = vst [vmem:[#allocation2 + $0x38] sm:$0x1] %v12868_v0  ;;  %490 = vst [vmem:[#allocation2 + $0x40] sm:$0x1] %v12868_v0  ;;  %10185 = vmatpush3.msra.mxu1 %v577_v4  ;;  %10142 = vmatprep.subr.mxu0 %v609_v5  ;;  %v574_v10 = vld [vmem:[#allocation6 + $0x58] sm:$0xff]  ;;  %v573_v12 = vld [vmem:[#allocation6 + $0x50] sm:$0xff] }
  0x8f   : > { %491 = vst [vmem:[#allocation2 + $0x48] sm:$0x1] %v12868_v0  ;;  %492 = vst [vmem:[#allocation2 + $0x50] sm:$0x1] %v12868_v0  ;;  %10186 = vmatprep.subr.mxu1 %v576_v6  ;;  %10143 = vmatpush3.msra.mxu0 %v609_v5  ;;  %v605_v13 = vld [vmem:[#allocation6 + $0xc8] sm:$0xff]  ;;  %v604_v17 = vld [vmem:[#allocation6 + $0xc0] sm:$0xff] }
  0x90   : > { %493 = vst [vmem:[#allocation2 + $0x58] sm:$0x1] %v12868_v0  ;;  %494 = vst [vmem:[#allocation2 + $0x60] sm:$0x1] %v12868_v0  ;;  %10187 = vmatpush3.msra.mxu1 %v576_v6  ;;  %10144 = vmatprep.subr.mxu0 %v608_v7  ;;  %v572_v14 = vld [vmem:[#allocation6 + $0x48] sm:$0xff]  ;;  %v571_v18 = vld [vmem:[#allocation6 + $0x40] sm:$0xff] }
  0x91   : > { %495 = vst [vmem:[#allocation2 + $0x68] sm:$0x1] %v12868_v0  ;;  %496 = vst [vmem:[#allocation2 + $0x70] sm:$0x1] %v12868_v0  ;;  %10188 = vmatprep.subr.mxu1 %v575_v8  ;;  %10145 = vmatpush3.msra.mxu0 %v608_v7  ;;  %v515_v15 = vld [vmem:[%s13115_s26] sm:$0xf] }
  0x92   : > { %497 = vst [vmem:[#allocation2 + $0x78] sm:$0x1] %v12868_v0  ;;  %498 = vst [vmem:[#allocation2 + $0x80] sm:$0x1] %v12868_v0  ;;  %10189 = vmatpush3.msra.mxu1 %v575_v8  ;;  %10146 = vmatprep.subr.mxu0 %v607_v9  ;;  %v516_v16 = vld [vmem:[%s13115_s26 + $0x4] sm:$0xf] }
  0x93   : > { %499 = vst [vmem:[#allocation2 + $0xd] sm:$0x1] %v12868_v0  ;;  %500 = vst [vmem:[#allocation2 + $0x15] sm:$0x1] %v12868_v0  ;;  %10190 = vmatprep.subr.mxu1 %v574_v10  ;;  %10147 = vmatpush3.msra.mxu0 %v607_v9  ;;  %v517_v19 = vld [vmem:[%s13115_s26 + $0x8] sm:$0xf] }
  0x94   : > { %501 = vst [vmem:[#allocation2 + $0x1d] sm:$0x1] %v12868_v0  ;;  %502 = vst [vmem:[#allocation2 + $0x25] sm:$0x1] %v12868_v0  ;;  %10191 = vmatpush3.msra.mxu1 %v574_v10  ;;  %10148 = vmatprep.subr.mxu0 %v606_v11  ;;  %v603_v20 = vld [vmem:[#allocation6 + $0xb8] sm:$0xff]  ;;  %v602_v22 = vld [vmem:[#allocation6 + $0xb0] sm:$0xff] }
  0x95   : > { %503 = vst [vmem:[#allocation2 + $0x2d] sm:$0x1] %v12868_v0  ;;  %504 = vst [vmem:[#allocation2 + $0x35] sm:$0x1] %v12868_v0  ;;  %10192 = vmatprep.subr.mxu1 %v573_v12  ;;  %10149 = vmatpush3.msra.mxu0 %v606_v11  ;;  %v570_v21 = vld [vmem:[#allocation6 + $0x38] sm:$0xff]  ;;  %v569_v23 = vld [vmem:[#allocation6 + $0x30] sm:$0xff] }
  0x96   : > { %505 = vst [vmem:[#allocation2 + $0x3d] sm:$0x1] %v12868_v0  ;;  %506 = vst [vmem:[#allocation2 + $0x45] sm:$0x1] %v12868_v0  ;;  %10193 = vmatpush3.msra.mxu1 %v573_v12  ;;  %10150 = vmatprep.subr.mxu0 %v605_v13  ;;  %v601_v24 = vld [vmem:[#allocation6 + $0xa8] sm:$0xff]  ;;  %v600_v26 = vld [vmem:[#allocation6 + $0xa0] sm:$0xff] }
  0x97   : > { %507 = vst [vmem:[#allocation2 + $0x4d] sm:$0x1] %v12868_v0  ;;  %508 = vst [vmem:[#allocation2 + $0x55] sm:$0x1] %v12868_v0  ;;  %10194 = vmatprep.subr.mxu1 %v572_v14  ;;  %10151 = vmatpush3.msra.mxu0 %v605_v13  ;;  %v568_v25 = vld [vmem:[#allocation6 + $0x28] sm:$0xff]  ;;  %v567_v27 = vld [vmem:[#allocation6 + $0x20] sm:$0xff] }
  0x98   : > { %509 = vst [vmem:[#allocation2 + $0x5d] sm:$0x1] %v12868_v0  ;;  %510 = vst [vmem:[#allocation2 + $0x65] sm:$0x1] %v12868_v0  ;;  %10195 = vmatpush3.msra.mxu1 %v572_v14  ;;  %10152 = vmatprep.subr.mxu0 %v604_v17  ;;  %v518_v28 = vld [vmem:[%s13115_s26 + $0xc] sm:$0xf] }
  0x99   : > { %511 = vst [vmem:[#allocation2 + $0x6d] sm:$0x1] %v12868_v0  ;;  %512 = vst [vmem:[#allocation2 + $0x75] sm:$0x1] %v12868_v0  ;;  %10196 = vmatprep.subr.mxu1 %v571_v18  ;;  %10153 = vmatpush3.msra.mxu0 %v604_v17  ;;  %v519_v29 = vld [vmem:[%s13115_s26 + $0x10] sm:$0xf] }
  0x9a   : > { %513 = vst [vmem:[#allocation2 + $0x7d] sm:$0x1] %v12868_v0  ;;  %514 = vst [vmem:[#allocation2 + $0x85] sm:$0x1] %v12868_v0  ;;  %10197 = vmatpush3.msra.mxu1 %v571_v18  ;;  %10154 = vmatprep.subr.mxu0 %v603_v20  ;;  %v599_v30 = vld [vmem:[#allocation6 + $0x98] sm:$0xff]  ;;  %v598_v33 = vld [vmem:[#allocation6 + $0x90] sm:$0xff] }
  0x9b   : > { %531 = vst [vmem:[#allocation2 + $0x9] sm:$0xf] %v515_v15  ;;  %532 = vst [vmem:[#allocation2 + $0x11] sm:$0xf] %v516_v16  ;;  %10198 = vmatprep.subr.mxu1 %v570_v21  ;;  %10155 = vmatpush3.msra.mxu0 %v603_v20  ;;  %v566_v31 = vld [vmem:[#allocation6 + $0x18] sm:$0xff]  ;;  %v565_v35 = vld [vmem:[#allocation6 + $0x10] sm:$0xff] }
  0x9c   : > { %533 = vst [vmem:[#allocation2 + $0x19] sm:$0xf] %v517_v19  ;;  %10199 = vmatpush3.msra.mxu1 %v570_v21  ;;  %10156 = vmatprep.subr.mxu0 %v602_v22  ;;  %534 = vst [vmem:[#allocation2 + $0x21] sm:$0xf] %v518_v28  ;;  %v520_v32 = vld [vmem:[%s13115_s26 + $0x14] sm:$0xf] }
  0x9d   : > { %10200 = vmatprep.subr.mxu1 %v569_v23  ;;  %10157 = vmatpush3.msra.mxu0 %v602_v22  ;;  %535 = vst [vmem:[#allocation2 + $0x29] sm:$0xf] %v519_v29  ;;  %v521_v34 = vld [vmem:[%s13115_s26 + $0x18] sm:$0xf]  ;;  %536 = vst [vmem:[#allocation2 + $0x31] sm:$0xf] %v520_v32 }
  0x9e   : > { %10201 = vmatpush3.msra.mxu1 %v569_v23  ;;  %10158 = vmatprep.subr.mxu0 %v601_v24  ;;  %537 = vst [vmem:[#allocation2 + $0x39] sm:$0xf] %v521_v34  ;;  %v522_v36 = vld [vmem:[%s13115_s26 + $0x1c] sm:$0xf]  ;;  %v523_v37 = vld [vmem:[%s13115_s26 + $0x20] sm:$0xf] }
  0x9f   : > { %10202 = vmatprep.subr.mxu1 %v568_v25  ;;  %10159 = vmatpush3.msra.mxu0 %v601_v24  ;;  %v597_v38 = vld [vmem:[#allocation6 + $0x88] sm:$0xff]  ;;  %538 = vst [vmem:[#allocation2 + $0x41] sm:$0xf] %v522_v36  ;;  %539 = vst [vmem:[#allocation2 + $0x49] sm:$0xf] %v523_v37  ;;  %v596_v42 = vld [vmem:[#allocation6 + $0x80] sm:$0xff] }
  0xa0   : > { %10203 = vmatpush3.msra.mxu1 %v568_v25  ;;  %10160 = vmatprep.subr.mxu0 %v600_v26  ;;  %v524_v39 = vld [vmem:[%s13115_s26 + $0x24] sm:$0xf]  ;;  %v525_v40 = vld [vmem:[%s13115_s26 + $0x28] sm:$0xf]  ;;  %v526_v43 = vld [vmem:[%s13115_s26 + $0x2c] sm:$0xf] }
  0xa1   : > { %10204 = vmatprep.subr.mxu1 %v567_v27  ;;  %10161 = vmatpush3.msra.mxu0 %v600_v26  ;;  %v564_v41 = vld [vmem:[#allocation6 + $0x8] sm:$0xff]  ;;  %540 = vst [vmem:[#allocation2 + $0x51] sm:$0xf] %v524_v39  ;;  %541 = vst [vmem:[#allocation2 + $0x59] sm:$0xf] %v525_v40  ;;  %v563_v44 = vld [vmem:[#allocation6] sm:$0xff] }
  0xa2   : > { %10205 = vmatpush3.msra.mxu1 %v567_v27  ;;  %10162 = vmatprep.subr.mxu0 %v599_v30  ;;  %v12254_v45 = vld [vmem:[#allocation2 + $0x1] ss:$8 sps:$4 sm:$0xff]   ;;  %542 = vst [vmem:[#allocation2 + $0x61] sm:$0xf] %v526_v43  ;;  %v916_v56 = vld [vmem:[#allocation6 + $0x168] sm:$0xff]  ;;  %v915_v58 = vld [vmem:[#allocation6 + $0x160] sm:$0xff] }
  0xa3   : > { %10206 = vmatprep.subr.mxu1 %v566_v31  ;;  %10163 = vmatpush3.msra.mxu0 %v599_v30  ;;  %v527_v46 = vld [vmem:[%s13115_s26 + $0x30] sm:$0xf]  ;;  %v528_v48 = vld [vmem:[%s13115_s26 + $0x34] sm:$0xf]  ;;  %v529_v49 = vld [vmem:[%s13115_s26 + $0x38] sm:$0xf] }
  0xa4   : > { %10207 = vmatpush3.msra.mxu1 %v566_v31  ;;  %10164 = vmatprep.subr.mxu0 %v598_v33  ;;  %v12255_v47 = vld [vmem:[#allocation2] ss:$8 sps:$4 sm:$0xff]   ;;  %543 = vst [vmem:[#allocation2 + $0x69] sm:$0xf] %v527_v46  ;;  %v12256_v50 = vld [vmem:[#allocation2 + $0x11] ss:$8 sps:$4 sm:$0xff]  }
  0xa5   : > { %10208 = vmatprep.subr.mxu1 %v565_v35  ;;  %10165 = vmatpush3.msra.mxu0 %v598_v33  ;;  %544 = vst [vmem:[#allocation2 + $0x71] sm:$0xf] %v528_v48  ;;  %545 = vst [vmem:[#allocation2 + $0x79] sm:$0xf] %v529_v49  ;;  %v12257_v51 = vld [vmem:[#allocation2 + $0x10] ss:$8 sps:$4 sm:$0xff]  }
  0xa6   : > { %10209 = vmatpush3.msra.mxu1 %v565_v35  ;;  %10166 = vmatprep.subr.mxu0 %v597_v38  ;;  %v918_v52 = vld [vmem:[#allocation6 + $0x178] sm:$0xff]  ;;  %v917_v54 = vld [vmem:[#allocation6 + $0x170] sm:$0xff]  ;;  %v1094_v57 = vld [vmem:[#allocation6 + $0x1e8] sm:$0xff]  ;;  %s8893_s23 = scalar_lea.sflag [#allocation5], %s13109_s7  ;;  %s12780_s24 = scalar_lea.vmem %s13460_s22, 1024 }
  0xa7   : > { %10210 = vmatprep.subr.mxu1 %v564_v41  ;;  %10167 = vmatpush3.msra.mxu0 %v597_v38  ;;  %v1096_v53 = vld [vmem:[#allocation6 + $0x1f8] sm:$0xff]  ;;  %v1095_v55 = vld [vmem:[#allocation6 + $0x1f0] sm:$0xff]  ;;  %v1093_v59 = vld [vmem:[#allocation6 + $0x1e0] sm:$0xff]  ;;  %p12781_p10 = scmp.ne.s32.totalorder %s13460_s22, %s12780_s24  ;;  %p13604_p11 = scmp.ne.s32.totalorder %s13543_s13, 0 }
  0xa8   : > { %10211 = vmatpush3.msra.mxu1 %v564_v41  ;;  %10168 = vmatprep.subr.mxu0 %v596_v42  ;;  %v914_v60 = vld [vmem:[#allocation6 + $0x158] sm:$0xff]  ;;  %v913_v62 = vld [vmem:[#allocation6 + $0x150] sm:$0xff]  ;;  %v912_v0 = vld [vmem:[#allocation6 + $0x148] sm:$0xff]  ;;  %s12869_s29 = smov [#allocation14]  }
  0xa9   : > { %10212 = vmatprep.subr.mxu1 %v563_v44  ;;  %10169 = vmatpush3.msra.mxu0 %v596_v42  ;;  %v1092_v61 = vld [vmem:[#allocation6 + $0x1d8] sm:$0xff]  ;;  %v1091_v63 = vld [vmem:[#allocation6 + $0x1d0] sm:$0xff]  ;;  %v1090_v1 = vld [vmem:[#allocation6 + $0x1c8] sm:$0xff]  ;;  %p12782_p0 = pnand %p12781_p10, %p13604_p11  ;;  %s12784_s16 = sshll.u32 %s12869_s29, 4  ;;  %s12785_s16 = int_to_ptr.vmem [resolvable:$false] %s12784_s16 }
  0xaa   : > { %10170 = vmatprep.mubr.f32.mxu0 %v12254_v45  ;;  %10213 = vmatpush3.msra.mxu1 %v563_v44  ;;  %v911_v2 = vld [vmem:[#allocation6 + $0x140] sm:$0xff]  ;;  %v910_v3 = vld [vmem:[#allocation6 + $0x138] sm:$0xff]  ;;  %v909_v7 = vld [vmem:[#allocation6 + $0x130] sm:$0xff]  ;;  %s12786_s27 = scalar_lea.vmem %s12785_s16, 2048  ;;  %p12787_p5 = scmp.lt.s32.totalorder %s13460_s22, %s12785_s16 }
  0xab   : > { %10214 = vmatprep.mubr.f32.mxu1 %v12255_v47  ;;  %10171 = vmatmul.mubr.f32.vlgmr.msra.gmra.mxu0 %v12256_v50  ;;  %v1089_v4 = vld [vmem:[#allocation6 + $0x1c0] sm:$0xff]  ;;  %v12258_v5 = vld [vmem:[#allocation2 + $0x21] ss:$8 sps:$4 sm:$0xff]   ;;  %v908_v11 = vld [vmem:[#allocation6 + $0x128] sm:$0xff]  ;;  %p12783_p13 = pneg %p12782_p0  ;;  %p12788_p9 = scmp.lt.s32.totalorder %s12786_s27, %s12780_s24 }
  0xac   : > { %10215 = vmatmul.mubr.f32.vlgmr.msra.gmra.mxu1 %v12257_v51  ;;  %10226 = vmatprep.subr.mxu0 %v918_v52  ;;  %v12259_v6 = vld [vmem:[#allocation2 + $0x20] ss:$8 sps:$4 sm:$0xff]   ;;  %v12260_v9 = vld [vmem:[#allocation2 + $0x31] ss:$8 sps:$4 sm:$0xff]   ;;  %v530_v25 = vld [vmem:[%s13115_s26 + $0x3c] sm:$0xf] }
  0xad   : > { %10270 = vmatprep.subr.mxu1 %v1096_v53  ;;  %10227 = vmatpush3.msra.mxu0 %v918_v52  ;;  %v1088_v8 = vld [vmem:[#allocation6 + $0x1b8] sm:$0xff]  ;;  %v12261_v10 = vld [vmem:[#allocation2 + $0x30] ss:$8 sps:$4 sm:$0xff]   ;;  %v1087_v12 = vld [vmem:[#allocation6 + $0x1b0] sm:$0xff]  ;;  %546 = vst [vmem:[#allocation2 + $0x81] sm:$0xf] %v530_v25  ;;  %p12789_p1 = por %p12788_p9, %p12787_p5 }
  0xae   : > { %10271 = vmatpush3.msra.mxu1 %v1096_v53  ;;  %10228 = vmatprep.subr.mxu0 %v917_v54  ;;  %v12262_v13 = vld [vmem:[#allocation2 + $0x41] ss:$8 sps:$4 sm:$0xff]   ;;  %v907_v15 = vld [vmem:[#allocation6 + $0x120] sm:$0xff]  ;;  %v1086_v16 = vld [vmem:[#allocation6 + $0x1a8] sm:$0xff] }
  0xaf   : > { %10272 = vmatprep.subr.mxu1 %v1095_v55  ;;  %10229 = vmatpush3.msra.mxu0 %v917_v54  ;;  %v12263_v14 = vld [vmem:[#allocation2 + $0x40] ss:$8 sps:$4 sm:$0xff]   ;;  %v12264_v17 = vld [vmem:[#allocation2 + $0x51] ss:$8 sps:$4 sm:$0xff]   ;;  %p12790_p3 = pnand %p12789_p1, %p12783_p13 }
  0xb0   : > { %10273 = vmatpush3.msra.mxu1 %v1095_v55  ;;  %10230 = vmatprep.subr.mxu0 %v916_v56  ;;  %v12265_v18 = vld [vmem:[#allocation2 + $0x50] ss:$8 sps:$4 sm:$0xff]   ;;  %v906_v19 = vld [vmem:[#allocation6 + $0x118] sm:$0xff]  ;;  %v905_v23 = vld [vmem:[#allocation6 + $0x110] sm:$0xff] }
  0xb1   : > { %10274 = vmatprep.subr.mxu1 %v1094_v57  ;;  %10231 = vmatpush3.msra.mxu0 %v916_v56  ;;  %v1085_v20 = vld [vmem:[#allocation6 + $0x1a0] sm:$0xff]  ;;  %v12266_v21 = vld [vmem:[#allocation2 + $0x61] ss:$8 sps:$4 sm:$0xff]   ;;  %v904_v28 = vld [vmem:[#allocation6 + $0x108] sm:$0xff] }
  0xb2   : > { %10275 = vmatpush3.msra.mxu1 %v1094_v57  ;;  %10232 = vmatprep.subr.mxu0 %v915_v58  ;;  %v12267_v22 = vld [vmem:[#allocation2 + $0x60] ss:$8 sps:$4 sm:$0xff]   ;;  %v12268_v26 = vld [vmem:[#allocation2 + $0x71] ss:$8 sps:$4 sm:$0xff]  }
  0xb3   : > { %10276 = vmatprep.subr.mxu1 %v1093_v59  ;;  %10233 = vmatpush3.msra.mxu0 %v915_v58  ;;  %v1084_v24 = vld [vmem:[#allocation6 + $0x198] sm:$0xff]  ;;  %v12269_v27 = vld [vmem:[#allocation2 + $0x70] ss:$8 sps:$4 sm:$0xff]   ;;  %v1083_v29 = vld [vmem:[#allocation6 + $0x190] sm:$0xff] }
  0xb4   : > { %10277 = vmatpush3.msra.mxu1 %v1093_v59  ;;  %10234 = vmatprep.subr.mxu0 %v914_v60  ;;  %v903_v30 = vld [vmem:[#allocation6 + $0x100] sm:$0xff]  ;;  %v1082_v31 = vld [vmem:[#allocation6 + $0x188] sm:$0xff]  ;;  %v12270_v32 = vld [vmem:[#allocation2 + $0x2] ss:$8 sps:$4 sm:$0xff]  }
  0xb5   : > { %10278 = vmatprep.subr.mxu1 %v1092_v61  ;;  %10235 = vmatpush3.msra.mxu0 %v914_v60  ;;  %v12271_v33 = vld [vmem:[#allocation2 + $0x12] ss:$8 sps:$4 sm:$0xff]   ;;  %v1274_v35 = vld [vmem:[#allocation6 + $0x278] sm:$0xff]  ;;  %v1273_v38 = vld [vmem:[#allocation6 + $0x270] sm:$0xff] }
  0xb6   : > { %10279 = vmatpush3.msra.mxu1 %v1092_v61  ;;  %10236 = vmatprep.subr.mxu0 %v913_v62  ;;  %v1081_v34 = vld [vmem:[#allocation6 + $0x180] sm:$0xff]  ;;  %v12273_v37 = vld [vmem:[#allocation2 + $0x18] ss:$8 sps:$4 sm:$0xff]   ;;  %v1452_v39 = vld [vmem:[#allocation6 + $0x2f8] sm:$0xff] }
  0xb7   : > { %10280 = vmatprep.subr.mxu1 %v1091_v63  ;;  %10237 = vmatpush3.msra.mxu0 %v913_v62  ;;  %v12272_v36 = vld [vmem:[#allocation2 + $0x8] ss:$8 sps:$4 sm:$0xff]   ;;  %v1272_v42 = vld [vmem:[#allocation6 + $0x268] sm:$0xff]  ;;  %v1451_v43 = vld [vmem:[#allocation6 + $0x2f0] sm:$0xff] }
  0xb8   : > { %10281 = vmatpush3.msra.mxu1 %v1091_v63  ;;  %10238 = vmatprep.subr.mxu0 %v912_v0  ;;  %v12274_v40 = vld [vmem:[#allocation2 + $0x22] ss:$8 sps:$4 sm:$0xff]   ;;  %v12275_v41 = vld [vmem:[#allocation2 + $0x32] ss:$8 sps:$4 sm:$0xff]  }
  0xb9   : > { %10282 = vmatprep.subr.mxu1 %v1090_v1  ;;  %10239 = vmatpush3.msra.mxu0 %v912_v0  ;;  %v12276_v44 = vld [vmem:[#allocation2 + $0x28] ss:$8 sps:$4 sm:$0xff]   ;;  %v12277_v45 = vld [vmem:[#allocation2 + $0x38] ss:$8 sps:$4 sm:$0xff]  }
  0xba   : > { %10283 = vmatpush3.msra.mxu1 %v1090_v1  ;;  %10240 = vmatprep.subr.mxu0 %v911_v2  ;;  %v1271_v46 = vld [vmem:[#allocation6 + $0x260] sm:$0xff]  ;;  %v1450_v47 = vld [vmem:[#allocation6 + $0x2e8] sm:$0xff]  ;;  %v12278_v48 = vld [vmem:[#allocation2 + $0x42] ss:$8 sps:$4 sm:$0xff]  }
  0xbb   : > { %10284 = vmatprep.subr.mxu1 %v1089_v4  ;;  %10241 = vmatpush3.msra.mxu0 %v911_v2  ;;  %v12279_v49 = vld [vmem:[#allocation2 + $0x52] ss:$8 sps:$4 sm:$0xff]   ;;  %v1270_v50 = vld [vmem:[#allocation6 + $0x258] sm:$0xff]  ;;  %v1269_v54 = vld [vmem:[#allocation6 + $0x250] sm:$0xff] }
  0xbc   : > { %10285 = vmatpush3.msra.mxu1 %v1089_v4  ;;  %10242 = vmatprep.subr.mxu0 %v910_v3  ;;  %v1449_v51 = vld [vmem:[#allocation6 + $0x2e0] sm:$0xff]  ;;  %v12281_v53 = vld [vmem:[#allocation2 + $0x58] ss:$8 sps:$4 sm:$0xff]   ;;  %v1448_v55 = vld [vmem:[#allocation6 + $0x2d8] sm:$0xff] }
  0xbd   : > { %10173 = vmatprep.mubr.f32.mxu0 %v12258_v5  ;;  %10243 = vmatpush3.msra.mxu0 %v910_v3  ;;  %v12280_v52 = vld [vmem:[#allocation2 + $0x48] ss:$8 sps:$4 sm:$0xff]   ;;  %v1268_v58 = vld [vmem:[#allocation6 + $0x248] sm:$0xff]  ;;  %v1447_v59 = vld [vmem:[#allocation6 + $0x2d0] sm:$0xff] }
  0xbe   : > { %10217 = vmatprep.mubr.f32.mxu1 %v12259_v6  ;;  %10244 = vmatprep.subr.mxu0 %v909_v7  ;;  %v12282_v56 = vld [vmem:[#allocation2 + $0x62] ss:$8 sps:$4 sm:$0xff]   ;;  %v12283_v57 = vld [vmem:[#allocation2 + $0x72] ss:$8 sps:$4 sm:$0xff]  }
  0xbf   : > { %10286 = vmatprep.subr.mxu1 %v1088_v8  ;;  %10174 = vmatmul.mubr.f32.gmra.mxu0 %v12260_v9  ;;  %v12284_v60 = vld [vmem:[#allocation2 + $0x68] ss:$8 sps:$4 sm:$0xff]   ;;  %v12285_v61 = vld [vmem:[#allocation2 + $0x78] ss:$8 sps:$4 sm:$0xff]  }
  0xc0   : > { %10218 = vmatmul.mubr.f32.gmra.mxu1 %v12261_v10  ;;  %10245 = vmatpush3.msra.mxu0 %v909_v7  ;;  %v1267_v62 = vld [vmem:[#allocation6 + $0x240] sm:$0xff]  ;;  %v1446_v63 = vld [vmem:[#allocation6 + $0x2c8] sm:$0xff]  ;;  %v1266_v0 = vld [vmem:[#allocation6 + $0x238] sm:$0xff] }
  0xc1   : > { %10287 = vmatpush3.msra.mxu1 %v1088_v8  ;;  %10246 = vmatprep.subr.mxu0 %v908_v11  ;;  %v1445_v1 = vld [vmem:[#allocation6 + $0x2c0] sm:$0xff]  ;;  %v1265_v2 = vld [vmem:[#allocation6 + $0x230] sm:$0xff]  ;;  %v1444_v3 = vld [vmem:[#allocation6 + $0x2b8] sm:$0xff] }
  0xc2   : > { %10288 = vmatprep.subr.mxu1 %v1087_v12  ;;  %10247 = vmatpush3.msra.mxu0 %v908_v11  ;;  %v1264_v4 = vld [vmem:[#allocation6 + $0x228] sm:$0xff]  ;;  %v1443_v5 = vld [vmem:[#allocation6 + $0x2b0] sm:$0xff]  ;;  %v1263_v6 = vld [vmem:[#allocation6 + $0x220] sm:$0xff] }
  0xc3   : > { %10289 = vmatpush3.msra.mxu1 %v1087_v12  ;;  %10176 = vmatprep.mubr.f32.mxu0 %v12262_v13  ;;  %v1442_v7 = vld [vmem:[#allocation6 + $0x2a8] sm:$0xff]  ;;  %v1262_v8 = vld [vmem:[#allocation6 + $0x218] sm:$0xff]  ;;  %v1441_v9 = vld [vmem:[#allocation6 + $0x2a0] sm:$0xff] }
  0xc4   : > { %10220 = vmatprep.mubr.f32.mxu1 %v12263_v14  ;;  %10248 = vmatprep.subr.mxu0 %v907_v15  ;;  %v1261_v10 = vld [vmem:[#allocation6 + $0x210] sm:$0xff]  ;;  %v1440_v11 = vld [vmem:[#allocation6 + $0x298] sm:$0xff]  ;;  %v1260_v12 = vld [vmem:[#allocation6 + $0x208] sm:$0xff] }
  0xc5   : > { %10290 = vmatprep.subr.mxu1 %v1086_v16  ;;  %10177 = vmatmul.mubr.f32.gmra.mxu0 %v12264_v17  ;;  %v1439_v13 = vld [vmem:[#allocation6 + $0x290] sm:$0xff]  ;;  %v1259_v14 = vld [vmem:[#allocation6 + $0x200] sm:$0xff] }
  0xc6   : > { %10221 = vmatmul.mubr.f32.gmra.mxu1 %v12265_v18  ;;  %10249 = vmatpush3.msra.mxu0 %v907_v15  ;;  %v1438_v15 = vld [vmem:[#allocation6 + $0x288] sm:$0xff]  ;;  %v1437_v18 = vld [vmem:[#allocation6 + $0x280] sm:$0xff] }
  0xc7   : > { %10291 = vmatpush3.msra.mxu1 %v1086_v16  ;;  %10250 = vmatprep.subr.mxu0 %v906_v19  ;;  %v12286_v16 = vld [vmem:[#allocation2 + $0x9] ss:$8 sps:$4 sm:$0xff]   ;;  %v12287_v17 = vld [vmem:[#allocation2 + $0x19] ss:$8 sps:$4 sm:$0xff]  }
  0xc8   : > { %10292 = vmatprep.subr.mxu1 %v1085_v20  ;;  %10251 = vmatpush3.msra.mxu0 %v906_v19  ;;  %v1631_v19 = vld [vmem:[#allocation6 + $0x378] sm:$0xff]  ;;  %v12291_v25 = vld [vmem:[#allocation2 + $0x39] ss:$8 sps:$4 sm:$0xff]  }
  0xc9   : > { %10293 = vmatpush3.msra.mxu1 %v1085_v20  ;;  %10179 = vmatprep.mubr.f32.mxu0 %v12266_v21  ;;  %v12288_v20 = vld [vmem:[#allocation2 + $0xa] ss:$8 sps:$4 sm:$0xff]   ;;  %v12289_v21 = vld [vmem:[#allocation2 + $0x1a] ss:$8 sps:$4 sm:$0xff]  }
  0xca   : > { %10223 = vmatprep.mubr.f32.mxu1 %v12267_v22  ;;  %10252 = vmatprep.subr.mxu0 %v905_v23  ;;  %v1630_v22 = vld [vmem:[#allocation6 + $0x370] sm:$0xff] }
  0xcb   : > { %10294 = vmatprep.subr.mxu1 %v1084_v24  ;;  %10180 = vmatmul.mubr.f32.gmra.mxu0 %v12268_v26  ;;  %v1629_v26 = vld [vmem:[#allocation6 + $0x368] sm:$0xff] }
  0xcc   : > { %10224 = vmatmul.mubr.f32.gmra.mxu1 %v12269_v27  ;;  %10253 = vmatpush3.msra.mxu0 %v905_v23  ;;  %v1809_v23 = vld [vmem:[#allocation6 + $0x3f8] sm:$0xff]  ;;  %v1808_v27 = vld [vmem:[#allocation6 + $0x3f0] sm:$0xff] }
  0xcd   : > { %10295 = vmatpush3.msra.mxu1 %v1084_v24  ;;  %10254 = vmatprep.subr.mxu0 %v904_v28  ;;  %v12290_v24 = vld [vmem:[#allocation2 + $0x29] ss:$8 sps:$4 sm:$0xff]  }
  0xce   : > { %10296 = vmatprep.subr.mxu1 %v1083_v29  ;;  %10255 = vmatpush3.msra.mxu0 %v904_v28  ;;  %v12292_v28 = vld [vmem:[#allocation2 + $0x2a] ss:$8 sps:$4 sm:$0xff]  }
  0xcf   : > { %10297 = vmatpush3.msra.mxu1 %v1083_v29  ;;  %10256 = vmatprep.subr.mxu0 %v903_v30  ;;  %v12293_v29 = vld [vmem:[#allocation2 + $0x3a] ss:$8 sps:$4 sm:$0xff]  }
  0xd0   : > { %10298 = vmatprep.subr.mxu1 %v1082_v31  ;;  %10257 = vmatpush3.msra.mxu0 %v903_v30  ;;  %v1628_v30 = vld [vmem:[#allocation6 + $0x360] sm:$0xff] }
  0xd1   : > { %10258 = vmatprep.mubr.f32.mxu0 %v12270_v32  ;;  %10299 = vmatpush3.msra.mxu1 %v1082_v31  ;;  %v1807_v31 = vld [vmem:[#allocation6 + $0x3e8] sm:$0xff]  ;;  %v12294_v32 = vld [vmem:[#allocation2 + $0x49] ss:$8 sps:$4 sm:$0xff]  }
  0xd2   : > { %10259 = vmatmul.mubr.f32.vlgmr.msra.gmra.mxu0 %v12271_v33  ;;  %10300 = vmatprep.subr.mxu1 %v1081_v34  ;;  %v12295_v33 = vld [vmem:[#allocation2 + $0x59] ss:$8 sps:$4 sm:$0xff]  }
  0xd3   : > { %10314 = vmatprep.subr.mxu0 %v1274_v35  ;;  %10301 = vmatpush3.msra.mxu1 %v1081_v34  ;;  %v1627_v34 = vld [vmem:[#allocation6 + $0x358] sm:$0xff] }
  0xd4   : > { %10302 = vmatprep.mubr.f32.mxu1 %v12272_v36  ;;  %10315 = vmatpush3.msra.mxu0 %v1274_v35  ;;  %v1806_v35 = vld [vmem:[#allocation6 + $0x3e0] sm:$0xff] }
  0xd5   : > { %10303 = vmatmul.mubr.f32.vlgmr.msra.gmra.mxu1 %v12273_v37  ;;  %10316 = vmatprep.subr.mxu0 %v1273_v38  ;;  %v12296_v36 = vld [vmem:[#allocation2 + $0x4a] ss:$8 sps:$4 sm:$0xff]   ;;  %v12297_v37 = vld [vmem:[#allocation2 + $0x5a] ss:$8 sps:$4 sm:$0xff]  }
  0xd6   : > { %10358 = vmatprep.subr.mxu1 %v1452_v39  ;;  %10261 = vmatprep.mubr.f32.mxu0 %v12274_v40  ;;  %v12298_v40 = vld [vmem:[#allocation2 + $0x69] ss:$8 sps:$4 sm:$0xff]  }
  0xd7   : > { %10317 = vmatpush3.msra.mxu0 %v1273_v38  ;;  %10359 = vmatpush3.msra.mxu1 %v1452_v39  ;;  %v1626_v38 = vld [vmem:[#allocation6 + $0x350] sm:$0xff]  ;;  %v1805_v39 = vld [vmem:[#allocation6 + $0x3d8] sm:$0xff] }
  0xd8   : > { %10262 = vmatmul.mubr.f32.gmra.mxu0 %v12275_v41  ;;  %10318 = vmatprep.subr.mxu0 %v1272_v42  ;;  %v12299_v41 = vld [vmem:[#allocation2 + $0x79] ss:$8 sps:$4 sm:$0xff]  }
  0xd9   : > { %10360 = vmatprep.subr.mxu1 %v1451_v43  ;;  %10305 = vmatprep.mubr.f32.mxu1 %v12276_v44  ;;  %v12300_v44 = vld [vmem:[#allocation2 + $0x6a] ss:$8 sps:$4 sm:$0xff]  }
  0xda   : > { %10319 = vmatpush3.msra.mxu0 %v1272_v42  ;;  %10361 = vmatpush3.msra.mxu1 %v1451_v43  ;;  %v1625_v42 = vld [vmem:[#allocation6 + $0x348] sm:$0xff]  ;;  %v1804_v43 = vld [vmem:[#allocation6 + $0x3d0] sm:$0xff] }
  0xdb   : > { %10320 = vmatprep.subr.mxu0 %v1271_v46  ;;  %10306 = vmatmul.mubr.f32.gmra.mxu1 %v12277_v45  ;;  %v12301_v45 = vld [vmem:[#allocation2 + $0x7a] ss:$8 sps:$4 sm:$0xff]  }
  0xdc   : > { %10362 = vmatprep.subr.mxu1 %v1450_v47  ;;  %10264 = vmatprep.mubr.f32.mxu0 %v12278_v48  ;;  %v1623_v48 = vld [vmem:[#allocation6 + $0x338] sm:$0xff] }
  0xdd   : > { %10321 = vmatpush3.msra.mxu0 %v1271_v46  ;;  %10363 = vmatpush3.msra.mxu1 %v1450_v47  ;;  %v1624_v46 = vld [vmem:[#allocation6 + $0x340] sm:$0xff]  ;;  %v1803_v47 = vld [vmem:[#allocation6 + $0x3c8] sm:$0xff] }
  0xde   : > { %10265 = vmatmul.mubr.f32.gmra.mxu0 %v12279_v49  ;;  %10322 = vmatprep.subr.mxu0 %v1270_v50  ;;  %v1802_v49 = vld [vmem:[#allocation6 + $0x3c0] sm:$0xff] }
  0xdf   : > { %10364 = vmatprep.subr.mxu1 %v1449_v51  ;;  %10308 = vmatprep.mubr.f32.mxu1 %v12280_v52  ;;  %v1621_v52 = vld [vmem:[#allocation6 + $0x328] sm:$0xff] }
  0xe0   : > { %10323 = vmatpush3.msra.mxu0 %v1270_v50  ;;  %10365 = vmatpush3.msra.mxu1 %v1449_v51  ;;  %v1622_v50 = vld [vmem:[#allocation6 + $0x330] sm:$0xff]  ;;  %v1801_v51 = vld [vmem:[#allocation6 + $0x3b8] sm:$0xff] }
  0xe1   : > { %10324 = vmatprep.subr.mxu0 %v1269_v54  ;;  %10309 = vmatmul.mubr.f32.gmra.mxu1 %v12281_v53  ;;  %v1800_v53 = vld [vmem:[#allocation6 + $0x3b0] sm:$0xff] }
  0xe2   : > { %10366 = vmatprep.subr.mxu1 %v1448_v55  ;;  %10267 = vmatprep.mubr.f32.mxu0 %v12282_v56  ;;  %v1619_v56 = vld [vmem:[#allocation6 + $0x318] sm:$0xff] }
  0xe3   : > { %10325 = vmatpush3.msra.mxu0 %v1269_v54  ;;  %10367 = vmatpush3.msra.mxu1 %v1448_v55  ;;  %v1620_v54 = vld [vmem:[#allocation6 + $0x320] sm:$0xff]  ;;  %v1799_v55 = vld [vmem:[#allocation6 + $0x3a8] sm:$0xff] }
  0xe4   : > { %10268 = vmatmul.mubr.f32.gmra.mxu0 %v12283_v57  ;;  %10326 = vmatprep.subr.mxu0 %v1268_v58  ;;  %v1798_v57 = vld [vmem:[#allocation6 + $0x3a0] sm:$0xff] }
  0xe5   : > { %10368 = vmatprep.subr.mxu1 %v1447_v59  ;;  %10311 = vmatprep.mubr.f32.mxu1 %v12284_v60  ;;  %v1617_v60 = vld [vmem:[#allocation6 + $0x308] sm:$0xff] }
  0xe6   : > { %10327 = vmatpush3.msra.mxu0 %v1268_v58  ;;  %10369 = vmatpush3.msra.mxu1 %v1447_v59  ;;  %v1618_v58 = vld [vmem:[#allocation6 + $0x310] sm:$0xff]  ;;  %v1797_v59 = vld [vmem:[#allocation6 + $0x398] sm:$0xff] }
  0xe7   : > { %10328 = vmatprep.subr.mxu0 %v1267_v62  ;;  %10312 = vmatmul.mubr.f32.gmra.mxu1 %v12285_v61  ;;  %v1796_v61 = vld [vmem:[#allocation6 + $0x390] sm:$0xff] }
  0xe8   : > { %10370 = vmatprep.subr.mxu1 %v1446_v63  ;;  %10329 = vmatpush3.msra.mxu0 %v1267_v62  ;;  %v1616_v62 = vld [vmem:[#allocation6 + $0x300] sm:$0xff] }
  0xe9   : > { %10371 = vmatpush3.msra.mxu1 %v1446_v63  ;;  %10330 = vmatprep.subr.mxu0 %v1266_v0  ;;  %v1795_v63 = vld [vmem:[#allocation6 + $0x388] sm:$0xff] }
  0xea   : > { %10372 = vmatprep.subr.mxu1 %v1445_v1  ;;  %10331 = vmatpush3.msra.mxu0 %v1266_v0  ;;  %v12302_v0 = vld [vmem:[#allocation2 + $0x10] ss:$8 sps:$4 sm:$0xff]  }
  0xeb   : > { %10373 = vmatpush3.msra.mxu1 %v1445_v1  ;;  %10332 = vmatprep.subr.mxu0 %v1265_v2  ;;  %v12303_v1 = vld [vmem:[#allocation2 + $0x20] ss:$8 sps:$4 sm:$0xff]  }
  0xec   : > { %10374 = vmatprep.subr.mxu1 %v1444_v3  ;;  %10333 = vmatpush3.msra.mxu0 %v1265_v2  ;;  %v1794_v2 = vld [vmem:[#allocation6 + $0x380] sm:$0xff] }
  0xed   : > { %10375 = vmatpush3.msra.mxu1 %v1444_v3  ;;  %10334 = vmatprep.subr.mxu0 %v1264_v4  ;;  %v1987_v3 = vld [vmem:[#allocation6 + $0x478] sm:$0xff] }
  0xee   : > { %10376 = vmatprep.subr.mxu1 %v1443_v5  ;;  %10335 = vmatpush3.msra.mxu0 %v1264_v4  ;;  %v12304_v4 = vld [vmem:[#allocation2 + $0x11] ss:$8 sps:$4 sm:$0xff]  }
  0xef   : > { %10377 = vmatpush3.msra.mxu1 %v1443_v5  ;;  %10336 = vmatprep.subr.mxu0 %v1263_v6  ;;  %v12305_v5 = vld [vmem:[#allocation2 + $0x21] ss:$8 sps:$4 sm:$0xff]  }
  0xf0   : > { %10378 = vmatprep.subr.mxu1 %v1442_v7  ;;  %10337 = vmatpush3.msra.mxu0 %v1263_v6  ;;  %v12306_v6 = vld [vmem:[#allocation2 + $0x30] ss:$8 sps:$4 sm:$0xff]  }
  0xf1   : > { %10379 = vmatpush3.msra.mxu1 %v1442_v7  ;;  %10338 = vmatprep.subr.mxu0 %v1262_v8  ;;  %v1986_v7 = vld [vmem:[#allocation6 + $0x470] sm:$0xff] }
  0xf2   : > { %10380 = vmatprep.subr.mxu1 %v1441_v9  ;;  %10339 = vmatpush3.msra.mxu0 %v1262_v8  ;;  %v12308_v8 = vld [vmem:[#allocation2 + $0x31] ss:$8 sps:$4 sm:$0xff]  }
  0xf3   : > { %10381 = vmatpush3.msra.mxu1 %v1441_v9  ;;  %10340 = vmatprep.subr.mxu0 %v1261_v10  ;;  %v12307_v9 = vld [vmem:[#allocation2 + $0x40] ss:$8 sps:$4 sm:$0xff]  }
  0xf4   : > { %10382 = vmatprep.subr.mxu1 %v1440_v11  ;;  %10341 = vmatpush3.msra.mxu0 %v1261_v10  ;;  %v1985_v10 = vld [vmem:[#allocation6 + $0x468] sm:$0xff] }
  0xf5   : > { %10383 = vmatpush3.msra.mxu1 %v1440_v11  ;;  %10342 = vmatprep.subr.mxu0 %v1260_v12  ;;  %v12309_v11 = vld [vmem:[#allocation2 + $0x41] ss:$8 sps:$4 sm:$0xff]  }
  0xf6   : > { %10384 = vmatprep.subr.mxu1 %v1439_v13  ;;  %10343 = vmatpush3.msra.mxu0 %v1260_v12  ;;  %v12310_v12 = vld [vmem:[#allocation2 + $0x50] ss:$8 sps:$4 sm:$0xff]  }
  0xf7   : > { %10385 = vmatpush3.msra.mxu1 %v1439_v13  ;;  %10344 = vmatprep.subr.mxu0 %v1259_v14  ;;  %v1984_v13 = vld [vmem:[#allocation6 + $0x460] sm:$0xff] }
  0xf8   : > { %10386 = vmatprep.subr.mxu1 %v1438_v15  ;;  %10345 = vmatpush3.msra.mxu0 %v1259_v14  ;;  %v12312_v14 = vld [vmem:[#allocation2 + $0x51] ss:$8 sps:$4 sm:$0xff]  }
  0xf9   : > { %10346 = vmatprep.mubr.f32.mxu0 %v12286_v16  ;;  %10387 = vmatpush3.msra.mxu1 %v1438_v15  ;;  %v12311_v15 = vld [vmem:[#allocation2 + $0x60] ss:$8 sps:$4 sm:$0xff]  }
  0xfa   : > { %10347 = vmatmul.mubr.f32.vlgmr.msra.gmra.mxu0 %v12287_v17  ;;  %10388 = vmatprep.subr.mxu1 %v1437_v18  ;;  %v1983_v16 = vld [vmem:[#allocation6 + $0x458] sm:$0xff] }
  0xfb   : > { %10402 = vmatprep.subr.mxu0 %v1631_v19  ;;  %10389 = vmatpush3.msra.mxu1 %v1437_v18  ;;  %v12313_v17 = vld [vmem:[#allocation2 + $0x61] ss:$8 sps:$4 sm:$0xff]   ;;  %v12314_v18 = vld [vmem:[#allocation2 + $0x70] ss:$8 sps:$4 sm:$0xff]  }
  0xfc   : > { %10390 = vmatprep.mubr.f32.mxu1 %v12288_v20  ;;  %10403 = vmatpush3.msra.mxu0 %v1631_v19  ;;  %v1982_v19 = vld [vmem:[#allocation6 + $0x450] sm:$0xff]  ;;  %v12316_v20 = vld [vmem:[#allocation2 + $0x71] ss:$8 sps:$4 sm:$0xff]  }
  0xfd   : > { %10391 = vmatmul.mubr.f32.vlgmr.msra.gmra.mxu1 %v12289_v21  ;;  %10404 = vmatprep.subr.mxu0 %v1630_v22  ;;  %v12315_v21 = vld [vmem:[#allocation2 + $0x80] ss:$8 sps:$4 sm:$0xff]  }
  0xfe   : > { %10446 = vmatprep.subr.mxu1 %v1809_v23  ;;  %10349 = vmatprep.mubr.f32.mxu0 %v12290_v24  ;;  %v12318_v24 = vld [vmem:[#allocation2 + $0x12] ss:$8 sps:$4 sm:$0xff]  }
  0xff   : > { %10405 = vmatpush3.msra.mxu0 %v1630_v22  ;;  %10447 = vmatpush3.msra.mxu1 %v1809_v23  ;;  %v1981_v22 = vld [vmem:[#allocation6 + $0x448] sm:$0xff]  ;;  %v12317_v23 = vld [vmem:[#allocation2 + $0x81] ss:$8 sps:$4 sm:$0xff]  }
 0x100   : > { %10350 = vmatmul.mubr.f32.gmra.mxu0 %v12291_v25  ;;  %10406 = vmatprep.subr.mxu0 %v1629_v26  ;;  %v1980_v25 = vld [vmem:[#allocation6 + $0x440] sm:$0xff] }
 0x101   : > { %10448 = vmatprep.subr.mxu1 %v1808_v27  ;;  %10393 = vmatprep.mubr.f32.mxu1 %v12292_v28  ;;  %v1977_v28 = vld [vmem:[#allocation6 + $0x428] sm:$0xff] }
 0x102   : > { %10407 = vmatpush3.msra.mxu0 %v1629_v26  ;;  %10449 = vmatpush3.msra.mxu1 %v1808_v27  ;;  %v1979_v26 = vld [vmem:[#allocation6 + $0x438] sm:$0xff]  ;;  %v1978_v27 = vld [vmem:[#allocation6 + $0x430] sm:$0xff] }
 0x103   : > { %10408 = vmatprep.subr.mxu0 %v1628_v30  ;;  %10394 = vmatmul.mubr.f32.gmra.mxu1 %v12293_v29  ;;  %v1976_v29 = vld [vmem:[#allocation6 + $0x420] sm:$0xff] }
 0x104   : > { %10450 = vmatprep.subr.mxu1 %v1807_v31  ;;  %10352 = vmatprep.mubr.f32.mxu0 %v12294_v32  ;;  %v1973_v32 = vld [vmem:[#allocation6 + $0x408] sm:$0xff] }
 0x105   : > { %10409 = vmatpush3.msra.mxu0 %v1628_v30  ;;  %10451 = vmatpush3.msra.mxu1 %v1807_v31  ;;  %v1975_v30 = vld [vmem:[#allocation6 + $0x418] sm:$0xff]  ;;  %v1974_v31 = vld [vmem:[#allocation6 + $0x410] sm:$0xff] }
 0x106   : > { %10353 = vmatmul.mubr.f32.gmra.mxu0 %v12295_v33  ;;  %10410 = vmatprep.subr.mxu0 %v1627_v34  ;;  %v1972_v33 = vld [vmem:[#allocation6 + $0x400] sm:$0xff] }
 0x107   : > { %10452 = vmatprep.subr.mxu1 %v1806_v35  ;;  %10396 = vmatprep.mubr.f32.mxu1 %v12296_v36  ;;  %v12321_v36 = vld [vmem:[#allocation2 + $0x42] ss:$8 sps:$4 sm:$0xff]  }
 0x108   : > { %10411 = vmatpush3.msra.mxu0 %v1627_v34  ;;  %10453 = vmatpush3.msra.mxu1 %v1806_v35  ;;  %v12319_v34 = vld [vmem:[#allocation2 + $0x22] ss:$8 sps:$4 sm:$0xff]   ;;  %v12320_v35 = vld [vmem:[#allocation2 + $0x32] ss:$8 sps:$4 sm:$0xff]  }
 0x109   : > { %10412 = vmatprep.subr.mxu0 %v1626_v38  ;;  %10397 = vmatmul.mubr.f32.gmra.mxu1 %v12297_v37  ;;  %v12322_v37 = vld [vmem:[#allocation2 + $0x52] ss:$8 sps:$4 sm:$0xff]  }
 0x10a   : > { %10454 = vmatprep.subr.mxu1 %v1805_v39  ;;  %10355 = vmatprep.mubr.f32.mxu0 %v12298_v40  ;;  %v12325_v40 = vld [vmem:[#allocation2 + $0x82] ss:$8 sps:$4 sm:$0xff]  }
 0x10b   : > { %10413 = vmatpush3.msra.mxu0 %v1626_v38  ;;  %10455 = vmatpush3.msra.mxu1 %v1805_v39  ;;  %v12323_v38 = vld [vmem:[#allocation2 + $0x62] ss:$8 sps:$4 sm:$0xff]   ;;  %v12324_v39 = vld [vmem:[#allocation2 + $0x72] ss:$8 sps:$4 sm:$0xff]  }
 0x10c   : > { %10356 = vmatmul.mubr.f32.gmra.mxu0 %v12299_v41  ;;  %10414 = vmatprep.subr.mxu0 %v1625_v42  ;;  %v2276_v41 = vld [vmem:[#allocation8 + $0xf8] sm:$0xff] }
 0x10d   : > { %10456 = vmatprep.subr.mxu1 %v1804_v43  ;;  %10399 = vmatprep.mubr.f32.mxu1 %v12300_v44  ;;  %v2242_v44 = vld [vmem:[#allocation8 + $0x70] sm:$0xff] }
 0x10e   : > { %10415 = vmatpush3.msra.mxu0 %v1625_v42  ;;  %10457 = vmatpush3.msra.mxu1 %v1804_v43  ;;  %v2243_v42 = vld [vmem:[#allocation8 + $0x78] sm:$0xff]  ;;  %v2275_v43 = vld [vmem:[#allocation8 + $0xf0] sm:$0xff] }
 0x10f   : > { %10416 = vmatprep.subr.mxu0 %v1624_v46  ;;  %10400 = vmatmul.mubr.f32.gmra.mxu1 %v12301_v45  ;;  %v2274_v45 = vld [vmem:[#allocation8 + $0xe8] sm:$0xff] }
 0x110   : > { %10458 = vmatprep.subr.mxu1 %v1803_v47  ;;  %10417 = vmatpush3.msra.mxu0 %v1624_v46  ;;  %v2241_v46 = vld [vmem:[#allocation8 + $0x68] sm:$0xff] }
 0x111   : > { %10459 = vmatpush3.msra.mxu1 %v1803_v47  ;;  %10418 = vmatprep.subr.mxu0 %v1623_v48  ;;  %v2273_v47 = vld [vmem:[#allocation8 + $0xe0] sm:$0xff] }
 0x112   : > { %10460 = vmatprep.subr.mxu1 %v1802_v49  ;;  %10419 = vmatpush3.msra.mxu0 %v1623_v48  ;;  %v2240_v48 = vld [vmem:[#allocation8 + $0x60] sm:$0xff] }
 0x113   : > { %10461 = vmatpush3.msra.mxu1 %v1802_v49  ;;  %10420 = vmatprep.subr.mxu0 %v1622_v50  ;;  %v2272_v49 = vld [vmem:[#allocation8 + $0xd8] sm:$0xff] }
 0x114   : > { %10462 = vmatprep.subr.mxu1 %v1801_v51  ;;  %10421 = vmatpush3.msra.mxu0 %v1622_v50  ;;  %v2239_v50 = vld [vmem:[#allocation8 + $0x58] sm:$0xff] }
 0x115   : > { %10463 = vmatpush3.msra.mxu1 %v1801_v51  ;;  %10422 = vmatprep.subr.mxu0 %v1621_v52  ;;  %v2271_v51 = vld [vmem:[#allocation8 + $0xd0] sm:$0xff] }
 0x116   : > { %10464 = vmatprep.subr.mxu1 %v1800_v53  ;;  %10423 = vmatpush3.msra.mxu0 %v1621_v52  ;;  %v2238_v52 = vld [vmem:[#allocation8 + $0x50] sm:$0xff] }
 0x117   : > { %10465 = vmatpush3.msra.mxu1 %v1800_v53  ;;  %10424 = vmatprep.subr.mxu0 %v1620_v54  ;;  %v2270_v53 = vld [vmem:[#allocation8 + $0xc8] sm:$0xff] }
 0x118   : > { %10466 = vmatprep.subr.mxu1 %v1799_v55  ;;  %10425 = vmatpush3.msra.mxu0 %v1620_v54  ;;  %v2237_v54 = vld [vmem:[#allocation8 + $0x48] sm:$0xff] }
 0x119   : > { %10467 = vmatpush3.msra.mxu1 %v1799_v55  ;;  %10426 = vmatprep.subr.mxu0 %v1619_v56  ;;  %v2269_v55 = vld [vmem:[#allocation8 + $0xc0] sm:$0xff] }
 0x11a   : > { %10468 = vmatprep.subr.mxu1 %v1798_v57  ;;  %10427 = vmatpush3.msra.mxu0 %v1619_v56  ;;  %v2236_v56 = vld [vmem:[#allocation8 + $0x40] sm:$0xff] }
 0x11b   : > { %10469 = vmatpush3.msra.mxu1 %v1798_v57  ;;  %10428 = vmatprep.subr.mxu0 %v1618_v58  ;;  %v2268_v57 = vld [vmem:[#allocation8 + $0xb8] sm:$0xff] }
 0x11c   : > { %10470 = vmatprep.subr.mxu1 %v1797_v59  ;;  %10429 = vmatpush3.msra.mxu0 %v1618_v58  ;;  %v2235_v58 = vld [vmem:[#allocation8 + $0x38] sm:$0xff] }
 0x11d   : > { %10471 = vmatpush3.msra.mxu1 %v1797_v59  ;;  %10430 = vmatprep.subr.mxu0 %v1617_v60  ;;  %v2267_v59 = vld [vmem:[#allocation8 + $0xb0] sm:$0xff] }
 0x11e   : > { %10472 = vmatprep.subr.mxu1 %v1796_v61  ;;  %10431 = vmatpush3.msra.mxu0 %v1617_v60  ;;  %v2234_v60 = vld [vmem:[#allocation8 + $0x30] sm:$0xff] }
 0x11f   : > { %10473 = vmatpush3.msra.mxu1 %v1796_v61  ;;  %10432 = vmatprep.subr.mxu0 %v1616_v62 }
 0x120   : > { %10474 = vmatprep.subr.mxu1 %v1795_v63  ;;  %10433 = vmatpush3.msra.mxu0 %v1616_v62  ;;  %v2266_v62 = vld [vmem:[#allocation8 + $0xa8] sm:$0xff] }
 0x121   : > { %10434 = vmatprep.mubr.f32.mxu0 %v12302_v0  ;;  %10475 = vmatpush3.msra.mxu1 %v1795_v63  ;;  %v2233_v63 = vld [vmem:[#allocation8 + $0x28] sm:$0xff]  ;;  %v2265_v0 = vld [vmem:[#allocation8 + $0xa0] sm:$0xff] }
 0x122   : > { %10435 = vmatmul.mubr.f32.vlgmr.msra.gmra.mxu0 %v12303_v1  ;;  %10476 = vmatprep.subr.mxu1 %v1794_v2  ;;  %v2232_v1 = vld [vmem:[#allocation8 + $0x20] sm:$0xff] }
 0x123   : > { %10490 = vmatprep.subr.mxu0 %v1987_v3  ;;  %10477 = vmatpush3.msra.mxu1 %v1794_v2 }
 0x124   : > { %10478 = vmatprep.mubr.f32.mxu1 %v12304_v4  ;;  %10491 = vmatpush3.msra.mxu0 %v1987_v3  ;;  %v2264_v3 = vld [vmem:[#allocation8 + $0x98] sm:$0xff] }
 0x125   : > { %10479 = vmatmul.mubr.f32.vlgmr.msra.gmra.mxu1 %v12305_v5  ;;  %10492 = vmatprep.subr.mxu0 %v1986_v7  ;;  %v2231_v4 = vld [vmem:[#allocation8 + $0x18] sm:$0xff] }
 0x126   : > { %10437 = vmatprep.mubr.f32.mxu0 %v12306_v6  ;;  %10493 = vmatpush3.msra.mxu0 %v1986_v7  ;;  %v2263_v6 = vld [vmem:[#allocation8 + $0x90] sm:$0xff] }
 0x127   : > { %10481 = vmatprep.mubr.f32.mxu1 %v12308_v8  ;;  %10438 = vmatmul.mubr.f32.gmra.mxu0 %v12307_v9  ;;  %v2230_v7 = vld [vmem:[#allocation8 + $0x10] sm:$0xff]  ;;  %v2262_v8 = vld [vmem:[#allocation8 + $0x88] sm:$0xff] }
 0x128   : > { %10494 = vmatprep.subr.mxu0 %v1985_v10  ;;  %10440 = vmatprep.mubr.f32.mxu0 %v12310_v12  ;;  %v2229_v9 = vld [vmem:[#allocation8 + $0x8] sm:$0xff]  ;;  %v2228_v12 = vld [vmem:[#allocation8] sm:$0xff] }
 0x129   : > { %10495 = vmatpush3.msra.mxu0 %v1985_v10  ;;  %10482 = vmatmul.mubr.f32.gmra.mxu1 %v12309_v11  ;;  %v2261_v11 = vld [vmem:[#allocation8 + $0x80] sm:$0xff] }
 0x12a   : > { %10496 = vmatprep.subr.mxu0 %v1984_v13  ;;  %10484 = vmatprep.mubr.f32.mxu1 %v12312_v14  ;;  %v13159_v14 = vld [vmem:[#allocation8 + $0x1f8] sm:$0xff] }
 0x12b   : > { %10497 = vmatpush3.msra.mxu0 %v1984_v13  ;;  %10534 = vmatprep.subr.mxu1 %v2276_v41  ;;  %v13157_v13 = vld [vmem:[#allocation8 + $0x178] sm:$0xff]  ;;  %13555 = vst [vmem:[#allocation21_spill] sm:$0xff] %v13159_v14 }
 0x12c   : > { %10441 = vmatmul.mubr.f32.gmra.mxu0 %v12311_v15  ;;  %10498 = vmatprep.subr.mxu0 %v1983_v16  ;;  %13554 = vst [vmem:[#allocation20_spill] sm:$0xff] %v13157_v13 }
 0x12d   : > { %10499 = vmatpush3.msra.mxu0 %v1983_v16  ;;  %10485 = vmatmul.mubr.f32.gmra.mxu1 %v12313_v17 }
 0x12e   : > { %10500 = vmatprep.subr.mxu0 %v1982_v19  ;;  %10443 = vmatprep.mubr.f32.mxu0 %v12314_v18 }
 0x12f   : > { %10501 = vmatpush3.msra.mxu0 %v1982_v19  ;;  %10487 = vmatprep.mubr.f32.mxu1 %v12316_v20 }
 0x130   : > { %10444 = vmatmul.mubr.f32.gmra.mxu0 %v12315_v21  ;;  %10502 = vmatprep.subr.mxu0 %v1981_v22 }
 0x131   : > { %10503 = vmatpush3.msra.mxu0 %v1981_v22  ;;  %10488 = vmatmul.mubr.f32.gmra.mxu1 %v12317_v23 }
 0x132   : > { %10504 = vmatprep.subr.mxu0 %v1980_v25  ;;  %10522 = vmatprep.mubr.f32.mxu0 %v12318_v24 }
 0x133   : > { %10505 = vmatpush3.msra.mxu0 %v1980_v25  ;;  %10535 = vmatpush3.msra.mxu1 %v2276_v41 }
 0x134   : > { %10506 = vmatprep.subr.mxu0 %v1979_v26  ;;  %10536 = vmatprep.subr.mxu1 %v2275_v43 }
 0x135   : > { %10507 = vmatpush3.msra.mxu0 %v1979_v26  ;;  %10537 = vmatpush3.msra.mxu1 %v2275_v43 }
 0x136   : > { %10508 = vmatprep.subr.mxu0 %v1978_v27  ;;  %10538 = vmatprep.subr.mxu1 %v2274_v45 }
 0x137   : > { %10509 = vmatpush3.msra.mxu0 %v1978_v27  ;;  %10539 = vmatpush3.msra.mxu1 %v2274_v45 }
 0x138   : > { %10510 = vmatprep.subr.mxu0 %v1977_v28  ;;  %10540 = vmatprep.subr.mxu1 %v2273_v47 }
 0x139   : > { %10511 = vmatpush3.msra.mxu0 %v1977_v28  ;;  %10541 = vmatpush3.msra.mxu1 %v2273_v47 }
 0x13a   : > { %10512 = vmatprep.subr.mxu0 %v1976_v29  ;;  %10542 = vmatprep.subr.mxu1 %v2272_v49 }
 0x13b   : > { %10513 = vmatpush3.msra.mxu0 %v1976_v29  ;;  %10543 = vmatpush3.msra.mxu1 %v2272_v49 }
 0x13c   : > { %10514 = vmatprep.subr.mxu0 %v1975_v30  ;;  %10544 = vmatprep.subr.mxu1 %v2271_v51 }
 0x13d   : > { %10515 = vmatpush3.msra.mxu0 %v1975_v30  ;;  %10545 = vmatpush3.msra.mxu1 %v2271_v51 }
 0x13e   : > { %10516 = vmatprep.subr.mxu0 %v1974_v31  ;;  %10546 = vmatprep.subr.mxu1 %v2270_v53 }
 0x13f   : > { %10517 = vmatpush3.msra.mxu0 %v1974_v31  ;;  %10547 = vmatpush3.msra.mxu1 %v2270_v53 }
 0x140   : > { %10518 = vmatprep.subr.mxu0 %v1973_v32  ;;  %10548 = vmatprep.subr.mxu1 %v2269_v55 }
 0x141   : > { %10519 = vmatpush3.msra.mxu0 %v1973_v32  ;;  %10549 = vmatpush3.msra.mxu1 %v2269_v55 }
 0x142   : > { %10520 = vmatprep.subr.mxu0 %v1972_v33  ;;  %10550 = vmatprep.subr.mxu1 %v2268_v57 }
 0x143   : > { %10521 = vmatpush3.msra.mxu0 %v1972_v33  ;;  %10551 = vmatpush3.msra.mxu1 %v2268_v57 }
 0x144   : > { %10523 = vmatmul.mubr.f32.vlgmr.msra.gmra.mxu0 %v12319_v34  ;;  %10578 = vmatprep.subr.mxu0 %v2243_v42 }
 0x145   : > { %10525 = vmatprep.mubr.f32.mxu0 %v12320_v35  ;;  %10579 = vmatpush3.msra.mxu0 %v2243_v42 }
 0x146   : > { %10580 = vmatprep.subr.mxu0 %v2242_v44  ;;  %10552 = vmatprep.subr.mxu1 %v2267_v59 }
 0x147   : > { %10581 = vmatpush3.msra.mxu0 %v2242_v44  ;;  %10553 = vmatpush3.msra.mxu1 %v2267_v59 }
 0x148   : > { %10526 = vmatmul.mubr.f32.gmra.mxu0 %v12321_v36  ;;  %10582 = vmatprep.subr.mxu0 %v2241_v46 }
 0x149   : > { %10528 = vmatprep.mubr.f32.mxu0 %v12322_v37  ;;  %10583 = vmatpush3.msra.mxu0 %v2241_v46 }
 0x14a   : > { %10584 = vmatprep.subr.mxu0 %v2240_v48  ;;  %10554 = vmatprep.subr.mxu1 %v2266_v62 }
 0x14b   : > { %10585 = vmatpush3.msra.mxu0 %v2240_v48  ;;  %10555 = vmatpush3.msra.mxu1 %v2266_v62 }
 0x14c   : > { %10529 = vmatmul.mubr.f32.gmra.mxu0 %v12323_v38  ;;  %10586 = vmatprep.subr.mxu0 %v2239_v50 }
 0x14d   : > { %10531 = vmatprep.mubr.f32.mxu0 %v12324_v39  ;;  %10587 = vmatpush3.msra.mxu0 %v2239_v50 }
 0x14e   : > { %10588 = vmatprep.subr.mxu0 %v2238_v52  ;;  %10556 = vmatprep.subr.mxu1 %v2265_v0 }
 0x14f   : > { %10589 = vmatpush3.msra.mxu0 %v2238_v52  ;;  %10557 = vmatpush3.msra.mxu1 %v2265_v0 }
 0x150   : > { %10532 = vmatmul.mubr.f32.gmra.mxu0 %v12325_v40  ;;  %10590 = vmatprep.subr.mxu0 %v2237_v54 }
 0x151   : > { %10591 = vmatpush3.msra.mxu0 %v2237_v54  ;;  %10558 = vmatprep.subr.mxu1 %v2264_v3 }
 0x152   : > { %10592 = vmatprep.subr.mxu0 %v2236_v56  ;;  %10559 = vmatpush3.msra.mxu1 %v2264_v3 }
 0x153   : > { %10593 = vmatpush3.msra.mxu0 %v2236_v56  ;;  %10560 = vmatprep.subr.mxu1 %v2263_v6 }
 0x154   : > { %10594 = vmatprep.subr.mxu0 %v2235_v58  ;;  %10561 = vmatpush3.msra.mxu1 %v2263_v6 }
 0x155   : > { %10595 = vmatpush3.msra.mxu0 %v2235_v58  ;;  %10562 = vmatprep.subr.mxu1 %v2262_v8 }
 0x156   : > { %10596 = vmatprep.subr.mxu0 %v2234_v60  ;;  %10563 = vmatpush3.msra.mxu1 %v2262_v8 }
 0x157   : > { %10597 = vmatpush3.msra.mxu0 %v2234_v60  ;;  %10564 = vmatprep.subr.mxu1 %v2261_v11 }
 0x158   : > { %10598 = vmatprep.subr.mxu0 %v2233_v63  ;;  %10565 = vmatpush3.msra.mxu1 %v2261_v11 }
 0x159   : > { %10599 = vmatpush3.msra.mxu0 %v2233_v63  ;;  %10622 = vmatprep.subr.mxu1 %v13157_v13 }
 0x15a   : > { %10600 = vmatprep.subr.mxu0 %v2232_v1 }
 0x15b   : > { %10601 = vmatpush3.msra.mxu0 %v2232_v1 }
 0x15c   : > { %10602 = vmatprep.subr.mxu0 %v2231_v4 }
 0x15d   : > { %10603 = vmatpush3.msra.mxu0 %v2231_v4 }
 0x15e   : > { %10604 = vmatprep.subr.mxu0 %v2230_v7 }
 0x15f   : > { %10605 = vmatpush3.msra.mxu0 %v2230_v7 }
 0x160   : > { %10606 = vmatprep.subr.mxu0 %v2229_v9 }
 0x161   : > { %10607 = vmatpush3.msra.mxu0 %v2229_v9 }
 0x162   : > { %10608 = vmatprep.subr.mxu0 %v2228_v12 }
 0x163   : > { %10609 = vmatpush3.msra.mxu0 %v2228_v12 }
 0x164   : > { %10666 = vmatprep.subr.mxu0 %v13159_v14 }
 0x16b   : > { %v13149_v61 = vpop.f32.mrf.mxu0 }
 0x16c   : > { %v10216_v16 = vpop.f32.mrf.mxu1 }
 0x16d   : > { %v13151_v2 = vpop.f32.mrf.mxu0  ;;  %v853_v62 = vadd.f32 %v10216_v16, %v13149_v61 }
 0x16e   : > { %v847_v18 = vpop.f32.mrf.mxu1 }
 0x16f   : > { %v848_v1 = vadd.f32 %v847_v18, %v13151_v2 }
 0x17f   : > { %v13153_v5 = vpop.f32.mrf.mxu0 }
 0x180   : > { %v10219_v19 = vpop.f32.mrf.mxu1 }
 0x181   : > { %v13155_v10 = vpop.f32.mrf.mxu0  ;;  %v863_v6 = vadd.f32 %v10219_v19, %v13153_v5 }
 0x182   : > { %v857_v21 = vpop.f32.mrf.mxu1 }
 0x183   : > { %v858_v14 = vadd.f32 %v857_v21, %v13155_v10 }
 0x185   : > { %v10178_v15 = vpop.f32.mrf.mxu0 }
 0x186   : > { %v10222_v23 = vpop.f32.mrf.mxu1 }
 0x187   : > { %v730_v17 = vpop.f32.mrf.mxu0  ;;  %v873_v13 = vadd.f32 %v10222_v23, %v10178_v15 }
 0x188   : > { %v867_v25 = vpop.f32.mrf.mxu1 }
 0x189   : > { %v868_v61 = vadd.f32 %v867_v25, %v730_v17 }
 0x18b   : > { %v13163_v20 = vpop.f32.mrf.mxu0 }
 0x18c   : > { %v10225_v27 = vpop.f32.mrf.mxu1 }
 0x18d   : > { %v13165_v22 = vpop.f32.mrf.mxu0 }
 0x18e   : > { %v13167_v29 = vpop.f32.mrf.mxu1 }
 0x192   : > { %v10260_v24 = vpop.f32.mrf.mxu0 }
 0x193   : > { %v1057_v3 = vadd.f32 %v10260_v24, %v853_v62  ;;  %v883_v24 = vadd.f32 %v10225_v27, %v13163_v20 }
 0x194   : > { %v1017_v26 = vpop.f32.mrf.mxu0 }
 0x195   : > { %v10304_v31 = vpop.f32.mrf.mxu1  ;;  %v1056_v7 = vadd.f32 %v1017_v26, %v848_v1 }
 0x196   : > { %v1235_v9 = vadd.f32 %v10304_v31, %v1057_v3 }
 0x197   : > { %v1195_v33 = vpop.f32.mrf.mxu1 }
 0x198   : > { %v10263_v28 = vpop.f32.mrf.mxu0 }
 0x199   : > { %v1059_v11 = vadd.f32 %v10263_v28, %v863_v6 }
 0x19a   : > { %v1027_v30 = vpop.f32.mrf.mxu0 }
 0x19b   : > { %v10307_v35 = vpop.f32.mrf.mxu1  ;;  %v1058_v16 = vadd.f32 %v1027_v30, %v858_v14  ;;  %v878_v14 = vadd.f32 %v13167_v29, %v13165_v22  ;;  %v13190_v22 = vld [vmem:[%s13507_s2] ss:$0 sm:$0xff] }
 0x19d   : > { %v1205_v37 = vpop.f32.mrf.mxu1 }
 0x19e   : > { %v10266_v32 = vpop.f32.mrf.mxu0  ;;  %v1236_v31 = vadd.f32 %v1205_v37, %v1058_v16 }
 0x1a0   : > { %v1037_v34 = vpop.f32.mrf.mxu0 }
 0x1a1   : > { %v10310_v39 = vpop.f32.mrf.mxu1  ;;  %v1060_v5 = vadd.f32 %v1037_v34, %v868_v61 }
 0x1a3   : > { %v1215_v41 = vpop.f32.mrf.mxu1 }
 0x1a4   : > { %v10269_v36 = vpop.f32.mrf.mxu0 }
 0x1a5   : > { %v1063_v62 = vadd.f32 %v10269_v36, %v883_v24 }
 0x1a6   : > { %v13169_v38 = vpop.f32.mrf.mxu0 }
 0x1a7   : > { %13556 = vst [vmem:[#allocation22_spill] sm:$0xff] %v13169_v38  ;;  %v10313_v43 = vpop.f32.mrf.mxu1  ;;  %v1237_v38 = vadd.f32 %v10307_v35, %v1059_v11 }
 0x1a8   : > { %v1241_v27 = vadd.f32 %v10313_v43, %v1063_v62 }
 0x1a9   : > { %v13171_v45 = vpop.f32.mrf.mxu1 }
 0x1aa   : > { %13557 = vst [vmem:[#allocation23_spill] sm:$0xff] %v13171_v45 }
 0x1ba   : > { %v10348_v40 = vpop.f32.mrf.mxu0 }
 0x1bc   : > { %v1373_v42 = vpop.f32.mrf.mxu0 }
 0x1bd   : > { %v10392_v47 = vpop.f32.mrf.mxu1 }
 0x1bf   : > { %v1551_v49 = vpop.f32.mrf.mxu1 }
 0x1c0   : > { %v10351_v44 = vpop.f32.mrf.mxu0 }
 0x1c1   : > { %v1415_v26 = vadd.f32 %v10351_v44, %v1237_v38  ;;  %v13562_v44 = vld [vmem:[#allocation23_spill] sm:$0xff] }
 0x1c2   : > { %v1383_v46 = vpop.f32.mrf.mxu0 }
 0x1c3   : > { %v10395_v51 = vpop.f32.mrf.mxu1  ;;  %v1414_v17 = vadd.f32 %v1383_v46, %v1236_v31 }
 0x1c4   : > { %v1593_v25 = vadd.f32 %v10395_v51, %v1415_v26 }
 0x1c5   : > { %v1561_v53 = vpop.f32.mrf.mxu1 }
 0x1c6   : > { %v10354_v48 = vpop.f32.mrf.mxu0  ;;  %v1592_v38 = vadd.f32 %v1561_v53, %v1414_v17 }
 0x1c8   : > { %v1393_v50 = vpop.f32.mrf.mxu0 }
 0x1c9   : > { %v10398_v55 = vpop.f32.mrf.mxu1 }
 0x1cb   : > { %v1571_v57 = vpop.f32.mrf.mxu1 }
 0x1cc   : > { %v10357_v52 = vpop.f32.mrf.mxu0 }
 0x1ce   : > { %v13173_v54 = vpop.f32.mrf.mxu0 }
 0x1cf   : > { %13558 = vst [vmem:[#allocation24_spill] sm:$0xff] %v13173_v54  ;;  %v13175_v59 = vpop.f32.mrf.mxu1  ;;  %v1413_v54 = vadd.f32 %v10348_v40, %v1235_v9  ;;  %v1419_v40 = vadd.f32 %v10357_v52, %v1241_v27 }
 0x1d0   : > { %13559 = vst [vmem:[#allocation25_spill] sm:$0xff] %v13175_v59  ;;  %v1234_v59 = vadd.f32 %v1195_v33, %v1056_v7 }
 0x1d1   : > { %v13178_v63 = vpop.f32.mrf.mxu1  ;;  %v1591_v19 = vadd.f32 %v10392_v47, %v1413_v54 }
 0x1d2   : > { %13560 = vst [vmem:[#allocation26_spill] sm:$0xff] %v13178_v63  ;;  %v1061_v63 = vadd.f32 %v10266_v32, %v873_v13  ;;  %v1412_v2 = vadd.f32 %v1373_v42, %v1234_v59  ;;  %v1238_v13 = vadd.f32 %v1215_v41, %v1060_v5  ;;  %v13561_v32 = vld [vmem:[#allocation22_spill] sm:$0xff] }
 0x1d3   : > { %v1062_v20 = vadd.f32 %v13561_v32, %v878_v14 }
 0x1d4   : > { %v1239_v28 = vadd.f32 %v10310_v39, %v1061_v63  ;;  %v1590_v10 = vadd.f32 %v1551_v49, %v1412_v2  ;;  %v1416_v33 = vadd.f32 %v1393_v50, %v1238_v13 }
 0x1d5   : > { %v1240_v46 = vadd.f32 %v13562_v44, %v1062_v20 }
 0x1d6   : > { %v1417_v23 = vadd.f32 %v10354_v48, %v1239_v28  ;;  %v1594_v47 = vadd.f32 %v1571_v57, %v1416_v33  ;;  %v13563_v52 = vld [vmem:[#allocation24_spill] sm:$0xff] }
 0x1d8   : > { %v1595_v39 = vadd.f32 %v10398_v55, %v1417_v23  ;;  %v1418_v55 = vadd.f32 %v13563_v52, %v1240_v46  ;;  %v2581_v52 = vld [vmem:[#allocation8 + $0x168] sm:$0xff] }
 0x1d9   : > { %v13565_v61 = vld [vmem:[#allocation26_spill] sm:$0xff] }
 0x1da   : > { %v1596_v16 = vadd.f32 %v13565_v61, %v1418_v55  ;;  %v2578_v61 = vld [vmem:[#allocation8 + $0x150] sm:$0xff] }
 0x1e2   : > { %v10436_v56 = vpop.f32.mrf.mxu0 }
 0x1e3   : > { %v1770_v15 = vadd.f32 %v10436_v56, %v1591_v19  ;;  %v13564_v56 = vld [vmem:[#allocation25_spill] sm:$0xff] }
 0x1e4   : > { %v1730_v58 = vpop.f32.mrf.mxu0 }
 0x1e5   : > { %v10480_v4 = vpop.f32.mrf.mxu1  ;;  %v1769_v30 = vadd.f32 %v1730_v58, %v1590_v10  ;;  %v1597_v58 = vadd.f32 %v13564_v56, %v1419_v40  ;;  %v13566_v56 = vld [vmem:[#allocation20_spill] sm:$0xff] }
 0x1e6   : > { %v1948_v35 = vadd.f32 %v10480_v4, %v1770_v15 }
 0x1e7   : > { %v10439_v60 = vpop.f32.mrf.mxu0  ;;  %v1908_v12 = vpop.f32.mrf.mxu1 }
 0x1e8   : > { %v1772_v37 = vadd.f32 %v10439_v60, %v1593_v25  ;;  %v1947_v29 = vadd.f32 %v1908_v12, %v1769_v30 }
 0x1e9   : > { %v1740_v0 = vpop.f32.mrf.mxu0  ;;  %v10483_v18 = vpop.f32.mrf.mxu1 }
 0x1ea   : > { %v1771_v43 = vadd.f32 %v1740_v0, %v1592_v38  ;;  %v1950_v50 = vadd.f32 %v10483_v18, %v1772_v37 }
 0x1eb   : > { %v1918_v21 = vpop.f32.mrf.mxu1 }
 0x1ec   : > { %v10442_v8 = vpop.f32.mrf.mxu0  ;;  %v1949_v57 = vadd.f32 %v1918_v21, %v1771_v43  ;;  %v2582_v43 = vld [vmem:[#allocation8 + $0x170] sm:$0xff] }
 0x1ed   : > { %v10486_v36 = vpop.f32.mrf.mxu1  ;;  %v1774_v48 = vadd.f32 %v10442_v8, %v1595_v39 }
 0x1ee   : > { %v1750_v45 = vpop.f32.mrf.mxu0 }
 0x1ef   : > { %v1928_v51 = vpop.f32.mrf.mxu1  ;;  %v1773_v59 = vadd.f32 %v1750_v45, %v1594_v47  ;;  %v1952_v0 = vadd.f32 %v10486_v36, %v1774_v48 }
 0x1f0   : > { %v10445_v1 = vpop.f32.mrf.mxu0 }
 0x1f1   : > { %v1776_v6 = vadd.f32 %v10445_v1, %v1597_v58  ;;  %v10489_v8 = vpop.f32.mrf.mxu1  ;;  %v1951_v2 = vadd.f32 %v1928_v51, %v1773_v59  ;;  %v2759_v58 = vld [vmem:[#allocation8 + $0x1e8] sm:$0xff] }
 0x1f2   : > { %v1760_v34 = vpop.f32.mrf.mxu0 }
 0x1f3   : > { %v1775_v31 = vadd.f32 %v1760_v34, %v1596_v16  ;;  %v1954_v10 = vadd.f32 %v10489_v8, %v1776_v6  ;;  %v1938_v15 = vpop.f32.mrf.mxu1  ;;  %v2579_v8 = vld [vmem:[#allocation8 + $0x158] sm:$0xff] }
 0x1f5   : > { %v1953_v27 = vadd.f32 %v1938_v15, %v1775_v31  ;;  %v2754_v31 = vld [vmem:[#allocation8 + $0x1c0] sm:$0xff]  ;;  %v2574_v15 = vld [vmem:[#allocation8 + $0x130] sm:$0xff] }
 0x204   : > { %v10524_v42 = vpop.f32.mrf.mxu0 }
 0x205   : > { %v2126_v41 = vadd.f32 %v10524_v42, %v1948_v35 }
 0x206   : > { %v2086_v49 = vpop.f32.mrf.mxu0 }
 0x207   : > { %v2141_v53 = vadd.f32 %v13190_v22, %v2126_v41  ;;  %v2125_v54 = vadd.f32 %v2086_v49, %v1947_v29 }
 0x208   : > { %v10527_v60 = vpop.f32.mrf.mxu0 }
 0x209   : > { %vm2149_vm0 = vcmp.gt.f32.partialorder %v2141_v53, 0.0  ;;  %v2157_v63 = vmul.f32 0.01, %v2141_v53  ;;  %v2140_v3 = vadd.f32 %v13190_v22, %v2125_v54  ;;  %v2128_v4 = vadd.f32 %v10527_v60, %v1950_v50  ;;  %v13567_v60 = vld [vmem:[#allocation21_spill] sm:$0xff] }
 0x20a   : > { %v2096_v7 = vpop.f32.mrf.mxu0 }
 0x20b   : > { %v2165_v9 = vsel %vm2149_vm0, %v2141_v53, %v2157_v63  ;;  %vm2148_vm1 = vcmp.gt.f32.partialorder %v2140_v3, 0.0  ;;  %v2156_v11 = vmul.f32 0.01, %v2140_v3  ;;  %v2143_v12 = vadd.f32 %v13190_v22, %v2128_v4  ;;  %v2760_v53 = vld [vmem:[#allocation8 + $0x1f0] sm:$0xff]  ;;  %v2580_v4 = vld [vmem:[#allocation8 + $0x160] sm:$0xff] }
 0x20c   : > { %v2181_v45 = vcombine.high %v2165_v9, %v2165_v9  ;;  %2198 = vst [vmem:[#allocation2 + $0x19] sm:$0xf] %v2165_v9  ;;  %v2127_v18 = vadd.f32 %v2096_v7, %v1949_v57  ;;  %v10530_v24 = vpop.f32.mrf.mxu0  ;;  %v2757_v9 = vld [vmem:[#allocation8 + $0x1d8] sm:$0xff] }
 0x20d   : > { %v2164_v5 = vsel %vm2148_vm1, %v2140_v3, %v2156_v11  ;;  %vm2151_vm2 = vcmp.gt.f32.partialorder %v2143_v12, 0.0  ;;  %v2159_v19 = vmul.f32 0.01, %v2143_v12  ;;  %v2130_v26 = vadd.f32 %v10530_v24, %v1952_v0  ;;  %v2758_v0 = vld [vmem:[#allocation8 + $0x1e0] sm:$0xff]  ;;  %v2755_v24 = vld [vmem:[#allocation8 + $0x1c8] sm:$0xff] }
 0x20e   : > { %2199 = vst [vmem:[#allocation2 + $0x21] sm:$0xf] %v2181_v45  ;;  %v2180_v28 = vcombine.high %v2164_v5, %v2164_v5  ;;  %2196 = vst [vmem:[#allocation2 + $0x9] sm:$0xf] %v2164_v5  ;;  %v2142_v62 = vadd.f32 %v13190_v22, %v2127_v18  ;;  %v2106_v1 = vpop.f32.mrf.mxu0  ;;  %v2577_v18 = vld [vmem:[#allocation8 + $0x148] sm:$0xff] }
 0x20f   : > { %v2167_v21 = vsel %vm2151_vm2, %v2143_v12, %v2159_v19  ;;  %v2145_v14 = vadd.f32 %v13190_v22, %v2130_v26  ;;  %v2129_v13 = vadd.f32 %v2106_v1, %v1951_v2  ;;  %v2756_v2 = vld [vmem:[#allocation8 + $0x1d0] sm:$0xff]  ;;  %v2576_v26 = vld [vmem:[#allocation8 + $0x140] sm:$0xff]  ;;  %v2753_v1 = vld [vmem:[#allocation8 + $0x1b8] sm:$0xff] }
 0x210   : > { %2197 = vst [vmem:[#allocation2 + $0x11] sm:$0xf] %v2180_v28  ;;  %v2183_v17 = vcombine.high %v2167_v21, %v2167_v21  ;;  %2202 = vst [vmem:[#allocation2 + $0x39] sm:$0xf] %v2167_v21  ;;  %vm2150_vm3 = vcmp.gt.f32.partialorder %v2142_v62, 0.0  ;;  %v10533_v25 = vpop.f32.mrf.mxu0  ;;  %v2575_v28 = vld [vmem:[#allocation8 + $0x138] sm:$0xff] }
 0x211   : > { %v2158_v23 = vmul.f32 0.01, %v2142_v62  ;;  %vm2153_vm4 = vcmp.gt.f32.partialorder %v2145_v14, 0.0  ;;  %v2161_v30 = vmul.f32 0.01, %v2145_v14  ;;  %v2144_v32 = vadd.f32 %v13190_v22, %v2129_v13  ;;  %v2752_v21 = vld [vmem:[#allocation8 + $0x1b0] sm:$0xff] }
 0x212   : > { %v2132_v20 = vadd.f32 %v10533_v25, %v1954_v10  ;;  %2203 = vst [vmem:[#allocation2 + $0x41] sm:$0xf] %v2183_v17  ;;  %v2116_v34 = vpop.f32.mrf.mxu0  ;;  %v2751_v13 = vld [vmem:[#allocation8 + $0x1a8] sm:$0xff]  ;;  %v2572_v17 = vld [vmem:[#allocation8 + $0x120] sm:$0xff]  ;;  %v2571_v25 = vld [vmem:[#allocation8 + $0x118] sm:$0xff] }
 0x213   : > { %v2166_v33 = vsel %vm2150_vm3, %v2142_v62, %v2158_v23  ;;  %v2169_v37 = vsel %vm2153_vm4, %v2145_v14, %v2161_v30  ;;  %vm2152_vm5 = vcmp.gt.f32.partialorder %v2144_v32, 0.0  ;;  %v2160_v36 = vmul.f32 0.01, %v2144_v32  ;;  %v2573_v14 = vld [vmem:[#allocation8 + $0x128] sm:$0xff]  ;;  %v2750_v23 = vld [vmem:[#allocation8 + $0x1a0] sm:$0xff]  ;;  %v2749_v30 = vld [vmem:[#allocation8 + $0x198] sm:$0xff] }
 0x214   : > { %v2182_v35 = vcombine.high %v2166_v33, %v2166_v33  ;;  %2200 = vst [vmem:[#allocation2 + $0x29] sm:$0xf] %v2166_v33  ;;  %v2185_v38 = vcombine.high %v2169_v37, %v2169_v37  ;;  %2206 = vst [vmem:[#allocation2 + $0x59] sm:$0xf] %v2169_v37  ;;  %v2147_v39 = vadd.f32 %v13190_v22, %v2132_v20  ;;  %v2748_v20 = vld [vmem:[#allocation8 + $0x190] sm:$0xff]  ;;  %v2747_v33 = vld [vmem:[#allocation8 + $0x188] sm:$0xff] }
 0x215   : > { %v2131_v40 = vadd.f32 %v2116_v34, %v1953_v27  ;;  %v2168_v42 = vsel %vm2152_vm5, %v2144_v32, %v2160_v36  ;;  %v12326_v29 = vld [vmem:[#allocation2 + $0x1] ss:$8 sps:$4 sm:$0xff]   ;;  %v2569_v27 = vld [vmem:[#allocation8 + $0x108] sm:$0xff]  ;;  %v2568_v34 = vld [vmem:[#allocation8 + $0x100] sm:$0xff] }
 0x216   : > { %2201 = vst [vmem:[#allocation2 + $0x31] sm:$0xf] %v2182_v35  ;;  %2207 = vst [vmem:[#allocation2 + $0x61] sm:$0xf] %v2185_v38  ;;  %v2184_v41 = vcombine.high %v2168_v42, %v2168_v42  ;;  %vm2155_vm6 = vcmp.gt.f32.partialorder %v2147_v39, 0.0  ;;  %10566 = vmatprep.mubr.f32.mxu1 %v12326_v29  ;;  %v2570_v32 = vld [vmem:[#allocation8 + $0x110] sm:$0xff] }
 0x217   : > { %2204 = vst [vmem:[#allocation2 + $0x49] sm:$0xf] %v2168_v42  ;;  %v2163_v44 = vmul.f32 0.01, %v2147_v39  ;;  %v2146_v46 = vadd.f32 %v13190_v22, %v2131_v40  ;;  %v12327_v47 = vld [vmem:[#allocation2] ss:$8 sps:$4 sm:$0xff]  }
 0x218   : > { %v12328_v48 = vld [vmem:[#allocation2 + $0x11] ss:$8 sps:$4 sm:$0xff]   ;;  %2205 = vst [vmem:[#allocation2 + $0x51] sm:$0xf] %v2184_v41  ;;  %10610 = vmatprep.mubr.f32.mxu0 %v12327_v47  ;;  %v12342_v62 = vld [vmem:[#allocation2 + $0x2] ss:$8 sps:$4 sm:$0xff]  }
 0x219   : > { %v2171_v49 = vsel %vm2155_vm6, %v2147_v39, %v2163_v44  ;;  %vm2154_vm7 = vcmp.gt.f32.partialorder %v2146_v46, 0.0  ;;  %v2162_v50 = vmul.f32 0.01, %v2146_v46  ;;  %v12329_v51 = vld [vmem:[#allocation2 + $0x10] ss:$8 sps:$4 sm:$0xff]   ;;  %10567 = vmatmul.mubr.f32.vlgmr.msra.gmra.mxu1 %v12328_v48  ;;  %v2939_v37 = vld [vmem:[#allocation8 + $0x278] sm:$0xff] }
 0x21a   : > { %v2187_v54 = vcombine.high %v2171_v49, %v2171_v49  ;;  %2210 = vst [vmem:[#allocation2 + $0x79] sm:$0xf] %v2171_v49  ;;  %10611 = vmatmul.mubr.f32.vlgmr.msra.gmra.mxu0 %v12329_v51  ;;  %10623 = vmatpush3.msra.mxu1 %v13566_v56  ;;  %v12343_v10 = vld [vmem:[#allocation2 + $0x8] ss:$8 sps:$4 sm:$0xff]   ;;  %v12345_v39 = vld [vmem:[#allocation2 + $0x18] ss:$8 sps:$4 sm:$0xff]  }
 0x21b   : > { %v2170_v55 = vsel %vm2154_vm7, %v2146_v46, %v2162_v50  ;;  %v12330_v22 = vld [vmem:[#allocation2 + $0x21] ss:$8 sps:$4 sm:$0xff]   ;;  %10667 = vmatpush3.msra.mxu0 %v13567_v60  ;;  %10624 = vmatprep.subr.mxu1 %v2582_v43  ;;  %v2746_v35 = vld [vmem:[#allocation8 + $0x180] sm:$0xff]  ;;  %v2937_v44 = vld [vmem:[#allocation8 + $0x268] sm:$0xff] }
 0x21c   : > { %2211 = vst [vmem:[#allocation2 + $0x81] sm:$0xf] %v2187_v54  ;;  %v2186_v59 = vcombine.high %v2170_v55, %v2170_v55  ;;  %2208 = vst [vmem:[#allocation2 + $0x69] sm:$0xf] %v2170_v55  ;;  %v12331_v63 = vld [vmem:[#allocation2 + $0x20] ss:$8 sps:$4 sm:$0xff]   ;;  %10668 = vmatprep.subr.mxu0 %v2760_v53  ;;  %10569 = vmatprep.mubr.f32.mxu1 %v12330_v22 }
 0x21d   : > { %v12332_v3 = vld [vmem:[#allocation2 + $0x31] ss:$8 sps:$4 sm:$0xff]   ;;  %10613 = vmatprep.mubr.f32.mxu0 %v12331_v63  ;;  %10625 = vmatpush3.msra.mxu1 %v2582_v43  ;;  %v3117_v36 = vld [vmem:[#allocation8 + $0x2f8] sm:$0xff]  ;;  %v2938_v40 = vld [vmem:[#allocation8 + $0x270] sm:$0xff] }
 0x21e   : > { %2209 = vst [vmem:[#allocation2 + $0x71] sm:$0xf] %v2186_v59  ;;  %v12333_v57 = vld [vmem:[#allocation2 + $0x30] ss:$8 sps:$4 sm:$0xff]   ;;  %10669 = vmatpush3.msra.mxu0 %v2760_v53  ;;  %10626 = vmatprep.subr.mxu1 %v2581_v52  ;;  %v12334_v6 = vld [vmem:[#allocation2 + $0x41] ss:$8 sps:$4 sm:$0xff]  }
 0x21f   : > { %10670 = vmatprep.subr.mxu0 %v2759_v58  ;;  %10570 = vmatmul.mubr.f32.gmra.mxu1 %v12332_v3  ;;  %v12335_v7 = vld [vmem:[#allocation2 + $0x40] ss:$8 sps:$4 sm:$0xff]   ;;  %v12336_v11 = vld [vmem:[#allocation2 + $0x51] ss:$8 sps:$4 sm:$0xff]  }
 0x220   : > { %10614 = vmatmul.mubr.f32.gmra.mxu0 %v12333_v57  ;;  %10627 = vmatpush3.msra.mxu1 %v2581_v52  ;;  %v12337_v12 = vld [vmem:[#allocation2 + $0x50] ss:$8 sps:$4 sm:$0xff]   ;;  %v12346_v42 = vld [vmem:[#allocation2 + $0x22] ss:$8 sps:$4 sm:$0xff]  }
 0x221   : > { %10671 = vmatpush3.msra.mxu0 %v2759_v58  ;;  %10628 = vmatprep.subr.mxu1 %v2580_v4  ;;  %v12344_v38 = vld [vmem:[#allocation2 + $0x12] ss:$8 sps:$4 sm:$0xff]   ;;  %v3116_v29 = vld [vmem:[#allocation8 + $0x2f0] sm:$0xff]  ;;  %v2935_v53 = vld [vmem:[#allocation8 + $0x258] sm:$0xff] }
 0x222   : > { %10672 = vmatprep.subr.mxu0 %v2758_v0  ;;  %10572 = vmatprep.mubr.f32.mxu1 %v12334_v6  ;;  %v12347_v41 = vld [vmem:[#allocation2 + $0x28] ss:$8 sps:$4 sm:$0xff]   ;;  %v3115_v46 = vld [vmem:[#allocation8 + $0x2e8] sm:$0xff]  ;;  %v2934_v56 = vld [vmem:[#allocation8 + $0x250] sm:$0xff] }
 0x223   : > { %10616 = vmatprep.mubr.f32.mxu0 %v12335_v7  ;;  %10629 = vmatpush3.msra.mxu1 %v2580_v4  ;;  %v12338_v16 = vld [vmem:[#allocation2 + $0x61] ss:$8 sps:$4 sm:$0xff]   ;;  %v12348_v47 = vld [vmem:[#allocation2 + $0x32] ss:$8 sps:$4 sm:$0xff]  }
 0x224   : > { %10673 = vmatpush3.msra.mxu0 %v2758_v0  ;;  %10630 = vmatprep.subr.mxu1 %v2579_v8  ;;  %v12339_v45 = vld [vmem:[#allocation2 + $0x60] ss:$8 sps:$4 sm:$0xff]   ;;  %v2936_v48 = vld [vmem:[#allocation8 + $0x260] sm:$0xff]  ;;  %v2933_v60 = vld [vmem:[#allocation8 + $0x248] sm:$0xff] }
 0x225   : > { %10674 = vmatprep.subr.mxu0 %v2757_v9  ;;  %10573 = vmatmul.mubr.f32.gmra.mxu1 %v12336_v11  ;;  %v12340_v5 = vld [vmem:[#allocation2 + $0x71] ss:$8 sps:$4 sm:$0xff]   ;;  %v12350_v49 = vld [vmem:[#allocation2 + $0x42] ss:$8 sps:$4 sm:$0xff]  }
 0x226   : > { %10617 = vmatmul.mubr.f32.gmra.mxu0 %v12337_v12  ;;  %10631 = vmatpush3.msra.mxu1 %v2579_v8  ;;  %v12341_v19 = vld [vmem:[#allocation2 + $0x70] ss:$8 sps:$4 sm:$0xff]   ;;  %v3113_v54 = vld [vmem:[#allocation8 + $0x2d8] sm:$0xff]  ;;  %v3112_v58 = vld [vmem:[#allocation8 + $0x2d0] sm:$0xff] }
 0x227   : > { %10675 = vmatpush3.msra.mxu0 %v2757_v9  ;;  %10632 = vmatprep.subr.mxu1 %v2578_v61  ;;  %v12349_v43 = vld [vmem:[#allocation2 + $0x38] ss:$8 sps:$4 sm:$0xff]   ;;  %v3114_v50 = vld [vmem:[#allocation8 + $0x2e0] sm:$0xff]  ;;  %v2931_v8 = vld [vmem:[#allocation8 + $0x238] sm:$0xff] }
 0x228   : > { %10676 = vmatprep.subr.mxu0 %v2756_v2  ;;  %10575 = vmatprep.mubr.f32.mxu1 %v12338_v16  ;;  %v12351_v51 = vld [vmem:[#allocation2 + $0x48] ss:$8 sps:$4 sm:$0xff]   ;;  %v12353_v55 = vld [vmem:[#allocation2 + $0x58] ss:$8 sps:$4 sm:$0xff]  }
 0x229   : > { %10619 = vmatprep.mubr.f32.mxu0 %v12339_v45  ;;  %10633 = vmatpush3.msra.mxu1 %v2578_v61  ;;  %v12352_v52 = vld [vmem:[#allocation2 + $0x52] ss:$8 sps:$4 sm:$0xff]   ;;  %v12354_v22 = vld [vmem:[#allocation2 + $0x62] ss:$8 sps:$4 sm:$0xff]  }
 0x22a   : > { %10677 = vmatpush3.msra.mxu0 %v2756_v2  ;;  %10634 = vmatprep.subr.mxu1 %v2577_v18  ;;  %v12355_v59 = vld [vmem:[#allocation2 + $0x68] ss:$8 sps:$4 sm:$0xff]   ;;  %v3111_v63 = vld [vmem:[#allocation8 + $0x2c8] sm:$0xff]  ;;  %v2930_v11 = vld [vmem:[#allocation8 + $0x230] sm:$0xff] }
 0x22b   : > { %10678 = vmatprep.subr.mxu0 %v2755_v24  ;;  %10576 = vmatmul.mubr.f32.gmra.mxu1 %v12340_v5  ;;  %v12356_v3 = vld [vmem:[#allocation2 + $0x72] ss:$8 sps:$4 sm:$0xff]   ;;  %v3109_v9 = vld [vmem:[#allocation8 + $0x2b8] sm:$0xff]  ;;  %v3108_v12 = vld [vmem:[#allocation8 + $0x2b0] sm:$0xff] }
 0x22c   : > { %10620 = vmatmul.mubr.f32.gmra.mxu0 %v12341_v19  ;;  %10635 = vmatpush3.msra.mxu1 %v2577_v18  ;;  %v12357_v4 = vld [vmem:[#allocation2 + $0x78] ss:$8 sps:$4 sm:$0xff]   ;;  %v2932_v57 = vld [vmem:[#allocation8 + $0x240] sm:$0xff]  ;;  %v2927_v18 = vld [vmem:[#allocation8 + $0x218] sm:$0xff] }
 0x22d   : > { %10679 = vmatpush3.msra.mxu0 %v2755_v24  ;;  %10636 = vmatprep.subr.mxu1 %v2576_v26  ;;  %v12358_v0 = vld [vmem:[#allocation2 + $0x9] ss:$8 sps:$4 sm:$0xff]   ;;  %v2929_v61 = vld [vmem:[#allocation8 + $0x228] sm:$0xff]  ;;  %v2926_v5 = vld [vmem:[#allocation8 + $0x210] sm:$0xff] }
 0x22e   : > { %10654 = vmatprep.mubr.f32.mxu1 %v12342_v62  ;;  %10680 = vmatprep.subr.mxu0 %v2754_v31  ;;  %v3110_v6 = vld [vmem:[#allocation8 + $0x2c0] sm:$0xff]  ;;  %v3107_v16 = vld [vmem:[#allocation8 + $0x2a8] sm:$0xff]  ;;  %v3105_v24 = vld [vmem:[#allocation8 + $0x298] sm:$0xff] }
 0x22f   : > { %10698 = vmatprep.mubr.f32.mxu0 %v12343_v10  ;;  %10637 = vmatpush3.msra.mxu1 %v2576_v26  ;;  %v12359_v7 = vld [vmem:[#allocation2 + $0xa] ss:$8 sps:$4 sm:$0xff]   ;;  %v3104_v19 = vld [vmem:[#allocation8 + $0x290] sm:$0xff]  ;;  %v2925_v26 = vld [vmem:[#allocation8 + $0x208] sm:$0xff] }
 0x230   : > { %10681 = vmatpush3.msra.mxu0 %v2754_v31  ;;  %10638 = vmatprep.subr.mxu1 %v2575_v28  ;;  %v2928_v2 = vld [vmem:[#allocation8 + $0x220] sm:$0xff]  ;;  %v3103_v31 = vld [vmem:[#allocation8 + $0x288] sm:$0xff]  ;;  %v3295_v10 = vld [vmem:[#allocation8 + $0x378] sm:$0xff] }
 0x231   : > { %10682 = vmatprep.subr.mxu0 %v2753_v1  ;;  %10639 = vmatpush3.msra.mxu1 %v2575_v28  ;;  %v3106_v45 = vld [vmem:[#allocation8 + $0x2a0] sm:$0xff] }
 0x232   : > { %10683 = vmatpush3.msra.mxu0 %v2753_v1  ;;  %10640 = vmatprep.subr.mxu1 %v2574_v15  ;;  %v2924_v28 = vld [vmem:[#allocation8 + $0x200] sm:$0xff]  ;;  %v12360_v1 = vld [vmem:[#allocation2 + $0x19] ss:$8 sps:$4 sm:$0xff]  }
 0x233   : > { %10684 = vmatprep.subr.mxu0 %v2752_v21  ;;  %10641 = vmatpush3.msra.mxu1 %v2574_v15  ;;  %v3102_v62 = vld [vmem:[#allocation8 + $0x280] sm:$0xff]  ;;  %v12361_v15 = vld [vmem:[#allocation2 + $0x1a] ss:$8 sps:$4 sm:$0xff]  }
 0x234   : > { %10685 = vmatpush3.msra.mxu0 %v2752_v21  ;;  %10642 = vmatprep.subr.mxu1 %v2573_v14  ;;  %v3473_v21 = vld [vmem:[#allocation8 + $0x3f8] sm:$0xff] }
 0x235   : > { %10686 = vmatprep.subr.mxu0 %v2751_v13  ;;  %10643 = vmatpush3.msra.mxu1 %v2573_v14  ;;  %v12362_v14 = vld [vmem:[#allocation2 + $0x29] ss:$8 sps:$4 sm:$0xff]  }
 0x236   : > { %10687 = vmatpush3.msra.mxu0 %v2751_v13  ;;  %10644 = vmatprep.subr.mxu1 %v2572_v17  ;;  %v12363_v13 = vld [vmem:[#allocation2 + $0x2a] ss:$8 sps:$4 sm:$0xff]  }
 0x237   : > { %10688 = vmatprep.subr.mxu0 %v2750_v23  ;;  %10645 = vmatpush3.msra.mxu1 %v2572_v17  ;;  %v3294_v17 = vld [vmem:[#allocation8 + $0x370] sm:$0xff] }
 0x238   : > { %10689 = vmatpush3.msra.mxu0 %v2750_v23  ;;  %10646 = vmatprep.subr.mxu1 %v2571_v25  ;;  %v3472_v23 = vld [vmem:[#allocation8 + $0x3f0] sm:$0xff] }
 0x239   : > { %10690 = vmatprep.subr.mxu0 %v2749_v30  ;;  %10647 = vmatpush3.msra.mxu1 %v2571_v25  ;;  %v12364_v25 = vld [vmem:[#allocation2 + $0x39] ss:$8 sps:$4 sm:$0xff]  }
 0x23a   : > { %10691 = vmatpush3.msra.mxu0 %v2749_v30  ;;  %10648 = vmatprep.subr.mxu1 %v2570_v32  ;;  %v3293_v30 = vld [vmem:[#allocation8 + $0x368] sm:$0xff] }
 0x23b   : > { %10692 = vmatprep.subr.mxu0 %v2748_v20  ;;  %10649 = vmatpush3.msra.mxu1 %v2570_v32  ;;  %v12365_v32 = vld [vmem:[#allocation2 + $0x3a] ss:$8 sps:$4 sm:$0xff]  }
 0x23c   : > { %10693 = vmatpush3.msra.mxu0 %v2748_v20  ;;  %10650 = vmatprep.subr.mxu1 %v2569_v27  ;;  %v3471_v20 = vld [vmem:[#allocation8 + $0x3e8] sm:$0xff] }
 0x23d   : > { %10694 = vmatprep.subr.mxu0 %v2747_v33  ;;  %10651 = vmatpush3.msra.mxu1 %v2569_v27  ;;  %v12366_v27 = vld [vmem:[#allocation2 + $0x49] ss:$8 sps:$4 sm:$0xff]  }
 0x23e   : > { %10695 = vmatpush3.msra.mxu0 %v2747_v33  ;;  %10652 = vmatprep.subr.mxu1 %v2568_v34  ;;  %v12367_v33 = vld [vmem:[#allocation2 + $0x4a] ss:$8 sps:$4 sm:$0xff]  }
 0x23f   : > { %10696 = vmatprep.subr.mxu0 %v2746_v35  ;;  %10653 = vmatpush3.msra.mxu1 %v2568_v34  ;;  %v3292_v34 = vld [vmem:[#allocation8 + $0x360] sm:$0xff] }
 0x240   : > { %10697 = vmatpush3.msra.mxu0 %v2746_v35  ;;  %10655 = vmatmul.mubr.f32.vlgmr.msra.gmra.mxu1 %v12344_v38  ;;  %v3470_v35 = vld [vmem:[#allocation8 + $0x3e0] sm:$0xff]  ;;  %v12369_v38 = vld [vmem:[#allocation2 + $0x5a] ss:$8 sps:$4 sm:$0xff]  }
 0x241   : > { %10699 = vmatmul.mubr.f32.vlgmr.msra.gmra.mxu0 %v12345_v39  ;;  %10710 = vmatprep.subr.mxu1 %v2939_v37  ;;  %v3469_v39 = vld [vmem:[#allocation8 + $0x3d8] sm:$0xff] }
 0x242   : > { %10754 = vmatprep.subr.mxu0 %v3117_v36  ;;  %10657 = vmatprep.mubr.f32.mxu1 %v12346_v42  ;;  %v12371_v42 = vld [vmem:[#allocation2 + $0x6a] ss:$8 sps:$4 sm:$0xff]  }
 0x243   : > { %10701 = vmatprep.mubr.f32.mxu0 %v12347_v41  ;;  %10711 = vmatpush3.msra.mxu1 %v2939_v37  ;;  %v12368_v37 = vld [vmem:[#allocation2 + $0x59] ss:$8 sps:$4 sm:$0xff]  }
 0x244   : > { %10755 = vmatpush3.msra.mxu0 %v3117_v36  ;;  %10712 = vmatprep.subr.mxu1 %v2938_v40  ;;  %v3291_v36 = vld [vmem:[#allocation8 + $0x358] sm:$0xff]  ;;  %v3468_v41 = vld [vmem:[#allocation8 + $0x3d0] sm:$0xff] }
 0x245   : > { %10756 = vmatprep.subr.mxu0 %v3116_v29  ;;  %10713 = vmatpush3.msra.mxu1 %v2938_v40  ;;  %v12370_v40 = vld [vmem:[#allocation2 + $0x69] ss:$8 sps:$4 sm:$0xff]  }
 0x246   : > { %10757 = vmatpush3.msra.mxu0 %v3116_v29  ;;  %10658 = vmatmul.mubr.f32.gmra.mxu1 %v12348_v47  ;;  %v3290_v29 = vld [vmem:[#allocation8 + $0x350] sm:$0xff] }
 0x247   : > { %10702 = vmatmul.mubr.f32.gmra.mxu0 %v12349_v43  ;;  %10714 = vmatprep.subr.mxu1 %v2937_v44  ;;  %v12373_v47 = vld [vmem:[#allocation2 + $0x7a] ss:$8 sps:$4 sm:$0xff]  }
 0x248   : > { %10758 = vmatprep.subr.mxu0 %v3115_v46  ;;  %10660 = vmatprep.mubr.f32.mxu1 %v12350_v49  ;;  %v3467_v43 = vld [vmem:[#allocation8 + $0x3c8] sm:$0xff]  ;;  %v3288_v49 = vld [vmem:[#allocation8 + $0x340] sm:$0xff] }
 0x249   : > { %10704 = vmatprep.mubr.f32.mxu0 %v12351_v51  ;;  %10715 = vmatpush3.msra.mxu1 %v2937_v44  ;;  %v12372_v44 = vld [vmem:[#allocation2 + $0x79] ss:$8 sps:$4 sm:$0xff]   ;;  %v3466_v51 = vld [vmem:[#allocation8 + $0x3c0] sm:$0xff] }
 0x24a   : > { %10759 = vmatpush3.msra.mxu0 %v3115_v46  ;;  %10716 = vmatprep.subr.mxu1 %v2936_v48  ;;  %v3289_v46 = vld [vmem:[#allocation8 + $0x348] sm:$0xff] }
 0x24b   : > { %10760 = vmatprep.subr.mxu0 %v3114_v50  ;;  %10717 = vmatpush3.msra.mxu1 %v2936_v48  ;;  %v12374_v48 = vld [vmem:[#allocation2 + $0x10] ss:$8 sps:$4 sm:$0xff]  }
 0x24c   : > { %10761 = vmatpush3.msra.mxu0 %v3114_v50  ;;  %10661 = vmatmul.mubr.f32.gmra.mxu1 %v12352_v52  ;;  %v12375_v50 = vld [vmem:[#allocation2 + $0x11] ss:$8 sps:$4 sm:$0xff]   ;;  %v3286_v52 = vld [vmem:[#allocation8 + $0x330] sm:$0xff] }
 0x24d   : > { %10705 = vmatmul.mubr.f32.gmra.mxu0 %v12353_v55  ;;  %10718 = vmatprep.subr.mxu1 %v2935_v53  ;;  %v3464_v55 = vld [vmem:[#allocation8 + $0x3b0] sm:$0xff] }
 0x24e   : > { %10762 = vmatprep.subr.mxu0 %v3113_v54  ;;  %10663 = vmatprep.mubr.f32.mxu1 %v12354_v22  ;;  %v3463_v22 = vld [vmem:[#allocation8 + $0x3a8] sm:$0xff] }
 0x24f   : > { %10707 = vmatprep.mubr.f32.mxu0 %v12355_v59  ;;  %10719 = vmatpush3.msra.mxu1 %v2935_v53  ;;  %v3287_v53 = vld [vmem:[#allocation8 + $0x338] sm:$0xff]  ;;  %v3462_v59 = vld [vmem:[#allocation8 + $0x3a0] sm:$0xff] }
 0x250   : > { %10763 = vmatpush3.msra.mxu0 %v3113_v54  ;;  %10720 = vmatprep.subr.mxu1 %v2934_v56  ;;  %v3465_v54 = vld [vmem:[#allocation8 + $0x3b8] sm:$0xff] }
 0x251   : > { %10764 = vmatprep.subr.mxu0 %v3112_v58  ;;  %10721 = vmatpush3.msra.mxu1 %v2934_v56  ;;  %v3285_v56 = vld [vmem:[#allocation8 + $0x328] sm:$0xff] }
 0x252   : > { %10765 = vmatpush3.msra.mxu0 %v3112_v58  ;;  %10664 = vmatmul.mubr.f32.gmra.mxu1 %v12356_v3  ;;  %v3284_v58 = vld [vmem:[#allocation8 + $0x320] sm:$0xff]  ;;  %v3282_v3 = vld [vmem:[#allocation8 + $0x310] sm:$0xff] }
 0x253   : > { %10708 = vmatmul.mubr.f32.gmra.mxu0 %v12357_v4  ;;  %10722 = vmatprep.subr.mxu1 %v2933_v60  ;;  %v3460_v4 = vld [vmem:[#allocation8 + $0x390] sm:$0xff] }
 0x254   : > { %10766 = vmatprep.subr.mxu0 %v3111_v63  ;;  %10723 = vmatpush3.msra.mxu1 %v2933_v60  ;;  %v3283_v60 = vld [vmem:[#allocation8 + $0x318] sm:$0xff] }
 0x255   : > { %10742 = vmatprep.mubr.f32.mxu1 %v12358_v0  ;;  %10767 = vmatpush3.msra.mxu0 %v3111_v63  ;;  %v3461_v63 = vld [vmem:[#allocation8 + $0x398] sm:$0xff]  ;;  %v3459_v0 = vld [vmem:[#allocation8 + $0x388] sm:$0xff] }
 0x256   : > { %10786 = vmatprep.mubr.f32.mxu0 %v12359_v7  ;;  %10724 = vmatprep.subr.mxu1 %v2932_v57  ;;  %v3458_v7 = vld [vmem:[#allocation8 + $0x380] sm:$0xff] }
 0x257   : > { %10768 = vmatprep.subr.mxu0 %v3110_v6  ;;  %10725 = vmatpush3.msra.mxu1 %v2932_v57  ;;  %v3281_v57 = vld [vmem:[#allocation8 + $0x308] sm:$0xff] }
 0x258   : > { %10769 = vmatpush3.msra.mxu0 %v3110_v6  ;;  %10726 = vmatprep.subr.mxu1 %v2931_v8  ;;  %v3280_v6 = vld [vmem:[#allocation8 + $0x300] sm:$0xff] }
 0x259   : > { %10770 = vmatprep.subr.mxu0 %v3109_v9  ;;  %10727 = vmatpush3.msra.mxu1 %v2931_v8  ;;  %v12376_v8 = vld [vmem:[#allocation2 + $0x20] ss:$8 sps:$4 sm:$0xff]  }
 0x25a   : > { %10771 = vmatpush3.msra.mxu0 %v3109_v9  ;;  %10728 = vmatprep.subr.mxu1 %v2930_v11  ;;  %v3651_v9 = vld [vmem:[#allocation8 + $0x478] sm:$0xff] }
 0x25b   : > { %10772 = vmatprep.subr.mxu0 %v3108_v12  ;;  %10729 = vmatpush3.msra.mxu1 %v2930_v11  ;;  %v12377_v11 = vld [vmem:[#allocation2 + $0x21] ss:$8 sps:$4 sm:$0xff]  }
 0x25c   : > { %10773 = vmatpush3.msra.mxu0 %v3108_v12  ;;  %10730 = vmatprep.subr.mxu1 %v2929_v61  ;;  %v12378_v12 = vld [vmem:[#allocation2 + $0x30] ss:$8 sps:$4 sm:$0xff]  }
 0x25d   : > { %10774 = vmatprep.subr.mxu0 %v3107_v16  ;;  %10731 = vmatpush3.msra.mxu1 %v2929_v61  ;;  %v12379_v61 = vld [vmem:[#allocation2 + $0x31] ss:$8 sps:$4 sm:$0xff]  }
 0x25e   : > { %10775 = vmatpush3.msra.mxu0 %v3107_v16  ;;  %10732 = vmatprep.subr.mxu1 %v2928_v2  ;;  %v3650_v16 = vld [vmem:[#allocation8 + $0x470] sm:$0xff] }
 0x25f   : > { %10776 = vmatprep.subr.mxu0 %v3106_v45  ;;  %10733 = vmatpush3.msra.mxu1 %v2928_v2  ;;  %v12380_v2 = vld [vmem:[#allocation2 + $0x40] ss:$8 sps:$4 sm:$0xff]  }
 0x260   : > { %10777 = vmatpush3.msra.mxu0 %v3106_v45  ;;  %10734 = vmatprep.subr.mxu1 %v2927_v18  ;;  %v12381_v45 = vld [vmem:[#allocation2 + $0x41] ss:$8 sps:$4 sm:$0xff]  }
 0x261   : > { %10778 = vmatprep.subr.mxu0 %v3105_v24  ;;  %10735 = vmatpush3.msra.mxu1 %v2927_v18  ;;  %v3649_v18 = vld [vmem:[#allocation8 + $0x468] sm:$0xff] }
 0x262   : > { %10779 = vmatpush3.msra.mxu0 %v3105_v24  ;;  %10736 = vmatprep.subr.mxu1 %v2926_v5  ;;  %v12382_v24 = vld [vmem:[#allocation2 + $0x50] ss:$8 sps:$4 sm:$0xff]  }
 0x263   : > { %10780 = vmatprep.subr.mxu0 %v3104_v19  ;;  %10737 = vmatpush3.msra.mxu1 %v2926_v5  ;;  %v12383_v5 = vld [vmem:[#allocation2 + $0x51] ss:$8 sps:$4 sm:$0xff]  }
 0x264   : > { %10781 = vmatpush3.msra.mxu0 %v3104_v19  ;;  %10738 = vmatprep.subr.mxu1 %v2925_v26  ;;  %v3648_v19 = vld [vmem:[#allocation8 + $0x460] sm:$0xff] }
 0x265   : > { %10782 = vmatprep.subr.mxu0 %v3103_v31  ;;  %10739 = vmatpush3.msra.mxu1 %v2925_v26  ;;  %v12384_v26 = vld [vmem:[#allocation2 + $0x60] ss:$8 sps:$4 sm:$0xff]  }
 0x266   : > { %10783 = vmatpush3.msra.mxu0 %v3103_v31  ;;  %10740 = vmatprep.subr.mxu1 %v2924_v28  ;;  %v12385_v31 = vld [vmem:[#allocation2 + $0x61] ss:$8 sps:$4 sm:$0xff]  }
 0x267   : > { %10784 = vmatprep.subr.mxu0 %v3102_v62  ;;  %10741 = vmatpush3.msra.mxu1 %v2924_v28  ;;  %v3647_v28 = vld [vmem:[#allocation8 + $0x458] sm:$0xff] }
 0x268   : > { %10785 = vmatpush3.msra.mxu0 %v3102_v62  ;;  %10743 = vmatmul.mubr.f32.vlgmr.msra.gmra.mxu1 %v12360_v1  ;;  %v12386_v62 = vld [vmem:[#allocation2 + $0x70] ss:$8 sps:$4 sm:$0xff]  }
 0x269   : > { %10787 = vmatmul.mubr.f32.vlgmr.msra.gmra.mxu0 %v12361_v15  ;;  %10798 = vmatprep.subr.mxu1 %v3295_v10  ;;  %v12387_v1 = vld [vmem:[#allocation2 + $0x71] ss:$8 sps:$4 sm:$0xff]   ;;  %v12388_v15 = vld [vmem:[#allocation2 + $0x80] ss:$8 sps:$4 sm:$0xff]  }
 0x26a   : > { %10842 = vmatprep.subr.mxu0 %v3473_v21  ;;  %10745 = vmatprep.mubr.f32.mxu1 %v12362_v14  ;;  %v3645_v14 = vld [vmem:[#allocation8 + $0x448] sm:$0xff] }
 0x26b   : > { %10789 = vmatprep.mubr.f32.mxu0 %v12363_v13  ;;  %10799 = vmatpush3.msra.mxu1 %v3295_v10  ;;  %v3646_v10 = vld [vmem:[#allocation8 + $0x450] sm:$0xff]  ;;  %v12390_v13 = vld [vmem:[#allocation2 + $0x12] ss:$8 sps:$4 sm:$0xff]  }
 0x26c   : > { %10843 = vmatpush3.msra.mxu0 %v3473_v21  ;;  %10800 = vmatprep.subr.mxu1 %v3294_v17  ;;  %v12389_v21 = vld [vmem:[#allocation2 + $0x81] ss:$8 sps:$4 sm:$0xff]  }
 0x26d   : > { %10844 = vmatprep.subr.mxu0 %v3472_v23  ;;  %10801 = vmatpush3.msra.mxu1 %v3294_v17  ;;  %v3644_v17 = vld [vmem:[#allocation8 + $0x440] sm:$0xff] }
 0x26e   : > { %10845 = vmatpush3.msra.mxu0 %v3472_v23  ;;  %10746 = vmatmul.mubr.f32.gmra.mxu1 %v12364_v25  ;;  %v3643_v23 = vld [vmem:[#allocation8 + $0x438] sm:$0xff]  ;;  %v3642_v25 = vld [vmem:[#allocation8 + $0x430] sm:$0xff] }
 0x26f   : > { %10790 = vmatmul.mubr.f32.gmra.mxu0 %v12365_v32  ;;  %10802 = vmatprep.subr.mxu1 %v3293_v30  ;;  %v3640_v32 = vld [vmem:[#allocation8 + $0x420] sm:$0xff] }
 0x270   : > { %10846 = vmatprep.subr.mxu0 %v3471_v20  ;;  %10748 = vmatprep.mubr.f32.mxu1 %v12366_v27  ;;  %v3638_v27 = vld [vmem:[#allocation8 + $0x410] sm:$0xff] }
 0x271   : > { %10792 = vmatprep.mubr.f32.mxu0 %v12367_v33  ;;  %10803 = vmatpush3.msra.mxu1 %v3293_v30  ;;  %v3641_v30 = vld [vmem:[#allocation8 + $0x428] sm:$0xff] }
 0x272   : > { %10847 = vmatpush3.msra.mxu0 %v3471_v20  ;;  %10804 = vmatprep.subr.mxu1 %v3292_v34  ;;  %v3639_v20 = vld [vmem:[#allocation8 + $0x418] sm:$0xff]  ;;  %v3637_v33 = vld [vmem:[#allocation8 + $0x408] sm:$0xff] }
 0x273   : > { %10848 = vmatprep.subr.mxu0 %v3470_v35  ;;  %10805 = vmatpush3.msra.mxu1 %v3292_v34  ;;  %v3636_v34 = vld [vmem:[#allocation8 + $0x400] sm:$0xff] }
 0x274   : > { %10849 = vmatpush3.msra.mxu0 %v3470_v35  ;;  %10749 = vmatmul.mubr.f32.gmra.mxu1 %v12368_v37  ;;  %v12391_v35 = vld [vmem:[#allocation2 + $0x22] ss:$8 sps:$4 sm:$0xff]   ;;  %v12392_v37 = vld [vmem:[#allocation2 + $0x32] ss:$8 sps:$4 sm:$0xff]  }
 0x275   : > { %10793 = vmatmul.mubr.f32.gmra.mxu0 %v12369_v38  ;;  %10806 = vmatprep.subr.mxu1 %v3291_v36  ;;  %v12394_v38 = vld [vmem:[#allocation2 + $0x52] ss:$8 sps:$4 sm:$0xff]  }
 0x276   : > { %10850 = vmatprep.subr.mxu0 %v3469_v39  ;;  %10751 = vmatprep.mubr.f32.mxu1 %v12370_v40  ;;  %v12396_v40 = vld [vmem:[#allocation2 + $0x72] ss:$8 sps:$4 sm:$0xff]  }
 0x277   : > { %10795 = vmatprep.mubr.f32.mxu0 %v12371_v42  ;;  %10807 = vmatpush3.msra.mxu1 %v3291_v36  ;;  %v12393_v36 = vld [vmem:[#allocation2 + $0x42] ss:$8 sps:$4 sm:$0xff]  }
 0x278   : > { %10851 = vmatpush3.msra.mxu0 %v3469_v39  ;;  %10808 = vmatprep.subr.mxu1 %v3290_v29  ;;  %v12395_v39 = vld [vmem:[#allocation2 + $0x62] ss:$8 sps:$4 sm:$0xff]  }
 0x279   : > { %10852 = vmatprep.subr.mxu0 %v3468_v41  ;;  %10809 = vmatpush3.msra.mxu1 %v3290_v29  ;;  %v12397_v42 = vld [vmem:[#allocation2 + $0x82] ss:$8 sps:$4 sm:$0xff]  }
 0x27a   : > { %10853 = vmatpush3.msra.mxu0 %v3468_v41  ;;  %10752 = vmatmul.mubr.f32.gmra.mxu1 %v12372_v44  ;;  %v3940_v29 = vld [vmem:[#allocation9 + $0xf8] sm:$0xff]  ;;  %v3939_v44 = vld [vmem:[#allocation9 + $0xf0] sm:$0xff] }
 0x27b   : > { %10796 = vmatmul.mubr.f32.gmra.mxu0 %v12373_v47  ;;  %10810 = vmatprep.subr.mxu1 %v3289_v46  ;;  %v3907_v41 = vld [vmem:[#allocation9 + $0x78] sm:$0xff]  ;;  %v3938_v47 = vld [vmem:[#allocation9 + $0xe8] sm:$0xff] }
 0x27c   : > { %10854 = vmatprep.subr.mxu0 %v3467_v43  ;;  %10811 = vmatpush3.msra.mxu1 %v3289_v46  ;;  %v3906_v46 = vld [vmem:[#allocation9 + $0x70] sm:$0xff] }
 0x27d   : > { %10830 = vmatprep.mubr.f32.mxu1 %v12374_v48  ;;  %10855 = vmatpush3.msra.mxu0 %v3467_v43  ;;  %v3905_v43 = vld [vmem:[#allocation9 + $0x68] sm:$0xff]  ;;  %v3937_v48 = vld [vmem:[#allocation9 + $0xe0] sm:$0xff] }
 0x27e   : > { %10874 = vmatprep.mubr.f32.mxu0 %v12375_v50  ;;  %10812 = vmatprep.subr.mxu1 %v3288_v49  ;;  %v3936_v50 = vld [vmem:[#allocation9 + $0xd8] sm:$0xff] }
 0x27f   : > { %10856 = vmatprep.subr.mxu0 %v3466_v51  ;;  %10813 = vmatpush3.msra.mxu1 %v3288_v49  ;;  %v3904_v49 = vld [vmem:[#allocation9 + $0x60] sm:$0xff] }
 0x280   : > { %10857 = vmatpush3.msra.mxu0 %v3466_v51  ;;  %10814 = vmatprep.subr.mxu1 %v3287_v53  ;;  %v3903_v51 = vld [vmem:[#allocation9 + $0x58] sm:$0xff] }
 0x281   : > { %10858 = vmatprep.subr.mxu0 %v3465_v54  ;;  %10815 = vmatpush3.msra.mxu1 %v3287_v53  ;;  %v3935_v53 = vld [vmem:[#allocation9 + $0xd0] sm:$0xff] }
 0x282   : > { %10859 = vmatpush3.msra.mxu0 %v3465_v54  ;;  %10816 = vmatprep.subr.mxu1 %v3286_v52  ;;  %v3902_v54 = vld [vmem:[#allocation9 + $0x50] sm:$0xff] }
 0x283   : > { %10860 = vmatprep.subr.mxu0 %v3464_v55  ;;  %10817 = vmatpush3.msra.mxu1 %v3286_v52 }
 0x284   : > { %10861 = vmatpush3.msra.mxu0 %v3464_v55  ;;  %10818 = vmatprep.subr.mxu1 %v3285_v56  ;;  %v3934_v55 = vld [vmem:[#allocation9 + $0xc8] sm:$0xff] }
 0x285   : > { %10862 = vmatprep.subr.mxu0 %v3463_v22  ;;  %10819 = vmatpush3.msra.mxu1 %v3285_v56  ;;  %v3901_v56 = vld [vmem:[#allocation9 + $0x48] sm:$0xff] }
 0x286   : > { %10863 = vmatpush3.msra.mxu0 %v3463_v22  ;;  %10820 = vmatprep.subr.mxu1 %v3284_v58 }
 0x287   : > { %10864 = vmatprep.subr.mxu0 %v3462_v59  ;;  %10821 = vmatpush3.msra.mxu1 %v3284_v58  ;;  %v3933_v58 = vld [vmem:[#allocation9 + $0xc0] sm:$0xff] }
 0x288   : > { %10865 = vmatpush3.msra.mxu0 %v3462_v59  ;;  %10822 = vmatprep.subr.mxu1 %v3283_v60  ;;  %v3900_v59 = vld [vmem:[#allocation9 + $0x40] sm:$0xff] }
 0x289   : > { %10866 = vmatprep.subr.mxu0 %v3461_v63  ;;  %10823 = vmatpush3.msra.mxu1 %v3283_v60  ;;  %v3932_v60 = vld [vmem:[#allocation9 + $0xb8] sm:$0xff] }
 0x28a   : > { %10867 = vmatpush3.msra.mxu0 %v3461_v63  ;;  %10824 = vmatprep.subr.mxu1 %v3282_v3  ;;  %v3899_v63 = vld [vmem:[#allocation9 + $0x38] sm:$0xff] }
 0x28b   : > { %10868 = vmatprep.subr.mxu0 %v3460_v4  ;;  %10825 = vmatpush3.msra.mxu1 %v3282_v3 }
 0x28c   : > { %10869 = vmatpush3.msra.mxu0 %v3460_v4  ;;  %10826 = vmatprep.subr.mxu1 %v3281_v57  ;;  %v3931_v4 = vld [vmem:[#allocation9 + $0xb0] sm:$0xff] }
 0x28d   : > { %10870 = vmatprep.subr.mxu0 %v3459_v0  ;;  %10827 = vmatpush3.msra.mxu1 %v3281_v57  ;;  %v3898_v57 = vld [vmem:[#allocation9 + $0x30] sm:$0xff] }
 0x28e   : > { %10871 = vmatpush3.msra.mxu0 %v3459_v0  ;;  %10828 = vmatprep.subr.mxu1 %v3280_v6  ;;  %v3930_v0 = vld [vmem:[#allocation9 + $0xa8] sm:$0xff] }
 0x28f   : > { %10872 = vmatprep.subr.mxu0 %v3458_v7  ;;  %10829 = vmatpush3.msra.mxu1 %v3280_v6  ;;  %v3897_v6 = vld [vmem:[#allocation9 + $0x28] sm:$0xff] }
 0x290   : > { %10873 = vmatpush3.msra.mxu0 %v3458_v7  ;;  %10831 = vmatmul.mubr.f32.vlgmr.msra.gmra.mxu1 %v12376_v8  ;;  %v3929_v8 = vld [vmem:[#allocation9 + $0xa0] sm:$0xff] }
 0x291   : > { %10875 = vmatmul.mubr.f32.vlgmr.msra.gmra.mxu0 %v12377_v11  ;;  %10886 = vmatprep.subr.mxu1 %v3651_v9 }
 0x292   : > { %10833 = vmatprep.mubr.f32.mxu1 %v12378_v12  ;;  %10877 = vmatprep.mubr.f32.mxu0 %v12379_v61  ;;  %v3928_v12 = vld [vmem:[#allocation9 + $0x98] sm:$0xff] }
 0x293   : > { %10887 = vmatpush3.msra.mxu1 %v3651_v9  ;;  %10930 = vmatprep.subr.mxu0 %v3940_v29  ;;  %v3896_v9 = vld [vmem:[#allocation9 + $0x20] sm:$0xff]  ;;  %v3895_v61 = vld [vmem:[#allocation9 + $0x18] sm:$0xff] }
 0x294   : > { %10888 = vmatprep.subr.mxu1 %v3650_v16  ;;  %10834 = vmatmul.mubr.f32.gmra.mxu1 %v12380_v2  ;;  %v3927_v2 = vld [vmem:[#allocation9 + $0x90] sm:$0xff] }
 0x295   : > { %10889 = vmatpush3.msra.mxu1 %v3650_v16  ;;  %10878 = vmatmul.mubr.f32.gmra.mxu0 %v12381_v45  ;;  %v3894_v45 = vld [vmem:[#allocation9 + $0x10] sm:$0xff] }
 0x296   : > { %10890 = vmatprep.subr.mxu1 %v3649_v18  ;;  %10836 = vmatprep.mubr.f32.mxu1 %v12382_v24  ;;  %v3893_v24 = vld [vmem:[#allocation9 + $0x8] sm:$0xff] }
 0x297   : > { %10880 = vmatprep.mubr.f32.mxu0 %v12383_v5  ;;  %10891 = vmatpush3.msra.mxu1 %v3649_v18  ;;  %v3926_v18 = vld [vmem:[#allocation9 + $0x88] sm:$0xff] }
 0x298   : > { %10892 = vmatprep.subr.mxu1 %v3648_v19  ;;  %10837 = vmatmul.mubr.f32.gmra.mxu1 %v12384_v26  ;;  %v3892_v26 = vld [vmem:[#allocation9] sm:$0xff] }
 0x299   : > { %10893 = vmatpush3.msra.mxu1 %v3648_v19  ;;  %10881 = vmatmul.mubr.f32.gmra.mxu0 %v12385_v31  ;;  %v3925_v19 = vld [vmem:[#allocation9 + $0x80] sm:$0xff] }
 0x29a   : > { %10894 = vmatprep.subr.mxu1 %v3647_v28  ;;  %10839 = vmatprep.mubr.f32.mxu1 %v12386_v62  ;;  %v13222_v62 = vld [vmem:[#allocation9 + $0x1f8] sm:$0xff] }
 0x29b   : > { %10883 = vmatprep.mubr.f32.mxu0 %v12387_v1  ;;  %10895 = vmatpush3.msra.mxu1 %v3647_v28  ;;  %v13220_v28 = vld [vmem:[#allocation9 + $0x178] sm:$0xff]  ;;  %13569 = vst [vmem:[#allocation23_spill] sm:$0xff] %v13222_v62 }
 0x29c   : > { %10896 = vmatprep.subr.mxu1 %v3646_v10  ;;  %10840 = vmatmul.mubr.f32.gmra.mxu1 %v12388_v15  ;;  %13568 = vst [vmem:[#allocation22_spill] sm:$0xff] %v13220_v28 }
 0x29d   : > { %10897 = vmatpush3.msra.mxu1 %v3646_v10  ;;  %10884 = vmatmul.mubr.f32.gmra.mxu0 %v12389_v21 }
 0x29e   : > { %10898 = vmatprep.subr.mxu1 %v3645_v14  ;;  %10918 = vmatprep.mubr.f32.mxu1 %v12390_v13 }
 0x29f   : > { %10899 = vmatpush3.msra.mxu1 %v3645_v14  ;;  %10931 = vmatpush3.msra.mxu0 %v3940_v29 }
 0x2a0   : > { %10900 = vmatprep.subr.mxu1 %v3644_v17  ;;  %10932 = vmatprep.subr.mxu0 %v3939_v44 }
 0x2a1   : > { %10901 = vmatpush3.msra.mxu1 %v3644_v17  ;;  %10933 = vmatpush3.msra.mxu0 %v3939_v44 }
 0x2a2   : > { %10902 = vmatprep.subr.mxu1 %v3643_v23  ;;  %10934 = vmatprep.subr.mxu0 %v3938_v47 }
 0x2a3   : > { %10903 = vmatpush3.msra.mxu1 %v3643_v23  ;;  %10935 = vmatpush3.msra.mxu0 %v3938_v47 }
 0x2a4   : > { %10904 = vmatprep.subr.mxu1 %v3642_v25  ;;  %10936 = vmatprep.subr.mxu0 %v3937_v48 }
 0x2a5   : > { %10905 = vmatpush3.msra.mxu1 %v3642_v25  ;;  %10937 = vmatpush3.msra.mxu0 %v3937_v48 }
 0x2a6   : > { %10906 = vmatprep.subr.mxu1 %v3641_v30  ;;  %10938 = vmatprep.subr.mxu0 %v3936_v50 }
 0x2a7   : > { %10907 = vmatpush3.msra.mxu1 %v3641_v30  ;;  %10939 = vmatpush3.msra.mxu0 %v3936_v50 }
 0x2a8   : > { %10908 = vmatprep.subr.mxu1 %v3640_v32  ;;  %10940 = vmatprep.subr.mxu0 %v3935_v53 }
 0x2a9   : > { %10909 = vmatpush3.msra.mxu1 %v3640_v32  ;;  %10941 = vmatpush3.msra.mxu0 %v3935_v53 }
 0x2aa   : > { %10910 = vmatprep.subr.mxu1 %v3639_v20  ;;  %10942 = vmatprep.subr.mxu0 %v3934_v55 }
 0x2ab   : > { %10911 = vmatpush3.msra.mxu1 %v3639_v20  ;;  %10943 = vmatpush3.msra.mxu0 %v3934_v55 }
 0x2ac   : > { %10912 = vmatprep.subr.mxu1 %v3638_v27  ;;  %10944 = vmatprep.subr.mxu0 %v3933_v58 }
 0x2ad   : > { %10913 = vmatpush3.msra.mxu1 %v3638_v27  ;;  %10945 = vmatpush3.msra.mxu0 %v3933_v58 }
 0x2ae   : > { %10914 = vmatprep.subr.mxu1 %v3637_v33  ;;  %10946 = vmatprep.subr.mxu0 %v3932_v60 }
 0x2af   : > { %10915 = vmatpush3.msra.mxu1 %v3637_v33  ;;  %10947 = vmatpush3.msra.mxu0 %v3932_v60 }
 0x2b0   : > { %10916 = vmatprep.subr.mxu1 %v3636_v34  ;;  %10948 = vmatprep.subr.mxu0 %v3931_v4 }
 0x2b1   : > { %10917 = vmatpush3.msra.mxu1 %v3636_v34  ;;  %10949 = vmatpush3.msra.mxu0 %v3931_v4 }
 0x2b2   : > { %10919 = vmatmul.mubr.f32.vlgmr.msra.gmra.mxu1 %v12391_v35  ;;  %10974 = vmatprep.subr.mxu1 %v3907_v41 }
 0x2b3   : > { %10921 = vmatprep.mubr.f32.mxu1 %v12392_v37  ;;  %10975 = vmatpush3.msra.mxu1 %v3907_v41 }
 0x2b4   : > { %10976 = vmatprep.subr.mxu1 %v3906_v46  ;;  %10950 = vmatprep.subr.mxu0 %v3930_v0 }
 0x2b5   : > { %10977 = vmatpush3.msra.mxu1 %v3906_v46  ;;  %10951 = vmatpush3.msra.mxu0 %v3930_v0 }
 0x2b6   : > { %10922 = vmatmul.mubr.f32.gmra.mxu1 %v12393_v36  ;;  %10978 = vmatprep.subr.mxu1 %v3905_v43 }
 0x2b7   : > { %10924 = vmatprep.mubr.f32.mxu1 %v12394_v38  ;;  %10979 = vmatpush3.msra.mxu1 %v3905_v43 }
 0x2b8   : > { %10980 = vmatprep.subr.mxu1 %v3904_v49  ;;  %10952 = vmatprep.subr.mxu0 %v3929_v8 }
 0x2b9   : > { %10981 = vmatpush3.msra.mxu1 %v3904_v49  ;;  %10953 = vmatpush3.msra.mxu0 %v3929_v8 }
 0x2ba   : > { %10925 = vmatmul.mubr.f32.gmra.mxu1 %v12395_v39  ;;  %10982 = vmatprep.subr.mxu1 %v3903_v51 }
 0x2bb   : > { %10927 = vmatprep.mubr.f32.mxu1 %v12396_v40  ;;  %10983 = vmatpush3.msra.mxu1 %v3903_v51 }
 0x2bc   : > { %10984 = vmatprep.subr.mxu1 %v3902_v54  ;;  %10954 = vmatprep.subr.mxu0 %v3928_v12 }
 0x2bd   : > { %10985 = vmatpush3.msra.mxu1 %v3902_v54  ;;  %10955 = vmatpush3.msra.mxu0 %v3928_v12 }
 0x2be   : > { %10928 = vmatmul.mubr.f32.gmra.mxu1 %v12397_v42  ;;  %10986 = vmatprep.subr.mxu1 %v3901_v56 }
 0x2bf   : > { %10987 = vmatpush3.msra.mxu1 %v3901_v56  ;;  %10956 = vmatprep.subr.mxu0 %v3927_v2 }
 0x2c0   : > { %10988 = vmatprep.subr.mxu1 %v3900_v59  ;;  %10957 = vmatpush3.msra.mxu0 %v3927_v2 }
 0x2c1   : > { %10989 = vmatpush3.msra.mxu1 %v3900_v59  ;;  %10958 = vmatprep.subr.mxu0 %v3926_v18 }
 0x2c2   : > { %10990 = vmatprep.subr.mxu1 %v3899_v63  ;;  %10959 = vmatpush3.msra.mxu0 %v3926_v18 }
 0x2c3   : > { %10991 = vmatpush3.msra.mxu1 %v3899_v63  ;;  %10960 = vmatprep.subr.mxu0 %v3925_v19 }
 0x2c4   : > { %10992 = vmatprep.subr.mxu1 %v3898_v57  ;;  %10961 = vmatpush3.msra.mxu0 %v3925_v19 }
 0x2c5   : > { %10993 = vmatpush3.msra.mxu1 %v3898_v57  ;;  %11018 = vmatprep.subr.mxu0 %v13220_v28 }
 0x2c6   : > { %10994 = vmatprep.subr.mxu1 %v3897_v6 }
 0x2c7   : > { %10995 = vmatpush3.msra.mxu1 %v3897_v6 }
 0x2c8   : > { %10996 = vmatprep.subr.mxu1 %v3896_v9 }
 0x2c9   : > { %10997 = vmatpush3.msra.mxu1 %v3896_v9 }
 0x2ca   : > { %10998 = vmatprep.subr.mxu1 %v3895_v61 }
 0x2cb   : > { %10999 = vmatpush3.msra.mxu1 %v3895_v61 }
 0x2cc   : > { %11000 = vmatprep.subr.mxu1 %v3894_v45 }
 0x2cd   : > { %11001 = vmatpush3.msra.mxu1 %v3894_v45 }
 0x2ce   : > { %11002 = vmatprep.subr.mxu1 %v3893_v24 }
 0x2cf   : > { %11003 = vmatpush3.msra.mxu1 %v3893_v24 }
 0x2d0   : > { %11004 = vmatprep.subr.mxu1 %v3892_v26 }
 0x2d1   : > { %11005 = vmatpush3.msra.mxu1 %v3892_v26 }
 0x2d2   : > { %11062 = vmatprep.subr.mxu1 %v13222_v62 }
 0x2d9   : > { %v13206_v52 = vpop.f32.mrf.mxu1 }
 0x2da   : > { %v13214_v11 = vpop.f32.mrf.mxu0 }
 0x2db   : > { %v13208_v22 = vpop.f32.mrf.mxu1  ;;  %v2518_v0 = vadd.f32 %v13214_v11, %v13206_v52 }
 0x2dc   : > { %v2512_v5 = vpop.f32.mrf.mxu0 }
 0x2dd   : > { %v2513_v8 = vadd.f32 %v2512_v5, %v13208_v22 }
 0x2df   : > { %v13210_v3 = vpop.f32.mrf.mxu1 }
 0x2e0   : > { %v10615_v1 = vpop.f32.mrf.mxu0 }
 0x2e1   : > { %v13212_v7 = vpop.f32.mrf.mxu1  ;;  %v2528_v61 = vadd.f32 %v10615_v1, %v13210_v3 }
 0x2e2   : > { %v2522_v15 = vpop.f32.mrf.mxu0 }
 0x2e3   : > { %v2523_v26 = vadd.f32 %v2522_v15, %v13212_v7 }
 0x2e5   : > { %v13216_v16 = vpop.f32.mrf.mxu1 }
 0x2e6   : > { %v10618_v13 = vpop.f32.mrf.mxu0 }
 0x2e7   : > { %v13218_v31 = vpop.f32.mrf.mxu1  ;;  %v2538_v62 = vadd.f32 %v10618_v13, %v13216_v16 }
 0x2e8   : > { %v2532_v23 = vpop.f32.mrf.mxu0 }
 0x2e9   : > { %v2533_v11 = vadd.f32 %v2532_v23, %v13218_v31 }
 0x2eb   : > { %v13224_v10 = vpop.f32.mrf.mxu1 }
 0x2ec   : > { %v10621_v30 = vpop.f32.mrf.mxu0 }
 0x2ed   : > { %v13228_v21 = vpop.f32.mrf.mxu1  ;;  %v2548_v3 = vadd.f32 %v10621_v30, %v13224_v10 }
 0x2ee   : > { %v13230_v20 = vpop.f32.mrf.mxu0 }
 0x2ef   : > { %v2543_v31 = vadd.f32 %v13230_v20, %v13228_v21  ;;  %v13256_v21 = vld [vmem:[%s13509_s4] ss:$0 sm:$0xff] }
 0x300   : > { %v10656_v14 = vpop.f32.mrf.mxu1 }
 0x301   : > { %v10700_v27 = vpop.f32.mrf.mxu0  ;;  %v2722_v9 = vadd.f32 %v10656_v14, %v2518_v0 }
 0x302   : > { %v2682_v17 = vpop.f32.mrf.mxu1 }
 0x303   : > { %v2860_v34 = vpop.f32.mrf.mxu0  ;;  %v2721_v2 = vadd.f32 %v2682_v17, %v2513_v8  ;;  %v2900_v24 = vadd.f32 %v10700_v27, %v2722_v9 }
 0x305   : > { %v2899_v28 = vadd.f32 %v2860_v34, %v2721_v2 }
 0x306   : > { %v10659_v25 = vpop.f32.mrf.mxu1 }
 0x307   : > { %v10703_v37 = vpop.f32.mrf.mxu0  ;;  %v2724_v19 = vadd.f32 %v10659_v25, %v2528_v61 }
 0x308   : > { %v2692_v32 = vpop.f32.mrf.mxu1 }
 0x309   : > { %v2870_v38 = vpop.f32.mrf.mxu0  ;;  %v2723_v22 = vadd.f32 %v2692_v32, %v2523_v26  ;;  %v2902_v0 = vadd.f32 %v10703_v37, %v2724_v19 }
 0x30b   : > { %v2901_v8 = vadd.f32 %v2870_v38, %v2723_v22 }
 0x30c   : > { %v10662_v33 = vpop.f32.mrf.mxu1 }
 0x30d   : > { %v10706_v42 = vpop.f32.mrf.mxu0  ;;  %v2726_v5 = vadd.f32 %v10662_v33, %v2538_v62 }
 0x30e   : > { %v2702_v35 = vpop.f32.mrf.mxu1 }
 0x30f   : > { %v2880_v41 = vpop.f32.mrf.mxu0  ;;  %v2725_v1 = vadd.f32 %v2702_v35, %v2533_v11  ;;  %v2904_v7 = vadd.f32 %v10706_v42, %v2726_v5 }
 0x311   : > { %v2903_v23 = vadd.f32 %v2880_v41, %v2725_v1 }
 0x312   : > { %v10665_v36 = vpop.f32.mrf.mxu1 }
 0x313   : > { %v10709_v46 = vpop.f32.mrf.mxu0  ;;  %v2728_v15 = vadd.f32 %v10665_v36, %v2548_v3 }
 0x314   : > { %v13232_v39 = vpop.f32.mrf.mxu1 }
 0x315   : > { %v13234_v43 = vpop.f32.mrf.mxu0  ;;  %v2906_v10 = vadd.f32 %v10709_v46, %v2728_v15  ;;  %v2727_v30 = vadd.f32 %v13232_v39, %v2543_v31 }
 0x317   : > { %v2905_v46 = vadd.f32 %v13234_v43, %v2727_v30 }
 0x328   : > { %v10744_v40 = vpop.f32.mrf.mxu1 }
 0x329   : > { %v10788_v48 = vpop.f32.mrf.mxu0 }
 0x32a   : > { %v3038_v29 = vpop.f32.mrf.mxu1 }
 0x32b   : > { %v3216_v50 = vpop.f32.mrf.mxu0 }
 0x32e   : > { %v10747_v44 = vpop.f32.mrf.mxu1 }
 0x32f   : > { %v10791_v53 = vpop.f32.mrf.mxu0  ;;  %v3080_v27 = vadd.f32 %v10747_v44, %v2902_v0 }
 0x330   : > { %v3048_v47 = vpop.f32.mrf.mxu1 }
 0x331   : > { %v3226_v55 = vpop.f32.mrf.mxu0  ;;  %v3079_v62 = vadd.f32 %v3048_v47, %v2901_v8  ;;  %v3258_v33 = vadd.f32 %v10791_v53, %v3080_v27 }
 0x333   : > { %v3257_v36 = vadd.f32 %v3226_v55, %v3079_v62 }
 0x334   : > { %v10750_v49 = vpop.f32.mrf.mxu1 }
 0x335   : > { %v10794_v59 = vpop.f32.mrf.mxu0  ;;  %v3082_v32 = vadd.f32 %v10750_v49, %v2904_v7 }
 0x336   : > { %v3058_v51 = vpop.f32.mrf.mxu1 }
 0x337   : > { %v3236_v63 = vpop.f32.mrf.mxu0  ;;  %v3081_v35 = vadd.f32 %v3058_v51, %v2903_v23 }
 0x339   : > { %v3259_v49 = vadd.f32 %v3236_v63, %v3081_v35 }
 0x33a   : > { %v10753_v54 = vpop.f32.mrf.mxu1 }
 0x33b   : > { %v13238_v57 = vpop.f32.mrf.mxu0  ;;  %v3084_v44 = vadd.f32 %v10753_v54, %v2906_v10 }
 0x33c   : > { %v13236_v56 = vpop.f32.mrf.mxu1 }
 0x33d   : > { %13570 = vst [vmem:[#allocation24_spill] sm:$0xff] %v13236_v56  ;;  %v13243_v12 = vpop.f32.mrf.mxu0  ;;  %v3078_v56 = vadd.f32 %v10744_v40, %v2900_v24  ;;  %v3262_v54 = vadd.f32 %v13238_v57, %v3084_v44 }
 0x33e   : > { %13571 = vst [vmem:[#allocation25_spill] sm:$0xff] %v13243_v12  ;;  %v3077_v12 = vadd.f32 %v3038_v29, %v2899_v28  ;;  %v3260_v29 = vadd.f32 %v10794_v59, %v3082_v32 }
 0x33f   : > { %v3256_v17 = vadd.f32 %v10788_v48, %v3078_v56 }
 0x340   : > { %v3255_v13 = vadd.f32 %v3216_v50, %v3077_v12 }
 0x345   : > { %v13573_v57 = vld [vmem:[#allocation25_spill] sm:$0xff] }
 0x350   : > { %v10832_v58 = vpop.f32.mrf.mxu1 }
 0x351   : > { %v10876_v45 = vpop.f32.mrf.mxu0  ;;  %v3434_v34 = vadd.f32 %v10832_v58, %v3256_v17  ;;  %v13572_v58 = vld [vmem:[#allocation24_spill] sm:$0xff] }
 0x352   : > { %v3394_v60 = vpop.f32.mrf.mxu1  ;;  %v3083_v59 = vadd.f32 %v13572_v58, %v2905_v46 }
 0x353   : > { %v3572_v52 = vpop.f32.mrf.mxu0  ;;  %v3433_v28 = vadd.f32 %v3394_v60, %v3255_v13  ;;  %v3612_v38 = vadd.f32 %v10876_v45, %v3434_v34 }
 0x354   : > { %v10835_v4 = vpop.f32.mrf.mxu1  ;;  %v3261_v26 = vadd.f32 %v13573_v57, %v3083_v59  ;;  %v13574_v59 = vld [vmem:[#allocation22_spill] sm:$0xff] }
 0x355   : > { %v10879_v25 = vpop.f32.mrf.mxu0  ;;  %v3436_v42 = vadd.f32 %v10835_v4, %v3258_v33  ;;  %v3611_v20 = vadd.f32 %v3572_v52, %v3433_v28 }
 0x356   : > { %v3404_v6 = vpop.f32.mrf.mxu1 }
 0x357   : > { %v3582_v37 = vpop.f32.mrf.mxu0  ;;  %v3435_v39 = vadd.f32 %v3404_v6, %v3257_v36  ;;  %v3614_v53 = vadd.f32 %v10879_v25, %v3436_v42 }
 0x358   : > { %v10838_v18 = vpop.f32.mrf.mxu1 }
 0x359   : > { %v10882_v41 = vpop.f32.mrf.mxu0  ;;  %v3438_v50 = vadd.f32 %v10838_v18, %v3260_v29  ;;  %v3613_v63 = vadd.f32 %v3582_v37, %v3435_v39 }
 0x35a   : > { %v3414_v14 = vpop.f32.mrf.mxu1 }
 0x35b   : > { %v3437_v60 = vadd.f32 %v3414_v14, %v3259_v49  ;;  %v3592_v9 = vpop.f32.mrf.mxu0  ;;  %v3616_v6 = vadd.f32 %v10882_v41, %v3438_v50  ;;  %v4246_v49 = vld [vmem:[#allocation9 + $0x170] sm:$0xff] }
 0x35c   : > { %v10841_v16 = vpop.f32.mrf.mxu1 }
 0x35d   : > { %v3440_v2 = vadd.f32 %v10841_v16, %v3262_v54  ;;  %v3615_v52 = vadd.f32 %v3592_v9, %v3437_v60  ;;  %v10885_v14 = vpop.f32.mrf.mxu0  ;;  %v4245_v54 = vld [vmem:[#allocation9 + $0x168] sm:$0xff]  ;;  %v13575_v9 = vld [vmem:[#allocation23_spill] sm:$0xff] }
 0x35e   : > { %v3424_v40 = vpop.f32.mrf.mxu1  ;;  %v4423_v60 = vld [vmem:[#allocation9 + $0x1e8] sm:$0xff] }
 0x35f   : > { %v3439_v17 = vadd.f32 %v3424_v40, %v3261_v26  ;;  %v3618_v7 = vadd.f32 %v10885_v14, %v3440_v2  ;;  %v3602_v62 = vpop.f32.mrf.mxu0  ;;  %v4242_v26 = vld [vmem:[#allocation9 + $0x150] sm:$0xff]  ;;  %v4419_v14 = vld [vmem:[#allocation9 + $0x1c8] sm:$0xff] }
 0x361   : > { %v3617_v37 = vadd.f32 %v3602_v62, %v3439_v17  ;;  %v4418_v17 = vld [vmem:[#allocation9 + $0x1c0] sm:$0xff]  ;;  %v4235_v62 = vld [vmem:[#allocation9 + $0x118] sm:$0xff] }
 0x372   : > { %v10920_v48 = vpop.f32.mrf.mxu1 }
 0x373   : > { %v3790_v47 = vadd.f32 %v10920_v48, %v3612_v38 }
 0x374   : > { %v3750_v51 = vpop.f32.mrf.mxu1 }
 0x375   : > { %v3805_v55 = vadd.f32 %v13256_v21, %v3790_v47  ;;  %v3789_v56 = vadd.f32 %v3750_v51, %v3611_v20 }
 0x376   : > { %v10923_v4 = vpop.f32.mrf.mxu1 }
 0x377   : > { %vm3813_vm8 = vcmp.gt.f32.partialorder %v3805_v55, 0.0  ;;  %v3821_v12 = vmul.f32 0.01, %v3805_v55  ;;  %v3804_v61 = vadd.f32 %v13256_v21, %v3789_v56  ;;  %v3792_v43 = vadd.f32 %v10923_v4, %v3614_v53 }
 0x378   : > { %v3760_v45 = vpop.f32.mrf.mxu1 }
 0x379   : > { %v3829_v18 = vsel %vm3813_vm8, %v3805_v55, %v3821_v12  ;;  %vm3812_vm9 = vcmp.gt.f32.partialorder %v3804_v61, 0.0  ;;  %v3820_v24 = vmul.f32 0.01, %v3804_v61  ;;  %v3807_v19 = vadd.f32 %v13256_v21, %v3792_v43  ;;  %v4424_v55 = vld [vmem:[#allocation9 + $0x1f0] sm:$0xff]  ;;  %v4244_v43 = vld [vmem:[#allocation9 + $0x160] sm:$0xff] }
 0x37a   : > { %v3845_v11 = vcombine.high %v3829_v18, %v3829_v18  ;;  %3862 = vst [vmem:[#allocation2 + $0x19] sm:$0xf] %v3829_v18  ;;  %v3791_v22 = vadd.f32 %v3760_v45, %v3613_v63  ;;  %v10926_v5 = vpop.f32.mrf.mxu1  ;;  %v4243_v18 = vld [vmem:[#allocation9 + $0x158] sm:$0xff] }
 0x37b   : > { %v3828_v0 = vsel %vm3812_vm9, %v3804_v61, %v3820_v24  ;;  %vm3815_vm10 = vcmp.gt.f32.partialorder %v3807_v19, 0.0  ;;  %v3823_v3 = vmul.f32 0.01, %v3807_v19  ;;  %v3794_v1 = vadd.f32 %v10926_v5, %v3616_v6  ;;  %v4422_v6 = vld [vmem:[#allocation9 + $0x1e0] sm:$0xff]  ;;  %v4421_v24 = vld [vmem:[#allocation9 + $0x1d8] sm:$0xff]  ;;  %v4241_v5 = vld [vmem:[#allocation9 + $0x148] sm:$0xff] }
 0x37c   : > { %3863 = vst [vmem:[#allocation2 + $0x21] sm:$0xf] %v3845_v11  ;;  %v3844_v27 = vcombine.high %v3828_v0, %v3828_v0  ;;  %3860 = vst [vmem:[#allocation2 + $0x9] sm:$0xf] %v3828_v0  ;;  %v3806_v25 = vadd.f32 %v13256_v21, %v3791_v22  ;;  %v3770_v8 = vpop.f32.mrf.mxu1  ;;  %v4420_v11 = vld [vmem:[#allocation9 + $0x1d0] sm:$0xff] }
 0x37d   : > { %v3831_v15 = vsel %vm3815_vm10, %v3807_v19, %v3823_v3  ;;  %v3809_v16 = vadd.f32 %v13256_v21, %v3794_v1  ;;  %v3793_v13 = vadd.f32 %v3770_v8, %v3615_v52  ;;  %v4240_v1 = vld [vmem:[#allocation9 + $0x140] sm:$0xff]  ;;  %v4417_v8 = vld [vmem:[#allocation9 + $0x1b8] sm:$0xff] }
 0x37e   : > { %3861 = vst [vmem:[#allocation2 + $0x11] sm:$0xf] %v3844_v27  ;;  %v3847_v34 = vcombine.high %v3831_v15, %v3831_v15  ;;  %3866 = vst [vmem:[#allocation2 + $0x39] sm:$0xf] %v3831_v15  ;;  %vm3814_vm11 = vcmp.gt.f32.partialorder %v3806_v25, 0.0  ;;  %v10929_v23 = vpop.f32.mrf.mxu1  ;;  %v4239_v27 = vld [vmem:[#allocation9 + $0x138] sm:$0xff] }
 0x37f   : > { %v3822_v31 = vmul.f32 0.01, %v3806_v25  ;;  %vm3817_vm12 = vcmp.gt.f32.partialorder %v3809_v16, 0.0  ;;  %v3825_v32 = vmul.f32 0.01, %v3809_v16  ;;  %v3808_v33 = vadd.f32 %v13256_v21, %v3793_v13  ;;  %v4238_v15 = vld [vmem:[#allocation9 + $0x130] sm:$0xff] }
 0x380   : > { %v3796_v28 = vadd.f32 %v10929_v23, %v3618_v7  ;;  %3867 = vst [vmem:[#allocation2 + $0x41] sm:$0xf] %v3847_v34  ;;  %v3780_v30 = vpop.f32.mrf.mxu1  ;;  %v4237_v13 = vld [vmem:[#allocation9 + $0x128] sm:$0xff]  ;;  %v4414_v23 = vld [vmem:[#allocation9 + $0x1a0] sm:$0xff] }
 0x381   : > { %v3830_v10 = vsel %vm3814_vm11, %v3806_v25, %v3822_v31  ;;  %v3833_v40 = vsel %vm3817_vm12, %v3809_v16, %v3825_v32  ;;  %vm3816_vm13 = vcmp.gt.f32.partialorder %v3808_v33, 0.0  ;;  %v3824_v38 = vmul.f32 0.01, %v3808_v33  ;;  %v4416_v16 = vld [vmem:[#allocation9 + $0x1b0] sm:$0xff]  ;;  %v4415_v34 = vld [vmem:[#allocation9 + $0x1a8] sm:$0xff]  ;;  %v4236_v31 = vld [vmem:[#allocation9 + $0x120] sm:$0xff] }
 0x382   : > { %v3846_v35 = vcombine.high %v3830_v10, %v3830_v10  ;;  %3864 = vst [vmem:[#allocation2 + $0x29] sm:$0xf] %v3830_v10  ;;  %v3849_v42 = vcombine.high %v3833_v40, %v3833_v40  ;;  %3870 = vst [vmem:[#allocation2 + $0x59] sm:$0xf] %v3833_v40  ;;  %v3811_v36 = vadd.f32 %v13256_v21, %v3796_v28  ;;  %v4413_v32 = vld [vmem:[#allocation9 + $0x198] sm:$0xff]  ;;  %v4412_v28 = vld [vmem:[#allocation9 + $0x190] sm:$0xff] }
 0x383   : > { %v3795_v29 = vadd.f32 %v3780_v30, %v3617_v37  ;;  %v3832_v44 = vsel %vm3816_vm13, %v3808_v33, %v3824_v38  ;;  %v12398_v48 = vld [vmem:[#allocation2 + $0x1] ss:$8 sps:$4 sm:$0xff]   ;;  %v4233_v37 = vld [vmem:[#allocation9 + $0x108] sm:$0xff]  ;;  %v4232_v30 = vld [vmem:[#allocation9 + $0x100] sm:$0xff] }
 0x384   : > { %3865 = vst [vmem:[#allocation2 + $0x31] sm:$0xf] %v3846_v35  ;;  %3871 = vst [vmem:[#allocation2 + $0x61] sm:$0xf] %v3849_v42  ;;  %v3848_v20 = vcombine.high %v3832_v44, %v3832_v44  ;;  %vm3819_vm14 = vcmp.gt.f32.partialorder %v3811_v36, 0.0  ;;  %10962 = vmatprep.mubr.f32.mxu0 %v12398_v48  ;;  %v4234_v33 = vld [vmem:[#allocation9 + $0x110] sm:$0xff] }
 0x385   : > { %3868 = vst [vmem:[#allocation2 + $0x49] sm:$0xf] %v3832_v44  ;;  %v3827_v41 = vmul.f32 0.01, %v3811_v36  ;;  %v3810_v47 = vadd.f32 %v13256_v21, %v3795_v29  ;;  %v12399_v46 = vld [vmem:[#allocation2] ss:$8 sps:$4 sm:$0xff]  }
 0x386   : > { %v12400_v39 = vld [vmem:[#allocation2 + $0x11] ss:$8 sps:$4 sm:$0xff]   ;;  %3869 = vst [vmem:[#allocation2 + $0x51] sm:$0xf] %v3848_v20  ;;  %11006 = vmatprep.mubr.f32.mxu1 %v12399_v46  ;;  %v12414_v25 = vld [vmem:[#allocation2 + $0x2] ss:$8 sps:$4 sm:$0xff]  }
 0x387   : > { %v3835_v50 = vsel %vm3819_vm14, %v3811_v36, %v3827_v41  ;;  %vm3818_vm15 = vcmp.gt.f32.partialorder %v3810_v47, 0.0  ;;  %v3826_v51 = vmul.f32 0.01, %v3810_v47  ;;  %v12401_v53 = vld [vmem:[#allocation2 + $0x10] ss:$8 sps:$4 sm:$0xff]   ;;  %10963 = vmatmul.mubr.f32.vlgmr.msra.gmra.mxu0 %v12400_v39  ;;  %v4603_v40 = vld [vmem:[#allocation9 + $0x278] sm:$0xff] }
 0x388   : > { %v3851_v56 = vcombine.high %v3835_v50, %v3835_v50  ;;  %3874 = vst [vmem:[#allocation2 + $0x79] sm:$0xf] %v3835_v50  ;;  %11007 = vmatmul.mubr.f32.vlgmr.msra.gmra.mxu1 %v12401_v53  ;;  %11019 = vmatpush3.msra.mxu0 %v13574_v59  ;;  %v12415_v7 = vld [vmem:[#allocation2 + $0x8] ss:$8 sps:$4 sm:$0xff]   ;;  %v4411_v10 = vld [vmem:[#allocation9 + $0x188] sm:$0xff]  ;;  %v4602_v29 = vld [vmem:[#allocation9 + $0x270] sm:$0xff] }
 0x389   : > { %v3834_v58 = vsel %vm3818_vm15, %v3810_v47, %v3826_v51  ;;  %v12402_v21 = vld [vmem:[#allocation2 + $0x21] ss:$8 sps:$4 sm:$0xff]   ;;  %11063 = vmatpush3.msra.mxu1 %v13575_v9  ;;  %11020 = vmatprep.subr.mxu0 %v4246_v49  ;;  %v4410_v35 = vld [vmem:[#allocation9 + $0x180] sm:$0xff]  ;;  %v4601_v41 = vld [vmem:[#allocation9 + $0x268] sm:$0xff] }
 0x38a   : > { %3875 = vst [vmem:[#allocation2 + $0x81] sm:$0xf] %v3851_v56  ;;  %v3850_v4 = vcombine.high %v3834_v58, %v3834_v58  ;;  %3872 = vst [vmem:[#allocation2 + $0x69] sm:$0xf] %v3834_v58  ;;  %v12403_v12 = vld [vmem:[#allocation2 + $0x20] ss:$8 sps:$4 sm:$0xff]   ;;  %11064 = vmatprep.subr.mxu1 %v4424_v55  ;;  %10965 = vmatprep.mubr.f32.mxu0 %v12402_v21 }
 0x38b   : > { %v12404_v61 = vld [vmem:[#allocation2 + $0x31] ss:$8 sps:$4 sm:$0xff]   ;;  %11009 = vmatprep.mubr.f32.mxu1 %v12403_v12  ;;  %11021 = vmatpush3.msra.mxu0 %v4246_v49  ;;  %v4781_v38 = vld [vmem:[#allocation9 + $0x2f8] sm:$0xff]  ;;  %v4780_v48 = vld [vmem:[#allocation9 + $0x2f0] sm:$0xff] }
 0x38c   : > { %3873 = vst [vmem:[#allocation2 + $0x71] sm:$0xf] %v3850_v4  ;;  %v12405_v63 = vld [vmem:[#allocation2 + $0x30] ss:$8 sps:$4 sm:$0xff]   ;;  %11065 = vmatpush3.msra.mxu1 %v4424_v55  ;;  %11022 = vmatprep.subr.mxu0 %v4245_v54  ;;  %v12406_v2 = vld [vmem:[#allocation2 + $0x41] ss:$8 sps:$4 sm:$0xff]  }
 0x38d   : > { %11066 = vmatprep.subr.mxu1 %v4423_v60  ;;  %10966 = vmatmul.mubr.f32.gmra.mxu0 %v12404_v61  ;;  %v12407_v45 = vld [vmem:[#allocation2 + $0x40] ss:$8 sps:$4 sm:$0xff]   ;;  %v12408_v19 = vld [vmem:[#allocation2 + $0x51] ss:$8 sps:$4 sm:$0xff]  }
 0x38e   : > { %11010 = vmatmul.mubr.f32.gmra.mxu1 %v12405_v63  ;;  %11023 = vmatpush3.msra.mxu0 %v4245_v54  ;;  %v12409_v57 = vld [vmem:[#allocation2 + $0x50] ss:$8 sps:$4 sm:$0xff]   ;;  %v12418_v44 = vld [vmem:[#allocation2 + $0x22] ss:$8 sps:$4 sm:$0xff]  }
 0x38f   : > { %11067 = vmatpush3.msra.mxu1 %v4423_v60  ;;  %11024 = vmatprep.subr.mxu0 %v4244_v43  ;;  %v12416_v42 = vld [vmem:[#allocation2 + $0x12] ss:$8 sps:$4 sm:$0xff]   ;;  %v12422_v50 = vld [vmem:[#allocation2 + $0x42] ss:$8 sps:$4 sm:$0xff]  }
 0x390   : > { %11068 = vmatprep.subr.mxu1 %v4422_v6  ;;  %10968 = vmatprep.mubr.f32.mxu0 %v12406_v2  ;;  %v12417_v36 = vld [vmem:[#allocation2 + $0x18] ss:$8 sps:$4 sm:$0xff]   ;;  %v12419_v20 = vld [vmem:[#allocation2 + $0x28] ss:$8 sps:$4 sm:$0xff]  }
 0x391   : > { %11012 = vmatprep.mubr.f32.mxu1 %v12407_v45  ;;  %11025 = vmatpush3.msra.mxu0 %v4244_v43  ;;  %v12410_v52 = vld [vmem:[#allocation2 + $0x61] ss:$8 sps:$4 sm:$0xff]   ;;  %v4779_v47 = vld [vmem:[#allocation9 + $0x2e8] sm:$0xff]  ;;  %v4600_v39 = vld [vmem:[#allocation9 + $0x260] sm:$0xff] }
 0x392   : > { %11069 = vmatpush3.msra.mxu1 %v4422_v6  ;;  %11026 = vmatprep.subr.mxu0 %v4243_v18  ;;  %v12411_v22 = vld [vmem:[#allocation2 + $0x60] ss:$8 sps:$4 sm:$0xff]   ;;  %v12420_v46 = vld [vmem:[#allocation2 + $0x32] ss:$8 sps:$4 sm:$0xff]  }
 0x393   : > { %11070 = vmatprep.subr.mxu1 %v4421_v24  ;;  %10969 = vmatmul.mubr.f32.gmra.mxu0 %v12408_v19  ;;  %v12412_v0 = vld [vmem:[#allocation2 + $0x71] ss:$8 sps:$4 sm:$0xff]   ;;  %v4599_v55 = vld [vmem:[#allocation9 + $0x258] sm:$0xff]  ;;  %v4598_v59 = vld [vmem:[#allocation9 + $0x250] sm:$0xff] }
 0x394   : > { %11013 = vmatmul.mubr.f32.gmra.mxu1 %v12409_v57  ;;  %11027 = vmatpush3.msra.mxu0 %v4243_v18  ;;  %v12413_v3 = vld [vmem:[#allocation2 + $0x70] ss:$8 sps:$4 sm:$0xff]   ;;  %v4777_v56 = vld [vmem:[#allocation9 + $0x2d8] sm:$0xff]  ;;  %v4776_v60 = vld [vmem:[#allocation9 + $0x2d0] sm:$0xff] }
 0x395   : > { %11071 = vmatpush3.msra.mxu1 %v4421_v24  ;;  %11028 = vmatprep.subr.mxu0 %v4242_v26  ;;  %v12421_v49 = vld [vmem:[#allocation2 + $0x38] ss:$8 sps:$4 sm:$0xff]   ;;  %v4778_v51 = vld [vmem:[#allocation9 + $0x2e0] sm:$0xff]  ;;  %v4595_v18 = vld [vmem:[#allocation9 + $0x238] sm:$0xff] }
 0x396   : > { %11072 = vmatprep.subr.mxu1 %v4420_v11  ;;  %10971 = vmatprep.mubr.f32.mxu0 %v12410_v52  ;;  %v12423_v53 = vld [vmem:[#allocation2 + $0x48] ss:$8 sps:$4 sm:$0xff]   ;;  %v12425_v58 = vld [vmem:[#allocation2 + $0x58] ss:$8 sps:$4 sm:$0xff]  }
 0x397   : > { %11015 = vmatprep.mubr.f32.mxu1 %v12411_v22  ;;  %11029 = vmatpush3.msra.mxu0 %v4242_v26  ;;  %v12424_v54 = vld [vmem:[#allocation2 + $0x52] ss:$8 sps:$4 sm:$0xff]   ;;  %v12426_v21 = vld [vmem:[#allocation2 + $0x62] ss:$8 sps:$4 sm:$0xff]  }
 0x398   : > { %11073 = vmatpush3.msra.mxu1 %v4420_v11  ;;  %11030 = vmatprep.subr.mxu0 %v4241_v5  ;;  %v12427_v4 = vld [vmem:[#allocation2 + $0x68] ss:$8 sps:$4 sm:$0xff]   ;;  %v4597_v9 = vld [vmem:[#allocation9 + $0x248] sm:$0xff]  ;;  %v4594_v19 = vld [vmem:[#allocation9 + $0x230] sm:$0xff] }
 0x399   : > { %11074 = vmatprep.subr.mxu1 %v4419_v14  ;;  %10972 = vmatmul.mubr.f32.gmra.mxu0 %v12412_v0  ;;  %v4775_v12 = vld [vmem:[#allocation9 + $0x2c8] sm:$0xff]  ;;  %v4596_v63 = vld [vmem:[#allocation9 + $0x240] sm:$0xff]  ;;  %v4773_v24 = vld [vmem:[#allocation9 + $0x2b8] sm:$0xff] }
 0x39a   : > { %11016 = vmatmul.mubr.f32.gmra.mxu1 %v12413_v3  ;;  %11031 = vmatpush3.msra.mxu0 %v4241_v5  ;;  %v12428_v61 = vld [vmem:[#allocation2 + $0x72] ss:$8 sps:$4 sm:$0xff]   ;;  %v4772_v57 = vld [vmem:[#allocation9 + $0x2b0] sm:$0xff]  ;;  %v4591_v5 = vld [vmem:[#allocation9 + $0x218] sm:$0xff] }
 0x39b   : > { %11075 = vmatpush3.msra.mxu1 %v4419_v14  ;;  %11032 = vmatprep.subr.mxu0 %v4240_v1  ;;  %v12429_v43 = vld [vmem:[#allocation2 + $0x78] ss:$8 sps:$4 sm:$0xff]   ;;  %v12430_v6 = vld [vmem:[#allocation2 + $0x9] ss:$8 sps:$4 sm:$0xff]  }
 0x39c   : > { %11050 = vmatprep.mubr.f32.mxu0 %v12414_v25  ;;  %11076 = vmatprep.subr.mxu1 %v4418_v17  ;;  %v4774_v2 = vld [vmem:[#allocation9 + $0x2c0] sm:$0xff]  ;;  %v4593_v26 = vld [vmem:[#allocation9 + $0x228] sm:$0xff]  ;;  %v4769_v14 = vld [vmem:[#allocation9 + $0x298] sm:$0xff] }
 0x39d   : > { %11094 = vmatprep.mubr.f32.mxu1 %v12415_v7  ;;  %11033 = vmatpush3.msra.mxu0 %v4240_v1  ;;  %v12431_v45 = vld [vmem:[#allocation2 + $0xa] ss:$8 sps:$4 sm:$0xff]   ;;  %v4771_v52 = vld [vmem:[#allocation9 + $0x2a8] sm:$0xff]  ;;  %v4590_v0 = vld [vmem:[#allocation9 + $0x210] sm:$0xff] }
 0x39e   : > { %11077 = vmatpush3.msra.mxu1 %v4418_v17  ;;  %11034 = vmatprep.subr.mxu0 %v4239_v27  ;;  %v4592_v11 = vld [vmem:[#allocation9 + $0x220] sm:$0xff]  ;;  %v4768_v3 = vld [vmem:[#allocation9 + $0x290] sm:$0xff]  ;;  %v4589_v1 = vld [vmem:[#allocation9 + $0x208] sm:$0xff] }
 0x39f   : > { %11078 = vmatprep.subr.mxu1 %v4417_v8  ;;  %11035 = vmatpush3.msra.mxu0 %v4239_v27  ;;  %v4770_v22 = vld [vmem:[#allocation9 + $0x2a0] sm:$0xff]  ;;  %v4767_v17 = vld [vmem:[#allocation9 + $0x288] sm:$0xff]  ;;  %v4959_v7 = vld [vmem:[#allocation9 + $0x378] sm:$0xff] }
 0x3a0   : > { %11079 = vmatpush3.msra.mxu1 %v4417_v8  ;;  %11036 = vmatprep.subr.mxu0 %v4238_v15  ;;  %v4588_v27 = vld [vmem:[#allocation9 + $0x200] sm:$0xff]  ;;  %v12432_v8 = vld [vmem:[#allocation2 + $0x19] ss:$8 sps:$4 sm:$0xff]  }
 0x3a1   : > { %11080 = vmatprep.subr.mxu1 %v4416_v16  ;;  %11037 = vmatpush3.msra.mxu0 %v4238_v15  ;;  %v4766_v25 = vld [vmem:[#allocation9 + $0x280] sm:$0xff]  ;;  %v12433_v15 = vld [vmem:[#allocation2 + $0x1a] ss:$8 sps:$4 sm:$0xff]  }
 0x3a2   : > { %11081 = vmatpush3.msra.mxu1 %v4416_v16  ;;  %11038 = vmatprep.subr.mxu0 %v4237_v13  ;;  %v5137_v16 = vld [vmem:[#allocation9 + $0x3f8] sm:$0xff] }
 0x3a3   : > { %11082 = vmatprep.subr.mxu1 %v4415_v34  ;;  %11039 = vmatpush3.msra.mxu0 %v4237_v13  ;;  %v12434_v13 = vld [vmem:[#allocation2 + $0x29] ss:$8 sps:$4 sm:$0xff]  }
 0x3a4   : > { %11083 = vmatpush3.msra.mxu1 %v4415_v34  ;;  %11040 = vmatprep.subr.mxu0 %v4236_v31  ;;  %v12435_v34 = vld [vmem:[#allocation2 + $0x2a] ss:$8 sps:$4 sm:$0xff]  }
 0x3a5   : > { %11084 = vmatprep.subr.mxu1 %v4414_v23  ;;  %11041 = vmatpush3.msra.mxu0 %v4236_v31  ;;  %v4958_v31 = vld [vmem:[#allocation9 + $0x370] sm:$0xff] }
 0x3a6   : > { %11085 = vmatpush3.msra.mxu1 %v4414_v23  ;;  %11042 = vmatprep.subr.mxu0 %v4235_v62  ;;  %v5136_v23 = vld [vmem:[#allocation9 + $0x3f0] sm:$0xff] }
 0x3a7   : > { %11086 = vmatprep.subr.mxu1 %v4413_v32  ;;  %11043 = vmatpush3.msra.mxu0 %v4235_v62  ;;  %v12436_v62 = vld [vmem:[#allocation2 + $0x39] ss:$8 sps:$4 sm:$0xff]  }
 0x3a8   : > { %11087 = vmatpush3.msra.mxu1 %v4413_v32  ;;  %11044 = vmatprep.subr.mxu0 %v4234_v33  ;;  %v4957_v32 = vld [vmem:[#allocation9 + $0x368] sm:$0xff] }
 0x3a9   : > { %11088 = vmatprep.subr.mxu1 %v4412_v28  ;;  %11045 = vmatpush3.msra.mxu0 %v4234_v33  ;;  %v12437_v33 = vld [vmem:[#allocation2 + $0x3a] ss:$8 sps:$4 sm:$0xff]  }
 0x3aa   : > { %11089 = vmatpush3.msra.mxu1 %v4412_v28  ;;  %11046 = vmatprep.subr.mxu0 %v4233_v37  ;;  %v5135_v28 = vld [vmem:[#allocation9 + $0x3e8] sm:$0xff] }
 0x3ab   : > { %11090 = vmatprep.subr.mxu1 %v4411_v10  ;;  %11047 = vmatpush3.msra.mxu0 %v4233_v37  ;;  %v12438_v37 = vld [vmem:[#allocation2 + $0x49] ss:$8 sps:$4 sm:$0xff]  }
 0x3ac   : > { %11091 = vmatpush3.msra.mxu1 %v4411_v10  ;;  %11048 = vmatprep.subr.mxu0 %v4232_v30  ;;  %v12439_v10 = vld [vmem:[#allocation2 + $0x4a] ss:$8 sps:$4 sm:$0xff]  }
 0x3ad   : > { %11092 = vmatprep.subr.mxu1 %v4410_v35  ;;  %11049 = vmatpush3.msra.mxu0 %v4232_v30  ;;  %v4956_v30 = vld [vmem:[#allocation9 + $0x360] sm:$0xff] }
 0x3ae   : > { %11093 = vmatpush3.msra.mxu1 %v4410_v35  ;;  %11051 = vmatmul.mubr.f32.vlgmr.msra.gmra.mxu0 %v12416_v42  ;;  %v5134_v35 = vld [vmem:[#allocation9 + $0x3e0] sm:$0xff]  ;;  %v12441_v42 = vld [vmem:[#allocation2 + $0x5a] ss:$8 sps:$4 sm:$0xff]  }
 0x3af   : > { %11095 = vmatmul.mubr.f32.vlgmr.msra.gmra.mxu1 %v12417_v36  ;;  %11106 = vmatprep.subr.mxu0 %v4603_v40  ;;  %v5133_v36 = vld [vmem:[#allocation9 + $0x3d8] sm:$0xff] }
 0x3b0   : > { %11150 = vmatprep.subr.mxu1 %v4781_v38  ;;  %11053 = vmatprep.mubr.f32.mxu0 %v12418_v44  ;;  %v12443_v44 = vld [vmem:[#allocation2 + $0x6a] ss:$8 sps:$4 sm:$0xff]  }
 0x3b1   : > { %11097 = vmatprep.mubr.f32.mxu1 %v12419_v20  ;;  %11107 = vmatpush3.msra.mxu0 %v4603_v40  ;;  %v12440_v40 = vld [vmem:[#allocation2 + $0x59] ss:$8 sps:$4 sm:$0xff]  }
 0x3b2   : > { %11151 = vmatpush3.msra.mxu1 %v4781_v38  ;;  %11108 = vmatprep.subr.mxu0 %v4602_v29  ;;  %v4955_v38 = vld [vmem:[#allocation9 + $0x358] sm:$0xff]  ;;  %v5132_v20 = vld [vmem:[#allocation9 + $0x3d0] sm:$0xff] }
 0x3b3   : > { %11152 = vmatprep.subr.mxu1 %v4780_v48  ;;  %11109 = vmatpush3.msra.mxu0 %v4602_v29  ;;  %v12442_v29 = vld [vmem:[#allocation2 + $0x69] ss:$8 sps:$4 sm:$0xff]  }
 0x3b4   : > { %11153 = vmatpush3.msra.mxu1 %v4780_v48  ;;  %11054 = vmatmul.mubr.f32.gmra.mxu0 %v12420_v46  ;;  %v4954_v48 = vld [vmem:[#allocation9 + $0x350] sm:$0xff] }
 0x3b5   : > { %11098 = vmatmul.mubr.f32.gmra.mxu1 %v12421_v49  ;;  %11110 = vmatprep.subr.mxu0 %v4601_v41  ;;  %v12445_v46 = vld [vmem:[#allocation2 + $0x7a] ss:$8 sps:$4 sm:$0xff]  }
 0x3b6   : > { %11154 = vmatprep.subr.mxu1 %v4779_v47  ;;  %11056 = vmatprep.mubr.f32.mxu0 %v12422_v50  ;;  %v5131_v49 = vld [vmem:[#allocation9 + $0x3c8] sm:$0xff]  ;;  %v4952_v50 = vld [vmem:[#allocation9 + $0x340] sm:$0xff] }
 0x3b7   : > { %11100 = vmatprep.mubr.f32.mxu1 %v12423_v53  ;;  %11111 = vmatpush3.msra.mxu0 %v4601_v41  ;;  %v12444_v41 = vld [vmem:[#allocation2 + $0x79] ss:$8 sps:$4 sm:$0xff]   ;;  %v5130_v53 = vld [vmem:[#allocation9 + $0x3c0] sm:$0xff] }
 0x3b8   : > { %11155 = vmatpush3.msra.mxu1 %v4779_v47  ;;  %11112 = vmatprep.subr.mxu0 %v4600_v39  ;;  %v4953_v47 = vld [vmem:[#allocation9 + $0x348] sm:$0xff] }
 0x3b9   : > { %11156 = vmatprep.subr.mxu1 %v4778_v51  ;;  %11113 = vmatpush3.msra.mxu0 %v4600_v39  ;;  %v12446_v39 = vld [vmem:[#allocation2 + $0x10] ss:$8 sps:$4 sm:$0xff]  }
 0x3ba   : > { %11157 = vmatpush3.msra.mxu1 %v4778_v51  ;;  %11057 = vmatmul.mubr.f32.gmra.mxu0 %v12424_v54  ;;  %v12447_v51 = vld [vmem:[#allocation2 + $0x11] ss:$8 sps:$4 sm:$0xff]   ;;  %v4950_v54 = vld [vmem:[#allocation9 + $0x330] sm:$0xff] }
 0x3bb   : > { %11101 = vmatmul.mubr.f32.gmra.mxu1 %v12425_v58  ;;  %11114 = vmatprep.subr.mxu0 %v4599_v55  ;;  %v5128_v58 = vld [vmem:[#allocation9 + $0x3b0] sm:$0xff] }
 0x3bc   : > { %11158 = vmatprep.subr.mxu1 %v4777_v56  ;;  %11059 = vmatprep.mubr.f32.mxu0 %v12426_v21  ;;  %v5127_v21 = vld [vmem:[#allocation9 + $0x3a8] sm:$0xff] }
 0x3bd   : > { %11103 = vmatprep.mubr.f32.mxu1 %v12427_v4  ;;  %11115 = vmatpush3.msra.mxu0 %v4599_v55  ;;  %v4951_v55 = vld [vmem:[#allocation9 + $0x338] sm:$0xff]  ;;  %v5126_v4 = vld [vmem:[#allocation9 + $0x3a0] sm:$0xff] }
 0x3be   : > { %11159 = vmatpush3.msra.mxu1 %v4777_v56  ;;  %11116 = vmatprep.subr.mxu0 %v4598_v59  ;;  %v5129_v56 = vld [vmem:[#allocation9 + $0x3b8] sm:$0xff] }
 0x3bf   : > { %11160 = vmatprep.subr.mxu1 %v4776_v60  ;;  %11117 = vmatpush3.msra.mxu0 %v4598_v59  ;;  %v4949_v59 = vld [vmem:[#allocation9 + $0x328] sm:$0xff] }
 0x3c0   : > { %11161 = vmatpush3.msra.mxu1 %v4776_v60  ;;  %11060 = vmatmul.mubr.f32.gmra.mxu0 %v12428_v61  ;;  %v4948_v60 = vld [vmem:[#allocation9 + $0x320] sm:$0xff]  ;;  %v4946_v61 = vld [vmem:[#allocation9 + $0x310] sm:$0xff] }
 0x3c1   : > { %11104 = vmatmul.mubr.f32.gmra.mxu1 %v12429_v43  ;;  %11118 = vmatprep.subr.mxu0 %v4597_v9  ;;  %v5124_v43 = vld [vmem:[#allocation9 + $0x390] sm:$0xff] }
 0x3c2   : > { %11162 = vmatprep.subr.mxu1 %v4775_v12  ;;  %11119 = vmatpush3.msra.mxu0 %v4597_v9  ;;  %v4947_v9 = vld [vmem:[#allocation9 + $0x318] sm:$0xff] }
 0x3c3   : > { %11138 = vmatprep.mubr.f32.mxu0 %v12430_v6  ;;  %11163 = vmatpush3.msra.mxu1 %v4775_v12  ;;  %v5125_v12 = vld [vmem:[#allocation9 + $0x398] sm:$0xff]  ;;  %v5123_v6 = vld [vmem:[#allocation9 + $0x388] sm:$0xff] }
 0x3c4   : > { %11182 = vmatprep.mubr.f32.mxu1 %v12431_v45  ;;  %11120 = vmatprep.subr.mxu0 %v4596_v63  ;;  %v5122_v45 = vld [vmem:[#allocation9 + $0x380] sm:$0xff] }
 0x3c5   : > { %11164 = vmatprep.subr.mxu1 %v4774_v2  ;;  %11121 = vmatpush3.msra.mxu0 %v4596_v63  ;;  %v4945_v63 = vld [vmem:[#allocation9 + $0x308] sm:$0xff] }
 0x3c6   : > { %11165 = vmatpush3.msra.mxu1 %v4774_v2  ;;  %11122 = vmatprep.subr.mxu0 %v4595_v18  ;;  %v4944_v2 = vld [vmem:[#allocation9 + $0x300] sm:$0xff] }
 0x3c7   : > { %11166 = vmatprep.subr.mxu1 %v4773_v24  ;;  %11123 = vmatpush3.msra.mxu0 %v4595_v18  ;;  %v12448_v18 = vld [vmem:[#allocation2 + $0x20] ss:$8 sps:$4 sm:$0xff]  }
 0x3c8   : > { %11167 = vmatpush3.msra.mxu1 %v4773_v24  ;;  %11124 = vmatprep.subr.mxu0 %v4594_v19  ;;  %v5315_v24 = vld [vmem:[#allocation9 + $0x478] sm:$0xff] }
 0x3c9   : > { %11168 = vmatprep.subr.mxu1 %v4772_v57  ;;  %11125 = vmatpush3.msra.mxu0 %v4594_v19  ;;  %v12449_v19 = vld [vmem:[#allocation2 + $0x21] ss:$8 sps:$4 sm:$0xff]  }
 0x3ca   : > { %11169 = vmatpush3.msra.mxu1 %v4772_v57  ;;  %11126 = vmatprep.subr.mxu0 %v4593_v26  ;;  %v12450_v57 = vld [vmem:[#allocation2 + $0x30] ss:$8 sps:$4 sm:$0xff]  }
 0x3cb   : > { %11170 = vmatprep.subr.mxu1 %v4771_v52  ;;  %11127 = vmatpush3.msra.mxu0 %v4593_v26  ;;  %v12451_v26 = vld [vmem:[#allocation2 + $0x31] ss:$8 sps:$4 sm:$0xff]  }
 0x3cc   : > { %11171 = vmatpush3.msra.mxu1 %v4771_v52  ;;  %11128 = vmatprep.subr.mxu0 %v4592_v11  ;;  %v5314_v52 = vld [vmem:[#allocation9 + $0x470] sm:$0xff] }
 0x3cd   : > { %11172 = vmatprep.subr.mxu1 %v4770_v22  ;;  %11129 = vmatpush3.msra.mxu0 %v4592_v11  ;;  %v12452_v11 = vld [vmem:[#allocation2 + $0x40] ss:$8 sps:$4 sm:$0xff]  }
 0x3ce   : > { %11173 = vmatpush3.msra.mxu1 %v4770_v22  ;;  %11130 = vmatprep.subr.mxu0 %v4591_v5  ;;  %v12453_v22 = vld [vmem:[#allocation2 + $0x41] ss:$8 sps:$4 sm:$0xff]  }
 0x3cf   : > { %11174 = vmatprep.subr.mxu1 %v4769_v14  ;;  %11131 = vmatpush3.msra.mxu0 %v4591_v5  ;;  %v5313_v5 = vld [vmem:[#allocation9 + $0x468] sm:$0xff] }
 0x3d0   : > { %11175 = vmatpush3.msra.mxu1 %v4769_v14  ;;  %11132 = vmatprep.subr.mxu0 %v4590_v0  ;;  %v12454_v14 = vld [vmem:[#allocation2 + $0x50] ss:$8 sps:$4 sm:$0xff]  }
 0x3d1   : > { %11176 = vmatprep.subr.mxu1 %v4768_v3  ;;  %11133 = vmatpush3.msra.mxu0 %v4590_v0  ;;  %v12455_v0 = vld [vmem:[#allocation2 + $0x51] ss:$8 sps:$4 sm:$0xff]  }
 0x3d2   : > { %11177 = vmatpush3.msra.mxu1 %v4768_v3  ;;  %11134 = vmatprep.subr.mxu0 %v4589_v1  ;;  %v5312_v3 = vld [vmem:[#allocation9 + $0x460] sm:$0xff] }
 0x3d3   : > { %11178 = vmatprep.subr.mxu1 %v4767_v17  ;;  %11135 = vmatpush3.msra.mxu0 %v4589_v1  ;;  %v12456_v1 = vld [vmem:[#allocation2 + $0x60] ss:$8 sps:$4 sm:$0xff]  }
 0x3d4   : > { %11179 = vmatpush3.msra.mxu1 %v4767_v17  ;;  %11136 = vmatprep.subr.mxu0 %v4588_v27  ;;  %v12457_v17 = vld [vmem:[#allocation2 + $0x61] ss:$8 sps:$4 sm:$0xff]  }
 0x3d5   : > { %11180 = vmatprep.subr.mxu1 %v4766_v25  ;;  %11137 = vmatpush3.msra.mxu0 %v4588_v27  ;;  %v5311_v27 = vld [vmem:[#allocation9 + $0x458] sm:$0xff] }
 0x3d6   : > { %11181 = vmatpush3.msra.mxu1 %v4766_v25  ;;  %11139 = vmatmul.mubr.f32.vlgmr.msra.gmra.mxu0 %v12432_v8  ;;  %v12458_v25 = vld [vmem:[#allocation2 + $0x70] ss:$8 sps:$4 sm:$0xff]  }
 0x3d7   : > { %11183 = vmatmul.mubr.f32.vlgmr.msra.gmra.mxu1 %v12433_v15  ;;  %11194 = vmatprep.subr.mxu0 %v4959_v7  ;;  %v12459_v8 = vld [vmem:[#allocation2 + $0x71] ss:$8 sps:$4 sm:$0xff]   ;;  %v12460_v15 = vld [vmem:[#allocation2 + $0x80] ss:$8 sps:$4 sm:$0xff]  }
 0x3d8   : > { %11238 = vmatprep.subr.mxu1 %v5137_v16  ;;  %11141 = vmatprep.mubr.f32.mxu0 %v12434_v13  ;;  %v5309_v13 = vld [vmem:[#allocation9 + $0x448] sm:$0xff] }
 0x3d9   : > { %11185 = vmatprep.mubr.f32.mxu1 %v12435_v34  ;;  %11195 = vmatpush3.msra.mxu0 %v4959_v7  ;;  %v5310_v7 = vld [vmem:[#allocation9 + $0x450] sm:$0xff]  ;;  %v12462_v34 = vld [vmem:[#allocation2 + $0x12] ss:$8 sps:$4 sm:$0xff]  }
 0x3da   : > { %11239 = vmatpush3.msra.mxu1 %v5137_v16  ;;  %11196 = vmatprep.subr.mxu0 %v4958_v31  ;;  %v12461_v16 = vld [vmem:[#allocation2 + $0x81] ss:$8 sps:$4 sm:$0xff]  }
 0x3db   : > { %11240 = vmatprep.subr.mxu1 %v5136_v23  ;;  %11197 = vmatpush3.msra.mxu0 %v4958_v31  ;;  %v5308_v31 = vld [vmem:[#allocation9 + $0x440] sm:$0xff] }
 0x3dc   : > { %11241 = vmatpush3.msra.mxu1 %v5136_v23  ;;  %11142 = vmatmul.mubr.f32.gmra.mxu0 %v12436_v62  ;;  %v5307_v23 = vld [vmem:[#allocation9 + $0x438] sm:$0xff]  ;;  %v5306_v62 = vld [vmem:[#allocation9 + $0x430] sm:$0xff] }
 0x3dd   : > { %11186 = vmatmul.mubr.f32.gmra.mxu1 %v12437_v33  ;;  %11198 = vmatprep.subr.mxu0 %v4957_v32  ;;  %v5304_v33 = vld [vmem:[#allocation9 + $0x420] sm:$0xff] }
 0x3de   : > { %11242 = vmatprep.subr.mxu1 %v5135_v28  ;;  %11144 = vmatprep.mubr.f32.mxu0 %v12438_v37  ;;  %v5302_v37 = vld [vmem:[#allocation9 + $0x410] sm:$0xff] }
 0x3df   : > { %11188 = vmatprep.mubr.f32.mxu1 %v12439_v10  ;;  %11199 = vmatpush3.msra.mxu0 %v4957_v32  ;;  %v5305_v32 = vld [vmem:[#allocation9 + $0x428] sm:$0xff] }
 0x3e0   : > { %11243 = vmatpush3.msra.mxu1 %v5135_v28  ;;  %11200 = vmatprep.subr.mxu0 %v4956_v30  ;;  %v5303_v28 = vld [vmem:[#allocation9 + $0x418] sm:$0xff]  ;;  %v5301_v10 = vld [vmem:[#allocation9 + $0x408] sm:$0xff] }
 0x3e1   : > { %11244 = vmatprep.subr.mxu1 %v5134_v35  ;;  %11201 = vmatpush3.msra.mxu0 %v4956_v30  ;;  %v5300_v30 = vld [vmem:[#allocation9 + $0x400] sm:$0xff] }
 0x3e2   : > { %11245 = vmatpush3.msra.mxu1 %v5134_v35  ;;  %11145 = vmatmul.mubr.f32.gmra.mxu0 %v12440_v40  ;;  %v12463_v35 = vld [vmem:[#allocation2 + $0x22] ss:$8 sps:$4 sm:$0xff]   ;;  %v12464_v40 = vld [vmem:[#allocation2 + $0x32] ss:$8 sps:$4 sm:$0xff]  }
 0x3e3   : > { %11189 = vmatmul.mubr.f32.gmra.mxu1 %v12441_v42  ;;  %11202 = vmatprep.subr.mxu0 %v4955_v38  ;;  %v12466_v42 = vld [vmem:[#allocation2 + $0x52] ss:$8 sps:$4 sm:$0xff]  }
 0x3e4   : > { %11246 = vmatprep.subr.mxu1 %v5133_v36  ;;  %11147 = vmatprep.mubr.f32.mxu0 %v12442_v29  ;;  %v12468_v29 = vld [vmem:[#allocation2 + $0x72] ss:$8 sps:$4 sm:$0xff]  }
 0x3e5   : > { %11191 = vmatprep.mubr.f32.mxu1 %v12443_v44  ;;  %11203 = vmatpush3.msra.mxu0 %v4955_v38  ;;  %v12465_v38 = vld [vmem:[#allocation2 + $0x42] ss:$8 sps:$4 sm:$0xff]  }
 0x3e6   : > { %11247 = vmatpush3.msra.mxu1 %v5133_v36  ;;  %11204 = vmatprep.subr.mxu0 %v4954_v48  ;;  %v12467_v36 = vld [vmem:[#allocation2 + $0x62] ss:$8 sps:$4 sm:$0xff]  }
 0x3e7   : > { %11248 = vmatprep.subr.mxu1 %v5132_v20  ;;  %11205 = vmatpush3.msra.mxu0 %v4954_v48  ;;  %v12469_v44 = vld [vmem:[#allocation2 + $0x82] ss:$8 sps:$4 sm:$0xff]  }
 0x3e8   : > { %11249 = vmatpush3.msra.mxu1 %v5132_v20  ;;  %11148 = vmatmul.mubr.f32.gmra.mxu0 %v12444_v41  ;;  %v5604_v48 = vld [vmem:[#allocation11 + $0xf8] sm:$0xff]  ;;  %v5603_v41 = vld [vmem:[#allocation11 + $0xf0] sm:$0xff] }
 0x3e9   : > { %11192 = vmatmul.mubr.f32.gmra.mxu1 %v12445_v46  ;;  %11206 = vmatprep.subr.mxu0 %v4953_v47  ;;  %v5571_v20 = vld [vmem:[#allocation11 + $0x78] sm:$0xff]  ;;  %v5602_v46 = vld [vmem:[#allocation11 + $0xe8] sm:$0xff] }
 0x3ea   : > { %11250 = vmatprep.subr.mxu1 %v5131_v49  ;;  %11207 = vmatpush3.msra.mxu0 %v4953_v47  ;;  %v5570_v47 = vld [vmem:[#allocation11 + $0x70] sm:$0xff] }
 0x3eb   : > { %11226 = vmatprep.mubr.f32.mxu0 %v12446_v39  ;;  %11251 = vmatpush3.msra.mxu1 %v5131_v49  ;;  %v5569_v49 = vld [vmem:[#allocation11 + $0x68] sm:$0xff]  ;;  %v5601_v39 = vld [vmem:[#allocation11 + $0xe0] sm:$0xff] }
 0x3ec   : > { %11270 = vmatprep.mubr.f32.mxu1 %v12447_v51  ;;  %11208 = vmatprep.subr.mxu0 %v4952_v50  ;;  %v5600_v51 = vld [vmem:[#allocation11 + $0xd8] sm:$0xff] }
 0x3ed   : > { %11252 = vmatprep.subr.mxu1 %v5130_v53  ;;  %11209 = vmatpush3.msra.mxu0 %v4952_v50  ;;  %v5568_v50 = vld [vmem:[#allocation11 + $0x60] sm:$0xff] }
 0x3ee   : > { %11253 = vmatpush3.msra.mxu1 %v5130_v53  ;;  %11210 = vmatprep.subr.mxu0 %v4951_v55  ;;  %v5567_v53 = vld [vmem:[#allocation11 + $0x58] sm:$0xff] }
 0x3ef   : > { %11254 = vmatprep.subr.mxu1 %v5129_v56  ;;  %11211 = vmatpush3.msra.mxu0 %v4951_v55  ;;  %v5599_v55 = vld [vmem:[#allocation11 + $0xd0] sm:$0xff] }
 0x3f0   : > { %11255 = vmatpush3.msra.mxu1 %v5129_v56  ;;  %11212 = vmatprep.subr.mxu0 %v4950_v54  ;;  %v5566_v56 = vld [vmem:[#allocation11 + $0x50] sm:$0xff] }
 0x3f1   : > { %11256 = vmatprep.subr.mxu1 %v5128_v58  ;;  %11213 = vmatpush3.msra.mxu0 %v4950_v54 }
 0x3f2   : > { %11257 = vmatpush3.msra.mxu1 %v5128_v58  ;;  %11214 = vmatprep.subr.mxu0 %v4949_v59  ;;  %v5598_v58 = vld [vmem:[#allocation11 + $0xc8] sm:$0xff] }
 0x3f3   : > { %11258 = vmatprep.subr.mxu1 %v5127_v21  ;;  %11215 = vmatpush3.msra.mxu0 %v4949_v59  ;;  %v5565_v59 = vld [vmem:[#allocation11 + $0x48] sm:$0xff] }
 0x3f4   : > { %11259 = vmatpush3.msra.mxu1 %v5127_v21  ;;  %11216 = vmatprep.subr.mxu0 %v4948_v60 }
 0x3f5   : > { %11260 = vmatprep.subr.mxu1 %v5126_v4  ;;  %11217 = vmatpush3.msra.mxu0 %v4948_v60  ;;  %v5597_v60 = vld [vmem:[#allocation11 + $0xc0] sm:$0xff] }
 0x3f6   : > { %11261 = vmatpush3.msra.mxu1 %v5126_v4  ;;  %11218 = vmatprep.subr.mxu0 %v4947_v9  ;;  %v5564_v4 = vld [vmem:[#allocation11 + $0x40] sm:$0xff] }
 0x3f7   : > { %11262 = vmatprep.subr.mxu1 %v5125_v12  ;;  %11219 = vmatpush3.msra.mxu0 %v4947_v9  ;;  %v5596_v9 = vld [vmem:[#allocation11 + $0xb8] sm:$0xff] }
 0x3f8   : > { %11263 = vmatpush3.msra.mxu1 %v5125_v12  ;;  %11220 = vmatprep.subr.mxu0 %v4946_v61  ;;  %v5563_v12 = vld [vmem:[#allocation11 + $0x38] sm:$0xff] }
 0x3f9   : > { %11264 = vmatprep.subr.mxu1 %v5124_v43  ;;  %11221 = vmatpush3.msra.mxu0 %v4946_v61 }
 0x3fa   : > { %11265 = vmatpush3.msra.mxu1 %v5124_v43  ;;  %11222 = vmatprep.subr.mxu0 %v4945_v63  ;;  %v5595_v43 = vld [vmem:[#allocation11 + $0xb0] sm:$0xff] }
 0x3fb   : > { %11266 = vmatprep.subr.mxu1 %v5123_v6  ;;  %11223 = vmatpush3.msra.mxu0 %v4945_v63  ;;  %v5562_v63 = vld [vmem:[#allocation11 + $0x30] sm:$0xff] }
 0x3fc   : > { %11267 = vmatpush3.msra.mxu1 %v5123_v6  ;;  %11224 = vmatprep.subr.mxu0 %v4944_v2  ;;  %v5594_v6 = vld [vmem:[#allocation11 + $0xa8] sm:$0xff] }
 0x3fd   : > { %11268 = vmatprep.subr.mxu1 %v5122_v45  ;;  %11225 = vmatpush3.msra.mxu0 %v4944_v2  ;;  %v5561_v2 = vld [vmem:[#allocation11 + $0x28] sm:$0xff] }
 0x3fe   : > { %11269 = vmatpush3.msra.mxu1 %v5122_v45  ;;  %11227 = vmatmul.mubr.f32.vlgmr.msra.gmra.mxu0 %v12448_v18  ;;  %v5593_v18 = vld [vmem:[#allocation11 + $0xa0] sm:$0xff] }
 0x3ff   : > { %11271 = vmatmul.mubr.f32.vlgmr.msra.gmra.mxu1 %v12449_v19  ;;  %11282 = vmatprep.subr.mxu0 %v5315_v24 }
 0x400   : > { %11229 = vmatprep.mubr.f32.mxu0 %v12450_v57  ;;  %11273 = vmatprep.mubr.f32.mxu1 %v12451_v26  ;;  %v5592_v57 = vld [vmem:[#allocation11 + $0x98] sm:$0xff] }
 0x401   : > { %11283 = vmatpush3.msra.mxu0 %v5315_v24  ;;  %11326 = vmatprep.subr.mxu1 %v5604_v48  ;;  %v5560_v24 = vld [vmem:[#allocation11 + $0x20] sm:$0xff]  ;;  %v5559_v26 = vld [vmem:[#allocation11 + $0x18] sm:$0xff] }
 0x402   : > { %11284 = vmatprep.subr.mxu0 %v5314_v52  ;;  %11230 = vmatmul.mubr.f32.gmra.mxu0 %v12452_v11  ;;  %v5591_v11 = vld [vmem:[#allocation11 + $0x90] sm:$0xff] }
 0x403   : > { %11285 = vmatpush3.msra.mxu0 %v5314_v52  ;;  %11274 = vmatmul.mubr.f32.gmra.mxu1 %v12453_v22  ;;  %v5558_v22 = vld [vmem:[#allocation11 + $0x10] sm:$0xff] }
 0x404   : > { %11286 = vmatprep.subr.mxu0 %v5313_v5  ;;  %11232 = vmatprep.mubr.f32.mxu0 %v12454_v14  ;;  %v5557_v14 = vld [vmem:[#allocation11 + $0x8] sm:$0xff] }
 0x405   : > { %11276 = vmatprep.mubr.f32.mxu1 %v12455_v0  ;;  %11287 = vmatpush3.msra.mxu0 %v5313_v5  ;;  %v5590_v5 = vld [vmem:[#allocation11 + $0x88] sm:$0xff] }
 0x406   : > { %11288 = vmatprep.subr.mxu0 %v5312_v3  ;;  %11233 = vmatmul.mubr.f32.gmra.mxu0 %v12456_v1  ;;  %v5556_v1 = vld [vmem:[#allocation11] sm:$0xff] }
 0x407   : > { %11289 = vmatpush3.msra.mxu0 %v5312_v3  ;;  %11277 = vmatmul.mubr.f32.gmra.mxu1 %v12457_v17  ;;  %v5589_v3 = vld [vmem:[#allocation11 + $0x80] sm:$0xff] }
 0x408   : > { %11290 = vmatprep.subr.mxu0 %v5311_v27  ;;  %11235 = vmatprep.mubr.f32.mxu0 %v12458_v25  ;;  %v13288_v25 = vld [vmem:[#allocation11 + $0x1f8] sm:$0xff] }
 0x409   : > { %11279 = vmatprep.mubr.f32.mxu1 %v12459_v8  ;;  %11291 = vmatpush3.msra.mxu0 %v5311_v27  ;;  %v13286_v27 = vld [vmem:[#allocation11 + $0x178] sm:$0xff]  ;;  %13577 = vst [vmem:[#allocation20_spill] sm:$0xff] %v13288_v25 }
 0x40a   : > { %11292 = vmatprep.subr.mxu0 %v5310_v7  ;;  %11236 = vmatmul.mubr.f32.gmra.mxu0 %v12460_v15  ;;  %13576 = vst [vmem:[#allocation26_spill] sm:$0xff] %v13286_v27 }
 0x40b   : > { %11293 = vmatpush3.msra.mxu0 %v5310_v7  ;;  %11280 = vmatmul.mubr.f32.gmra.mxu1 %v12461_v16 }
 0x40c   : > { %11294 = vmatprep.subr.mxu0 %v5309_v13  ;;  %11314 = vmatprep.mubr.f32.mxu0 %v12462_v34 }
 0x40d   : > { %11295 = vmatpush3.msra.mxu0 %v5309_v13  ;;  %11327 = vmatpush3.msra.mxu1 %v5604_v48 }
 0x40e   : > { %11296 = vmatprep.subr.mxu0 %v5308_v31  ;;  %11328 = vmatprep.subr.mxu1 %v5603_v41 }
 0x40f   : > { %11297 = vmatpush3.msra.mxu0 %v5308_v31  ;;  %11329 = vmatpush3.msra.mxu1 %v5603_v41 }
 0x410   : > { %11298 = vmatprep.subr.mxu0 %v5307_v23  ;;  %11330 = vmatprep.subr.mxu1 %v5602_v46 }
 0x411   : > { %11299 = vmatpush3.msra.mxu0 %v5307_v23  ;;  %11331 = vmatpush3.msra.mxu1 %v5602_v46 }
 0x412   : > { %11300 = vmatprep.subr.mxu0 %v5306_v62  ;;  %11332 = vmatprep.subr.mxu1 %v5601_v39 }
 0x413   : > { %11301 = vmatpush3.msra.mxu0 %v5306_v62  ;;  %11333 = vmatpush3.msra.mxu1 %v5601_v39 }
 0x414   : > { %11302 = vmatprep.subr.mxu0 %v5305_v32  ;;  %11334 = vmatprep.subr.mxu1 %v5600_v51 }
 0x415   : > { %11303 = vmatpush3.msra.mxu0 %v5305_v32  ;;  %11335 = vmatpush3.msra.mxu1 %v5600_v51 }
 0x416   : > { %11304 = vmatprep.subr.mxu0 %v5304_v33  ;;  %11336 = vmatprep.subr.mxu1 %v5599_v55 }
 0x417   : > { %11305 = vmatpush3.msra.mxu0 %v5304_v33  ;;  %11337 = vmatpush3.msra.mxu1 %v5599_v55 }
 0x418   : > { %11306 = vmatprep.subr.mxu0 %v5303_v28  ;;  %11338 = vmatprep.subr.mxu1 %v5598_v58 }
 0x419   : > { %11307 = vmatpush3.msra.mxu0 %v5303_v28  ;;  %11339 = vmatpush3.msra.mxu1 %v5598_v58 }
 0x41a   : > { %11308 = vmatprep.subr.mxu0 %v5302_v37  ;;  %11340 = vmatprep.subr.mxu1 %v5597_v60 }
 0x41b   : > { %11309 = vmatpush3.msra.mxu0 %v5302_v37  ;;  %11341 = vmatpush3.msra.mxu1 %v5597_v60 }
 0x41c   : > { %11310 = vmatprep.subr.mxu0 %v5301_v10  ;;  %11342 = vmatprep.subr.mxu1 %v5596_v9 }
 0x41d   : > { %11311 = vmatpush3.msra.mxu0 %v5301_v10  ;;  %11343 = vmatpush3.msra.mxu1 %v5596_v9 }
 0x41e   : > { %11312 = vmatprep.subr.mxu0 %v5300_v30  ;;  %11344 = vmatprep.subr.mxu1 %v5595_v43 }
 0x41f   : > { %11313 = vmatpush3.msra.mxu0 %v5300_v30  ;;  %11345 = vmatpush3.msra.mxu1 %v5595_v43 }
 0x420   : > { %11315 = vmatmul.mubr.f32.vlgmr.msra.gmra.mxu0 %v12463_v35  ;;  %11370 = vmatprep.subr.mxu0 %v5571_v20 }
 0x421   : > { %11317 = vmatprep.mubr.f32.mxu0 %v12464_v40  ;;  %11371 = vmatpush3.msra.mxu0 %v5571_v20 }
 0x422   : > { %11372 = vmatprep.subr.mxu0 %v5570_v47  ;;  %11346 = vmatprep.subr.mxu1 %v5594_v6 }
 0x423   : > { %11373 = vmatpush3.msra.mxu0 %v5570_v47  ;;  %11347 = vmatpush3.msra.mxu1 %v5594_v6 }
 0x424   : > { %11318 = vmatmul.mubr.f32.gmra.mxu0 %v12465_v38  ;;  %11374 = vmatprep.subr.mxu0 %v5569_v49 }
 0x425   : > { %11320 = vmatprep.mubr.f32.mxu0 %v12466_v42  ;;  %11375 = vmatpush3.msra.mxu0 %v5569_v49 }
 0x426   : > { %11376 = vmatprep.subr.mxu0 %v5568_v50  ;;  %11348 = vmatprep.subr.mxu1 %v5593_v18 }
 0x427   : > { %11377 = vmatpush3.msra.mxu0 %v5568_v50  ;;  %11349 = vmatpush3.msra.mxu1 %v5593_v18 }
 0x428   : > { %11321 = vmatmul.mubr.f32.gmra.mxu0 %v12467_v36  ;;  %11378 = vmatprep.subr.mxu0 %v5567_v53 }
 0x429   : > { %11323 = vmatprep.mubr.f32.mxu0 %v12468_v29  ;;  %11379 = vmatpush3.msra.mxu0 %v5567_v53 }
 0x42a   : > { %11380 = vmatprep.subr.mxu0 %v5566_v56  ;;  %11350 = vmatprep.subr.mxu1 %v5592_v57 }
 0x42b   : > { %11381 = vmatpush3.msra.mxu0 %v5566_v56  ;;  %11351 = vmatpush3.msra.mxu1 %v5592_v57 }
 0x42c   : > { %11324 = vmatmul.mubr.f32.gmra.mxu0 %v12469_v44  ;;  %11382 = vmatprep.subr.mxu0 %v5565_v59 }
 0x42d   : > { %11383 = vmatpush3.msra.mxu0 %v5565_v59  ;;  %11352 = vmatprep.subr.mxu1 %v5591_v11 }
 0x42e   : > { %11384 = vmatprep.subr.mxu0 %v5564_v4  ;;  %11353 = vmatpush3.msra.mxu1 %v5591_v11 }
 0x42f   : > { %11385 = vmatpush3.msra.mxu0 %v5564_v4  ;;  %11354 = vmatprep.subr.mxu1 %v5590_v5 }
 0x430   : > { %11386 = vmatprep.subr.mxu0 %v5563_v12  ;;  %11355 = vmatpush3.msra.mxu1 %v5590_v5 }
 0x431   : > { %11387 = vmatpush3.msra.mxu0 %v5563_v12  ;;  %11356 = vmatprep.subr.mxu1 %v5589_v3 }
 0x432   : > { %11388 = vmatprep.subr.mxu0 %v5562_v63  ;;  %11357 = vmatpush3.msra.mxu1 %v5589_v3 }
 0x433   : > { %11389 = vmatpush3.msra.mxu0 %v5562_v63  ;;  %11414 = vmatprep.subr.mxu1 %v13286_v27 }
 0x434   : > { %11390 = vmatprep.subr.mxu0 %v5561_v2 }
 0x435   : > { %11391 = vmatpush3.msra.mxu0 %v5561_v2 }
 0x436   : > { %11392 = vmatprep.subr.mxu0 %v5560_v24 }
 0x437   : > { %11393 = vmatpush3.msra.mxu0 %v5560_v24 }
 0x438   : > { %11394 = vmatprep.subr.mxu0 %v5559_v26 }
 0x439   : > { %11395 = vmatpush3.msra.mxu0 %v5559_v26 }
 0x43a   : > { %11396 = vmatprep.subr.mxu0 %v5558_v22 }
 0x43b   : > { %11397 = vmatpush3.msra.mxu0 %v5558_v22 }
 0x43c   : > { %11398 = vmatprep.subr.mxu0 %v5557_v14 }
 0x43d   : > { %11399 = vmatpush3.msra.mxu0 %v5557_v14 }
 0x43e   : > { %11400 = vmatprep.subr.mxu0 %v5556_v1 }
 0x43f   : > { %11401 = vmatpush3.msra.mxu0 %v5556_v1 }
 0x440   : > { %11458 = vmatprep.subr.mxu0 %v13288_v25 }
 0x447   : > { %v13272_v54 = vpop.f32.mrf.mxu0 }
 0x448   : > { %v13280_v19 = vpop.f32.mrf.mxu1 }
 0x449   : > { %v13274_v21 = vpop.f32.mrf.mxu0  ;;  %v4182_v6 = vadd.f32 %v13280_v19, %v13272_v54 }
 0x44a   : > { %v4176_v0 = vpop.f32.mrf.mxu1 }
 0x44b   : > { %v4177_v18 = vadd.f32 %v4176_v0, %v13274_v21 }
 0x44d   : > { %v13276_v61 = vpop.f32.mrf.mxu0 }
 0x44e   : > { %v11011_v8 = vpop.f32.mrf.mxu1 }
 0x44f   : > { %v13278_v45 = vpop.f32.mrf.mxu0  ;;  %v4192_v26 = vadd.f32 %v11011_v8, %v13276_v61 }
 0x450   : > { %v4186_v15 = vpop.f32.mrf.mxu1 }
 0x451   : > { %v4187_v1 = vadd.f32 %v4186_v15, %v13278_v45 }
 0x453   : > { %v13282_v52 = vpop.f32.mrf.mxu0 }
 0x454   : > { %v11014_v34 = vpop.f32.mrf.mxu1 }
 0x455   : > { %v13284_v17 = vpop.f32.mrf.mxu0  ;;  %v4202_v25 = vadd.f32 %v11014_v34, %v13282_v52 }
 0x456   : > { %v4196_v23 = vpop.f32.mrf.mxu1 }
 0x457   : > { %v4197_v19 = vadd.f32 %v4196_v23, %v13284_v17 }
 0x459   : > { %v13290_v7 = vpop.f32.mrf.mxu0 }
 0x45a   : > { %v11017_v32 = vpop.f32.mrf.mxu1 }
 0x45b   : > { %v13294_v16 = vpop.f32.mrf.mxu0  ;;  %v4212_v61 = vadd.f32 %v11017_v32, %v13290_v7 }
 0x45c   : > { %v13296_v28 = vpop.f32.mrf.mxu1 }
 0x45d   : > { %v4207_v17 = vadd.f32 %v13296_v28, %v13294_v16  ;;  %v13322_v16 = vld [vmem:[%s13511_s6] ss:$0 sm:$0xff] }
 0x46e   : > { %v11052_v13 = vpop.f32.mrf.mxu0 }
 0x46f   : > { %v11096_v37 = vpop.f32.mrf.mxu1  ;;  %v4386_v24 = vadd.f32 %v11052_v13, %v4182_v6 }
 0x470   : > { %v4346_v31 = vpop.f32.mrf.mxu0 }
 0x471   : > { %v4524_v30 = vpop.f32.mrf.mxu1  ;;  %v4385_v11 = vadd.f32 %v4346_v31, %v4177_v18  ;;  %v4564_v14 = vadd.f32 %v11096_v37, %v4386_v24 }
 0x473   : > { %v4563_v27 = vadd.f32 %v4524_v30, %v4385_v11 }
 0x474   : > { %v11055_v62 = vpop.f32.mrf.mxu0 }
 0x475   : > { %v11099_v40 = vpop.f32.mrf.mxu1  ;;  %v4388_v3 = vadd.f32 %v11055_v62, %v4192_v26 }
 0x476   : > { %v4356_v33 = vpop.f32.mrf.mxu0 }
 0x477   : > { %v4534_v42 = vpop.f32.mrf.mxu1  ;;  %v4387_v21 = vadd.f32 %v4356_v33, %v4187_v1  ;;  %v4566_v6 = vadd.f32 %v11099_v40, %v4388_v3 }
 0x479   : > { %v4565_v18 = vadd.f32 %v4534_v42, %v4387_v21 }
 0x47a   : > { %v11058_v10 = vpop.f32.mrf.mxu0 }
 0x47b   : > { %v11102_v44 = vpop.f32.mrf.mxu1  ;;  %v4390_v0 = vadd.f32 %v11058_v10, %v4202_v25 }
 0x47c   : > { %v4366_v35 = vpop.f32.mrf.mxu0 }
 0x47d   : > { %v4544_v20 = vpop.f32.mrf.mxu1  ;;  %v4389_v8 = vadd.f32 %v4366_v35, %v4197_v19  ;;  %v4568_v45 = vadd.f32 %v11102_v44, %v4390_v0 }
 0x47f   : > { %v4567_v23 = vadd.f32 %v4544_v20, %v4389_v8 }
 0x480   : > { %v11061_v38 = vpop.f32.mrf.mxu0 }
 0x481   : > { %v11105_v47 = vpop.f32.mrf.mxu1  ;;  %v4392_v15 = vadd.f32 %v11061_v38, %v4212_v61 }
 0x482   : > { %v13298_v36 = vpop.f32.mrf.mxu0 }
 0x483   : > { %v13300_v49 = vpop.f32.mrf.mxu1  ;;  %v4570_v7 = vadd.f32 %v11105_v47, %v4392_v15  ;;  %v4391_v32 = vadd.f32 %v13298_v36, %v4207_v17 }
 0x485   : > { %v4569_v47 = vadd.f32 %v13300_v49, %v4391_v32 }
 0x496   : > { %v11140_v29 = vpop.f32.mrf.mxu0 }
 0x497   : > { %v11184_v39 = vpop.f32.mrf.mxu1 }
 0x498   : > { %v4702_v48 = vpop.f32.mrf.mxu0 }
 0x499   : > { %v4880_v51 = vpop.f32.mrf.mxu1 }
 0x49c   : > { %v11143_v41 = vpop.f32.mrf.mxu0 }
 0x49d   : > { %v11187_v55 = vpop.f32.mrf.mxu1  ;;  %v4744_v37 = vadd.f32 %v11143_v41, %v4566_v6 }
 0x49e   : > { %v4712_v46 = vpop.f32.mrf.mxu0 }
 0x49f   : > { %v4890_v58 = vpop.f32.mrf.mxu1  ;;  %v4743_v25 = vadd.f32 %v4712_v46, %v4565_v18  ;;  %v4922_v10 = vadd.f32 %v11187_v55, %v4744_v37 }
 0x4a1   : > { %v4921_v38 = vadd.f32 %v4890_v58, %v4743_v25 }
 0x4a2   : > { %v11146_v50 = vpop.f32.mrf.mxu0 }
 0x4a3   : > { %v11190_v4 = vpop.f32.mrf.mxu1  ;;  %v4746_v33 = vadd.f32 %v11146_v50, %v4568_v45 }
 0x4a4   : > { %v4722_v53 = vpop.f32.mrf.mxu0 }
 0x4a5   : > { %v4900_v12 = vpop.f32.mrf.mxu1  ;;  %v4745_v35 = vadd.f32 %v4722_v53, %v4567_v23 }
 0x4a7   : > { %v4923_v50 = vadd.f32 %v4900_v12, %v4745_v35 }
 0x4a8   : > { %v11149_v56 = vpop.f32.mrf.mxu0 }
 0x4a9   : > { %v13304_v63 = vpop.f32.mrf.mxu1  ;;  %v4748_v41 = vadd.f32 %v11149_v56, %v4570_v7 }
 0x4aa   : > { %v13302_v59 = vpop.f32.mrf.mxu0 }
 0x4ab   : > { %13578 = vst [vmem:[#allocation21_spill] sm:$0xff] %v13302_v59  ;;  %v13309_v57 = vpop.f32.mrf.mxu1  ;;  %v4742_v59 = vadd.f32 %v11140_v29, %v4564_v14  ;;  %v4926_v56 = vadd.f32 %v13304_v63, %v4748_v41 }
 0x4ac   : > { %13579 = vst [vmem:[#allocation24_spill] sm:$0xff] %v13309_v57  ;;  %v4741_v57 = vadd.f32 %v4702_v48, %v4563_v27  ;;  %v4924_v48 = vadd.f32 %v11190_v4, %v4746_v33 }
 0x4ad   : > { %v4920_v31 = vadd.f32 %v11184_v39, %v4742_v59 }
 0x4ae   : > { %v4919_v34 = vadd.f32 %v4880_v51, %v4741_v57 }
 0x4b3   : > { %v13581_v63 = vld [vmem:[#allocation24_spill] sm:$0xff] }
 0x4be   : > { %v11228_v60 = vpop.f32.mrf.mxu0 }
 0x4bf   : > { %v11272_v22 = vpop.f32.mrf.mxu1  ;;  %v5098_v30 = vadd.f32 %v11228_v60, %v4920_v31  ;;  %v13580_v60 = vld [vmem:[#allocation21_spill] sm:$0xff] }
 0x4c0   : > { %v5058_v9 = vpop.f32.mrf.mxu0  ;;  %v4747_v4 = vadd.f32 %v13580_v60, %v4569_v47 }
 0x4c1   : > { %v5236_v54 = vpop.f32.mrf.mxu1  ;;  %v5097_v27 = vadd.f32 %v5058_v9, %v4919_v34  ;;  %v5276_v42 = vadd.f32 %v11272_v22, %v5098_v30 }
 0x4c2   : > { %v11231_v43 = vpop.f32.mrf.mxu0  ;;  %v4925_v1 = vadd.f32 %v13581_v63, %v4747_v4  ;;  %v13582_v4 = vld [vmem:[#allocation26_spill] sm:$0xff] }
 0x4c3   : > { %v11275_v62 = vpop.f32.mrf.mxu1  ;;  %v5100_v44 = vadd.f32 %v11231_v43, %v4922_v10  ;;  %v5275_v28 = vadd.f32 %v5236_v54, %v5097_v27 }
 0x4c4   : > { %v5068_v2 = vpop.f32.mrf.mxu0 }
 0x4c5   : > { %v5246_v40 = vpop.f32.mrf.mxu1  ;;  %v5099_v36 = vadd.f32 %v5068_v2, %v4921_v38  ;;  %v5278_v55 = vadd.f32 %v11275_v62, %v5100_v44 }
 0x4c6   : > { %v11234_v5 = vpop.f32.mrf.mxu0 }
 0x4c7   : > { %v11278_v20 = vpop.f32.mrf.mxu1  ;;  %v5102_v51 = vadd.f32 %v11234_v5, %v4924_v48  ;;  %v5277_v12 = vadd.f32 %v5246_v40, %v5099_v36 }
 0x4c8   : > { %v5078_v13 = vpop.f32.mrf.mxu0 }
 0x4c9   : > { %v5101_v9 = vadd.f32 %v5078_v13, %v4923_v50  ;;  %v5256_v24 = vpop.f32.mrf.mxu1  ;;  %v5280_v2 = vadd.f32 %v11278_v20, %v5102_v51  ;;  %v5910_v50 = vld [vmem:[#allocation11 + $0x170] sm:$0xff] }
 0x4ca   : > { %v11237_v52 = vpop.f32.mrf.mxu0 }
 0x4cb   : > { %v5104_v11 = vadd.f32 %v11237_v52, %v4926_v56  ;;  %v5279_v54 = vadd.f32 %v5256_v24, %v5101_v9  ;;  %v11281_v13 = vpop.f32.mrf.mxu1  ;;  %v5909_v56 = vld [vmem:[#allocation11 + $0x168] sm:$0xff]  ;;  %v13583_v24 = vld [vmem:[#allocation20_spill] sm:$0xff] }
 0x4cc   : > { %v5088_v29 = vpop.f32.mrf.mxu0  ;;  %v6087_v9 = vld [vmem:[#allocation11 + $0x1e8] sm:$0xff] }
 0x4cd   : > { %v5103_v31 = vadd.f32 %v5088_v29, %v4925_v1  ;;  %v5282_v45 = vadd.f32 %v11281_v13, %v5104_v11  ;;  %v5266_v25 = vpop.f32.mrf.mxu1  ;;  %v5906_v1 = vld [vmem:[#allocation11 + $0x150] sm:$0xff]  ;;  %v6083_v13 = vld [vmem:[#allocation11 + $0x1c8] sm:$0xff] }
 0x4cf   : > { %v5281_v40 = vadd.f32 %v5266_v25, %v5103_v31  ;;  %v6082_v31 = vld [vmem:[#allocation11 + $0x1c0] sm:$0xff]  ;;  %v5899_v25 = vld [vmem:[#allocation11 + $0x118] sm:$0xff] }
 0x4e0   : > { %v11316_v39 = vpop.f32.mrf.mxu0 }
 0x4e1   : > { %v5454_v46 = vadd.f32 %v11316_v39, %v5276_v42 }
 0x4e2   : > { %v5414_v53 = vpop.f32.mrf.mxu0 }
 0x4e3   : > { %v5469_v58 = vadd.f32 %v13322_v16, %v5454_v46  ;;  %v5453_v59 = vadd.f32 %v5414_v53, %v5275_v28 }
 0x4e4   : > { %v11319_v43 = vpop.f32.mrf.mxu0 }
 0x4e5   : > { %vm5477_vm0 = vcmp.gt.f32.partialorder %v5469_v58, 0.0  ;;  %v5485_v57 = vmul.f32 0.01, %v5469_v58  ;;  %v5468_v26 = vadd.f32 %v13322_v16, %v5453_v59  ;;  %v5456_v49 = vadd.f32 %v11319_v43, %v5278_v55 }
 0x4e6   : > { %v5424_v22 = vpop.f32.mrf.mxu0 }
 0x4e7   : > { %v5493_v5 = vsel %vm5477_vm0, %v5469_v58, %v5485_v57  ;;  %vm5476_vm1 = vcmp.gt.f32.partialorder %v5468_v26, 0.0  ;;  %v5484_v14 = vmul.f32 0.01, %v5468_v26  ;;  %v5471_v3 = vadd.f32 %v13322_v16, %v5456_v49  ;;  %v6088_v58 = vld [vmem:[#allocation11 + $0x1f0] sm:$0xff]  ;;  %v5908_v49 = vld [vmem:[#allocation11 + $0x160] sm:$0xff] }
 0x4e8   : > { %v5509_v19 = vcombine.high %v5493_v5, %v5493_v5  ;;  %5526 = vst [vmem:[#allocation2 + $0x19] sm:$0xf] %v5493_v5  ;;  %v5455_v21 = vadd.f32 %v5424_v22, %v5277_v12  ;;  %v11322_v0 = vpop.f32.mrf.mxu0  ;;  %v5907_v5 = vld [vmem:[#allocation11 + $0x158] sm:$0xff] }
 0x4e9   : > { %v5492_v6 = vsel %vm5476_vm1, %v5468_v26, %v5484_v14  ;;  %vm5479_vm2 = vcmp.gt.f32.partialorder %v5471_v3, 0.0  ;;  %v5487_v61 = vmul.f32 0.01, %v5471_v3  ;;  %v5458_v8 = vadd.f32 %v11322_v0, %v5280_v2  ;;  %v6086_v2 = vld [vmem:[#allocation11 + $0x1e0] sm:$0xff]  ;;  %v6085_v14 = vld [vmem:[#allocation11 + $0x1d8] sm:$0xff]  ;;  %v5905_v0 = vld [vmem:[#allocation11 + $0x148] sm:$0xff] }
 0x4ea   : > { %5527 = vst [vmem:[#allocation2 + $0x21] sm:$0xf] %v5509_v19  ;;  %v5508_v37 = vcombine.high %v5492_v6, %v5492_v6  ;;  %5524 = vst [vmem:[#allocation2 + $0x9] sm:$0xf] %v5492_v6  ;;  %v5470_v62 = vadd.f32 %v13322_v16, %v5455_v21  ;;  %v5434_v18 = vpop.f32.mrf.mxu0  ;;  %v6084_v19 = vld [vmem:[#allocation11 + $0x1d0] sm:$0xff] }
 0x4eb   : > { %v5495_v15 = vsel %vm5479_vm2, %v5471_v3, %v5487_v61  ;;  %v5473_v52 = vadd.f32 %v13322_v16, %v5458_v8  ;;  %v5457_v34 = vadd.f32 %v5434_v18, %v5279_v54  ;;  %v5904_v8 = vld [vmem:[#allocation11 + $0x140] sm:$0xff]  ;;  %v6081_v18 = vld [vmem:[#allocation11 + $0x1b8] sm:$0xff] }
 0x4ec   : > { %5525 = vst [vmem:[#allocation2 + $0x11] sm:$0xf] %v5508_v37  ;;  %v5511_v30 = vcombine.high %v5495_v15, %v5495_v15  ;;  %5530 = vst [vmem:[#allocation2 + $0x39] sm:$0xf] %v5495_v15  ;;  %vm5478_vm3 = vcmp.gt.f32.partialorder %v5470_v62, 0.0  ;;  %v11325_v23 = vpop.f32.mrf.mxu0  ;;  %v5903_v37 = vld [vmem:[#allocation11 + $0x138] sm:$0xff] }
 0x4ed   : > { %v5486_v17 = vmul.f32 0.01, %v5470_v62  ;;  %vm5481_vm4 = vcmp.gt.f32.partialorder %v5473_v52, 0.0  ;;  %v5489_v33 = vmul.f32 0.01, %v5473_v52  ;;  %v5472_v10 = vadd.f32 %v13322_v16, %v5457_v34  ;;  %v5902_v15 = vld [vmem:[#allocation11 + $0x130] sm:$0xff] }
 0x4ee   : > { %v5460_v27 = vadd.f32 %v11325_v23, %v5282_v45  ;;  %5531 = vst [vmem:[#allocation2 + $0x41] sm:$0xf] %v5511_v30  ;;  %v5444_v32 = vpop.f32.mrf.mxu0  ;;  %v5901_v34 = vld [vmem:[#allocation11 + $0x128] sm:$0xff]  ;;  %v6078_v23 = vld [vmem:[#allocation11 + $0x1a0] sm:$0xff] }
 0x4ef   : > { %v5494_v7 = vsel %vm5478_vm3, %v5470_v62, %v5486_v17  ;;  %v5497_v29 = vsel %vm5481_vm4, %v5473_v52, %v5489_v33  ;;  %vm5480_vm5 = vcmp.gt.f32.partialorder %v5472_v10, 0.0  ;;  %v5488_v42 = vmul.f32 0.01, %v5472_v10  ;;  %v6080_v52 = vld [vmem:[#allocation11 + $0x1b0] sm:$0xff]  ;;  %v6079_v30 = vld [vmem:[#allocation11 + $0x1a8] sm:$0xff]  ;;  %v5900_v17 = vld [vmem:[#allocation11 + $0x120] sm:$0xff] }
 0x4f0   : > { %v5510_v35 = vcombine.high %v5494_v7, %v5494_v7  ;;  %5528 = vst [vmem:[#allocation2 + $0x29] sm:$0xf] %v5494_v7  ;;  %v5513_v44 = vcombine.high %v5497_v29, %v5497_v29  ;;  %5534 = vst [vmem:[#allocation2 + $0x59] sm:$0xf] %v5497_v29  ;;  %v5475_v38 = vadd.f32 %v13322_v16, %v5460_v27  ;;  %v6077_v33 = vld [vmem:[#allocation11 + $0x198] sm:$0xff]  ;;  %v6076_v27 = vld [vmem:[#allocation11 + $0x190] sm:$0xff] }
 0x4f1   : > { %v5459_v48 = vadd.f32 %v5444_v32, %v5281_v40  ;;  %v5496_v41 = vsel %vm5480_vm5, %v5472_v10, %v5488_v42  ;;  %v12470_v39 = vld [vmem:[#allocation2 + $0x1] ss:$8 sps:$4 sm:$0xff]   ;;  %v5897_v40 = vld [vmem:[#allocation11 + $0x108] sm:$0xff]  ;;  %v5896_v32 = vld [vmem:[#allocation11 + $0x100] sm:$0xff] }
 0x4f2   : > { %5529 = vst [vmem:[#allocation2 + $0x31] sm:$0xf] %v5510_v35  ;;  %5535 = vst [vmem:[#allocation2 + $0x61] sm:$0xf] %v5513_v44  ;;  %v5512_v28 = vcombine.high %v5496_v41, %v5496_v41  ;;  %vm5483_vm6 = vcmp.gt.f32.partialorder %v5475_v38, 0.0  ;;  %11358 = vmatprep.mubr.f32.mxu1 %v12470_v39  ;;  %v5898_v10 = vld [vmem:[#allocation11 + $0x110] sm:$0xff] }
 0x4f3   : > { %5532 = vst [vmem:[#allocation2 + $0x49] sm:$0xf] %v5496_v41  ;;  %v5491_v20 = vmul.f32 0.01, %v5475_v38  ;;  %v5474_v46 = vadd.f32 %v13322_v16, %v5459_v48  ;;  %v12471_v47 = vld [vmem:[#allocation2] ss:$8 sps:$4 sm:$0xff]  }
 0x4f4   : > { %v12472_v36 = vld [vmem:[#allocation2 + $0x11] ss:$8 sps:$4 sm:$0xff]   ;;  %5533 = vst [vmem:[#allocation2 + $0x51] sm:$0xf] %v5512_v28  ;;  %11402 = vmatprep.mubr.f32.mxu0 %v12471_v47  ;;  %v12486_v62 = vld [vmem:[#allocation2 + $0x2] ss:$8 sps:$4 sm:$0xff]  }
 0x4f5   : > { %v5499_v51 = vsel %vm5483_vm6, %v5475_v38, %v5491_v20  ;;  %vm5482_vm7 = vcmp.gt.f32.partialorder %v5474_v46, 0.0  ;;  %v5490_v53 = vmul.f32 0.01, %v5474_v46  ;;  %v12473_v55 = vld [vmem:[#allocation2 + $0x10] ss:$8 sps:$4 sm:$0xff]   ;;  %11359 = vmatmul.mubr.f32.vlgmr.msra.gmra.mxu1 %v12472_v36  ;;  %v6267_v29 = vld [vmem:[#allocation11 + $0x278] sm:$0xff] }
 0x4f6   : > { %v5515_v59 = vcombine.high %v5499_v51, %v5499_v51  ;;  %5538 = vst [vmem:[#allocation2 + $0x79] sm:$0xf] %v5499_v51  ;;  %11403 = vmatmul.mubr.f32.vlgmr.msra.gmra.mxu0 %v12473_v55  ;;  %11415 = vmatpush3.msra.mxu1 %v13582_v4  ;;  %v12487_v45 = vld [vmem:[#allocation2 + $0x8] ss:$8 sps:$4 sm:$0xff]   ;;  %v6075_v7 = vld [vmem:[#allocation11 + $0x188] sm:$0xff]  ;;  %v6266_v48 = vld [vmem:[#allocation11 + $0x270] sm:$0xff] }
 0x4f7   : > { %v5498_v60 = vsel %vm5482_vm7, %v5474_v46, %v5490_v53  ;;  %v12474_v16 = vld [vmem:[#allocation2 + $0x21] ss:$8 sps:$4 sm:$0xff]   ;;  %11459 = vmatpush3.msra.mxu0 %v13583_v24  ;;  %11416 = vmatprep.subr.mxu1 %v5910_v50  ;;  %v6074_v35 = vld [vmem:[#allocation11 + $0x180] sm:$0xff]  ;;  %v6265_v20 = vld [vmem:[#allocation11 + $0x268] sm:$0xff] }
 0x4f8   : > { %5539 = vst [vmem:[#allocation2 + $0x81] sm:$0xf] %v5515_v59  ;;  %v5514_v43 = vcombine.high %v5498_v60, %v5498_v60  ;;  %5536 = vst [vmem:[#allocation2 + $0x69] sm:$0xf] %v5498_v60  ;;  %v12475_v57 = vld [vmem:[#allocation2 + $0x20] ss:$8 sps:$4 sm:$0xff]   ;;  %11460 = vmatprep.subr.mxu0 %v6088_v58  ;;  %11361 = vmatprep.mubr.f32.mxu1 %v12474_v16 }
 0x4f9   : > { %v12476_v26 = vld [vmem:[#allocation2 + $0x31] ss:$8 sps:$4 sm:$0xff]   ;;  %11405 = vmatprep.mubr.f32.mxu0 %v12475_v57  ;;  %11417 = vmatpush3.msra.mxu1 %v5910_v50  ;;  %v6445_v42 = vld [vmem:[#allocation11 + $0x2f8] sm:$0xff]  ;;  %v6444_v39 = vld [vmem:[#allocation11 + $0x2f0] sm:$0xff] }
 0x4fa   : > { %5537 = vst [vmem:[#allocation2 + $0x71] sm:$0xf] %v5514_v43  ;;  %v12477_v12 = vld [vmem:[#allocation2 + $0x30] ss:$8 sps:$4 sm:$0xff]   ;;  %11461 = vmatpush3.msra.mxu0 %v6088_v58  ;;  %11418 = vmatprep.subr.mxu1 %v5909_v56  ;;  %v12478_v11 = vld [vmem:[#allocation2 + $0x41] ss:$8 sps:$4 sm:$0xff]  }
 0x4fb   : > { %11462 = vmatprep.subr.mxu0 %v6087_v9  ;;  %11362 = vmatmul.mubr.f32.gmra.mxu1 %v12476_v26  ;;  %v12479_v22 = vld [vmem:[#allocation2 + $0x40] ss:$8 sps:$4 sm:$0xff]   ;;  %v12480_v3 = vld [vmem:[#allocation2 + $0x51] ss:$8 sps:$4 sm:$0xff]  }
 0x4fc   : > { %11406 = vmatmul.mubr.f32.gmra.mxu0 %v12477_v12  ;;  %11419 = vmatpush3.msra.mxu1 %v5909_v56  ;;  %v12481_v63 = vld [vmem:[#allocation2 + $0x50] ss:$8 sps:$4 sm:$0xff]   ;;  %v12490_v41 = vld [vmem:[#allocation2 + $0x22] ss:$8 sps:$4 sm:$0xff]  }
 0x4fd   : > { %11463 = vmatpush3.msra.mxu0 %v6087_v9  ;;  %11420 = vmatprep.subr.mxu1 %v5908_v49  ;;  %v12488_v44 = vld [vmem:[#allocation2 + $0x12] ss:$8 sps:$4 sm:$0xff]   ;;  %v12494_v51 = vld [vmem:[#allocation2 + $0x42] ss:$8 sps:$4 sm:$0xff]  }
 0x4fe   : > { %11464 = vmatprep.subr.mxu0 %v6086_v2  ;;  %11364 = vmatprep.mubr.f32.mxu1 %v12478_v11  ;;  %v12489_v38 = vld [vmem:[#allocation2 + $0x18] ss:$8 sps:$4 sm:$0xff]   ;;  %v12491_v28 = vld [vmem:[#allocation2 + $0x28] ss:$8 sps:$4 sm:$0xff]  }
 0x4ff   : > { %11408 = vmatprep.mubr.f32.mxu0 %v12479_v22  ;;  %11421 = vmatpush3.msra.mxu1 %v5908_v49  ;;  %v12482_v54 = vld [vmem:[#allocation2 + $0x61] ss:$8 sps:$4 sm:$0xff]   ;;  %v6443_v46 = vld [vmem:[#allocation11 + $0x2e8] sm:$0xff]  ;;  %v6264_v36 = vld [vmem:[#allocation11 + $0x260] sm:$0xff] }
 0x500   : > { %11465 = vmatpush3.msra.mxu0 %v6086_v2  ;;  %11422 = vmatprep.subr.mxu1 %v5907_v5  ;;  %v12483_v21 = vld [vmem:[#allocation2 + $0x60] ss:$8 sps:$4 sm:$0xff]   ;;  %v12492_v47 = vld [vmem:[#allocation2 + $0x32] ss:$8 sps:$4 sm:$0xff]  }
 0x501   : > { %11466 = vmatprep.subr.mxu0 %v6085_v14  ;;  %11365 = vmatmul.mubr.f32.gmra.mxu1 %v12480_v3  ;;  %v12484_v6 = vld [vmem:[#allocation2 + $0x71] ss:$8 sps:$4 sm:$0xff]   ;;  %v6263_v58 = vld [vmem:[#allocation11 + $0x258] sm:$0xff]  ;;  %v6262_v4 = vld [vmem:[#allocation11 + $0x250] sm:$0xff] }
 0x502   : > { %11409 = vmatmul.mubr.f32.gmra.mxu0 %v12481_v63  ;;  %11423 = vmatpush3.msra.mxu1 %v5907_v5  ;;  %v12485_v61 = vld [vmem:[#allocation2 + $0x70] ss:$8 sps:$4 sm:$0xff]   ;;  %v6441_v59 = vld [vmem:[#allocation11 + $0x2d8] sm:$0xff]  ;;  %v6440_v9 = vld [vmem:[#allocation11 + $0x2d0] sm:$0xff] }
 0x503   : > { %11467 = vmatpush3.msra.mxu0 %v6085_v14  ;;  %11424 = vmatprep.subr.mxu1 %v5906_v1  ;;  %v12493_v50 = vld [vmem:[#allocation2 + $0x38] ss:$8 sps:$4 sm:$0xff]   ;;  %v6442_v53 = vld [vmem:[#allocation11 + $0x2e0] sm:$0xff]  ;;  %v6259_v5 = vld [vmem:[#allocation11 + $0x238] sm:$0xff] }
 0x504   : > { %11468 = vmatprep.subr.mxu0 %v6084_v19  ;;  %11367 = vmatprep.mubr.f32.mxu1 %v12482_v54  ;;  %v12495_v55 = vld [vmem:[#allocation2 + $0x48] ss:$8 sps:$4 sm:$0xff]   ;;  %v12497_v60 = vld [vmem:[#allocation2 + $0x58] ss:$8 sps:$4 sm:$0xff]  }
 0x505   : > { %11411 = vmatprep.mubr.f32.mxu0 %v12483_v21  ;;  %11425 = vmatpush3.msra.mxu1 %v5906_v1  ;;  %v12496_v56 = vld [vmem:[#allocation2 + $0x52] ss:$8 sps:$4 sm:$0xff]   ;;  %v12498_v16 = vld [vmem:[#allocation2 + $0x62] ss:$8 sps:$4 sm:$0xff]  }
 0x506   : > { %11469 = vmatpush3.msra.mxu0 %v6084_v19  ;;  %11426 = vmatprep.subr.mxu1 %v5905_v0  ;;  %v12499_v43 = vld [vmem:[#allocation2 + $0x68] ss:$8 sps:$4 sm:$0xff]   ;;  %v6261_v24 = vld [vmem:[#allocation11 + $0x248] sm:$0xff]  ;;  %v6258_v3 = vld [vmem:[#allocation11 + $0x230] sm:$0xff] }
 0x507   : > { %11470 = vmatprep.subr.mxu0 %v6083_v13  ;;  %11368 = vmatmul.mubr.f32.gmra.mxu1 %v12484_v6  ;;  %v6439_v57 = vld [vmem:[#allocation11 + $0x2c8] sm:$0xff]  ;;  %v6260_v12 = vld [vmem:[#allocation11 + $0x240] sm:$0xff]  ;;  %v6437_v14 = vld [vmem:[#allocation11 + $0x2b8] sm:$0xff] }
 0x508   : > { %11412 = vmatmul.mubr.f32.gmra.mxu0 %v12485_v61  ;;  %11427 = vmatpush3.msra.mxu1 %v5905_v0  ;;  %v12500_v26 = vld [vmem:[#allocation2 + $0x72] ss:$8 sps:$4 sm:$0xff]   ;;  %v6436_v63 = vld [vmem:[#allocation11 + $0x2b0] sm:$0xff]  ;;  %v6255_v0 = vld [vmem:[#allocation11 + $0x218] sm:$0xff] }
 0x509   : > { %11471 = vmatpush3.msra.mxu0 %v6083_v13  ;;  %11428 = vmatprep.subr.mxu1 %v5904_v8  ;;  %v12501_v49 = vld [vmem:[#allocation2 + $0x78] ss:$8 sps:$4 sm:$0xff]   ;;  %v12502_v2 = vld [vmem:[#allocation2 + $0x9] ss:$8 sps:$4 sm:$0xff]  }
 0x50a   : > { %11446 = vmatprep.mubr.f32.mxu1 %v12486_v62  ;;  %11472 = vmatprep.subr.mxu0 %v6082_v31  ;;  %v6438_v11 = vld [vmem:[#allocation11 + $0x2c0] sm:$0xff]  ;;  %v6257_v1 = vld [vmem:[#allocation11 + $0x228] sm:$0xff]  ;;  %v6433_v13 = vld [vmem:[#allocation11 + $0x298] sm:$0xff] }
 0x50b   : > { %11490 = vmatprep.mubr.f32.mxu0 %v12487_v45  ;;  %11429 = vmatpush3.msra.mxu1 %v5904_v8  ;;  %v12503_v22 = vld [vmem:[#allocation2 + $0xa] ss:$8 sps:$4 sm:$0xff]   ;;  %v6435_v54 = vld [vmem:[#allocation11 + $0x2a8] sm:$0xff]  ;;  %v6254_v6 = vld [vmem:[#allocation11 + $0x210] sm:$0xff] }
 0x50c   : > { %11473 = vmatpush3.msra.mxu0 %v6082_v31  ;;  %11430 = vmatprep.subr.mxu1 %v5903_v37  ;;  %v6256_v19 = vld [vmem:[#allocation11 + $0x220] sm:$0xff]  ;;  %v6432_v61 = vld [vmem:[#allocation11 + $0x290] sm:$0xff]  ;;  %v6253_v8 = vld [vmem:[#allocation11 + $0x208] sm:$0xff] }
 0x50d   : > { %11474 = vmatprep.subr.mxu0 %v6081_v18  ;;  %11431 = vmatpush3.msra.mxu1 %v5903_v37  ;;  %v6434_v21 = vld [vmem:[#allocation11 + $0x2a0] sm:$0xff]  ;;  %v6431_v31 = vld [vmem:[#allocation11 + $0x288] sm:$0xff]  ;;  %v6623_v45 = vld [vmem:[#allocation11 + $0x378] sm:$0xff] }
 0x50e   : > { %11475 = vmatpush3.msra.mxu0 %v6081_v18  ;;  %11432 = vmatprep.subr.mxu1 %v5902_v15  ;;  %v6252_v37 = vld [vmem:[#allocation11 + $0x200] sm:$0xff]  ;;  %v12504_v18 = vld [vmem:[#allocation2 + $0x19] ss:$8 sps:$4 sm:$0xff]  }
 0x50f   : > { %11476 = vmatprep.subr.mxu0 %v6080_v52  ;;  %11433 = vmatpush3.msra.mxu1 %v5902_v15  ;;  %v6430_v62 = vld [vmem:[#allocation11 + $0x280] sm:$0xff]  ;;  %v12505_v15 = vld [vmem:[#allocation2 + $0x1a] ss:$8 sps:$4 sm:$0xff]  }
 0x510   : > { %11477 = vmatpush3.msra.mxu0 %v6080_v52  ;;  %11434 = vmatprep.subr.mxu1 %v5901_v34  ;;  %v6801_v52 = vld [vmem:[#allocation11 + $0x3f8] sm:$0xff] }
 0x511   : > { %11478 = vmatprep.subr.mxu0 %v6079_v30  ;;  %11435 = vmatpush3.msra.mxu1 %v5901_v34  ;;  %v12506_v34 = vld [vmem:[#allocation2 + $0x29] ss:$8 sps:$4 sm:$0xff]  }
 0x512   : > { %11479 = vmatpush3.msra.mxu0 %v6079_v30  ;;  %11436 = vmatprep.subr.mxu1 %v5900_v17  ;;  %v12507_v30 = vld [vmem:[#allocation2 + $0x2a] ss:$8 sps:$4 sm:$0xff]  }
 0x513   : > { %11480 = vmatprep.subr.mxu0 %v6078_v23  ;;  %11437 = vmatpush3.msra.mxu1 %v5900_v17  ;;  %v6622_v17 = vld [vmem:[#allocation11 + $0x370] sm:$0xff] }
 0x514   : > { %11481 = vmatpush3.msra.mxu0 %v6078_v23  ;;  %11438 = vmatprep.subr.mxu1 %v5899_v25  ;;  %v6800_v23 = vld [vmem:[#allocation11 + $0x3f0] sm:$0xff] }
 0x515   : > { %11482 = vmatprep.subr.mxu0 %v6077_v33  ;;  %11439 = vmatpush3.msra.mxu1 %v5899_v25  ;;  %v12508_v25 = vld [vmem:[#allocation2 + $0x39] ss:$8 sps:$4 sm:$0xff]  }
 0x516   : > { %11483 = vmatpush3.msra.mxu0 %v6077_v33  ;;  %11440 = vmatprep.subr.mxu1 %v5898_v10  ;;  %v6621_v33 = vld [vmem:[#allocation11 + $0x368] sm:$0xff] }
 0x517   : > { %11484 = vmatprep.subr.mxu0 %v6076_v27  ;;  %11441 = vmatpush3.msra.mxu1 %v5898_v10  ;;  %v12509_v10 = vld [vmem:[#allocation2 + $0x3a] ss:$8 sps:$4 sm:$0xff]  }
 0x518   : > { %11485 = vmatpush3.msra.mxu0 %v6076_v27  ;;  %11442 = vmatprep.subr.mxu1 %v5897_v40  ;;  %v6799_v27 = vld [vmem:[#allocation11 + $0x3e8] sm:$0xff] }
 0x519   : > { %11486 = vmatprep.subr.mxu0 %v6075_v7  ;;  %11443 = vmatpush3.msra.mxu1 %v5897_v40  ;;  %v12510_v40 = vld [vmem:[#allocation2 + $0x49] ss:$8 sps:$4 sm:$0xff]  }
 0x51a   : > { %11487 = vmatpush3.msra.mxu0 %v6075_v7  ;;  %11444 = vmatprep.subr.mxu1 %v5896_v32  ;;  %v12511_v7 = vld [vmem:[#allocation2 + $0x4a] ss:$8 sps:$4 sm:$0xff]  }
 0x51b   : > { %11488 = vmatprep.subr.mxu0 %v6074_v35  ;;  %11445 = vmatpush3.msra.mxu1 %v5896_v32  ;;  %v6620_v32 = vld [vmem:[#allocation11 + $0x360] sm:$0xff] }
 0x51c   : > { %11489 = vmatpush3.msra.mxu0 %v6074_v35  ;;  %11447 = vmatmul.mubr.f32.vlgmr.msra.gmra.mxu1 %v12488_v44  ;;  %v6798_v35 = vld [vmem:[#allocation11 + $0x3e0] sm:$0xff]  ;;  %v12513_v44 = vld [vmem:[#allocation2 + $0x5a] ss:$8 sps:$4 sm:$0xff]  }
 0x51d   : > { %11491 = vmatmul.mubr.f32.vlgmr.msra.gmra.mxu0 %v12489_v38  ;;  %11502 = vmatprep.subr.mxu1 %v6267_v29  ;;  %v6797_v38 = vld [vmem:[#allocation11 + $0x3d8] sm:$0xff] }
 0x51e   : > { %11546 = vmatprep.subr.mxu0 %v6445_v42  ;;  %11449 = vmatprep.mubr.f32.mxu1 %v12490_v41  ;;  %v12515_v41 = vld [vmem:[#allocation2 + $0x6a] ss:$8 sps:$4 sm:$0xff]  }
 0x51f   : > { %11493 = vmatprep.mubr.f32.mxu0 %v12491_v28  ;;  %11503 = vmatpush3.msra.mxu1 %v6267_v29  ;;  %v12512_v29 = vld [vmem:[#allocation2 + $0x59] ss:$8 sps:$4 sm:$0xff]  }
 0x520   : > { %11547 = vmatpush3.msra.mxu0 %v6445_v42  ;;  %11504 = vmatprep.subr.mxu1 %v6266_v48  ;;  %v6619_v42 = vld [vmem:[#allocation11 + $0x358] sm:$0xff]  ;;  %v6796_v28 = vld [vmem:[#allocation11 + $0x3d0] sm:$0xff] }
 0x521   : > { %11548 = vmatprep.subr.mxu0 %v6444_v39  ;;  %11505 = vmatpush3.msra.mxu1 %v6266_v48  ;;  %v12514_v48 = vld [vmem:[#allocation2 + $0x69] ss:$8 sps:$4 sm:$0xff]  }
 0x522   : > { %11549 = vmatpush3.msra.mxu0 %v6444_v39  ;;  %11450 = vmatmul.mubr.f32.gmra.mxu1 %v12492_v47  ;;  %v6618_v39 = vld [vmem:[#allocation11 + $0x350] sm:$0xff] }
 0x523   : > { %11494 = vmatmul.mubr.f32.gmra.mxu0 %v12493_v50  ;;  %11506 = vmatprep.subr.mxu1 %v6265_v20  ;;  %v12517_v47 = vld [vmem:[#allocation2 + $0x7a] ss:$8 sps:$4 sm:$0xff]  }
 0x524   : > { %11550 = vmatprep.subr.mxu0 %v6443_v46  ;;  %11452 = vmatprep.mubr.f32.mxu1 %v12494_v51  ;;  %v6795_v50 = vld [vmem:[#allocation11 + $0x3c8] sm:$0xff]  ;;  %v6616_v51 = vld [vmem:[#allocation11 + $0x340] sm:$0xff] }
 0x525   : > { %11496 = vmatprep.mubr.f32.mxu0 %v12495_v55  ;;  %11507 = vmatpush3.msra.mxu1 %v6265_v20  ;;  %v12516_v20 = vld [vmem:[#allocation2 + $0x79] ss:$8 sps:$4 sm:$0xff]   ;;  %v6794_v55 = vld [vmem:[#allocation11 + $0x3c0] sm:$0xff] }
 0x526   : > { %11551 = vmatpush3.msra.mxu0 %v6443_v46  ;;  %11508 = vmatprep.subr.mxu1 %v6264_v36  ;;  %v6617_v46 = vld [vmem:[#allocation11 + $0x348] sm:$0xff] }
 0x527   : > { %11552 = vmatprep.subr.mxu0 %v6442_v53  ;;  %11509 = vmatpush3.msra.mxu1 %v6264_v36  ;;  %v12518_v36 = vld [vmem:[#allocation2 + $0x10] ss:$8 sps:$4 sm:$0xff]  }
 0x528   : > { %11553 = vmatpush3.msra.mxu0 %v6442_v53  ;;  %11453 = vmatmul.mubr.f32.gmra.mxu1 %v12496_v56  ;;  %v12519_v53 = vld [vmem:[#allocation2 + $0x11] ss:$8 sps:$4 sm:$0xff]   ;;  %v6614_v56 = vld [vmem:[#allocation11 + $0x330] sm:$0xff] }
 0x529   : > { %11497 = vmatmul.mubr.f32.gmra.mxu0 %v12497_v60  ;;  %11510 = vmatprep.subr.mxu1 %v6263_v58  ;;  %v6792_v60 = vld [vmem:[#allocation11 + $0x3b0] sm:$0xff] }
 0x52a   : > { %11554 = vmatprep.subr.mxu0 %v6441_v59  ;;  %11455 = vmatprep.mubr.f32.mxu1 %v12498_v16  ;;  %v6791_v16 = vld [vmem:[#allocation11 + $0x3a8] sm:$0xff] }
 0x52b   : > { %11499 = vmatprep.mubr.f32.mxu0 %v12499_v43  ;;  %11511 = vmatpush3.msra.mxu1 %v6263_v58  ;;  %v6615_v58 = vld [vmem:[#allocation11 + $0x338] sm:$0xff]  ;;  %v6790_v43 = vld [vmem:[#allocation11 + $0x3a0] sm:$0xff] }
 0x52c   : > { %11555 = vmatpush3.msra.mxu0 %v6441_v59  ;;  %11512 = vmatprep.subr.mxu1 %v6262_v4  ;;  %v6793_v59 = vld [vmem:[#allocation11 + $0x3b8] sm:$0xff] }
 0x52d   : > { %11556 = vmatprep.subr.mxu0 %v6440_v9  ;;  %11513 = vmatpush3.msra.mxu1 %v6262_v4  ;;  %v6613_v4 = vld [vmem:[#allocation11 + $0x328] sm:$0xff] }
 0x52e   : > { %11557 = vmatpush3.msra.mxu0 %v6440_v9  ;;  %11456 = vmatmul.mubr.f32.gmra.mxu1 %v12500_v26  ;;  %v6612_v9 = vld [vmem:[#allocation11 + $0x320] sm:$0xff]  ;;  %v6610_v26 = vld [vmem:[#allocation11 + $0x310] sm:$0xff] }
 0x52f   : > { %11500 = vmatmul.mubr.f32.gmra.mxu0 %v12501_v49  ;;  %11514 = vmatprep.subr.mxu1 %v6261_v24  ;;  %v6788_v49 = vld [vmem:[#allocation11 + $0x390] sm:$0xff] }
 0x530   : > { %11558 = vmatprep.subr.mxu0 %v6439_v57  ;;  %11515 = vmatpush3.msra.mxu1 %v6261_v24  ;;  %v6611_v24 = vld [vmem:[#allocation11 + $0x318] sm:$0xff] }
 0x531   : > { %11534 = vmatprep.mubr.f32.mxu1 %v12502_v2  ;;  %11559 = vmatpush3.msra.mxu0 %v6439_v57  ;;  %v6789_v57 = vld [vmem:[#allocation11 + $0x398] sm:$0xff]  ;;  %v6787_v2 = vld [vmem:[#allocation11 + $0x388] sm:$0xff] }
 0x532   : > { %11578 = vmatprep.mubr.f32.mxu0 %v12503_v22  ;;  %11516 = vmatprep.subr.mxu1 %v6260_v12  ;;  %v6786_v22 = vld [vmem:[#allocation11 + $0x380] sm:$0xff] }
 0x533   : > { %11560 = vmatprep.subr.mxu0 %v6438_v11  ;;  %11517 = vmatpush3.msra.mxu1 %v6260_v12  ;;  %v6609_v12 = vld [vmem:[#allocation11 + $0x308] sm:$0xff] }
 0x534   : > { %11561 = vmatpush3.msra.mxu0 %v6438_v11  ;;  %11518 = vmatprep.subr.mxu1 %v6259_v5  ;;  %v6608_v11 = vld [vmem:[#allocation11 + $0x300] sm:$0xff] }
 0x535   : > { %11562 = vmatprep.subr.mxu0 %v6437_v14  ;;  %11519 = vmatpush3.msra.mxu1 %v6259_v5  ;;  %v12520_v5 = vld [vmem:[#allocation2 + $0x20] ss:$8 sps:$4 sm:$0xff]  }
 0x536   : > { %11563 = vmatpush3.msra.mxu0 %v6437_v14  ;;  %11520 = vmatprep.subr.mxu1 %v6258_v3  ;;  %v6979_v14 = vld [vmem:[#allocation11 + $0x478] sm:$0xff] }
 0x537   : > { %11564 = vmatprep.subr.mxu0 %v6436_v63  ;;  %11521 = vmatpush3.msra.mxu1 %v6258_v3  ;;  %v12521_v3 = vld [vmem:[#allocation2 + $0x21] ss:$8 sps:$4 sm:$0xff]  }
 0x538   : > { %11565 = vmatpush3.msra.mxu0 %v6436_v63  ;;  %11522 = vmatprep.subr.mxu1 %v6257_v1  ;;  %v12522_v63 = vld [vmem:[#allocation2 + $0x30] ss:$8 sps:$4 sm:$0xff]  }
 0x539   : > { %11566 = vmatprep.subr.mxu0 %v6435_v54  ;;  %11523 = vmatpush3.msra.mxu1 %v6257_v1  ;;  %v12523_v1 = vld [vmem:[#allocation2 + $0x31] ss:$8 sps:$4 sm:$0xff]  }
 0x53a   : > { %11567 = vmatpush3.msra.mxu0 %v6435_v54  ;;  %11524 = vmatprep.subr.mxu1 %v6256_v19  ;;  %v6978_v54 = vld [vmem:[#allocation11 + $0x470] sm:$0xff] }
 0x53b   : > { %11568 = vmatprep.subr.mxu0 %v6434_v21  ;;  %11525 = vmatpush3.msra.mxu1 %v6256_v19  ;;  %v12524_v19 = vld [vmem:[#allocation2 + $0x40] ss:$8 sps:$4 sm:$0xff]  }
 0x53c   : > { %11569 = vmatpush3.msra.mxu0 %v6434_v21  ;;  %11526 = vmatprep.subr.mxu1 %v6255_v0  ;;  %v12525_v21 = vld [vmem:[#allocation2 + $0x41] ss:$8 sps:$4 sm:$0xff]  }
 0x53d   : > { %11570 = vmatprep.subr.mxu0 %v6433_v13  ;;  %11527 = vmatpush3.msra.mxu1 %v6255_v0  ;;  %v6977_v0 = vld [vmem:[#allocation11 + $0x468] sm:$0xff] }
 0x53e   : > { %11571 = vmatpush3.msra.mxu0 %v6433_v13  ;;  %11528 = vmatprep.subr.mxu1 %v6254_v6  ;;  %v12526_v13 = vld [vmem:[#allocation2 + $0x50] ss:$8 sps:$4 sm:$0xff]  }
 0x53f   : > { %11572 = vmatprep.subr.mxu0 %v6432_v61  ;;  %11529 = vmatpush3.msra.mxu1 %v6254_v6  ;;  %v12527_v6 = vld [vmem:[#allocation2 + $0x51] ss:$8 sps:$4 sm:$0xff]  }
 0x540   : > { %11573 = vmatpush3.msra.mxu0 %v6432_v61  ;;  %11530 = vmatprep.subr.mxu1 %v6253_v8  ;;  %v6976_v61 = vld [vmem:[#allocation11 + $0x460] sm:$0xff] }
 0x541   : > { %11574 = vmatprep.subr.mxu0 %v6431_v31  ;;  %11531 = vmatpush3.msra.mxu1 %v6253_v8  ;;  %v12528_v8 = vld [vmem:[#allocation2 + $0x60] ss:$8 sps:$4 sm:$0xff]  }
 0x542   : > { %11575 = vmatpush3.msra.mxu0 %v6431_v31  ;;  %11532 = vmatprep.subr.mxu1 %v6252_v37  ;;  %v12529_v31 = vld [vmem:[#allocation2 + $0x61] ss:$8 sps:$4 sm:$0xff]  }
 0x543   : > { %11576 = vmatprep.subr.mxu0 %v6430_v62  ;;  %11533 = vmatpush3.msra.mxu1 %v6252_v37  ;;  %v6975_v37 = vld [vmem:[#allocation11 + $0x458] sm:$0xff] }
 0x544   : > { %11577 = vmatpush3.msra.mxu0 %v6430_v62  ;;  %11535 = vmatmul.mubr.f32.vlgmr.msra.gmra.mxu1 %v12504_v18  ;;  %v12530_v62 = vld [vmem:[#allocation2 + $0x70] ss:$8 sps:$4 sm:$0xff]  }
 0x545   : > { %11579 = vmatmul.mubr.f32.vlgmr.msra.gmra.mxu0 %v12505_v15  ;;  %11590 = vmatprep.subr.mxu1 %v6623_v45  ;;  %v12531_v18 = vld [vmem:[#allocation2 + $0x71] ss:$8 sps:$4 sm:$0xff]   ;;  %v12532_v15 = vld [vmem:[#allocation2 + $0x80] ss:$8 sps:$4 sm:$0xff]  }
 0x546   : > { %11634 = vmatprep.subr.mxu0 %v6801_v52  ;;  %11537 = vmatprep.mubr.f32.mxu1 %v12506_v34  ;;  %v6973_v34 = vld [vmem:[#allocation11 + $0x448] sm:$0xff] }
 0x547   : > { %11581 = vmatprep.mubr.f32.mxu0 %v12507_v30  ;;  %11591 = vmatpush3.msra.mxu1 %v6623_v45  ;;  %v6974_v45 = vld [vmem:[#allocation11 + $0x450] sm:$0xff]  ;;  %v12534_v30 = vld [vmem:[#allocation2 + $0x12] ss:$8 sps:$4 sm:$0xff]  }
 0x548   : > { %11635 = vmatpush3.msra.mxu0 %v6801_v52  ;;  %11592 = vmatprep.subr.mxu1 %v6622_v17  ;;  %v12533_v52 = vld [vmem:[#allocation2 + $0x81] ss:$8 sps:$4 sm:$0xff]  }
 0x549   : > { %11636 = vmatprep.subr.mxu0 %v6800_v23  ;;  %11593 = vmatpush3.msra.mxu1 %v6622_v17  ;;  %v6972_v17 = vld [vmem:[#allocation11 + $0x440] sm:$0xff] }
 0x54a   : > { %11637 = vmatpush3.msra.mxu0 %v6800_v23  ;;  %11538 = vmatmul.mubr.f32.gmra.mxu1 %v12508_v25  ;;  %v6971_v23 = vld [vmem:[#allocation11 + $0x438] sm:$0xff]  ;;  %v6970_v25 = vld [vmem:[#allocation11 + $0x430] sm:$0xff] }
 0x54b   : > { %11582 = vmatmul.mubr.f32.gmra.mxu0 %v12509_v10  ;;  %11594 = vmatprep.subr.mxu1 %v6621_v33  ;;  %v6968_v10 = vld [vmem:[#allocation11 + $0x420] sm:$0xff] }
 0x54c   : > { %11638 = vmatprep.subr.mxu0 %v6799_v27  ;;  %11540 = vmatprep.mubr.f32.mxu1 %v12510_v40  ;;  %v6966_v40 = vld [vmem:[#allocation11 + $0x410] sm:$0xff] }
 0x54d   : > { %11584 = vmatprep.mubr.f32.mxu0 %v12511_v7  ;;  %11595 = vmatpush3.msra.mxu1 %v6621_v33  ;;  %v6969_v33 = vld [vmem:[#allocation11 + $0x428] sm:$0xff] }
 0x54e   : > { %11639 = vmatpush3.msra.mxu0 %v6799_v27  ;;  %11596 = vmatprep.subr.mxu1 %v6620_v32  ;;  %v6967_v27 = vld [vmem:[#allocation11 + $0x418] sm:$0xff]  ;;  %v6965_v7 = vld [vmem:[#allocation11 + $0x408] sm:$0xff] }
 0x54f   : > { %11640 = vmatprep.subr.mxu0 %v6798_v35  ;;  %11597 = vmatpush3.msra.mxu1 %v6620_v32  ;;  %v6964_v32 = vld [vmem:[#allocation11 + $0x400] sm:$0xff] }
 0x550   : > { %11641 = vmatpush3.msra.mxu0 %v6798_v35  ;;  %11541 = vmatmul.mubr.f32.gmra.mxu1 %v12512_v29  ;;  %v12535_v35 = vld [vmem:[#allocation2 + $0x22] ss:$8 sps:$4 sm:$0xff]   ;;  %v12536_v29 = vld [vmem:[#allocation2 + $0x32] ss:$8 sps:$4 sm:$0xff]  }
 0x551   : > { %11585 = vmatmul.mubr.f32.gmra.mxu0 %v12513_v44  ;;  %11598 = vmatprep.subr.mxu1 %v6619_v42  ;;  %v12538_v44 = vld [vmem:[#allocation2 + $0x52] ss:$8 sps:$4 sm:$0xff]  }
 0x552   : > { %11642 = vmatprep.subr.mxu0 %v6797_v38  ;;  %11543 = vmatprep.mubr.f32.mxu1 %v12514_v48  ;;  %v12540_v48 = vld [vmem:[#allocation2 + $0x72] ss:$8 sps:$4 sm:$0xff]  }
 0x553   : > { %11587 = vmatprep.mubr.f32.mxu0 %v12515_v41  ;;  %11599 = vmatpush3.msra.mxu1 %v6619_v42  ;;  %v12537_v42 = vld [vmem:[#allocation2 + $0x42] ss:$8 sps:$4 sm:$0xff]  }
 0x554   : > { %11643 = vmatpush3.msra.mxu0 %v6797_v38  ;;  %11600 = vmatprep.subr.mxu1 %v6618_v39  ;;  %v12539_v38 = vld [vmem:[#allocation2 + $0x62] ss:$8 sps:$4 sm:$0xff]  }
 0x555   : > { %11644 = vmatprep.subr.mxu0 %v6796_v28  ;;  %11601 = vmatpush3.msra.mxu1 %v6618_v39  ;;  %v12541_v41 = vld [vmem:[#allocation2 + $0x82] ss:$8 sps:$4 sm:$0xff]  }
 0x556   : > { %11645 = vmatpush3.msra.mxu0 %v6796_v28  ;;  %11544 = vmatmul.mubr.f32.gmra.mxu1 %v12516_v20  ;;  %v7268_v39 = vld [vmem:[#allocation12 + $0xf8] sm:$0xff]  ;;  %v7267_v20 = vld [vmem:[#allocation12 + $0xf0] sm:$0xff] }
 0x557   : > { %11588 = vmatmul.mubr.f32.gmra.mxu0 %v12517_v47  ;;  %11602 = vmatprep.subr.mxu1 %v6617_v46  ;;  %v7235_v28 = vld [vmem:[#allocation12 + $0x78] sm:$0xff]  ;;  %v7266_v47 = vld [vmem:[#allocation12 + $0xe8] sm:$0xff] }
 0x558   : > { %11646 = vmatprep.subr.mxu0 %v6795_v50  ;;  %11603 = vmatpush3.msra.mxu1 %v6617_v46  ;;  %v7234_v46 = vld [vmem:[#allocation12 + $0x70] sm:$0xff] }
 0x559   : > { %11622 = vmatprep.mubr.f32.mxu1 %v12518_v36  ;;  %11647 = vmatpush3.msra.mxu0 %v6795_v50  ;;  %v7233_v50 = vld [vmem:[#allocation12 + $0x68] sm:$0xff]  ;;  %v7265_v36 = vld [vmem:[#allocation12 + $0xe0] sm:$0xff] }
 0x55a   : > { %11666 = vmatprep.mubr.f32.mxu0 %v12519_v53  ;;  %11604 = vmatprep.subr.mxu1 %v6616_v51  ;;  %v7264_v53 = vld [vmem:[#allocation12 + $0xd8] sm:$0xff] }
 0x55b   : > { %11648 = vmatprep.subr.mxu0 %v6794_v55  ;;  %11605 = vmatpush3.msra.mxu1 %v6616_v51  ;;  %v7232_v51 = vld [vmem:[#allocation12 + $0x60] sm:$0xff] }
 0x55c   : > { %11649 = vmatpush3.msra.mxu0 %v6794_v55  ;;  %11606 = vmatprep.subr.mxu1 %v6615_v58  ;;  %v7231_v55 = vld [vmem:[#allocation12 + $0x58] sm:$0xff] }
 0x55d   : > { %11650 = vmatprep.subr.mxu0 %v6793_v59  ;;  %11607 = vmatpush3.msra.mxu1 %v6615_v58  ;;  %v7263_v58 = vld [vmem:[#allocation12 + $0xd0] sm:$0xff] }
 0x55e   : > { %11651 = vmatpush3.msra.mxu0 %v6793_v59  ;;  %11608 = vmatprep.subr.mxu1 %v6614_v56  ;;  %v7230_v59 = vld [vmem:[#allocation12 + $0x50] sm:$0xff] }
 0x55f   : > { %11652 = vmatprep.subr.mxu0 %v6792_v60  ;;  %11609 = vmatpush3.msra.mxu1 %v6614_v56 }
 0x560   : > { %11653 = vmatpush3.msra.mxu0 %v6792_v60  ;;  %11610 = vmatprep.subr.mxu1 %v6613_v4  ;;  %v7262_v60 = vld [vmem:[#allocation12 + $0xc8] sm:$0xff] }
 0x561   : > { %11654 = vmatprep.subr.mxu0 %v6791_v16  ;;  %11611 = vmatpush3.msra.mxu1 %v6613_v4  ;;  %v7229_v4 = vld [vmem:[#allocation12 + $0x48] sm:$0xff] }
 0x562   : > { %11655 = vmatpush3.msra.mxu0 %v6791_v16  ;;  %11612 = vmatprep.subr.mxu1 %v6612_v9 }
 0x563   : > { %11656 = vmatprep.subr.mxu0 %v6790_v43  ;;  %11613 = vmatpush3.msra.mxu1 %v6612_v9  ;;  %v7261_v9 = vld [vmem:[#allocation12 + $0xc0] sm:$0xff] }
 0x564   : > { %11657 = vmatpush3.msra.mxu0 %v6790_v43  ;;  %11614 = vmatprep.subr.mxu1 %v6611_v24  ;;  %v7228_v43 = vld [vmem:[#allocation12 + $0x40] sm:$0xff] }
 0x565   : > { %11658 = vmatprep.subr.mxu0 %v6789_v57  ;;  %11615 = vmatpush3.msra.mxu1 %v6611_v24  ;;  %v7260_v24 = vld [vmem:[#allocation12 + $0xb8] sm:$0xff] }
 0x566   : > { %11659 = vmatpush3.msra.mxu0 %v6789_v57  ;;  %11616 = vmatprep.subr.mxu1 %v6610_v26  ;;  %v7227_v57 = vld [vmem:[#allocation12 + $0x38] sm:$0xff] }
 0x567   : > { %11660 = vmatprep.subr.mxu0 %v6788_v49  ;;  %11617 = vmatpush3.msra.mxu1 %v6610_v26 }
 0x568   : > { %11661 = vmatpush3.msra.mxu0 %v6788_v49  ;;  %11618 = vmatprep.subr.mxu1 %v6609_v12  ;;  %v7259_v49 = vld [vmem:[#allocation12 + $0xb0] sm:$0xff] }
 0x569   : > { %11662 = vmatprep.subr.mxu0 %v6787_v2  ;;  %11619 = vmatpush3.msra.mxu1 %v6609_v12  ;;  %v7226_v12 = vld [vmem:[#allocation12 + $0x30] sm:$0xff] }
 0x56a   : > { %11663 = vmatpush3.msra.mxu0 %v6787_v2  ;;  %11620 = vmatprep.subr.mxu1 %v6608_v11  ;;  %v7258_v2 = vld [vmem:[#allocation12 + $0xa8] sm:$0xff] }
 0x56b   : > { %11664 = vmatprep.subr.mxu0 %v6786_v22  ;;  %11621 = vmatpush3.msra.mxu1 %v6608_v11  ;;  %v7225_v11 = vld [vmem:[#allocation12 + $0x28] sm:$0xff] }
 0x56c   : > { %11665 = vmatpush3.msra.mxu0 %v6786_v22  ;;  %11623 = vmatmul.mubr.f32.vlgmr.msra.gmra.mxu1 %v12520_v5  ;;  %v7257_v5 = vld [vmem:[#allocation12 + $0xa0] sm:$0xff] }
 0x56d   : > { %11667 = vmatmul.mubr.f32.vlgmr.msra.gmra.mxu0 %v12521_v3  ;;  %11678 = vmatprep.subr.mxu1 %v6979_v14 }
 0x56e   : > { %11625 = vmatprep.mubr.f32.mxu1 %v12522_v63  ;;  %11669 = vmatprep.mubr.f32.mxu0 %v12523_v1  ;;  %v7256_v63 = vld [vmem:[#allocation12 + $0x98] sm:$0xff] }
 0x56f   : > { %11679 = vmatpush3.msra.mxu1 %v6979_v14  ;;  %11722 = vmatprep.subr.mxu0 %v7268_v39  ;;  %v7224_v14 = vld [vmem:[#allocation12 + $0x20] sm:$0xff]  ;;  %v7223_v1 = vld [vmem:[#allocation12 + $0x18] sm:$0xff] }
 0x570   : > { %11680 = vmatprep.subr.mxu1 %v6978_v54  ;;  %11626 = vmatmul.mubr.f32.gmra.mxu1 %v12524_v19  ;;  %v7255_v19 = vld [vmem:[#allocation12 + $0x90] sm:$0xff] }
 0x571   : > { %11681 = vmatpush3.msra.mxu1 %v6978_v54  ;;  %11670 = vmatmul.mubr.f32.gmra.mxu0 %v12525_v21  ;;  %v7222_v21 = vld [vmem:[#allocation12 + $0x10] sm:$0xff] }
 0x572   : > { %11682 = vmatprep.subr.mxu1 %v6977_v0  ;;  %11628 = vmatprep.mubr.f32.mxu1 %v12526_v13  ;;  %v7221_v13 = vld [vmem:[#allocation12 + $0x8] sm:$0xff] }
 0x573   : > { %11672 = vmatprep.mubr.f32.mxu0 %v12527_v6  ;;  %11683 = vmatpush3.msra.mxu1 %v6977_v0  ;;  %v7254_v0 = vld [vmem:[#allocation12 + $0x88] sm:$0xff] }
 0x574   : > { %11684 = vmatprep.subr.mxu1 %v6976_v61  ;;  %11629 = vmatmul.mubr.f32.gmra.mxu1 %v12528_v8  ;;  %v7220_v8 = vld [vmem:[#allocation12] sm:$0xff] }
 0x575   : > { %11685 = vmatpush3.msra.mxu1 %v6976_v61  ;;  %11673 = vmatmul.mubr.f32.gmra.mxu0 %v12529_v31  ;;  %v7253_v61 = vld [vmem:[#allocation12 + $0x80] sm:$0xff] }
 0x576   : > { %11686 = vmatprep.subr.mxu1 %v6975_v37  ;;  %11631 = vmatprep.mubr.f32.mxu1 %v12530_v62  ;;  %v13354_v62 = vld [vmem:[#allocation12 + $0x1f8] sm:$0xff] }
 0x577   : > { %11675 = vmatprep.mubr.f32.mxu0 %v12531_v18  ;;  %11687 = vmatpush3.msra.mxu1 %v6975_v37  ;;  %v13352_v37 = vld [vmem:[#allocation12 + $0x178] sm:$0xff]  ;;  %13585 = vst [vmem:[#allocation22_spill] sm:$0xff] %v13354_v62 }
 0x578   : > { %11688 = vmatprep.subr.mxu1 %v6974_v45  ;;  %11632 = vmatmul.mubr.f32.gmra.mxu1 %v12532_v15  ;;  %13584 = vst [vmem:[#allocation25_spill] sm:$0xff] %v13352_v37 }
 0x579   : > { %11689 = vmatpush3.msra.mxu1 %v6974_v45  ;;  %11676 = vmatmul.mubr.f32.gmra.mxu0 %v12533_v52 }
 0x57a   : > { %11690 = vmatprep.subr.mxu1 %v6973_v34  ;;  %11710 = vmatprep.mubr.f32.mxu1 %v12534_v30 }
 0x57b   : > { %11691 = vmatpush3.msra.mxu1 %v6973_v34  ;;  %11723 = vmatpush3.msra.mxu0 %v7268_v39 }
 0x57c   : > { %11692 = vmatprep.subr.mxu1 %v6972_v17  ;;  %11724 = vmatprep.subr.mxu0 %v7267_v20 }
 0x57d   : > { %11693 = vmatpush3.msra.mxu1 %v6972_v17  ;;  %11725 = vmatpush3.msra.mxu0 %v7267_v20 }
 0x57e   : > { %11694 = vmatprep.subr.mxu1 %v6971_v23  ;;  %11726 = vmatprep.subr.mxu0 %v7266_v47 }
 0x57f   : > { %11695 = vmatpush3.msra.mxu1 %v6971_v23  ;;  %11727 = vmatpush3.msra.mxu0 %v7266_v47 }
 0x580   : > { %11696 = vmatprep.subr.mxu1 %v6970_v25  ;;  %11728 = vmatprep.subr.mxu0 %v7265_v36 }
 0x581   : > { %11697 = vmatpush3.msra.mxu1 %v6970_v25  ;;  %11729 = vmatpush3.msra.mxu0 %v7265_v36 }
 0x582   : > { %11698 = vmatprep.subr.mxu1 %v6969_v33  ;;  %11730 = vmatprep.subr.mxu0 %v7264_v53 }
 0x583   : > { %11699 = vmatpush3.msra.mxu1 %v6969_v33  ;;  %11731 = vmatpush3.msra.mxu0 %v7264_v53 }
 0x584   : > { %11700 = vmatprep.subr.mxu1 %v6968_v10  ;;  %11732 = vmatprep.subr.mxu0 %v7263_v58 }
 0x585   : > { %11701 = vmatpush3.msra.mxu1 %v6968_v10  ;;  %11733 = vmatpush3.msra.mxu0 %v7263_v58 }
 0x586   : > { %11702 = vmatprep.subr.mxu1 %v6967_v27  ;;  %11734 = vmatprep.subr.mxu0 %v7262_v60 }
 0x587   : > { %11703 = vmatpush3.msra.mxu1 %v6967_v27  ;;  %11735 = vmatpush3.msra.mxu0 %v7262_v60 }
 0x588   : > { %11704 = vmatprep.subr.mxu1 %v6966_v40  ;;  %11736 = vmatprep.subr.mxu0 %v7261_v9 }
 0x589   : > { %11705 = vmatpush3.msra.mxu1 %v6966_v40  ;;  %11737 = vmatpush3.msra.mxu0 %v7261_v9 }
 0x58a   : > { %11706 = vmatprep.subr.mxu1 %v6965_v7  ;;  %11738 = vmatprep.subr.mxu0 %v7260_v24 }
 0x58b   : > { %11707 = vmatpush3.msra.mxu1 %v6965_v7  ;;  %11739 = vmatpush3.msra.mxu0 %v7260_v24 }
 0x58c   : > { %11708 = vmatprep.subr.mxu1 %v6964_v32  ;;  %11740 = vmatprep.subr.mxu0 %v7259_v49 }
 0x58d   : > { %11709 = vmatpush3.msra.mxu1 %v6964_v32  ;;  %11741 = vmatpush3.msra.mxu0 %v7259_v49 }
 0x58e   : > { %11711 = vmatmul.mubr.f32.vlgmr.msra.gmra.mxu1 %v12535_v35  ;;  %11766 = vmatprep.subr.mxu1 %v7235_v28 }
 0x58f   : > { %11713 = vmatprep.mubr.f32.mxu1 %v12536_v29  ;;  %11767 = vmatpush3.msra.mxu1 %v7235_v28 }
 0x590   : > { %11768 = vmatprep.subr.mxu1 %v7234_v46  ;;  %11742 = vmatprep.subr.mxu0 %v7258_v2 }
 0x591   : > { %11769 = vmatpush3.msra.mxu1 %v7234_v46  ;;  %11743 = vmatpush3.msra.mxu0 %v7258_v2 }
 0x592   : > { %11714 = vmatmul.mubr.f32.gmra.mxu1 %v12537_v42  ;;  %11770 = vmatprep.subr.mxu1 %v7233_v50 }
 0x593   : > { %11716 = vmatprep.mubr.f32.mxu1 %v12538_v44  ;;  %11771 = vmatpush3.msra.mxu1 %v7233_v50 }
 0x594   : > { %11772 = vmatprep.subr.mxu1 %v7232_v51  ;;  %11744 = vmatprep.subr.mxu0 %v7257_v5 }
 0x595   : > { %11773 = vmatpush3.msra.mxu1 %v7232_v51  ;;  %11745 = vmatpush3.msra.mxu0 %v7257_v5 }
 0x596   : > { %11717 = vmatmul.mubr.f32.gmra.mxu1 %v12539_v38  ;;  %11774 = vmatprep.subr.mxu1 %v7231_v55 }
 0x597   : > { %11719 = vmatprep.mubr.f32.mxu1 %v12540_v48  ;;  %11775 = vmatpush3.msra.mxu1 %v7231_v55 }
 0x598   : > { %11776 = vmatprep.subr.mxu1 %v7230_v59  ;;  %11746 = vmatprep.subr.mxu0 %v7256_v63 }
 0x599   : > { %11777 = vmatpush3.msra.mxu1 %v7230_v59  ;;  %11747 = vmatpush3.msra.mxu0 %v7256_v63 }
 0x59a   : > { %11720 = vmatmul.mubr.f32.gmra.mxu1 %v12541_v41  ;;  %11778 = vmatprep.subr.mxu1 %v7229_v4 }
 0x59b   : > { %11779 = vmatpush3.msra.mxu1 %v7229_v4  ;;  %11748 = vmatprep.subr.mxu0 %v7255_v19 }
 0x59c   : > { %11780 = vmatprep.subr.mxu1 %v7228_v43  ;;  %11749 = vmatpush3.msra.mxu0 %v7255_v19 }
 0x59d   : > { %11781 = vmatpush3.msra.mxu1 %v7228_v43  ;;  %11750 = vmatprep.subr.mxu0 %v7254_v0 }
 0x59e   : > { %11782 = vmatprep.subr.mxu1 %v7227_v57  ;;  %11751 = vmatpush3.msra.mxu0 %v7254_v0 }
 0x59f   : > { %11783 = vmatpush3.msra.mxu1 %v7227_v57  ;;  %11752 = vmatprep.subr.mxu0 %v7253_v61 }
 0x5a0   : > { %11784 = vmatprep.subr.mxu1 %v7226_v12  ;;  %11753 = vmatpush3.msra.mxu0 %v7253_v61 }
 0x5a1   : > { %11785 = vmatpush3.msra.mxu1 %v7226_v12  ;;  %11810 = vmatprep.subr.mxu0 %v13352_v37 }
 0x5a2   : > { %11786 = vmatprep.subr.mxu1 %v7225_v11 }
 0x5a3   : > { %11787 = vmatpush3.msra.mxu1 %v7225_v11 }
 0x5a4   : > { %11788 = vmatprep.subr.mxu1 %v7224_v14 }
 0x5a5   : > { %11789 = vmatpush3.msra.mxu1 %v7224_v14 }
 0x5a6   : > { %11790 = vmatprep.subr.mxu1 %v7223_v1 }
 0x5a7   : > { %11791 = vmatpush3.msra.mxu1 %v7223_v1 }
 0x5a8   : > { %11792 = vmatprep.subr.mxu1 %v7222_v21 }
 0x5a9   : > { %11793 = vmatpush3.msra.mxu1 %v7222_v21 }
 0x5aa   : > { %11794 = vmatprep.subr.mxu1 %v7221_v13 }
 0x5ab   : > { %11795 = vmatpush3.msra.mxu1 %v7221_v13 }
 0x5ac   : > { %11796 = vmatprep.subr.mxu1 %v7220_v8 }
 0x5ad   : > { %11797 = vmatpush3.msra.mxu1 %v7220_v8 }
 0x5ae   : > { %11854 = vmatprep.subr.mxu1 %v13354_v62 }
 0x5b5   : > { %v13338_v56 = vpop.f32.mrf.mxu1 }
 0x5b6   : > { %v13346_v3 = vpop.f32.mrf.mxu0 }
 0x5b7   : > { %v13340_v16 = vpop.f32.mrf.mxu1  ;;  %v5846_v2 = vadd.f32 %v13346_v3, %v13338_v56 }
 0x5b8   : > { %v5840_v6 = vpop.f32.mrf.mxu0 }
 0x5b9   : > { %v5841_v5 = vadd.f32 %v5840_v6, %v13340_v16 }
 0x5bb   : > { %v13342_v26 = vpop.f32.mrf.mxu1 }
 0x5bc   : > { %v11407_v18 = vpop.f32.mrf.mxu0 }
 0x5bd   : > { %v13344_v22 = vpop.f32.mrf.mxu1  ;;  %v5856_v1 = vadd.f32 %v11407_v18, %v13342_v26 }
 0x5be   : > { %v5850_v15 = vpop.f32.mrf.mxu0 }
 0x5bf   : > { %v5851_v8 = vadd.f32 %v5850_v15, %v13344_v22 }
 0x5c1   : > { %v13348_v54 = vpop.f32.mrf.mxu1 }
 0x5c2   : > { %v11410_v30 = vpop.f32.mrf.mxu0 }
 0x5c3   : > { %v13350_v31 = vpop.f32.mrf.mxu1  ;;  %v5866_v62 = vadd.f32 %v11410_v30, %v13348_v54 }
 0x5c4   : > { %v5860_v23 = vpop.f32.mrf.mxu0 }
 0x5c5   : > { %v5861_v3 = vadd.f32 %v5860_v23, %v13350_v31 }
 0x5c7   : > { %v13356_v45 = vpop.f32.mrf.mxu1 }
 0x5c8   : > { %v11413_v33 = vpop.f32.mrf.mxu0 }
 0x5c9   : > { %v13360_v52 = vpop.f32.mrf.mxu1  ;;  %v5876_v26 = vadd.f32 %v11413_v33, %v13356_v45 }
 0x5ca   : > { %v13362_v27 = vpop.f32.mrf.mxu0 }
 0x5cb   : > { %v5871_v31 = vadd.f32 %v13362_v27, %v13360_v52  ;;  %v13388_v52 = vld [vmem:[%s13513_s8] ss:$0 sm:$0xff] }
 0x5dc   : > { %v11448_v34 = vpop.f32.mrf.mxu1 }
 0x5dd   : > { %v11492_v40 = vpop.f32.mrf.mxu0  ;;  %v6050_v14 = vadd.f32 %v11448_v34, %v5846_v2 }
 0x5de   : > { %v6010_v17 = vpop.f32.mrf.mxu1 }
 0x5df   : > { %v6188_v32 = vpop.f32.mrf.mxu0  ;;  %v6049_v19 = vadd.f32 %v6010_v17, %v5841_v5  ;;  %v6228_v13 = vadd.f32 %v11492_v40, %v6050_v14 }
 0x5e1   : > { %v6227_v37 = vadd.f32 %v6188_v32, %v6049_v19 }
 0x5e2   : > { %v11451_v25 = vpop.f32.mrf.mxu1 }
 0x5e3   : > { %v11495_v29 = vpop.f32.mrf.mxu0  ;;  %v6052_v61 = vadd.f32 %v11451_v25, %v5856_v1 }
 0x5e4   : > { %v6020_v10 = vpop.f32.mrf.mxu1 }
 0x5e5   : > { %v6198_v44 = vpop.f32.mrf.mxu0  ;;  %v6051_v16 = vadd.f32 %v6020_v10, %v5851_v8  ;;  %v6230_v2 = vadd.f32 %v11495_v29, %v6052_v61 }
 0x5e7   : > { %v6229_v5 = vadd.f32 %v6198_v44, %v6051_v16 }
 0x5e8   : > { %v11454_v7 = vpop.f32.mrf.mxu1 }
 0x5e9   : > { %v11498_v41 = vpop.f32.mrf.mxu0  ;;  %v6054_v6 = vadd.f32 %v11454_v7, %v5866_v62 }
 0x5ea   : > { %v6030_v35 = vpop.f32.mrf.mxu1 }
 0x5eb   : > { %v6208_v28 = vpop.f32.mrf.mxu0  ;;  %v6053_v18 = vadd.f32 %v6030_v35, %v5861_v3  ;;  %v6232_v22 = vadd.f32 %v11498_v41, %v6054_v6 }
 0x5ed   : > { %v6231_v23 = vadd.f32 %v6208_v28, %v6053_v18 }
 0x5ee   : > { %v11457_v42 = vpop.f32.mrf.mxu1 }
 0x5ef   : > { %v11501_v46 = vpop.f32.mrf.mxu0  ;;  %v6056_v15 = vadd.f32 %v11457_v42, %v5876_v26 }
 0x5f0   : > { %v13364_v38 = vpop.f32.mrf.mxu1 }
 0x5f1   : > { %v13366_v50 = vpop.f32.mrf.mxu0  ;;  %v6234_v45 = vadd.f32 %v11501_v46, %v6056_v15  ;;  %v6055_v33 = vadd.f32 %v13364_v38, %v5871_v31 }
 0x5f3   : > { %v6233_v46 = vadd.f32 %v13366_v50, %v6055_v33 }
 0x604   : > { %v11536_v48 = vpop.f32.mrf.mxu1 }
 0x605   : > { %v11580_v36 = vpop.f32.mrf.mxu0 }
 0x606   : > { %v6366_v39 = vpop.f32.mrf.mxu1 }
 0x607   : > { %v6544_v53 = vpop.f32.mrf.mxu0 }
 0x60a   : > { %v11539_v20 = vpop.f32.mrf.mxu1 }
 0x60b   : > { %v11583_v58 = vpop.f32.mrf.mxu0  ;;  %v6408_v40 = vadd.f32 %v11539_v20, %v6230_v2 }
 0x60c   : > { %v6376_v47 = vpop.f32.mrf.mxu1 }
 0x60d   : > { %v6554_v60 = vpop.f32.mrf.mxu0  ;;  %v6407_v62 = vadd.f32 %v6376_v47, %v6229_v5  ;;  %v6586_v7 = vadd.f32 %v11583_v58, %v6408_v40 }
 0x60f   : > { %v6585_v42 = vadd.f32 %v6554_v60, %v6407_v62 }
 0x610   : > { %v11542_v51 = vpop.f32.mrf.mxu1 }
 0x611   : > { %v11586_v43 = vpop.f32.mrf.mxu0  ;;  %v6410_v10 = vadd.f32 %v11542_v51, %v6232_v22 }
 0x612   : > { %v6386_v55 = vpop.f32.mrf.mxu1 }
 0x613   : > { %v6564_v57 = vpop.f32.mrf.mxu0  ;;  %v6409_v35 = vadd.f32 %v6386_v55, %v6231_v23 }
 0x615   : > { %v6587_v51 = vadd.f32 %v6564_v57, %v6409_v35 }
 0x616   : > { %v11545_v59 = vpop.f32.mrf.mxu1 }
 0x617   : > { %v13370_v12 = vpop.f32.mrf.mxu0  ;;  %v6412_v20 = vadd.f32 %v11545_v59, %v6234_v45 }
 0x618   : > { %v13368_v4 = vpop.f32.mrf.mxu1 }
 0x619   : > { %13586 = vst [vmem:[#allocation23_spill] sm:$0xff] %v13368_v4  ;;  %v13375_v63 = vpop.f32.mrf.mxu0  ;;  %v6406_v4 = vadd.f32 %v11536_v48, %v6228_v13  ;;  %v6590_v59 = vadd.f32 %v13370_v12, %v6412_v20 }
 0x61a   : > { %13587 = vst [vmem:[#allocation21_spill] sm:$0xff] %v13375_v63  ;;  %v6405_v63 = vadd.f32 %v6366_v39, %v6227_v37  ;;  %v6588_v39 = vadd.f32 %v11586_v43, %v6410_v10 }
 0x61b   : > { %v6584_v17 = vadd.f32 %v11580_v36, %v6406_v4 }
 0x61c   : > { %v6583_v30 = vadd.f32 %v6544_v53, %v6405_v63 }
 0x621   : > { %v13589_v12 = vld [vmem:[#allocation21_spill] sm:$0xff] }
 0x62c   : > { %v11624_v9 = vpop.f32.mrf.mxu1 }
 0x62d   : > { %v11668_v21 = vpop.f32.mrf.mxu0  ;;  %v6762_v32 = vadd.f32 %v11624_v9, %v6584_v17  ;;  %v13588_v9 = vld [vmem:[#allocation23_spill] sm:$0xff] }
 0x62e   : > { %v6722_v24 = vpop.f32.mrf.mxu1  ;;  %v6411_v43 = vadd.f32 %v13588_v9, %v6233_v46 }
 0x62f   : > { %v6900_v56 = vpop.f32.mrf.mxu0  ;;  %v6761_v37 = vadd.f32 %v6722_v24, %v6583_v30  ;;  %v6940_v44 = vadd.f32 %v11668_v21, %v6762_v32 }
 0x630   : > { %v11627_v49 = vpop.f32.mrf.mxu1  ;;  %v6589_v8 = vadd.f32 %v13589_v12, %v6411_v43  ;;  %v13590_v43 = vld [vmem:[#allocation25_spill] sm:$0xff] }
 0x631   : > { %v11671_v25 = vpop.f32.mrf.mxu0  ;;  %v6764_v41 = vadd.f32 %v11627_v49, %v6586_v7  ;;  %v6939_v27 = vadd.f32 %v6900_v56, %v6761_v37 }
 0x632   : > { %v6732_v11 = vpop.f32.mrf.mxu1 }
 0x633   : > { %v6910_v29 = vpop.f32.mrf.mxu0  ;;  %v6763_v38 = vadd.f32 %v6732_v11, %v6585_v42  ;;  %v6942_v58 = vadd.f32 %v11671_v25, %v6764_v41 }
 0x634   : > { %v11630_v0 = vpop.f32.mrf.mxu1 }
 0x635   : > { %v11674_v28 = vpop.f32.mrf.mxu0  ;;  %v6766_v53 = vadd.f32 %v11630_v0, %v6588_v39  ;;  %v6941_v57 = vadd.f32 %v6910_v29, %v6763_v38 }
 0x636   : > { %v6742_v34 = vpop.f32.mrf.mxu1 }
 0x637   : > { %v6765_v24 = vadd.f32 %v6742_v34, %v6587_v51  ;;  %v6920_v14 = vpop.f32.mrf.mxu0  ;;  %v6944_v11 = vadd.f32 %v11674_v28, %v6766_v53  ;;  %v7574_v51 = vld [vmem:[#allocation12 + $0x170] sm:$0xff] }
 0x638   : > { %v11633_v54 = vpop.f32.mrf.mxu1 }
 0x639   : > { %v6768_v19 = vadd.f32 %v11633_v54, %v6590_v59  ;;  %v6943_v56 = vadd.f32 %v6920_v14, %v6765_v24  ;;  %v11677_v34 = vpop.f32.mrf.mxu0  ;;  %v7573_v59 = vld [vmem:[#allocation12 + $0x168] sm:$0xff]  ;;  %v13591_v14 = vld [vmem:[#allocation22_spill] sm:$0xff] }
 0x63a   : > { %v6752_v48 = vpop.f32.mrf.mxu1  ;;  %v7751_v24 = vld [vmem:[#allocation12 + $0x1e8] sm:$0xff] }
 0x63b   : > { %v6767_v17 = vadd.f32 %v6752_v48, %v6589_v8  ;;  %v6946_v22 = vadd.f32 %v11677_v34, %v6768_v19  ;;  %v6930_v62 = vpop.f32.mrf.mxu0  ;;  %v7570_v8 = vld [vmem:[#allocation12 + $0x150] sm:$0xff]  ;;  %v7747_v34 = vld [vmem:[#allocation12 + $0x1c8] sm:$0xff] }
 0x63d   : > { %v6945_v29 = vadd.f32 %v6930_v62, %v6767_v17  ;;  %v7746_v17 = vld [vmem:[#allocation12 + $0x1c0] sm:$0xff]  ;;  %v7563_v62 = vld [vmem:[#allocation12 + $0x118] sm:$0xff] }
 0x64e   : > { %v11712_v36 = vpop.f32.mrf.mxu1 }
 0x64f   : > { %v7118_v47 = vadd.f32 %v11712_v36, %v6940_v44 }
 0x650   : > { %v7078_v55 = vpop.f32.mrf.mxu1 }
 0x651   : > { %v7133_v60 = vadd.f32 %v13388_v52, %v7118_v47  ;;  %v7117_v4 = vadd.f32 %v7078_v55, %v6939_v27 }
 0x652   : > { %v11715_v49 = vpop.f32.mrf.mxu1 }
 0x653   : > { %vm7141_vm8 = vcmp.gt.f32.partialorder %v7133_v60, 0.0  ;;  %v7149_v63 = vmul.f32 0.01, %v7133_v60  ;;  %v7132_v1 = vadd.f32 %v13388_v52, %v7117_v4  ;;  %v7120_v50 = vadd.f32 %v11715_v49, %v6942_v58 }
 0x654   : > { %v7088_v21 = vpop.f32.mrf.mxu1 }
 0x655   : > { %v7157_v0 = vsel %vm7141_vm8, %v7133_v60, %v7149_v63  ;;  %vm7140_vm9 = vcmp.gt.f32.partialorder %v7132_v1, 0.0  ;;  %v7148_v13 = vmul.f32 0.01, %v7132_v1  ;;  %v7135_v61 = vadd.f32 %v13388_v52, %v7120_v50  ;;  %v7752_v60 = vld [vmem:[#allocation12 + $0x1f0] sm:$0xff]  ;;  %v7572_v50 = vld [vmem:[#allocation12 + $0x160] sm:$0xff] }
 0x656   : > { %v7173_v3 = vcombine.high %v7157_v0, %v7157_v0  ;;  %7190 = vst [vmem:[#allocation2 + $0x19] sm:$0xf] %v7157_v0  ;;  %v7119_v16 = vadd.f32 %v7088_v21, %v6941_v57  ;;  %v11718_v6 = vpop.f32.mrf.mxu1  ;;  %v7571_v0 = vld [vmem:[#allocation12 + $0x158] sm:$0xff] }
 0x657   : > { %v7156_v2 = vsel %vm7140_vm9, %v7132_v1, %v7148_v13  ;;  %vm7143_vm10 = vcmp.gt.f32.partialorder %v7135_v61, 0.0  ;;  %v7151_v26 = vmul.f32 0.01, %v7135_v61  ;;  %v7122_v18 = vadd.f32 %v11718_v6, %v6944_v11  ;;  %v7750_v11 = vld [vmem:[#allocation12 + $0x1e0] sm:$0xff]  ;;  %v7749_v13 = vld [vmem:[#allocation12 + $0x1d8] sm:$0xff]  ;;  %v7569_v6 = vld [vmem:[#allocation12 + $0x148] sm:$0xff] }
 0x658   : > { %7191 = vst [vmem:[#allocation2 + $0x21] sm:$0xf] %v7173_v3  ;;  %v7172_v40 = vcombine.high %v7156_v2, %v7156_v2  ;;  %7188 = vst [vmem:[#allocation2 + $0x9] sm:$0xf] %v7156_v2  ;;  %v7134_v25 = vadd.f32 %v13388_v52, %v7119_v16  ;;  %v7098_v5 = vpop.f32.mrf.mxu1  ;;  %v7748_v3 = vld [vmem:[#allocation12 + $0x1d0] sm:$0xff] }
 0x659   : > { %v7159_v15 = vsel %vm7143_vm10, %v7135_v61, %v7151_v26  ;;  %v7137_v54 = vadd.f32 %v13388_v52, %v7122_v18  ;;  %v7121_v30 = vadd.f32 %v7098_v5, %v6943_v56  ;;  %v7568_v18 = vld [vmem:[#allocation12 + $0x140] sm:$0xff]  ;;  %v7745_v5 = vld [vmem:[#allocation12 + $0x1b8] sm:$0xff] }
 0x65a   : > { %7189 = vst [vmem:[#allocation2 + $0x11] sm:$0xf] %v7172_v40  ;;  %v7175_v32 = vcombine.high %v7159_v15, %v7159_v15  ;;  %7194 = vst [vmem:[#allocation2 + $0x39] sm:$0xf] %v7159_v15  ;;  %vm7142_vm11 = vcmp.gt.f32.partialorder %v7134_v25, 0.0  ;;  %v11721_v23 = vpop.f32.mrf.mxu1  ;;  %v7567_v40 = vld [vmem:[#allocation12 + $0x138] sm:$0xff] }
 0x65b   : > { %v7150_v31 = vmul.f32 0.01, %v7134_v25  ;;  %vm7145_vm12 = vcmp.gt.f32.partialorder %v7137_v54, 0.0  ;;  %v7153_v10 = vmul.f32 0.01, %v7137_v54  ;;  %v7136_v7 = vadd.f32 %v13388_v52, %v7121_v30  ;;  %v7566_v15 = vld [vmem:[#allocation12 + $0x130] sm:$0xff] }
 0x65c   : > { %v7124_v37 = vadd.f32 %v11721_v23, %v6946_v22  ;;  %7195 = vst [vmem:[#allocation2 + $0x41] sm:$0xf] %v7175_v32  ;;  %v7108_v33 = vpop.f32.mrf.mxu1  ;;  %v7565_v30 = vld [vmem:[#allocation12 + $0x128] sm:$0xff]  ;;  %v7742_v23 = vld [vmem:[#allocation12 + $0x1a0] sm:$0xff] }
 0x65d   : > { %v7158_v45 = vsel %vm7142_vm11, %v7134_v25, %v7150_v31  ;;  %v7161_v48 = vsel %vm7145_vm12, %v7137_v54, %v7153_v10  ;;  %vm7144_vm13 = vcmp.gt.f32.partialorder %v7136_v7, 0.0  ;;  %v7152_v44 = vmul.f32 0.01, %v7136_v7  ;;  %v7744_v54 = vld [vmem:[#allocation12 + $0x1b0] sm:$0xff]  ;;  %v7743_v32 = vld [vmem:[#allocation12 + $0x1a8] sm:$0xff]  ;;  %v7564_v31 = vld [vmem:[#allocation12 + $0x120] sm:$0xff] }
 0x65e   : > { %v7174_v35 = vcombine.high %v7158_v45, %v7158_v45  ;;  %7192 = vst [vmem:[#allocation2 + $0x29] sm:$0xf] %v7158_v45  ;;  %v7177_v41 = vcombine.high %v7161_v48, %v7161_v48  ;;  %7198 = vst [vmem:[#allocation2 + $0x59] sm:$0xf] %v7161_v48  ;;  %v7139_v42 = vadd.f32 %v13388_v52, %v7124_v37  ;;  %v7741_v10 = vld [vmem:[#allocation12 + $0x198] sm:$0xff]  ;;  %v7740_v37 = vld [vmem:[#allocation12 + $0x190] sm:$0xff] }
 0x65f   : > { %v7123_v39 = vadd.f32 %v7108_v33, %v6945_v29  ;;  %v7160_v20 = vsel %vm7144_vm13, %v7136_v7, %v7152_v44  ;;  %v12542_v36 = vld [vmem:[#allocation2 + $0x1] ss:$8 sps:$4 sm:$0xff]   ;;  %v7561_v29 = vld [vmem:[#allocation12 + $0x108] sm:$0xff]  ;;  %v7560_v33 = vld [vmem:[#allocation12 + $0x100] sm:$0xff] }
 0x660   : > { %7193 = vst [vmem:[#allocation2 + $0x31] sm:$0xf] %v7174_v35  ;;  %7199 = vst [vmem:[#allocation2 + $0x61] sm:$0xf] %v7177_v41  ;;  %v7176_v27 = vcombine.high %v7160_v20, %v7160_v20  ;;  %vm7147_vm14 = vcmp.gt.f32.partialorder %v7139_v42, 0.0  ;;  %11754 = vmatprep.mubr.f32.mxu0 %v12542_v36  ;;  %v7562_v7 = vld [vmem:[#allocation12 + $0x110] sm:$0xff] }
 0x661   : > { %7196 = vst [vmem:[#allocation2 + $0x49] sm:$0xf] %v7160_v20  ;;  %v7155_v28 = vmul.f32 0.01, %v7139_v42  ;;  %v7138_v47 = vadd.f32 %v13388_v52, %v7123_v39  ;;  %v12543_v46 = vld [vmem:[#allocation2] ss:$8 sps:$4 sm:$0xff]  }
 0x662   : > { %v12544_v38 = vld [vmem:[#allocation2 + $0x11] ss:$8 sps:$4 sm:$0xff]   ;;  %7197 = vst [vmem:[#allocation2 + $0x51] sm:$0xf] %v7176_v27  ;;  %11798 = vmatprep.mubr.f32.mxu1 %v12543_v46  ;;  %v12558_v25 = vld [vmem:[#allocation2 + $0x2] ss:$8 sps:$4 sm:$0xff]  }
 0x663   : > { %v7163_v53 = vsel %vm7147_vm14, %v7139_v42, %v7155_v28  ;;  %vm7146_vm15 = vcmp.gt.f32.partialorder %v7138_v47, 0.0  ;;  %v7154_v55 = vmul.f32 0.01, %v7138_v47  ;;  %v12545_v58 = vld [vmem:[#allocation2 + $0x10] ss:$8 sps:$4 sm:$0xff]   ;;  %11755 = vmatmul.mubr.f32.vlgmr.msra.gmra.mxu0 %v12544_v38  ;;  %v7931_v48 = vld [vmem:[#allocation12 + $0x278] sm:$0xff] }
 0x664   : > { %v7179_v4 = vcombine.high %v7163_v53, %v7163_v53  ;;  %7202 = vst [vmem:[#allocation2 + $0x79] sm:$0xf] %v7163_v53  ;;  %11799 = vmatmul.mubr.f32.vlgmr.msra.gmra.mxu1 %v12545_v58  ;;  %11811 = vmatpush3.msra.mxu0 %v13590_v43  ;;  %v12559_v22 = vld [vmem:[#allocation2 + $0x8] ss:$8 sps:$4 sm:$0xff]   ;;  %v7739_v45 = vld [vmem:[#allocation12 + $0x188] sm:$0xff]  ;;  %v7930_v39 = vld [vmem:[#allocation12 + $0x270] sm:$0xff] }
 0x665   : > { %v7162_v9 = vsel %vm7146_vm15, %v7138_v47, %v7154_v55  ;;  %v12546_v52 = vld [vmem:[#allocation2 + $0x21] ss:$8 sps:$4 sm:$0xff]   ;;  %11855 = vmatpush3.msra.mxu1 %v13591_v14  ;;  %11812 = vmatprep.subr.mxu0 %v7574_v51  ;;  %v7738_v35 = vld [vmem:[#allocation12 + $0x180] sm:$0xff]  ;;  %v7929_v28 = vld [vmem:[#allocation12 + $0x268] sm:$0xff] }
 0x666   : > { %7203 = vst [vmem:[#allocation2 + $0x81] sm:$0xf] %v7179_v4  ;;  %v7178_v49 = vcombine.high %v7162_v9, %v7162_v9  ;;  %7200 = vst [vmem:[#allocation2 + $0x69] sm:$0xf] %v7162_v9  ;;  %v12547_v63 = vld [vmem:[#allocation2 + $0x20] ss:$8 sps:$4 sm:$0xff]   ;;  %11856 = vmatprep.subr.mxu1 %v7752_v60  ;;  %11757 = vmatprep.mubr.f32.mxu0 %v12546_v52 }
 0x667   : > { %v12548_v1 = vld [vmem:[#allocation2 + $0x31] ss:$8 sps:$4 sm:$0xff]   ;;  %11801 = vmatprep.mubr.f32.mxu1 %v12547_v63  ;;  %11813 = vmatpush3.msra.mxu0 %v7574_v51  ;;  %v8109_v44 = vld [vmem:[#allocation12 + $0x2f8] sm:$0xff]  ;;  %v8108_v36 = vld [vmem:[#allocation12 + $0x2f0] sm:$0xff] }
 0x668   : > { %7201 = vst [vmem:[#allocation2 + $0x71] sm:$0xf] %v7178_v49  ;;  %v12549_v57 = vld [vmem:[#allocation2 + $0x30] ss:$8 sps:$4 sm:$0xff]   ;;  %11857 = vmatpush3.msra.mxu1 %v7752_v60  ;;  %11814 = vmatprep.subr.mxu0 %v7573_v59  ;;  %v12550_v19 = vld [vmem:[#allocation2 + $0x41] ss:$8 sps:$4 sm:$0xff]  }
 0x669   : > { %11858 = vmatprep.subr.mxu1 %v7751_v24  ;;  %11758 = vmatmul.mubr.f32.gmra.mxu0 %v12548_v1  ;;  %v12551_v21 = vld [vmem:[#allocation2 + $0x40] ss:$8 sps:$4 sm:$0xff]   ;;  %v12552_v61 = vld [vmem:[#allocation2 + $0x51] ss:$8 sps:$4 sm:$0xff]  }
 0x66a   : > { %11802 = vmatmul.mubr.f32.gmra.mxu1 %v12549_v57  ;;  %11815 = vmatpush3.msra.mxu0 %v7573_v59  ;;  %v12553_v12 = vld [vmem:[#allocation2 + $0x50] ss:$8 sps:$4 sm:$0xff]   ;;  %v12562_v20 = vld [vmem:[#allocation2 + $0x22] ss:$8 sps:$4 sm:$0xff]  }
 0x66b   : > { %11859 = vmatpush3.msra.mxu1 %v7751_v24  ;;  %11816 = vmatprep.subr.mxu0 %v7572_v50  ;;  %v12560_v41 = vld [vmem:[#allocation2 + $0x12] ss:$8 sps:$4 sm:$0xff]   ;;  %v12566_v53 = vld [vmem:[#allocation2 + $0x42] ss:$8 sps:$4 sm:$0xff]  }
 0x66c   : > { %11860 = vmatprep.subr.mxu1 %v7750_v11  ;;  %11760 = vmatprep.mubr.f32.mxu0 %v12550_v19  ;;  %v12561_v42 = vld [vmem:[#allocation2 + $0x18] ss:$8 sps:$4 sm:$0xff]   ;;  %v12563_v27 = vld [vmem:[#allocation2 + $0x28] ss:$8 sps:$4 sm:$0xff]  }
 0x66d   : > { %11804 = vmatprep.mubr.f32.mxu1 %v12551_v21  ;;  %11817 = vmatpush3.msra.mxu0 %v7572_v50  ;;  %v12554_v56 = vld [vmem:[#allocation2 + $0x61] ss:$8 sps:$4 sm:$0xff]   ;;  %v8107_v47 = vld [vmem:[#allocation12 + $0x2e8] sm:$0xff]  ;;  %v7928_v38 = vld [vmem:[#allocation12 + $0x260] sm:$0xff] }
 0x66e   : > { %11861 = vmatpush3.msra.mxu1 %v7750_v11  ;;  %11818 = vmatprep.subr.mxu0 %v7571_v0  ;;  %v12555_v16 = vld [vmem:[#allocation2 + $0x60] ss:$8 sps:$4 sm:$0xff]   ;;  %v12564_v46 = vld [vmem:[#allocation2 + $0x32] ss:$8 sps:$4 sm:$0xff]  }
 0x66f   : > { %11862 = vmatprep.subr.mxu1 %v7749_v13  ;;  %11761 = vmatmul.mubr.f32.gmra.mxu0 %v12552_v61  ;;  %v12556_v2 = vld [vmem:[#allocation2 + $0x71] ss:$8 sps:$4 sm:$0xff]   ;;  %v7927_v60 = vld [vmem:[#allocation12 + $0x258] sm:$0xff]  ;;  %v7926_v43 = vld [vmem:[#allocation12 + $0x250] sm:$0xff] }
 0x670   : > { %11805 = vmatmul.mubr.f32.gmra.mxu1 %v12553_v12  ;;  %11819 = vmatpush3.msra.mxu0 %v7571_v0  ;;  %v12557_v26 = vld [vmem:[#allocation2 + $0x70] ss:$8 sps:$4 sm:$0xff]   ;;  %v8105_v4 = vld [vmem:[#allocation12 + $0x2d8] sm:$0xff]  ;;  %v8104_v49 = vld [vmem:[#allocation12 + $0x2d0] sm:$0xff] }
 0x671   : > { %11863 = vmatpush3.msra.mxu1 %v7749_v13  ;;  %11820 = vmatprep.subr.mxu0 %v7570_v8  ;;  %v12565_v51 = vld [vmem:[#allocation2 + $0x38] ss:$8 sps:$4 sm:$0xff]   ;;  %v8106_v55 = vld [vmem:[#allocation12 + $0x2e0] sm:$0xff]  ;;  %v7923_v0 = vld [vmem:[#allocation12 + $0x238] sm:$0xff] }
 0x672   : > { %11864 = vmatprep.subr.mxu1 %v7748_v3  ;;  %11763 = vmatprep.mubr.f32.mxu0 %v12554_v56  ;;  %v12567_v58 = vld [vmem:[#allocation2 + $0x48] ss:$8 sps:$4 sm:$0xff]   ;;  %v12569_v9 = vld [vmem:[#allocation2 + $0x58] ss:$8 sps:$4 sm:$0xff]  }
 0x673   : > { %11807 = vmatprep.mubr.f32.mxu1 %v12555_v16  ;;  %11821 = vmatpush3.msra.mxu0 %v7570_v8  ;;  %v12568_v59 = vld [vmem:[#allocation2 + $0x52] ss:$8 sps:$4 sm:$0xff]   ;;  %v12570_v52 = vld [vmem:[#allocation2 + $0x62] ss:$8 sps:$4 sm:$0xff]  }
 0x674   : > { %11865 = vmatpush3.msra.mxu1 %v7748_v3  ;;  %11822 = vmatprep.subr.mxu0 %v7569_v6  ;;  %v12571_v24 = vld [vmem:[#allocation2 + $0x68] ss:$8 sps:$4 sm:$0xff]   ;;  %v7925_v14 = vld [vmem:[#allocation12 + $0x248] sm:$0xff]  ;;  %v7922_v61 = vld [vmem:[#allocation12 + $0x230] sm:$0xff] }
 0x675   : > { %11866 = vmatprep.subr.mxu1 %v7747_v34  ;;  %11764 = vmatmul.mubr.f32.gmra.mxu0 %v12556_v2  ;;  %v12572_v63 = vld [vmem:[#allocation2 + $0x72] ss:$8 sps:$4 sm:$0xff]   ;;  %v8101_v13 = vld [vmem:[#allocation12 + $0x2b8] sm:$0xff]  ;;  %v8100_v12 = vld [vmem:[#allocation12 + $0x2b0] sm:$0xff] }
 0x676   : > { %11808 = vmatmul.mubr.f32.gmra.mxu1 %v12557_v26  ;;  %11823 = vmatpush3.msra.mxu0 %v7569_v6  ;;  %v8103_v1 = vld [vmem:[#allocation12 + $0x2c8] sm:$0xff]  ;;  %v7924_v57 = vld [vmem:[#allocation12 + $0x240] sm:$0xff]  ;;  %v7919_v6 = vld [vmem:[#allocation12 + $0x218] sm:$0xff] }
 0x677   : > { %11867 = vmatpush3.msra.mxu1 %v7747_v34  ;;  %11824 = vmatprep.subr.mxu0 %v7568_v18  ;;  %v12573_v50 = vld [vmem:[#allocation2 + $0x78] ss:$8 sps:$4 sm:$0xff]   ;;  %v12574_v11 = vld [vmem:[#allocation2 + $0x9] ss:$8 sps:$4 sm:$0xff]  }
 0x678   : > { %11842 = vmatprep.mubr.f32.mxu0 %v12558_v25  ;;  %11868 = vmatprep.subr.mxu1 %v7746_v17  ;;  %v12575_v19 = vld [vmem:[#allocation2 + $0xa] ss:$8 sps:$4 sm:$0xff]   ;;  %v7921_v8 = vld [vmem:[#allocation12 + $0x228] sm:$0xff]  ;;  %v7918_v2 = vld [vmem:[#allocation12 + $0x210] sm:$0xff] }
 0x679   : > { %11886 = vmatprep.mubr.f32.mxu1 %v12559_v22  ;;  %11825 = vmatpush3.msra.mxu0 %v7568_v18  ;;  %v8102_v21 = vld [vmem:[#allocation12 + $0x2c0] sm:$0xff]  ;;  %v8099_v56 = vld [vmem:[#allocation12 + $0x2a8] sm:$0xff]  ;;  %v8097_v34 = vld [vmem:[#allocation12 + $0x298] sm:$0xff] }
 0x67a   : > { %11869 = vmatpush3.msra.mxu1 %v7746_v17  ;;  %11826 = vmatprep.subr.mxu0 %v7567_v40  ;;  %v7920_v3 = vld [vmem:[#allocation12 + $0x220] sm:$0xff]  ;;  %v8096_v26 = vld [vmem:[#allocation12 + $0x290] sm:$0xff]  ;;  %v7917_v18 = vld [vmem:[#allocation12 + $0x208] sm:$0xff] }
 0x67b   : > { %11870 = vmatprep.subr.mxu1 %v7745_v5  ;;  %11827 = vmatpush3.msra.mxu0 %v7567_v40  ;;  %v8098_v16 = vld [vmem:[#allocation12 + $0x2a0] sm:$0xff]  ;;  %v8095_v17 = vld [vmem:[#allocation12 + $0x288] sm:$0xff]  ;;  %v8287_v22 = vld [vmem:[#allocation12 + $0x378] sm:$0xff] }
 0x67c   : > { %11871 = vmatpush3.msra.mxu1 %v7745_v5  ;;  %11828 = vmatprep.subr.mxu0 %v7566_v15  ;;  %v7916_v40 = vld [vmem:[#allocation12 + $0x200] sm:$0xff]  ;;  %v12576_v5 = vld [vmem:[#allocation2 + $0x19] ss:$8 sps:$4 sm:$0xff]  }
 0x67d   : > { %11872 = vmatprep.subr.mxu1 %v7744_v54  ;;  %11829 = vmatpush3.msra.mxu0 %v7566_v15  ;;  %v8094_v25 = vld [vmem:[#allocation12 + $0x280] sm:$0xff]  ;;  %v12577_v15 = vld [vmem:[#allocation2 + $0x1a] ss:$8 sps:$4 sm:$0xff]  }
 0x67e   : > { %11873 = vmatpush3.msra.mxu1 %v7744_v54  ;;  %11830 = vmatprep.subr.mxu0 %v7565_v30  ;;  %v8465_v54 = vld [vmem:[#allocation12 + $0x3f8] sm:$0xff] }
 0x67f   : > { %11874 = vmatprep.subr.mxu1 %v7743_v32  ;;  %11831 = vmatpush3.msra.mxu0 %v7565_v30  ;;  %v12578_v30 = vld [vmem:[#allocation2 + $0x29] ss:$8 sps:$4 sm:$0xff]  }
 0x680   : > { %11875 = vmatpush3.msra.mxu1 %v7743_v32  ;;  %11832 = vmatprep.subr.mxu0 %v7564_v31  ;;  %v12579_v32 = vld [vmem:[#allocation2 + $0x2a] ss:$8 sps:$4 sm:$0xff]  }
 0x681   : > { %11876 = vmatprep.subr.mxu1 %v7742_v23  ;;  %11833 = vmatpush3.msra.mxu0 %v7564_v31  ;;  %v8286_v31 = vld [vmem:[#allocation12 + $0x370] sm:$0xff] }
 0x682   : > { %11877 = vmatpush3.msra.mxu1 %v7742_v23  ;;  %11834 = vmatprep.subr.mxu0 %v7563_v62  ;;  %v8464_v23 = vld [vmem:[#allocation12 + $0x3f0] sm:$0xff] }
 0x683   : > { %11878 = vmatprep.subr.mxu1 %v7741_v10  ;;  %11835 = vmatpush3.msra.mxu0 %v7563_v62  ;;  %v12580_v62 = vld [vmem:[#allocation2 + $0x39] ss:$8 sps:$4 sm:$0xff]  }
 0x684   : > { %11879 = vmatpush3.msra.mxu1 %v7741_v10  ;;  %11836 = vmatprep.subr.mxu0 %v7562_v7  ;;  %v8285_v10 = vld [vmem:[#allocation12 + $0x368] sm:$0xff] }
 0x685   : > { %11880 = vmatprep.subr.mxu1 %v7740_v37  ;;  %11837 = vmatpush3.msra.mxu0 %v7562_v7  ;;  %v12581_v7 = vld [vmem:[#allocation2 + $0x3a] ss:$8 sps:$4 sm:$0xff]  }
 0x686   : > { %11881 = vmatpush3.msra.mxu1 %v7740_v37  ;;  %11838 = vmatprep.subr.mxu0 %v7561_v29  ;;  %v8463_v37 = vld [vmem:[#allocation12 + $0x3e8] sm:$0xff] }
 0x687   : > { %11882 = vmatprep.subr.mxu1 %v7739_v45  ;;  %11839 = vmatpush3.msra.mxu0 %v7561_v29  ;;  %v12582_v29 = vld [vmem:[#allocation2 + $0x49] ss:$8 sps:$4 sm:$0xff]  }
 0x688   : > { %11883 = vmatpush3.msra.mxu1 %v7739_v45  ;;  %11840 = vmatprep.subr.mxu0 %v7560_v33  ;;  %v12583_v45 = vld [vmem:[#allocation2 + $0x4a] ss:$8 sps:$4 sm:$0xff]  }
 0x689   : > { %11884 = vmatprep.subr.mxu1 %v7738_v35  ;;  %11841 = vmatpush3.msra.mxu0 %v7560_v33  ;;  %v8284_v33 = vld [vmem:[#allocation12 + $0x360] sm:$0xff] }
 0x68a   : > { %11885 = vmatpush3.msra.mxu1 %v7738_v35  ;;  %11843 = vmatmul.mubr.f32.vlgmr.msra.gmra.mxu0 %v12560_v41  ;;  %v8462_v35 = vld [vmem:[#allocation12 + $0x3e0] sm:$0xff]  ;;  %v12585_v41 = vld [vmem:[#allocation2 + $0x5a] ss:$8 sps:$4 sm:$0xff]  }
 0x68b   : > { %11887 = vmatmul.mubr.f32.vlgmr.msra.gmra.mxu1 %v12561_v42  ;;  %11898 = vmatprep.subr.mxu0 %v7931_v48  ;;  %v8461_v42 = vld [vmem:[#allocation12 + $0x3d8] sm:$0xff] }
 0x68c   : > { %11942 = vmatprep.subr.mxu1 %v8109_v44  ;;  %11845 = vmatprep.mubr.f32.mxu0 %v12562_v20  ;;  %v12587_v20 = vld [vmem:[#allocation2 + $0x6a] ss:$8 sps:$4 sm:$0xff]  }
 0x68d   : > { %11889 = vmatprep.mubr.f32.mxu1 %v12563_v27  ;;  %11899 = vmatpush3.msra.mxu0 %v7931_v48  ;;  %v12584_v48 = vld [vmem:[#allocation2 + $0x59] ss:$8 sps:$4 sm:$0xff]  }
 0x68e   : > { %11943 = vmatpush3.msra.mxu1 %v8109_v44  ;;  %11900 = vmatprep.subr.mxu0 %v7930_v39  ;;  %v8283_v44 = vld [vmem:[#allocation12 + $0x358] sm:$0xff]  ;;  %v8460_v27 = vld [vmem:[#allocation12 + $0x3d0] sm:$0xff] }
 0x68f   : > { %11944 = vmatprep.subr.mxu1 %v8108_v36  ;;  %11901 = vmatpush3.msra.mxu0 %v7930_v39  ;;  %v12586_v39 = vld [vmem:[#allocation2 + $0x69] ss:$8 sps:$4 sm:$0xff]  }
 0x690   : > { %11945 = vmatpush3.msra.mxu1 %v8108_v36  ;;  %11846 = vmatmul.mubr.f32.gmra.mxu0 %v12564_v46  ;;  %v8282_v36 = vld [vmem:[#allocation12 + $0x350] sm:$0xff] }
 0x691   : > { %11890 = vmatmul.mubr.f32.gmra.mxu1 %v12565_v51  ;;  %11902 = vmatprep.subr.mxu0 %v7929_v28  ;;  %v12589_v46 = vld [vmem:[#allocation2 + $0x7a] ss:$8 sps:$4 sm:$0xff]  }
 0x692   : > { %11946 = vmatprep.subr.mxu1 %v8107_v47  ;;  %11848 = vmatprep.mubr.f32.mxu0 %v12566_v53  ;;  %v8459_v51 = vld [vmem:[#allocation12 + $0x3c8] sm:$0xff]  ;;  %v8280_v53 = vld [vmem:[#allocation12 + $0x340] sm:$0xff] }
 0x693   : > { %11892 = vmatprep.mubr.f32.mxu1 %v12567_v58  ;;  %11903 = vmatpush3.msra.mxu0 %v7929_v28  ;;  %v12588_v28 = vld [vmem:[#allocation2 + $0x79] ss:$8 sps:$4 sm:$0xff]   ;;  %v8458_v58 = vld [vmem:[#allocation12 + $0x3c0] sm:$0xff] }
 0x694   : > { %11947 = vmatpush3.msra.mxu1 %v8107_v47  ;;  %11904 = vmatprep.subr.mxu0 %v7928_v38  ;;  %v8281_v47 = vld [vmem:[#allocation12 + $0x348] sm:$0xff] }
 0x695   : > { %11948 = vmatprep.subr.mxu1 %v8106_v55  ;;  %11905 = vmatpush3.msra.mxu0 %v7928_v38  ;;  %v12590_v38 = vld [vmem:[#allocation2 + $0x10] ss:$8 sps:$4 sm:$0xff]  }
 0x696   : > { %11949 = vmatpush3.msra.mxu1 %v8106_v55  ;;  %11849 = vmatmul.mubr.f32.gmra.mxu0 %v12568_v59  ;;  %v12591_v55 = vld [vmem:[#allocation2 + $0x11] ss:$8 sps:$4 sm:$0xff]   ;;  %v8278_v59 = vld [vmem:[#allocation12 + $0x330] sm:$0xff] }
 0x697   : > { %11893 = vmatmul.mubr.f32.gmra.mxu1 %v12569_v9  ;;  %11906 = vmatprep.subr.mxu0 %v7927_v60  ;;  %v8456_v9 = vld [vmem:[#allocation12 + $0x3b0] sm:$0xff] }
 0x698   : > { %11950 = vmatprep.subr.mxu1 %v8105_v4  ;;  %11851 = vmatprep.mubr.f32.mxu0 %v12570_v52  ;;  %v8455_v52 = vld [vmem:[#allocation12 + $0x3a8] sm:$0xff] }
 0x699   : > { %11895 = vmatprep.mubr.f32.mxu1 %v12571_v24  ;;  %11907 = vmatpush3.msra.mxu0 %v7927_v60  ;;  %v8279_v60 = vld [vmem:[#allocation12 + $0x338] sm:$0xff]  ;;  %v8276_v24 = vld [vmem:[#allocation12 + $0x320] sm:$0xff] }
 0x69a   : > { %11951 = vmatpush3.msra.mxu1 %v8105_v4  ;;  %11908 = vmatprep.subr.mxu0 %v7926_v43  ;;  %v8457_v4 = vld [vmem:[#allocation12 + $0x3b8] sm:$0xff] }
 0x69b   : > { %11952 = vmatprep.subr.mxu1 %v8104_v49  ;;  %11909 = vmatpush3.msra.mxu0 %v7926_v43  ;;  %v8277_v43 = vld [vmem:[#allocation12 + $0x328] sm:$0xff] }
 0x69c   : > { %11953 = vmatpush3.msra.mxu1 %v8104_v49  ;;  %11852 = vmatmul.mubr.f32.gmra.mxu0 %v12572_v63  ;;  %v8454_v49 = vld [vmem:[#allocation12 + $0x3a0] sm:$0xff]  ;;  %v8453_v63 = vld [vmem:[#allocation12 + $0x398] sm:$0xff] }
 0x69d   : > { %11896 = vmatmul.mubr.f32.gmra.mxu1 %v12573_v50  ;;  %11910 = vmatprep.subr.mxu0 %v7925_v14  ;;  %v8452_v50 = vld [vmem:[#allocation12 + $0x390] sm:$0xff] }
 0x69e   : > { %11954 = vmatprep.subr.mxu1 %v8103_v1  ;;  %11911 = vmatpush3.msra.mxu0 %v7925_v14  ;;  %v8275_v14 = vld [vmem:[#allocation12 + $0x318] sm:$0xff] }
 0x69f   : > { %11930 = vmatprep.mubr.f32.mxu0 %v12574_v11  ;;  %11955 = vmatpush3.msra.mxu1 %v8103_v1  ;;  %v8274_v1 = vld [vmem:[#allocation12 + $0x310] sm:$0xff]  ;;  %v8451_v11 = vld [vmem:[#allocation12 + $0x388] sm:$0xff] }
 0x6a0   : > { %11974 = vmatprep.mubr.f32.mxu1 %v12575_v19  ;;  %11912 = vmatprep.subr.mxu0 %v7924_v57  ;;  %v8272_v19 = vld [vmem:[#allocation12 + $0x300] sm:$0xff] }
 0x6a1   : > { %11956 = vmatprep.subr.mxu1 %v8102_v21  ;;  %11913 = vmatpush3.msra.mxu0 %v7924_v57  ;;  %v8273_v57 = vld [vmem:[#allocation12 + $0x308] sm:$0xff] }
 0x6a2   : > { %11957 = vmatpush3.msra.mxu1 %v8102_v21  ;;  %11914 = vmatprep.subr.mxu0 %v7923_v0  ;;  %v8450_v21 = vld [vmem:[#allocation12 + $0x380] sm:$0xff] }
 0x6a3   : > { %11958 = vmatprep.subr.mxu1 %v8101_v13  ;;  %11915 = vmatpush3.msra.mxu0 %v7923_v0  ;;  %v12592_v0 = vld [vmem:[#allocation2 + $0x20] ss:$8 sps:$4 sm:$0xff]  }
 0x6a4   : > { %11959 = vmatpush3.msra.mxu1 %v8101_v13  ;;  %11916 = vmatprep.subr.mxu0 %v7922_v61  ;;  %v8643_v13 = vld [vmem:[#allocation12 + $0x478] sm:$0xff] }
 0x6a5   : > { %11960 = vmatprep.subr.mxu1 %v8100_v12  ;;  %11917 = vmatpush3.msra.mxu0 %v7922_v61  ;;  %v12593_v61 = vld [vmem:[#allocation2 + $0x21] ss:$8 sps:$4 sm:$0xff]  }
 0x6a6   : > { %11961 = vmatpush3.msra.mxu1 %v8100_v12  ;;  %11918 = vmatprep.subr.mxu0 %v7921_v8  ;;  %v12594_v12 = vld [vmem:[#allocation2 + $0x30] ss:$8 sps:$4 sm:$0xff]  }
 0x6a7   : > { %11962 = vmatprep.subr.mxu1 %v8099_v56  ;;  %11919 = vmatpush3.msra.mxu0 %v7921_v8  ;;  %v12595_v8 = vld [vmem:[#allocation2 + $0x31] ss:$8 sps:$4 sm:$0xff]  }
 0x6a8   : > { %11963 = vmatpush3.msra.mxu1 %v8099_v56  ;;  %11920 = vmatprep.subr.mxu0 %v7920_v3  ;;  %v8642_v56 = vld [vmem:[#allocation12 + $0x470] sm:$0xff] }
 0x6a9   : > { %11964 = vmatprep.subr.mxu1 %v8098_v16  ;;  %11921 = vmatpush3.msra.mxu0 %v7920_v3  ;;  %v12596_v3 = vld [vmem:[#allocation2 + $0x40] ss:$8 sps:$4 sm:$0xff]  }
 0x6aa   : > { %11965 = vmatpush3.msra.mxu1 %v8098_v16  ;;  %11922 = vmatprep.subr.mxu0 %v7919_v6  ;;  %v8641_v16 = vld [vmem:[#allocation12 + $0x468] sm:$0xff] }
 0x6ab   : > { %11966 = vmatprep.subr.mxu1 %v8097_v34  ;;  %11923 = vmatpush3.msra.mxu0 %v7919_v6  ;;  %v12597_v6 = vld [vmem:[#allocation2 + $0x41] ss:$8 sps:$4 sm:$0xff]  }
 0x6ac   : > { %11967 = vmatpush3.msra.mxu1 %v8097_v34  ;;  %11924 = vmatprep.subr.mxu0 %v7918_v2  ;;  %v12598_v34 = vld [vmem:[#allocation2 + $0x50] ss:$8 sps:$4 sm:$0xff]  }
 0x6ad   : > { %11968 = vmatprep.subr.mxu1 %v8096_v26  ;;  %11925 = vmatpush3.msra.mxu0 %v7918_v2  ;;  %v12599_v2 = vld [vmem:[#allocation2 + $0x51] ss:$8 sps:$4 sm:$0xff]  }
 0x6ae   : > { %11969 = vmatpush3.msra.mxu1 %v8096_v26  ;;  %11926 = vmatprep.subr.mxu0 %v7917_v18  ;;  %v8640_v26 = vld [vmem:[#allocation12 + $0x460] sm:$0xff] }
 0x6af   : > { %11970 = vmatprep.subr.mxu1 %v8095_v17  ;;  %11927 = vmatpush3.msra.mxu0 %v7917_v18  ;;  %v12600_v18 = vld [vmem:[#allocation2 + $0x60] ss:$8 sps:$4 sm:$0xff]  }
 0x6b0   : > { %11971 = vmatpush3.msra.mxu1 %v8095_v17  ;;  %11928 = vmatprep.subr.mxu0 %v7916_v40  ;;  %v8639_v17 = vld [vmem:[#allocation12 + $0x458] sm:$0xff] }
 0x6b1   : > { %11972 = vmatprep.subr.mxu1 %v8094_v25  ;;  %11929 = vmatpush3.msra.mxu0 %v7916_v40  ;;  %v12601_v40 = vld [vmem:[#allocation2 + $0x61] ss:$8 sps:$4 sm:$0xff]  }
 0x6b2   : > { %11973 = vmatpush3.msra.mxu1 %v8094_v25  ;;  %11931 = vmatmul.mubr.f32.vlgmr.msra.gmra.mxu0 %v12576_v5  ;;  %v12602_v25 = vld [vmem:[#allocation2 + $0x70] ss:$8 sps:$4 sm:$0xff]  }
 0x6b3   : > { %11975 = vmatmul.mubr.f32.vlgmr.msra.gmra.mxu1 %v12577_v15  ;;  %11986 = vmatprep.subr.mxu0 %v8287_v22  ;;  %v12603_v5 = vld [vmem:[#allocation2 + $0x71] ss:$8 sps:$4 sm:$0xff]   ;;  %v12604_v15 = vld [vmem:[#allocation2 + $0x80] ss:$8 sps:$4 sm:$0xff]  }
 0x6b4   : > { %12030 = vmatprep.subr.mxu1 %v8465_v54  ;;  %11933 = vmatprep.mubr.f32.mxu0 %v12578_v30  ;;  %v12605_v30 = vld [vmem:[#allocation2 + $0x81] ss:$8 sps:$4 sm:$0xff]  }
 0x6b5   : > { %11977 = vmatprep.mubr.f32.mxu1 %v12579_v32  ;;  %11987 = vmatpush3.msra.mxu0 %v8287_v22  ;;  %v8638_v22 = vld [vmem:[#allocation12 + $0x450] sm:$0xff]  ;;  %v12606_v32 = vld [vmem:[#allocation2 + $0x12] ss:$8 sps:$4 sm:$0xff]  }
 0x6b6   : > { %12031 = vmatpush3.msra.mxu1 %v8465_v54  ;;  %11988 = vmatprep.subr.mxu0 %v8286_v31  ;;  %v8637_v54 = vld [vmem:[#allocation12 + $0x448] sm:$0xff] }
 0x6b7   : > { %12032 = vmatprep.subr.mxu1 %v8464_v23  ;;  %11989 = vmatpush3.msra.mxu0 %v8286_v31  ;;  %v8636_v31 = vld [vmem:[#allocation12 + $0x440] sm:$0xff] }
 0x6b8   : > { %12033 = vmatpush3.msra.mxu1 %v8464_v23  ;;  %11934 = vmatmul.mubr.f32.gmra.mxu0 %v12580_v62  ;;  %v12607_v23 = vld [vmem:[#allocation2 + $0x52] ss:$8 sps:$4 sm:$0xff]   ;;  %v8635_v62 = vld [vmem:[#allocation12 + $0x438] sm:$0xff] }
 0x6b9   : > { %11978 = vmatmul.mubr.f32.gmra.mxu1 %v12581_v7  ;;  %11990 = vmatprep.subr.mxu0 %v8285_v10  ;;  %v8633_v7 = vld [vmem:[#allocation12 + $0x428] sm:$0xff] }
 0x6ba   : > { %12034 = vmatprep.subr.mxu1 %v8463_v37  ;;  %11936 = vmatprep.mubr.f32.mxu0 %v12582_v29  ;;  %v8631_v29 = vld [vmem:[#allocation12 + $0x418] sm:$0xff] }
 0x6bb   : > { %11980 = vmatprep.mubr.f32.mxu1 %v12583_v45  ;;  %11991 = vmatpush3.msra.mxu0 %v8285_v10  ;;  %v8634_v10 = vld [vmem:[#allocation12 + $0x430] sm:$0xff] }
 0x6bc   : > { %12035 = vmatpush3.msra.mxu1 %v8463_v37  ;;  %11992 = vmatprep.subr.mxu0 %v8284_v33  ;;  %v8632_v37 = vld [vmem:[#allocation12 + $0x420] sm:$0xff]  ;;  %v8630_v45 = vld [vmem:[#allocation12 + $0x410] sm:$0xff] }
 0x6bd   : > { %12036 = vmatprep.subr.mxu1 %v8462_v35  ;;  %11993 = vmatpush3.msra.mxu0 %v8284_v33  ;;  %v8629_v33 = vld [vmem:[#allocation12 + $0x408] sm:$0xff] }
 0x6be   : > { %12037 = vmatpush3.msra.mxu1 %v8462_v35  ;;  %11937 = vmatmul.mubr.f32.gmra.mxu0 %v12584_v48  ;;  %v8628_v35 = vld [vmem:[#allocation12 + $0x400] sm:$0xff]  ;;  %v12608_v48 = vld [vmem:[#allocation2 + $0x22] ss:$8 sps:$4 sm:$0xff]  }
 0x6bf   : > { %11981 = vmatmul.mubr.f32.gmra.mxu1 %v12585_v41  ;;  %11994 = vmatprep.subr.mxu0 %v8283_v44  ;;  %v12610_v41 = vld [vmem:[#allocation2 + $0x32] ss:$8 sps:$4 sm:$0xff]  }
 0x6c0   : > { %12038 = vmatprep.subr.mxu1 %v8461_v42  ;;  %11939 = vmatprep.mubr.f32.mxu0 %v12586_v39  ;;  %v12612_v39 = vld [vmem:[#allocation2 + $0x42] ss:$8 sps:$4 sm:$0xff]  }
 0x6c1   : > { %11983 = vmatprep.mubr.f32.mxu1 %v12587_v20  ;;  %11995 = vmatpush3.msra.mxu0 %v8283_v44  ;;  %v12609_v44 = vld [vmem:[#allocation2 + $0x62] ss:$8 sps:$4 sm:$0xff]  }
 0x6c2   : > { %12039 = vmatpush3.msra.mxu1 %v8461_v42  ;;  %11996 = vmatprep.subr.mxu0 %v8282_v36  ;;  %v12611_v42 = vld [vmem:[#allocation2 + $0x72] ss:$8 sps:$4 sm:$0xff]   ;;  %v12613_v20 = vld [vmem:[#allocation2 + $0x82] ss:$8 sps:$4 sm:$0xff]  }
 0x6c3   : > { %12040 = vmatprep.subr.mxu1 %v8460_v27  ;;  %11997 = vmatpush3.msra.mxu0 %v8282_v36 }
 0x6c4   : > { %12041 = vmatpush3.msra.mxu1 %v8460_v27  ;;  %11940 = vmatmul.mubr.f32.gmra.mxu0 %v12588_v28 }
 0x6c5   : > { %11984 = vmatmul.mubr.f32.gmra.mxu1 %v12589_v46  ;;  %11998 = vmatprep.subr.mxu0 %v8281_v47 }
 0x6c6   : > { %12042 = vmatprep.subr.mxu1 %v8459_v51  ;;  %11999 = vmatpush3.msra.mxu0 %v8281_v47 }
 0x6c7   : > { %12018 = vmatprep.mubr.f32.mxu0 %v12590_v38  ;;  %12043 = vmatpush3.msra.mxu1 %v8459_v51 }
 0x6c8   : > { %12062 = vmatprep.mubr.f32.mxu1 %v12591_v55  ;;  %12000 = vmatprep.subr.mxu0 %v8280_v53 }
 0x6c9   : > { %12044 = vmatprep.subr.mxu1 %v8458_v58  ;;  %12001 = vmatpush3.msra.mxu0 %v8280_v53 }
 0x6ca   : > { %12045 = vmatpush3.msra.mxu1 %v8458_v58  ;;  %12002 = vmatprep.subr.mxu0 %v8279_v60 }
 0x6cb   : > { %12046 = vmatprep.subr.mxu1 %v8457_v4  ;;  %12003 = vmatpush3.msra.mxu0 %v8279_v60 }
 0x6cc   : > { %12047 = vmatpush3.msra.mxu1 %v8457_v4  ;;  %12004 = vmatprep.subr.mxu0 %v8278_v59 }
 0x6cd   : > { %12048 = vmatprep.subr.mxu1 %v8456_v9  ;;  %12005 = vmatpush3.msra.mxu0 %v8278_v59 }
 0x6ce   : > { %12049 = vmatpush3.msra.mxu1 %v8456_v9  ;;  %12006 = vmatprep.subr.mxu0 %v8277_v43 }
 0x6cf   : > { %12050 = vmatprep.subr.mxu1 %v8455_v52  ;;  %12007 = vmatpush3.msra.mxu0 %v8277_v43 }
 0x6d0   : > { %12051 = vmatpush3.msra.mxu1 %v8455_v52  ;;  %12008 = vmatprep.subr.mxu0 %v8276_v24 }
 0x6d1   : > { %12052 = vmatprep.subr.mxu1 %v8454_v49  ;;  %12009 = vmatpush3.msra.mxu0 %v8276_v24 }
 0x6d2   : > { %12053 = vmatpush3.msra.mxu1 %v8454_v49  ;;  %12010 = vmatprep.subr.mxu0 %v8275_v14 }
 0x6d3   : > { %12054 = vmatprep.subr.mxu1 %v8453_v63  ;;  %12011 = vmatpush3.msra.mxu0 %v8275_v14 }
 0x6d4   : > { %12055 = vmatpush3.msra.mxu1 %v8453_v63  ;;  %12012 = vmatprep.subr.mxu0 %v8274_v1 }
 0x6d5   : > { %12056 = vmatprep.subr.mxu1 %v8452_v50  ;;  %12013 = vmatpush3.msra.mxu0 %v8274_v1 }
 0x6d6   : > { %12057 = vmatpush3.msra.mxu1 %v8452_v50  ;;  %12014 = vmatprep.subr.mxu0 %v8273_v57 }
 0x6d7   : > { %12058 = vmatprep.subr.mxu1 %v8451_v11  ;;  %12015 = vmatpush3.msra.mxu0 %v8273_v57 }
 0x6d8   : > { %12059 = vmatpush3.msra.mxu1 %v8451_v11  ;;  %12016 = vmatprep.subr.mxu0 %v8272_v19 }
 0x6d9   : > { %12060 = vmatprep.subr.mxu1 %v8450_v21  ;;  %12017 = vmatpush3.msra.mxu0 %v8272_v19 }
 0x6da   : > { %12061 = vmatpush3.msra.mxu1 %v8450_v21  ;;  %12019 = vmatmul.mubr.f32.vlgmr.msra.gmra.mxu0 %v12592_v0 }
 0x6db   : > { %12063 = vmatmul.mubr.f32.vlgmr.msra.gmra.mxu1 %v12593_v61  ;;  %12074 = vmatprep.subr.mxu0 %v8643_v13 }
 0x6dc   : > { %12118 = vmatprep.subr.mxu1 %v8643_v13  ;;  %12021 = vmatprep.mubr.f32.mxu0 %v12594_v12 }
 0x6dd   : > { %12065 = vmatprep.mubr.f32.mxu1 %v12595_v8  ;;  %12075 = vmatpush3.msra.mxu0 %v8643_v13 }
 0x6de   : > { %12134 = vmatpush3.msra.mxu1 %v8643_v13  ;;  %12076 = vmatprep.subr.mxu0 %v8642_v56 }
 0x6df   : > { %12119 = vmatprep.subr.mxu1 %v8642_v56  ;;  %12077 = vmatpush3.msra.mxu0 %v8642_v56 }
 0x6e0   : > { %12135 = vmatpush3.msra.mxu1 %v8642_v56  ;;  %12022 = vmatmul.mubr.f32.gmra.mxu0 %v12596_v3 }
 0x6e1   : > { %12066 = vmatmul.mubr.f32.gmra.mxu1 %v12597_v6  ;;  %12078 = vmatprep.subr.mxu0 %v8641_v16 }
 0x6e2   : > { %12120 = vmatprep.subr.mxu1 %v8641_v16  ;;  %12024 = vmatprep.mubr.f32.mxu0 %v12598_v34 }
 0x6e3   : > { %12068 = vmatprep.mubr.f32.mxu1 %v12599_v2  ;;  %12079 = vmatpush3.msra.mxu0 %v8641_v16 }
 0x6e4   : > { %12136 = vmatpush3.msra.mxu1 %v8641_v16  ;;  %12080 = vmatprep.subr.mxu0 %v8640_v26 }
 0x6e5   : > { %12121 = vmatprep.subr.mxu1 %v8640_v26  ;;  %12081 = vmatpush3.msra.mxu0 %v8640_v26 }
 0x6e6   : > { %12137 = vmatpush3.msra.mxu1 %v8640_v26  ;;  %12025 = vmatmul.mubr.f32.gmra.mxu0 %v12600_v18 }
 0x6e7   : > { %12069 = vmatmul.mubr.f32.gmra.mxu1 %v12601_v40  ;;  %12082 = vmatprep.subr.mxu0 %v8639_v17 }
 0x6e8   : > { %12122 = vmatprep.subr.mxu1 %v8639_v17  ;;  %12027 = vmatprep.mubr.f32.mxu0 %v12602_v25 }
 0x6e9   : > { %12071 = vmatprep.mubr.f32.mxu1 %v12603_v5  ;;  %12083 = vmatpush3.msra.mxu0 %v8639_v17 }
 0x6ea   : > { %12138 = vmatpush3.msra.mxu1 %v8639_v17  ;;  %12084 = vmatprep.subr.mxu0 %v8638_v22 }
 0x6eb   : > { %12123 = vmatprep.subr.mxu1 %v8638_v22  ;;  %12085 = vmatpush3.msra.mxu0 %v8638_v22 }
 0x6ec   : > { %12139 = vmatpush3.msra.mxu1 %v8638_v22  ;;  %12028 = vmatmul.mubr.f32.gmra.mxu0 %v12604_v15 }
 0x6ed   : > { %12072 = vmatmul.mubr.f32.gmra.mxu1 %v12605_v30  ;;  %12086 = vmatprep.subr.mxu0 %v8637_v54 }
 0x6ee   : > { %12124 = vmatprep.subr.mxu1 %v8637_v54  ;;  %12087 = vmatpush3.msra.mxu0 %v8637_v54 }
 0x6ef   : > { %12140 = vmatpush3.msra.mxu1 %v8637_v54  ;;  %12106 = vmatprep.mubr.f32.mxu0 %v12606_v32 }
 0x6f0   : > { %12112 = vmatprep.mubr.f32.mxu1 %v12607_v23  ;;  %12088 = vmatprep.subr.mxu0 %v8636_v31 }
 0x6f1   : > { %12125 = vmatprep.subr.mxu1 %v8636_v31  ;;  %12089 = vmatpush3.msra.mxu0 %v8636_v31 }
 0x6f2   : > { %12141 = vmatpush3.msra.mxu1 %v8636_v31  ;;  %12090 = vmatprep.subr.mxu0 %v8635_v62 }
 0x6f3   : > { %12126 = vmatprep.subr.mxu1 %v8635_v62  ;;  %12091 = vmatpush3.msra.mxu0 %v8635_v62 }
 0x6f4   : > { %12142 = vmatpush3.msra.mxu1 %v8635_v62  ;;  %12092 = vmatprep.subr.mxu0 %v8634_v10 }
 0x6f5   : > { %12127 = vmatprep.subr.mxu1 %v8634_v10  ;;  %12093 = vmatpush3.msra.mxu0 %v8634_v10 }
 0x6f6   : > { %12143 = vmatpush3.msra.mxu1 %v8634_v10  ;;  %12094 = vmatprep.subr.mxu0 %v8633_v7 }
 0x6f7   : > { %12128 = vmatprep.subr.mxu1 %v8633_v7  ;;  %12095 = vmatpush3.msra.mxu0 %v8633_v7 }
 0x6f8   : > { %12144 = vmatpush3.msra.mxu1 %v8633_v7  ;;  %12096 = vmatprep.subr.mxu0 %v8632_v37 }
 0x6f9   : > { %12129 = vmatprep.subr.mxu1 %v8632_v37  ;;  %12097 = vmatpush3.msra.mxu0 %v8632_v37 }
 0x6fa   : > { %12145 = vmatpush3.msra.mxu1 %v8632_v37  ;;  %12098 = vmatprep.subr.mxu0 %v8631_v29 }
 0x6fb   : > { %12130 = vmatprep.subr.mxu1 %v8631_v29  ;;  %12099 = vmatpush3.msra.mxu0 %v8631_v29 }
 0x6fc   : > { %12146 = vmatpush3.msra.mxu1 %v8631_v29  ;;  %12100 = vmatprep.subr.mxu0 %v8630_v45 }
 0x6fd   : > { %12131 = vmatprep.subr.mxu1 %v8630_v45  ;;  %12101 = vmatpush3.msra.mxu0 %v8630_v45 }
 0x6fe   : > { %12147 = vmatpush3.msra.mxu1 %v8630_v45  ;;  %12102 = vmatprep.subr.mxu0 %v8629_v33 }
 0x6ff   : > { %12132 = vmatprep.subr.mxu1 %v8629_v33  ;;  %12103 = vmatpush3.msra.mxu0 %v8629_v33 }
 0x700   : > { %12148 = vmatpush3.msra.mxu1 %v8629_v33  ;;  %12104 = vmatprep.subr.mxu0 %v8628_v35 }
 0x701   : > { %12133 = vmatprep.subr.mxu1 %v8628_v35  ;;  %12105 = vmatpush3.msra.mxu0 %v8628_v35 }
 0x702   : > { %12149 = vmatpush3.msra.mxu1 %v8628_v35  ;;  %12107 = vmatmul.mubr.f32.vlgmr.msra.gmra.mxu0 %v12608_v48 }
 0x703   : > { %12113 = vmatmul.mubr.f32.vlgmr.msra.gmra.mxu1 %v12609_v44  ;;  %12109 = vmatprep.mubr.f32.mxu0 %v12610_v41 }
 0x704   : > { %12115 = vmatprep.mubr.f32.mxu1 %v12611_v42 }
 0x706   : > { %12110 = vmatmul.mubr.f32.gmra.mxu0 %v12612_v39 }
 0x707   : > { %12116 = vmatmul.mubr.f32.gmra.mxu1 %v12613_v20 }
 0x723   : > { %v11756_v36 = vpop.f32.mrf.mxu0 }
 0x724   : > { %v11800_v27 = vpop.f32.mrf.mxu1 }
 0x725   : > { %v7367_v28 = vpop.f32.mrf.mxu0  ;;  %v7510_v29 = vadd.f32 %v11800_v27, %v11756_v36 }
 0x726   : > { %v7504_v47 = vpop.f32.mrf.mxu1 }
 0x727   : > { %v7505_v35 = vadd.f32 %v7504_v47, %v7367_v28 }
 0x729   : > { %v11759_v46 = vpop.f32.mrf.mxu0 }
 0x72a   : > { %v11803_v51 = vpop.f32.mrf.mxu1 }
 0x72b   : > { %v7377_v38 = vpop.f32.mrf.mxu0  ;;  %v7520_v39 = vadd.f32 %v11803_v51, %v11759_v46 }
 0x72c   : > { %v7514_v53 = vpop.f32.mrf.mxu1 }
 0x72f   : > { %v11762_v55 = vpop.f32.mrf.mxu0 }
 0x730   : > { %v11806_v58 = vpop.f32.mrf.mxu1 }
 0x731   : > { %v7387_v60 = vpop.f32.mrf.mxu0  ;;  %v7530_v45 = vadd.f32 %v11806_v58, %v11762_v55 }
 0x732   : > { %v7524_v4 = vpop.f32.mrf.mxu1 }
 0x733   : > { %v7525_v41 = vadd.f32 %v7524_v4, %v7387_v60 }
 0x735   : > { %v11765_v59 = vpop.f32.mrf.mxu0 }
 0x736   : > { %v11809_v9 = vpop.f32.mrf.mxu1 }
 0x737   : > { %v7397_v43 = vpop.f32.mrf.mxu0 }
 0x738   : > { %v7534_v52 = vpop.f32.mrf.mxu1 }
 0x739   : > { %v7535_v55 = vadd.f32 %v7534_v52, %v7397_v43 }
 0x74a   : > { %v11844_v24 = vpop.f32.mrf.mxu0 }
 0x74b   : > { %v11888_v49 = vpop.f32.mrf.mxu1  ;;  %v7714_v48 = vadd.f32 %v11844_v24, %v7510_v29 }
 0x74c   : > { %v7674_v14 = vpop.f32.mrf.mxu0 }
 0x74d   : > { %v7852_v63 = vpop.f32.mrf.mxu1  ;;  %v7713_v20 = vadd.f32 %v7674_v14, %v7505_v35 }
 0x74f   : > { %v7891_v47 = vadd.f32 %v7852_v63, %v7713_v20  ;;  %v12616_v20 = vld [vmem:[%s13115_s26] sm:$0xff]  }
 0x750   : > { %v11847_v1 = vpop.f32.mrf.mxu0 }
 0x751   : > { %v11891_v50 = vpop.f32.mrf.mxu1  ;;  %v7716_v27 = vadd.f32 %v11847_v1, %v7520_v39 }
 0x752   : > { %v7684_v57 = vpop.f32.mrf.mxu0 }
 0x753   : > { %v13404_v11 = vpop.f32.mrf.mxu1 }
 0x754   : > { %13592 = vst [vmem:[#allocation24_spill] sm:$0xff] %v13404_v11 }
 0x756   : > { %v11850_v19 = vpop.f32.mrf.mxu0 }
 0x757   : > { %v11894_v21 = vpop.f32.mrf.mxu1  ;;  %v7718_v42 = vadd.f32 %v11850_v19, %v7530_v45  ;;  %v7894_v45 = vadd.f32 %v11891_v50, %v7716_v27 }
 0x758   : > { %v7694_v0 = vpop.f32.mrf.mxu0 }
 0x759   : > { %v7872_v13 = vpop.f32.mrf.mxu1  ;;  %v7896_v58 = vadd.f32 %v11894_v21, %v7718_v42 }
 0x75b   : > { %v13598_v14 = vld [vmem:[#allocation24_spill] sm:$0xff] }
 0x75c   : > { %v11853_v61 = vpop.f32.mrf.mxu0 }
 0x75d   : > { %v11897_v12 = vpop.f32.mrf.mxu1 }
 0x75e   : > { %v7704_v8 = vpop.f32.mrf.mxu0 }
 0x75f   : > { %v7882_v56 = vpop.f32.mrf.mxu1  ;;  %v7719_v4 = vadd.f32 %v7704_v8, %v7535_v55 }
 0x761   : > { %v7897_v1 = vadd.f32 %v7882_v56, %v7719_v4 }
 0x772   : > { %v11932_v3 = vpop.f32.mrf.mxu0 }
 0x773   : > { %v11976_v16 = vpop.f32.mrf.mxu1 }
 0x774   : > { %v8030_v6 = vpop.f32.mrf.mxu0 }
 0x775   : > { %v8208_v34 = vpop.f32.mrf.mxu1  ;;  %v8069_v46 = vadd.f32 %v8030_v6, %v7891_v47 }
 0x777   : > { %v8247_v63 = vadd.f32 %v8208_v34, %v8069_v46 }
 0x778   : > { %v11935_v2 = vpop.f32.mrf.mxu0 }
 0x779   : > { %v13406_v26 = vpop.f32.mrf.mxu1 }
 0x77a   : > { %13593 = vst [vmem:[#allocation26_spill] sm:$0xff] %v13406_v26  ;;  %v8040_v18 = vpop.f32.mrf.mxu0  ;;  %v7717_v26 = vadd.f32 %v7694_v0, %v7525_v41 }
 0x77b   : > { %v13408_v17 = vpop.f32.mrf.mxu1 }
 0x77c   : > { %13594 = vst [vmem:[#allocation20_spill] sm:$0xff] %v13408_v17  ;;  %v7540_v17 = vadd.f32 %v11809_v9, %v11765_v59 }
 0x77e   : > { %v11938_v40 = vpop.f32.mrf.mxu0  ;;  %v7720_v28 = vadd.f32 %v11853_v61, %v7540_v17 }
 0x77f   : > { %v11982_v25 = vpop.f32.mrf.mxu1  ;;  %v8074_v60 = vadd.f32 %v11938_v40, %v7896_v58  ;;  %v12617_v58 = vld [vmem:[%s13115_s26 + $0x20] sm:$0xff]  }
 0x780   : > { %v8050_v5 = vpop.f32.mrf.mxu0  ;;  %v7898_v59 = vadd.f32 %v11897_v12, %v7720_v28 }
 0x781   : > { %v8228_v22 = vpop.f32.mrf.mxu1  ;;  %v8252_v43 = vadd.f32 %v11982_v25, %v8074_v60  ;;  %v13599_v50 = vld [vmem:[#allocation26_spill] sm:$0xff] }
 0x784   : > { %v11941_v15 = vpop.f32.mrf.mxu0 }
 0x785   : > { %v11985_v54 = vpop.f32.mrf.mxu1  ;;  %v8076_v52 = vadd.f32 %v11941_v15, %v7898_v59 }
 0x786   : > { %v8060_v30 = vpop.f32.mrf.mxu0 }
 0x787   : > { %v8238_v32 = vpop.f32.mrf.mxu1  ;;  %v8075_v8 = vadd.f32 %v8060_v30, %v7897_v1  ;;  %v8254_v12 = vadd.f32 %v11985_v54, %v8076_v52 }
 0x789   : > { %v8253_v34 = vadd.f32 %v8238_v32, %v8075_v8  ;;  %v12615_v32 = vld [vmem:[%s13115_s26 + $0x28] sm:$0xff]  }
 0x79a   : > { %v12020_v31 = vpop.f32.mrf.mxu0 }
 0x79b   : > { %v12064_v23 = vpop.f32.mrf.mxu1 }
 0x79c   : > { %v8386_v62 = vpop.f32.mrf.mxu0 }
 0x79d   : > { %v13410_v10 = vpop.f32.mrf.mxu1 }
 0x79e   : > { %13595 = vst [vmem:[#allocation23_spill] sm:$0xff] %v13410_v10  ;;  %v7515_v10 = vadd.f32 %v7514_v53, %v7377_v38 }
 0x7a0   : > { %v12023_v7 = vpop.f32.mrf.mxu0  ;;  %v7715_v24 = vadd.f32 %v7684_v57, %v7515_v10  ;;  %v12614_v10 = vld [vmem:[%s13115_s26 + $0x8] sm:$0xff]  }
 0x7a1   : > { %v13412_v37 = vpop.f32.mrf.mxu1 }
 0x7a2   : > { %13596 = vst [vmem:[#allocation21_spill] sm:$0xff] %v13412_v37  ;;  %v8396_v33 = vpop.f32.mrf.mxu0  ;;  %v7892_v37 = vadd.f32 %v11888_v49, %v7714_v48  ;;  %v7893_v38 = vadd.f32 %v13598_v14, %v7715_v24  ;;  %v8072_v49 = vadd.f32 %v11935_v2, %v7894_v45  ;;  %v12619_v14 = vld [vmem:[%s13115_s26 + $0x38] sm:$0xff]  }
 0x7a3   : > { %v13414_v44 = vpop.f32.mrf.mxu1 }
 0x7a4   : > { %13597 = vst [vmem:[#allocation25_spill] sm:$0xff] %v13414_v44  ;;  %v8070_v29 = vadd.f32 %v11932_v3, %v7892_v37  ;;  %v7895_v44 = vadd.f32 %v7872_v13, %v7717_v26  ;;  %v8071_v57 = vadd.f32 %v8040_v18, %v7893_v38  ;;  %v8250_v6 = vadd.f32 %v13599_v50, %v8072_v49 }
 0x7a5   : > { %v8425_v26 = vadd.f32 %v8386_v62, %v8247_v63  ;;  %v13601_v30 = vld [vmem:[#allocation23_spill] sm:$0xff] }
 0x7a6   : > { %v12026_v11 = vpop.f32.mrf.mxu0  ;;  %v8073_v9 = vadd.f32 %v8050_v5, %v7895_v44  ;;  %v8248_v53 = vadd.f32 %v11976_v16, %v8070_v29  ;;  %v13600_v16 = vld [vmem:[#allocation20_spill] sm:$0xff]  ;;  %v8428_v25 = vadd.f32 %v12023_v7, %v8250_v6 }
 0x7a7   : > { %v12070_v36 = vpop.f32.mrf.mxu1  ;;  %v8430_v3 = vadd.f32 %v12026_v11, %v8252_v43  ;;  %v8249_v2 = vadd.f32 %v13600_v16, %v8071_v57  ;;  %v13422_v11 = vld [vmem:[%s13515_s10] ss:$0 sm:$0xff]  ;;  %v8603_v54 = vadd.f32 %v13601_v30, %v8425_v26 }
 0x7a8   : > { %v8406_v19 = vpop.f32.mrf.mxu0  ;;  %v8426_v0 = vadd.f32 %v12020_v31, %v8248_v53  ;;  %v8251_v61 = vadd.f32 %v8228_v22, %v8073_v9 }
 0x7a9   : > { %v8584_v51 = vpop.f32.mrf.mxu1  ;;  %v8608_v18 = vadd.f32 %v12070_v36, %v8430_v3  ;;  %v8427_v31 = vadd.f32 %v8396_v33, %v8249_v2  ;;  %v13602_v44 = vld [vmem:[#allocation21_spill] sm:$0xff]  ;;  %v12621_v2 = vld [vmem:[%s13115_s26 + $0x30] sm:$0xff]  }
 0x7aa   : > { %v8429_v17 = vadd.f32 %v8406_v19, %v8251_v61  ;;  %v8604_v56 = vadd.f32 %v12064_v23, %v8426_v0  ;;  %v8606_v41 = vadd.f32 %v13602_v44, %v8428_v25  ;;  %v12618_v19 = vld [vmem:[%s13115_s26 + $0x18] sm:$0xff]  }
 0x7ab   : > { %v13603_v47 = vld [vmem:[#allocation25_spill] sm:$0xff] }
 0x7ac   : > { %v12029_v21 = vpop.f32.mrf.mxu0  ;;  %v8607_v37 = vadd.f32 %v8584_v51, %v8429_v17  ;;  %v8605_v24 = vadd.f32 %v13603_v47, %v8427_v31 }
 0x7ad   : > { %v12073_v13 = vpop.f32.mrf.mxu1  ;;  %v8432_v15 = vadd.f32 %v12029_v21, %v8254_v12  ;;  %v12620_v12 = vld [vmem:[%s13115_s26 + $0x10] sm:$0xff]  }
 0x7ae   : > { %v8416_v40 = vpop.f32.mrf.mxu0 }
 0x7af   : > { %v8594_v5 = vpop.f32.mrf.mxu1  ;;  %v8431_v7 = vadd.f32 %v8416_v40, %v8253_v34  ;;  %v8610_v36 = vadd.f32 %v12073_v13, %v8432_v15 }
 0x7b1   : > { %v8609_v46 = vadd.f32 %v8594_v5, %v8431_v7 }
 0x7c2   : > { %v12108_v22 = vpop.f32.mrf.mxu0 }
 0x7c3   : > { %v8782_v62 = vadd.f32 %v12108_v22, %v8604_v56  ;;  %v12114_v23 = vpop.f32.mrf.mxu1 }
 0x7c4   : > { %v8786_v35 = vadd.f32 %v12114_v23, %v8608_v18  ;;  %v8742_v48 = vpop.f32.mrf.mxu0 }
 0x7c5   : > { %v8797_v42 = vadd.f32 %v13422_v11, %v8782_v62  ;;  %v8781_v39 = vadd.f32 %v8742_v48, %v8603_v54  ;;  %v8762_v27 = vpop.f32.mrf.mxu1 }
 0x7c6   : > { %v8801_v33 = vadd.f32 %v13422_v11, %v8786_v35  ;;  %v8785_v55 = vadd.f32 %v8762_v27, %v8607_v37  ;;  %v12111_v28 = vpop.f32.mrf.mxu0 }
 0x7c7   : > { %v8853_v29 = vadd.f32 %v12614_v10, %v8797_v42  ;;  %v8796_v4 = vadd.f32 %v13422_v11, %v8781_v39  ;;  %v8784_v60 = vadd.f32 %v12111_v28, %v8606_v41  ;;  %v12117_v45 = vpop.f32.mrf.mxu1 }
 0x7c8   : > { %v8857_v51 = vadd.f32 %v12615_v32, %v8801_v33  ;;  %v8800_v59 = vadd.f32 %v13422_v11, %v8785_v55  ;;  %v8788_v9 = vadd.f32 %v12117_v45, %v8610_v36  ;;  %v8752_v21 = vpop.f32.mrf.mxu0 }
 0x7c9   : > { %vm8861_vm0 = vcmp.gt.f32.partialorder %v8853_v29, 0.0  ;;  %v8869_v38 = vmul.f32 0.01, %v8853_v29  ;;  %v8852_v53 = vadd.f32 %v12616_v20, %v8796_v4  ;;  %v8799_v49 = vadd.f32 %v13422_v11, %v8784_v60  ;;  %v8772_v13 = vpop.f32.mrf.mxu1 }
 0x7ca   : > { %vm8865_vm1 = vcmp.gt.f32.partialorder %v8857_v51, 0.0  ;;  %v8873_v1 = vmul.f32 0.01, %v8857_v51  ;;  %v8856_v43 = vadd.f32 %v12617_v58, %v8800_v59  ;;  %v8803_v52 = vadd.f32 %v13422_v11, %v8788_v9 }
 0x7cb   : > { %v8877_v63 = vsel %vm8861_vm0, %v8853_v29, %v8869_v38  ;;  %vm8860_vm2 = vcmp.gt.f32.partialorder %v8852_v53, 0.0  ;;  %v8868_v57 = vmul.f32 0.01, %v8852_v53  ;;  %v8855_v0 = vadd.f32 %v12618_v19, %v8799_v49 }
 0x7cc   : > { %8885 = vst [vmem:[%s13441_s15 + $0x8] sm:$0xff] %v8877_v63  ;;  %v8881_v61 = vsel %vm8865_vm1, %v8857_v51, %v8873_v1  ;;  %vm8864_vm3 = vcmp.gt.f32.partialorder %v8856_v43, 0.0  ;;  %v8872_v8 = vmul.f32 0.01, %v8856_v43  ;;  %v8859_v3 = vadd.f32 %v12619_v14, %v8803_v52 }
 0x7cd   : > { %8889 = vst [vmem:[%s13441_s15 + $0x28] sm:$0xff] %v8881_v61  ;;  %v8876_v50 = vsel %vm8860_vm2, %v8852_v53, %v8868_v57  ;;  %vm8863_vm4 = vcmp.gt.f32.partialorder %v8855_v0, 0.0  ;;  %v8871_v6 = vmul.f32 0.01, %v8855_v0  ;;  %v8783_v26 = vadd.f32 %v8752_v21, %v8605_v24 }
 0x7ce   : > { %8884 = vst [vmem:[%s13441_s15] sm:$0xff] %v8876_v50  ;;  %v8880_v17 = vsel %vm8864_vm3, %v8856_v43, %v8872_v8  ;;  %vm8867_vm5 = vcmp.gt.f32.partialorder %v8859_v3, 0.0  ;;  %v8875_v40 = vmul.f32 0.01, %v8859_v3  ;;  %v8787_v16 = vadd.f32 %v8772_v13, %v8609_v46 }
 0x7cf   : > { %8888 = vst [vmem:[%s13441_s15 + $0x20] sm:$0xff] %v8880_v17  ;;  %v8879_v56 = vsel %vm8863_vm4, %v8855_v0, %v8871_v6  ;;  %v8798_v25 = vadd.f32 %v13422_v11, %v8783_v26 }
 0x7d0   : > { %8887 = vst [vmem:[%s13441_s15 + $0x18] sm:$0xff] %v8879_v56  ;;  %v8883_v5 = vsel %vm8867_vm5, %v8859_v3, %v8875_v40  ;;  %v8802_v34 = vadd.f32 %v13422_v11, %v8787_v16 }
 0x7d1   : > { %8891 = vst [vmem:[%s13441_s15 + $0x38] sm:$0xff] %v8883_v5  ;;  %v8854_v18 = vadd.f32 %v12620_v12, %v8798_v25 }
 0x7d2   : > { %v8858_v15 = vadd.f32 %v12621_v2, %v8802_v34 }
 0x7d3   : > { %vm8862_vm6 = vcmp.gt.f32.partialorder %v8854_v18, 0.0  ;;  %v8870_v22 = vmul.f32 0.01, %v8854_v18 }
 0x7d4   : > { %vm8866_vm7 = vcmp.gt.f32.partialorder %v8858_v15, 0.0  ;;  %v8874_v30 = vmul.f32 0.01, %v8858_v15 }
 0x7d5   : > { %v8878_v11 = vsel %vm8862_vm6, %v8854_v18, %v8870_v22 }
 0x7d6   : > { %8886 = vst [vmem:[%s13441_s15 + $0x10] sm:$0xff] %v8878_v11  ;;  %v8882_v54 = vsel %vm8866_vm7, %v8858_v15, %v8874_v30 }
 0x7d7   : > { %8890 = vst [vmem:[%s13441_s15 + $0x30] sm:$0xff] %v8882_v54 }
 0x7d8   : > { %12793 = shalt.err (!%p12790_p3)
}
 0x7d9   : > { %s12794_s21 = scalar_lea.hbm %s13458_s3, 1024  ;;  %s12798_s5 = scalar_lea.hbm %s13516_s11, 2048 }
 0x7da   : > { %p12795_p4 = scmp.ne.s32.totalorder %s13458_s3, %s12794_s21  ;;  %p12799_p2 = scmp.lt.s32.totalorder %s13458_s3, %s13516_s11 }
 0x7db   : > { %p12800_p7 = scmp.lt.s32.totalorder %s12798_s5, %s12794_s21 }
 0x7dc   : > { %p12796_p12 = pnand %p12795_p4, %p13604_p11 }
 0x7dd   : > { %p12801_p8 = por %p12800_p7, %p12799_p2 }
 0x7de   : > { %p12797_p6 = pneg %p12796_p12 }
 0x7e0   : > { %p12802_p10 = pnand %p12801_p8, %p12797_p6 }
 0x7e2   : > { %12805 = shalt.err (!%p12802_p10)
}
 0x7e3   : > { %s12870_s26 = smov 128   ;;  %s12871_s1 = smov 8  }
 0x7e4   : > { %12172 = dma.vmem_to_hbm [thread:$0]  (%p13604_p11), %s13460_s22, 1024, %s13458_s3, %s8893_s23, %s12870_s26, %s12870_s26, %s12871_s1  }
 0x7e5 PF: > { %s8921_s24 = sand.u32 1, %s12844_s17   ;;  %p13605_p0 = scmp.ne.s32.totalorder %s13544_s25, 0 }
 0x7e6   : > { %p13606_p13 = scmp.ge.s32.totalorder %s12856_s20, 2  ;;  %s8922_s29 = scalar_lea.sflag [#allocation5], %s8921_s24 }
 0x7e8   : > { %p12195_p5 = pnand %p13606_p13, %p13605_p0 }
 0x7ea   : > { %p12196_p9 = pneg %p12195_p5 }
 0x7ec   : > { %12839 = dma.done.wait (%p12196_p9), %s8922_s29, 1024  }
 0x7ed   : > { %12841 = vsyncadd (%p12196_p9), %s8922_s29, 4294966272  ;;  %p27_p1 = scmp.ge.s32.totalorder %s13043_s30, 4   ;;  %s13607_s17 = smov %s12848_s18 }
 0x7ee   : > { %s13608_s18 = smov %s12852_s19  ;;  %s13609_s19 = smov %s13055_s28 }
 0x7ef   : > { %s13610_s20 = smov %s13043_s30  ;;  %29 = sbr.rel (!%p27_p1) target bundleno = 14 (0xe), region = 172 }
 0x7f4   :  { %8927 = vsyncpa [#allocation4], 1 }
 0x7f5   :  { %8929 = vsyncpa [#allocation4 + $0x1], 1 }
 0x7f6   :  { %8930 = vsyncpa [#allocation7], 1 }
 0x7f7   :  { %8931 = vsyncpa [#allocation10], 1 }
 0x7f8   :  { %8932 = vsyncpa [#allocation13], 1 }
 0x7f9   :  { %8933 = vsyncpa [#allocation5], 1 }
 0x7fa   :  { %8935 = vsyncpa [#allocation5 + $0x1], 1 }

</bundles_post_ra>
